<compile_context>
chip_gen: v5e
topology: v5e:2x2
jax: 0.10.0
libtpu: 0.0.40
codegen_flags: <defaults>
</compile_context>

<pallas_src>
import numpy as np
import jax
import jax.numpy as jnp
from jax.experimental import pallas as pl
from jax.experimental.pallas import tpu as pltpu


# ----------------------------------------------------------------------------
# Pallas conv kernel: 3x3 conv (stride 1, pad 1) + folded eval-BN + ReLU
# ----------------------------------------------------------------------------
def _pick_tile_rows(h, w, target_rows=512):
    """Largest divisor of h such that the tile has <= target_rows output pixels."""
    best = 1
    for th in range(1, h + 1):
        if h % th == 0 and th * w <= target_rows:
            best = th
    return best


def conv3x3_bn_relu(xs_padded, w9s, shift, out_dtype):
    """3x3 conv + folded BatchNorm(eval) + ReLU over a (virtually) channel-
    concatenated input.

    xs_padded: list of NHWC bf16 inputs, each already zero-padded by 1 in H, W.
               Together they represent the channel-concatenated conv input.
    w9s:       list of (9, Cin_i, Cout) bf16 weights (tap-major, BN scale folded),
               one per input, split along the input-channel rows.
    shift:     (Cout,) f32 folded bias/BN shift.
    Returns (N, H, W, Cout) in out_dtype.
    """
    n, hp, wp, _ = xs_padded[0].shape
    for x in xs_padded:
        assert x.shape[:3] == (n, hp, wp)
    h, w = hp - 2, wp - 2
    cout = w9s[0].shape[-1]
    cins = [x.shape[-1] for x in xs_padded]
    th = _pick_tile_rows(h, w)
    n_tiles = h // th
    n_src = len(xs_padded)

    def kernel(*refs):
        x_refs = refs[:n_src]
        w_refs = refs[n_src:2 * n_src]
        shift_ref = refs[2 * n_src]
        o_ref = refs[2 * n_src + 1]

        row0 = pl.program_id(1) * th
        acc = jnp.zeros((th * w, cout), jnp.float32)
        for s in range(n_src):
            x_ref, w_ref, cin = x_refs[s], w_refs[s], cins[s]
            for dy in range(3):
                for dx in range(3):
                    # shifted halo view of the resident padded image
                    win = x_ref[0, pl.ds(row0 + dy, th), dx:dx + w, :]
                    acc = acc + jnp.dot(
                        win.reshape(th * w, cin),
                        w_ref[dy * 3 + dx],
                        preferred_element_type=jnp.float32,
                    )
        y = jnp.maximum(acc + shift_ref[...], 0.0)
        o_ref[0] = y.reshape(th, w, cout).astype(o_ref.dtype)

    in_specs = (
        # full padded image per batch element; block index is constant along the
        # inner (row-tile) grid axis so it stays resident in VMEM (fetched once)
        [pl.BlockSpec((1, hp, wp, c), lambda i, j: (i, 0, 0, 0)) for c in cins]
        + [pl.BlockSpec((9, c, cout), lambda i, j: (0, 0, 0)) for c in cins]
        + [pl.BlockSpec((1, cout), lambda i, j: (0, 0))]
    )

    out = pl.pallas_call(
        kernel,
        out_shape=jax.ShapeDtypeStruct((n, h, w, cout), out_dtype),
        grid=(n, n_tiles),
        in_specs=in_specs,
        out_specs=pl.BlockSpec((1, th, w, cout), lambda i, j: (i, j, 0, 0)),
        compiler_params=pltpu.CompilerParams(
            dimension_semantics=("parallel", "parallel")),
    )(*xs_padded, *w9s, shift.reshape(1, cout).astype(jnp.float32))
    return out


# ----------------------------------------------------------------------------
# Plain-JAX glue: bilinear 2x upsample (align_corners=True)
# ----------------------------------------------------------------------------
def _interp_matrix(n_in, n_out):
    a = np.zeros((n_out, n_in), np.float32)
    if n_in == 1:
        a[:, 0] = 1.0
        return jnp.asarray(a)
    src = np.arange(n_out, dtype=np.float64) * (n_in - 1) / (n_out - 1)
    lo = np.clip(np.floor(src).astype(np.int64), 0, n_in - 2)
    frac = (src - lo).astype(np.float32)
    a[np.arange(n_out), lo] += 1.0 - frac
    a[np.arange(n_out), lo + 1] += frac
    return jnp.asarray(a)


def upsample_bilinear2x(x_nhwc):
    # TODO(synk): bilinear (align_corners=True) interpolation kept as plain-JAX
    # glue (tiny dense interp matrices); the conv hot path is the Pallas kernel.
    n, h, w, c = x_nhwc.shape
    ah = _interp_matrix(h, 2 * h)
    aw = _interp_matrix(w, 2 * w)
    t = jnp.einsum("oh,nhwc->nowc", ah, x_nhwc)
    return jnp.einsum("pw,nowc->nopc", aw, t)


# ----------------------------------------------------------------------------
# Parameter preparation: fold eval-mode BN + conv bias into (weights, shift)
# ----------------------------------------------------------------------------
def _fold_conv_bn(raw, eps=1e-5):
    w, b = raw["w"], raw["b"]                       # w: (Cout, Cin, 3, 3)
    scale = raw["gamma"] / jnp.sqrt(raw["rvar"] + eps)
    cout, cin = w.shape[0], w.shape[1]
    w9 = jnp.transpose(w, (2, 3, 1, 0)).reshape(9, cin, cout)   # tap-major
    w9 = (w9 * scale[None, None, :]).astype(jnp.bfloat16)       # fold BN scale
    shift = (raw["beta"] + (b - raw["rmean"]) * scale).astype(jnp.float32)
    return w9, shift


def fold_up_params(raw1, raw2, c_skip):
    """raw1: conv(in_ch -> out_ch) whose input is cat([x2, x1]); raw2: out->out.
    c_skip = channel count of x2 (first in the concat)."""
    w9_1, shift1 = _fold_conv_bn(raw1)
    w9_2, shift2 = _fold_conv_bn(raw2)
    return {
        "conv1_w_skip": w9_1[:, :c_skip, :],   # weight rows acting on x2
        "conv1_w_up": w9_1[:, c_skip:, :],     # weight rows acting on upsampled x1
        "conv1_shift": shift1,
        "conv2_w": w9_2,
        "conv2_shift": shift2,
    }


# ----------------------------------------------------------------------------
# Up.forward
# ----------------------------------------------------------------------------
def up_forward(x1_nchw, x2_nchw, params):
    """Up.forward(x1, x2): bilinear-upsample x1, pad to x2's size,
    concat([x2, x1], dim=1) (realized as split weights, no HBM concat),
    then DoubleConv (two 3x3 conv + BN + ReLU).
    # TODO(synk): training-mode BatchNorm (batch statistics / running-stat
    # updates) is not implemented; eval-mode BN is folded into the conv.
    """
    x1 = jnp.transpose(x1_nchw, (0, 2, 3, 1))       # NCHW -> NHWC
    x2 = jnp.transpose(x2_nchw, (0, 2, 3, 1))
    x1 = upsample_bilinear2x(x1)
    diff_y = x2.shape[1] - x1.shape[1]
    diff_x = x2.shape[2] - x1.shape[2]
    # F.pad alignment fused with the 3x3-conv halo pad of 1 (single jnp.pad)
    x1p = jnp.pad(
        x1.astype(jnp.bfloat16),
        ((0, 0),
         (1 + diff_y // 2, 1 + diff_y - diff_y // 2),
         (1 + diff_x // 2, 1 + diff_x - diff_x // 2),
         (0, 0)))
    x2p = jnp.pad(x2.astype(jnp.bfloat16), ((0, 0), (1, 1), (1, 1), (0, 0)))

    # conv1: channel concat realized by splitting the weight rows per source
    y = conv3x3_bn_relu(
        [x2p, x1p],
        [params["conv1_w_skip"], params["conv1_w_up"]],
        params["conv1_shift"],
        out_dtype=jnp.bfloat16)                     # bf16 intermediate (half HBM)
    yp = jnp.pad(y, ((0, 0), (1, 1), (1, 1), (0, 0)))
    y = conv3x3_bn_relu([yp], [params["conv2_w"]], params["conv2_shift"],
                        out_dtype=jnp.float32)
    return jnp.transpose(y, (0, 3, 1, 2))           # NHWC -> NCHW


# ----------------------------------------------------------------------------
# Deterministic raw parameter init (PyTorch layouts) + plain-JAX reference
# ----------------------------------------------------------------------------
def _init_conv_bn_raw(key, cin, cout):
    ks = jax.random.split(key, 6)
    return {
        "w": jax.random.normal(ks[0], (cout, cin, 3, 3), jnp.float32)
             * np.sqrt(2.0 / (9 * cin)),
        "b": 0.01 * jax.random.normal(ks[1], (cout,), jnp.float32),
        "gamma": 1.0 + 0.1 * jax.random.normal(ks[2], (cout,), jnp.float32),
        "beta": 0.1 * jax.random.normal(ks[3], (cout,), jnp.float32),
        "rmean": 0.1 * jax.random.normal(ks[4], (cout,), jnp.float32),
        "rvar": 1.0 + 0.1 * jax.random.uniform(ks[5], (cout,), jnp.float32),
    }


def up_reference(x1_nchw, x2_nchw, raw1, raw2, eps=1e-5):
    """Pure-JAX f32 reference of Up.forward (eval-mode BN)."""
    def conv_bn_relu(x, p):
        y = jax.lax.conv_general_dilated(
            x, p["w"], window_strides=(1, 1), padding=((1, 1), (1, 1)),
            dimension_numbers=("NCHW", "OIHW", "NCHW"))
        y = y + p["b"][None, :, None, None]
        scale = p["gamma"] / jnp.sqrt(p["rvar"] + eps)
        y = (scale[None, :, None, None] * (y - p["rmean"][None, :, None, None])
             + p["beta"][None, :, None, None])
        return jnp.maximum(y, 0.0)

    x1u = jnp.transpose(
        upsample_bilinear2x(jnp.transpose(x1_nchw, (0, 2, 3, 1))), (0, 3, 1, 2))
    dy = x2_nchw.shape[2] - x1u.shape[2]
    dx = x2_nchw.shape[3] - x1u.shape[3]
    x1u = jnp.pad(x1u, ((0, 0), (0, 0),
                        (dy // 2, dy - dy // 2), (dx // 2, dx - dx // 2)))
    x = jnp.concatenate([x2_nchw, x1u], axis=1)
    return conv_bn_relu(conv_bn_relu(x, raw1), raw2)


# ----------------------------------------------------------------------------
if __name__ == "__main__":
    key = jax.random.PRNGKey(0)
    in_channels, out_channels = 256, 128            # Up(256, 128)
    c_up = in_channels // 2                         # channels of x1 (decoder path)
    c_skip = in_channels - c_up                     # channels of x2 (skip path)
    batch, h, w = 2, 16, 16                         # x2 spatial; x1 is h/2 x w/2

    x1 = jax.random.normal(jax.random.fold_in(key, 1),
                           (batch, c_up, h // 2, w // 2), jnp.float32)
    x2 = jax.random.normal(jax.random.fold_in(key, 2),
                           (batch, c_skip, h, w), jnp.float32)

    raw1 = _init_conv_bn_raw(jax.random.fold_in(key, 10), in_channels, out_channels)
    raw2 = _init_conv_bn_raw(jax.random.fold_in(key, 11), out_channels, out_channels)
    params = fold_up_params(raw1, raw2, c_skip)

    out = jax.jit(up_forward)(x1, x2, params)
    out = jax.block_until_ready(out)

    assert out.shape == (batch, out_channels, h, w)
    assert bool(jnp.all(jnp.isfinite(out)))

    # bf16-tolerance check against the f32 reference
    ref = up_reference(x1, x2, raw1, raw2)
    err = float(jnp.max(jnp.abs(out - ref)))
    ref_scale = float(jnp.max(jnp.abs(ref))) + 1e-6
    assert err <= 0.05 * ref_scale + 0.05, f"max abs err {err} vs ref scale {ref_scale}"

    print("KERNEL_OK")
</pallas_src>

<mosaic_0001>
module attributes {stable_mosaic.version = 11 : i64} {
  func.func @kernel(%arg0: i32, %arg1: i32, %arg2: memref<1x18x18x128xbf16, #tpu.memory_space<vmem>>, %arg3: memref<1x18x18x128xbf16, #tpu.memory_space<vmem>>, %arg4: memref<9x128x128xbf16, #tpu.memory_space<vmem>>, %arg5: memref<9x128x128xbf16, #tpu.memory_space<vmem>>, %arg6: memref<1x128xf32, #tpu.memory_space<vmem>>, %arg7: memref<1x16x16x128xbf16, #tpu.memory_space<vmem>>) attributes {dimension_semantics = [#tpu.dimension_semantics<parallel>, #tpu.dimension_semantics<parallel>], iteration_bounds = array<i64: 2, 1>, scalar_prefetch = 0 : i64, scratch_operands = 0 : i64, tpu.core_type = #tpu.core_type<tc>, window_params = [{transform_indices = @transform_0, window_bounds = array<i64: 1, 18, 18, 128>}, {transform_indices = @transform_1, window_bounds = array<i64: 1, 18, 18, 128>}, {pipeline_mode = #tpu.pipeline_mode<synchronous>, transform_indices = @transform_2, window_bounds = array<i64: 9, 128, 128>}, {pipeline_mode = #tpu.pipeline_mode<synchronous>, transform_indices = @transform_3, window_bounds = array<i64: 9, 128, 128>}, {pipeline_mode = #tpu.pipeline_mode<synchronous>, transform_indices = @transform_4, window_bounds = array<i64: 1, 128>}, {transform_indices = @transform_5, window_bounds = array<i64: 1, 16, 16, 128>}]} {
    %c16_i32 = arith.constant 16 : i32
    %0 = arith.muli %arg1, %c16_i32 : i32
    %cst = arith.constant 0.000000e+00 : f32
    %1 = vector.broadcast %cst : f32 to vector<256x128xf32>
    %c0_i32 = arith.constant 0 : i32
    %2 = arith.addi %0, %c0_i32 : i32
    %c0 = arith.constant 0 : index
    %3 = arith.index_cast %2 : i32 to index
    %c0_0 = arith.constant 0 : index
    %c0_1 = arith.constant 0 : index
    %4 = vector.load %arg2[%c0, %3, %c0_0, %c0_1] : memref<1x18x18x128xbf16, #tpu.memory_space<vmem>>, vector<1x16x16x128xbf16>
    %5 = vector.shape_cast %4 : vector<1x16x16x128xbf16> to vector<16x16x128xbf16>
    %6 = vector.shape_cast %5 : vector<16x16x128xbf16> to vector<256x128xbf16>
    %c0_2 = arith.constant 0 : index
    %c0_3 = arith.constant 0 : index
    %c0_4 = arith.constant 0 : index
    %7 = vector.load %arg4[%c0_2, %c0_3, %c0_4] : memref<9x128x128xbf16, #tpu.memory_space<vmem>>, vector<1x128x128xbf16>
    %8 = vector.shape_cast %7 : vector<1x128x128xbf16> to vector<128x128xbf16>
    %cst_5 = arith.constant dense<0.000000e+00> : vector<256x128xf32>
    %9 = tpu.matmul %6, %8, %cst_5 {dimension_numbers = #tpu.dot_dimension_numbers<[1], [0], [0], [1], [0, 0, 1, 1], [], []>} : vector<256x128xbf16>, vector<128x128xbf16>, vector<256x128xf32> -> vector<256x128xf32>
    %10 = arith.addf %1, %9 : vector<256x128xf32>
    %c0_i32_6 = arith.constant 0 : i32
    %11 = arith.addi %0, %c0_i32_6 : i32
    %c0_7 = arith.constant 0 : index
    %12 = arith.index_cast %11 : i32 to index
    %c1 = arith.constant 1 : index
    %c0_8 = arith.constant 0 : index
    %13 = vector.load %arg2[%c0_7, %12, %c1, %c0_8] : memref<1x18x18x128xbf16, #tpu.memory_space<vmem>>, vector<1x16x16x128xbf16>
    %14 = vector.shape_cast %13 : vector<1x16x16x128xbf16> to vector<16x16x128xbf16>
    %15 = vector.shape_cast %14 : vector<16x16x128xbf16> to vector<256x128xbf16>
    %c1_9 = arith.constant 1 : index
    %c0_10 = arith.constant 0 : index
    %c0_11 = arith.constant 0 : index
    %16 = vector.load %arg4[%c1_9, %c0_10, %c0_11] : memref<9x128x128xbf16, #tpu.memory_space<vmem>>, vector<1x128x128xbf16>
    %17 = vector.shape_cast %16 : vector<1x128x128xbf16> to vector<128x128xbf16>
    %cst_12 = arith.constant dense<0.000000e+00> : vector<256x128xf32>
    %18 = tpu.matmul %15, %17, %cst_12 {dimension_numbers = #tpu.dot_dimension_numbers<[1], [0], [0], [1], [0, 0, 1, 1], [], []>} : vector<256x128xbf16>, vector<128x128xbf16>, vector<256x128xf32> -> vector<256x128xf32>
    %19 = arith.addf %10, %18 : vector<256x128xf32>
    %c0_i32_13 = arith.constant 0 : i32
    %20 = arith.addi %0, %c0_i32_13 : i32
    %c0_14 = arith.constant 0 : index
    %21 = arith.index_cast %20 : i32 to index
    %c2 = arith.constant 2 : index
    %c0_15 = arith.constant 0 : index
    %22 = vector.load %arg2[%c0_14, %21, %c2, %c0_15] : memref<1x18x18x128xbf16, #tpu.memory_space<vmem>>, vector<1x16x16x128xbf16>
    %23 = vector.shape_cast %22 : vector<1x16x16x128xbf16> to vector<16x16x128xbf16>
    %24 = vector.shape_cast %23 : vector<16x16x128xbf16> to vector<256x128xbf16>
    %c2_16 = arith.constant 2 : index
    %c0_17 = arith.constant 0 : index
    %c0_18 = arith.constant 0 : index
    %25 = vector.load %arg4[%c2_16, %c0_17, %c0_18] : memref<9x128x128xbf16, #tpu.memory_space<vmem>>, vector<1x128x128xbf16>
    %26 = vector.shape_cast %25 : vector<1x128x128xbf16> to vector<128x128xbf16>
    %cst_19 = arith.constant dense<0.000000e+00> : vector<256x128xf32>
    %27 = tpu.matmul %24, %26, %cst_19 {dimension_numbers = #tpu.dot_dimension_numbers<[1], [0], [0], [1], [0, 0, 1, 1], [], []>} : vector<256x128xbf16>, vector<128x128xbf16>, vector<256x128xf32> -> vector<256x128xf32>
    %28 = arith.addf %19, %27 : vector<256x128xf32>
    %c1_i32 = arith.constant 1 : i32
    %29 = arith.addi %0, %c1_i32 : i32
    %c0_20 = arith.constant 0 : index
    %30 = arith.index_cast %29 : i32 to index
    %c0_21 = arith.constant 0 : index
    %c0_22 = arith.constant 0 : index
    %31 = vector.load %arg2[%c0_20, %30, %c0_21, %c0_22] : memref<1x18x18x128xbf16, #tpu.memory_space<vmem>>, vector<1x16x16x128xbf16>
    %32 = vector.shape_cast %31 : vector<1x16x16x128xbf16> to vector<16x16x128xbf16>
    %33 = vector.shape_cast %32 : vector<16x16x128xbf16> to vector<256x128xbf16>
    %c3 = arith.constant 3 : index
    %c0_23 = arith.constant 0 : index
    %c0_24 = arith.constant 0 : index
    %34 = vector.load %arg4[%c3, %c0_23, %c0_24] : memref<9x128x128xbf16, #tpu.memory_space<vmem>>, vector<1x128x128xbf16>
    %35 = vector.shape_cast %34 : vector<1x128x128xbf16> to vector<128x128xbf16>
    %cst_25 = arith.constant dense<0.000000e+00> : vector<256x128xf32>
    %36 = tpu.matmul %33, %35, %cst_25 {dimension_numbers = #tpu.dot_dimension_numbers<[1], [0], [0], [1], [0, 0, 1, 1], [], []>} : vector<256x128xbf16>, vector<128x128xbf16>, vector<256x128xf32> -> vector<256x128xf32>
    %37 = arith.addf %28, %36 : vector<256x128xf32>
    %c1_i32_26 = arith.constant 1 : i32
    %38 = arith.addi %0, %c1_i32_26 : i32
    %c0_27 = arith.constant 0 : index
    %39 = arith.index_cast %38 : i32 to index
    %c1_28 = arith.constant 1 : index
    %c0_29 = arith.constant 0 : index
    %40 = vector.load %arg2[%c0_27, %39, %c1_28, %c0_29] : memref<1x18x18x128xbf16, #tpu.memory_space<vmem>>, vector<1x16x16x128xbf16>
    %41 = vector.shape_cast %40 : vector<1x16x16x128xbf16> to vector<16x16x128xbf16>
    %42 = vector.shape_cast %41 : vector<16x16x128xbf16> to vector<256x128xbf16>
    %c4 = arith.constant 4 : index
    %c0_30 = arith.constant 0 : index
    %c0_31 = arith.constant 0 : index
    %43 = vector.load %arg4[%c4, %c0_30, %c0_31] : memref<9x128x128xbf16, #tpu.memory_space<vmem>>, vector<1x128x128xbf16>
    %44 = vector.shape_cast %43 : vector<1x128x128xbf16> to vector<128x128xbf16>
    %cst_32 = arith.constant dense<0.000000e+00> : vector<256x128xf32>
    %45 = tpu.matmul %42, %44, %cst_32 {dimension_numbers = #tpu.dot_dimension_numbers<[1], [0], [0], [1], [0, 0, 1, 1], [], []>} : vector<256x128xbf16>, vector<128x128xbf16>, vector<256x128xf32> -> vector<256x128xf32>
    %46 = arith.addf %37, %45 : vector<256x128xf32>
    %c1_i32_33 = arith.constant 1 : i32
    %47 = arith.addi %0, %c1_i32_33 : i32
    %c0_34 = arith.constant 0 : index
    %48 = arith.index_cast %47 : i32 to index
    %c2_35 = arith.constant 2 : index
    %c0_36 = arith.constant 0 : index
    %49 = vector.load %arg2[%c0_34, %48, %c2_35, %c0_36] : memref<1x18x18x128xbf16, #tpu.memory_space<vmem>>, vector<1x16x16x128xbf16>
    %50 = vector.shape_cast %49 : vector<1x16x16x128xbf16> to vector<16x16x128xbf16>
    %51 = vector.shape_cast %50 : vector<16x16x128xbf16> to vector<256x128xbf16>
    %c5 = arith.constant 5 : index
    %c0_37 = arith.constant 0 : index
    %c0_38 = arith.constant 0 : index
    %52 = vector.load %arg4[%c5, %c0_37, %c0_38] : memref<9x128x128xbf16, #tpu.memory_space<vmem>>, vector<1x128x128xbf16>
    %53 = vector.shape_cast %52 : vector<1x128x128xbf16> to vector<128x128xbf16>
    %cst_39 = arith.constant dense<0.000000e+00> : vector<256x128xf32>
    %54 = tpu.matmul %51, %53, %cst_39 {dimension_numbers = #tpu.dot_dimension_numbers<[1], [0], [0], [1], [0, 0, 1, 1], [], []>} : vector<256x128xbf16>, vector<128x128xbf16>, vector<256x128xf32> -> vector<256x128xf32>
    %55 = arith.addf %46, %54 : vector<256x128xf32>
    %c2_i32 = arith.constant 2 : i32
    %56 = arith.addi %0, %c2_i32 : i32
    %c0_40 = arith.constant 0 : index
    %57 = arith.index_cast %56 : i32 to index
    %c0_41 = arith.constant 0 : index
    %c0_42 = arith.constant 0 : index
    %58 = vector.load %arg2[%c0_40, %57, %c0_41, %c0_42] : memref<1x18x18x128xbf16, #tpu.memory_space<vmem>>, vector<1x16x16x128xbf16>
    %59 = vector.shape_cast %58 : vector<1x16x16x128xbf16> to vector<16x16x128xbf16>
    %60 = vector.shape_cast %59 : vector<16x16x128xbf16> to vector<256x128xbf16>
    %c6 = arith.constant 6 : index
    %c0_43 = arith.constant 0 : index
    %c0_44 = arith.constant 0 : index
    %61 = vector.load %arg4[%c6, %c0_43, %c0_44] : memref<9x128x128xbf16, #tpu.memory_space<vmem>>, vector<1x128x128xbf16>
    %62 = vector.shape_cast %61 : vector<1x128x128xbf16> to vector<128x128xbf16>
    %cst_45 = arith.constant dense<0.000000e+00> : vector<256x128xf32>
    %63 = tpu.matmul %60, %62, %cst_45 {dimension_numbers = #tpu.dot_dimension_numbers<[1], [0], [0], [1], [0, 0, 1, 1], [], []>} : vector<256x128xbf16>, vector<128x128xbf16>, vector<256x128xf32> -> vector<256x128xf32>
    %64 = arith.addf %55, %63 : vector<256x128xf32>
    %c2_i32_46 = arith.constant 2 : i32
    %65 = arith.addi %0, %c2_i32_46 : i32
    %c0_47 = arith.constant 0 : index
    %66 = arith.index_cast %65 : i32 to index
    %c1_48 = arith.constant 1 : index
    %c0_49 = arith.constant 0 : index
    %67 = vector.load %arg2[%c0_47, %66, %c1_48, %c0_49] : memref<1x18x18x128xbf16, #tpu.memory_space<vmem>>, vector<1x16x16x128xbf16>
    %68 = vector.shape_cast %67 : vector<1x16x16x128xbf16> to vector<16x16x128xbf16>
    %69 = vector.shape_cast %68 : vector<16x16x128xbf16> to vector<256x128xbf16>
    %c7 = arith.constant 7 : index
    %c0_50 = arith.constant 0 : index
    %c0_51 = arith.constant 0 : index
    %70 = vector.load %arg4[%c7, %c0_50, %c0_51] : memref<9x128x128xbf16, #tpu.memory_space<vmem>>, vector<1x128x128xbf16>
    %71 = vector.shape_cast %70 : vector<1x128x128xbf16> to vector<128x128xbf16>
    %cst_52 = arith.constant dense<0.000000e+00> : vector<256x128xf32>
    %72 = tpu.matmul %69, %71, %cst_52 {dimension_numbers = #tpu.dot_dimension_numbers<[1], [0], [0], [1], [0, 0, 1, 1], [], []>} : vector<256x128xbf16>, vector<128x128xbf16>, vector<256x128xf32> -> vector<256x128xf32>
    %73 = arith.addf %64, %72 : vector<256x128xf32>
    %c2_i32_53 = arith.constant 2 : i32
    %74 = arith.addi %0, %c2_i32_53 : i32
    %c0_54 = arith.constant 0 : index
    %75 = arith.index_cast %74 : i32 to index
    %c2_55 = arith.constant 2 : index
    %c0_56 = arith.constant 0 : index
    %76 = vector.load %arg2[%c0_54, %75, %c2_55, %c0_56] : memref<1x18x18x128xbf16, #tpu.memory_space<vmem>>, vector<1x16x16x128xbf16>
    %77 = vector.shape_cast %76 : vector<1x16x16x128xbf16> to vector<16x16x128xbf16>
    %78 = vector.shape_cast %77 : vector<16x16x128xbf16> to vector<256x128xbf16>
    %c8 = arith.constant 8 : index
    %c0_57 = arith.constant 0 : index
    %c0_58 = arith.constant 0 : index
    %79 = vector.load %arg4[%c8, %c0_57, %c0_58] : memref<9x128x128xbf16, #tpu.memory_space<vmem>>, vector<1x128x128xbf16>
    %80 = vector.shape_cast %79 : vector<1x128x128xbf16> to vector<128x128xbf16>
    %cst_59 = arith.constant dense<0.000000e+00> : vector<256x128xf32>
    %81 = tpu.matmul %78, %80, %cst_59 {dimension_numbers = #tpu.dot_dimension_numbers<[1], [0], [0], [1], [0, 0, 1, 1], [], []>} : vector<256x128xbf16>, vector<128x128xbf16>, vector<256x128xf32> -> vector<256x128xf32>
    %82 = arith.addf %73, %81 : vector<256x128xf32>
    %c0_i32_60 = arith.constant 0 : i32
    %83 = arith.addi %0, %c0_i32_60 : i32
    %c0_61 = arith.constant 0 : index
    %84 = arith.index_cast %83 : i32 to index
    %c0_62 = arith.constant 0 : index
    %c0_63 = arith.constant 0 : index
    %85 = vector.load %arg3[%c0_61, %84, %c0_62, %c0_63] : memref<1x18x18x128xbf16, #tpu.memory_space<vmem>>, vector<1x16x16x128xbf16>
    %86 = vector.shape_cast %85 : vector<1x16x16x128xbf16> to vector<16x16x128xbf16>
    %87 = vector.shape_cast %86 : vector<16x16x128xbf16> to vector<256x128xbf16>
    %c0_64 = arith.constant 0 : index
    %c0_65 = arith.constant 0 : index
    %c0_66 = arith.constant 0 : index
    %88 = vector.load %arg5[%c0_64, %c0_65, %c0_66] : memref<9x128x128xbf16, #tpu.memory_space<vmem>>, vector<1x128x128xbf16>
    %89 = vector.shape_cast %88 : vector<1x128x128xbf16> to vector<128x128xbf16>
    %cst_67 = arith.constant dense<0.000000e+00> : vector<256x128xf32>
    %90 = tpu.matmul %87, %89, %cst_67 {dimension_numbers = #tpu.dot_dimension_numbers<[1], [0], [0], [1], [0, 0, 1, 1], [], []>} : vector<256x128xbf16>, vector<128x128xbf16>, vector<256x128xf32> -> vector<256x128xf32>
    %91 = arith.addf %82, %90 : vector<256x128xf32>
    %c0_i32_68 = arith.constant 0 : i32
    %92 = arith.addi %0, %c0_i32_68 : i32
    %c0_69 = arith.constant 0 : index
    %93 = arith.index_cast %92 : i32 to index
    %c1_70 = arith.constant 1 : index
    %c0_71 = arith.constant 0 : index
    %94 = vector.load %arg3[%c0_69, %93, %c1_70, %c0_71] : memref<1x18x18x128xbf16, #tpu.memory_space<vmem>>, vector<1x16x16x128xbf16>
    %95 = vector.shape_cast %94 : vector<1x16x16x128xbf16> to vector<16x16x128xbf16>
    %96 = vector.shape_cast %95 : vector<16x16x128xbf16> to vector<256x128xbf16>
    %c1_72 = arith.constant 1 : index
    %c0_73 = arith.constant 0 : index
    %c0_74 = arith.constant 0 : index
    %97 = vector.load %arg5[%c1_72, %c0_73, %c0_74] : memref<9x128x128xbf16, #tpu.memory_space<vmem>>, vector<1x128x128xbf16>
    %98 = vector.shape_cast %97 : vector<1x128x128xbf16> to vector<128x128xbf16>
    %cst_75 = arith.constant dense<0.000000e+00> : vector<256x128xf32>
    %99 = tpu.matmul %96, %98, %cst_75 {dimension_numbers = #tpu.dot_dimension_numbers<[1], [0], [0], [1], [0, 0, 1, 1], [], []>} : vector<256x128xbf16>, vector<128x128xbf16>, vector<256x128xf32> -> vector<256x128xf32>
    %100 = arith.addf %91, %99 : vector<256x128xf32>
    %c0_i32_76 = arith.constant 0 : i32
    %101 = arith.addi %0, %c0_i32_76 : i32
    %c0_77 = arith.constant 0 : index
    %102 = arith.index_cast %101 : i32 to index
    %c2_78 = arith.constant 2 : index
    %c0_79 = arith.constant 0 : index
    %103 = vector.load %arg3[%c0_77, %102, %c2_78, %c0_79] : memref<1x18x18x128xbf16, #tpu.memory_space<vmem>>, vector<1x16x16x128xbf16>
    %104 = vector.shape_cast %103 : vector<1x16x16x128xbf16> to vector<16x16x128xbf16>
    %105 = vector.shape_cast %104 : vector<16x16x128xbf16> to vector<256x128xbf16>
    %c2_80 = arith.constant 2 : index
    %c0_81 = arith.constant 0 : index
    %c0_82 = arith.constant 0 : index
    %106 = vector.load %arg5[%c2_80, %c0_81, %c0_82] : memref<9x128x128xbf16, #tpu.memory_space<vmem>>, vector<1x128x128xbf16>
    %107 = vector.shape_cast %106 : vector<1x128x128xbf16> to vector<128x128xbf16>
    %cst_83 = arith.constant dense<0.000000e+00> : vector<256x128xf32>
    %108 = tpu.matmul %105, %107, %cst_83 {dimension_numbers = #tpu.dot_dimension_numbers<[1], [0], [0], [1], [0, 0, 1, 1], [], []>} : vector<256x128xbf16>, vector<128x128xbf16>, vector<256x128xf32> -> vector<256x128xf32>
    %109 = arith.addf %100, %108 : vector<256x128xf32>
    %c1_i32_84 = arith.constant 1 : i32
    %110 = arith.addi %0, %c1_i32_84 : i32
    %c0_85 = arith.constant 0 : index
    %111 = arith.index_cast %110 : i32 to index
    %c0_86 = arith.constant 0 : index
    %c0_87 = arith.constant 0 : index
    %112 = vector.load %arg3[%c0_85, %111, %c0_86, %c0_87] : memref<1x18x18x128xbf16, #tpu.memory_space<vmem>>, vector<1x16x16x128xbf16>
    %113 = vector.shape_cast %112 : vector<1x16x16x128xbf16> to vector<16x16x128xbf16>
    %114 = vector.shape_cast %113 : vector<16x16x128xbf16> to vector<256x128xbf16>
    %c3_88 = arith.constant 3 : index
    %c0_89 = arith.constant 0 : index
    %c0_90 = arith.constant 0 : index
    %115 = vector.load %arg5[%c3_88, %c0_89, %c0_90] : memref<9x128x128xbf16, #tpu.memory_space<vmem>>, vector<1x128x128xbf16>
    %116 = vector.shape_cast %115 : vector<1x128x128xbf16> to vector<128x128xbf16>
    %cst_91 = arith.constant dense<0.000000e+00> : vector<256x128xf32>
    %117 = tpu.matmul %114, %116, %cst_91 {dimension_numbers = #tpu.dot_dimension_numbers<[1], [0], [0], [1], [0, 0, 1, 1], [], []>} : vector<256x128xbf16>, vector<128x128xbf16>, vector<256x128xf32> -> vector<256x128xf32>
    %118 = arith.addf %109, %117 : vector<256x128xf32>
    %c1_i32_92 = arith.constant 1 : i32
    %119 = arith.addi %0, %c1_i32_92 : i32
    %c0_93 = arith.constant 0 : index
    %120 = arith.index_cast %119 : i32 to index
    %c1_94 = arith.constant 1 : index
    %c0_95 = arith.constant 0 : index
    %121 = vector.load %arg3[%c0_93, %120, %c1_94, %c0_95] : memref<1x18x18x128xbf16, #tpu.memory_space<vmem>>, vector<1x16x16x128xbf16>
    %122 = vector.shape_cast %121 : vector<1x16x16x128xbf16> to vector<16x16x128xbf16>
    %123 = vector.shape_cast %122 : vector<16x16x128xbf16> to vector<256x128xbf16>
    %c4_96 = arith.constant 4 : index
    %c0_97 = arith.constant 0 : index
    %c0_98 = arith.constant 0 : index
    %124 = vector.load %arg5[%c4_96, %c0_97, %c0_98] : memref<9x128x128xbf16, #tpu.memory_space<vmem>>, vector<1x128x128xbf16>
    %125 = vector.shape_cast %124 : vector<1x128x128xbf16> to vector<128x128xbf16>
    %cst_99 = arith.constant dense<0.000000e+00> : vector<256x128xf32>
    %126 = tpu.matmul %123, %125, %cst_99 {dimension_numbers = #tpu.dot_dimension_numbers<[1], [0], [0], [1], [0, 0, 1, 1], [], []>} : vector<256x128xbf16>, vector<128x128xbf16>, vector<256x128xf32> -> vector<256x128xf32>
    %127 = arith.addf %118, %126 : vector<256x128xf32>
    %c1_i32_100 = arith.constant 1 : i32
    %128 = arith.addi %0, %c1_i32_100 : i32
    %c0_101 = arith.constant 0 : index
    %129 = arith.index_cast %128 : i32 to index
    %c2_102 = arith.constant 2 : index
    %c0_103 = arith.constant 0 : index
    %130 = vector.load %arg3[%c0_101, %129, %c2_102, %c0_103] : memref<1x18x18x128xbf16, #tpu.memory_space<vmem>>, vector<1x16x16x128xbf16>
    %131 = vector.shape_cast %130 : vector<1x16x16x128xbf16> to vector<16x16x128xbf16>
    %132 = vector.shape_cast %131 : vector<16x16x128xbf16> to vector<256x128xbf16>
    %c5_104 = arith.constant 5 : index
    %c0_105 = arith.constant 0 : index
    %c0_106 = arith.constant 0 : index
    %133 = vector.load %arg5[%c5_104, %c0_105, %c0_106] : memref<9x128x128xbf16, #tpu.memory_space<vmem>>, vector<1x128x128xbf16>
    %134 = vector.shape_cast %133 : vector<1x128x128xbf16> to vector<128x128xbf16>
    %cst_107 = arith.constant dense<0.000000e+00> : vector<256x128xf32>
    %135 = tpu.matmul %132, %134, %cst_107 {dimension_numbers = #tpu.dot_dimension_numbers<[1], [0], [0], [1], [0, 0, 1, 1], [], []>} : vector<256x128xbf16>, vector<128x128xbf16>, vector<256x128xf32> -> vector<256x128xf32>
    %136 = arith.addf %127, %135 : vector<256x128xf32>
    %c2_i32_108 = arith.constant 2 : i32
    %137 = arith.addi %0, %c2_i32_108 : i32
    %c0_109 = arith.constant 0 : index
    %138 = arith.index_cast %137 : i32 to index
    %c0_110 = arith.constant 0 : index
    %c0_111 = arith.constant 0 : index
    %139 = vector.load %arg3[%c0_109, %138, %c0_110, %c0_111] : memref<1x18x18x128xbf16, #tpu.memory_space<vmem>>, vector<1x16x16x128xbf16>
    %140 = vector.shape_cast %139 : vector<1x16x16x128xbf16> to vector<16x16x128xbf16>
    %141 = vector.shape_cast %140 : vector<16x16x128xbf16> to vector<256x128xbf16>
    %c6_112 = arith.constant 6 : index
    %c0_113 = arith.constant 0 : index
    %c0_114 = arith.constant 0 : index
    %142 = vector.load %arg5[%c6_112, %c0_113, %c0_114] : memref<9x128x128xbf16, #tpu.memory_space<vmem>>, vector<1x128x128xbf16>
    %143 = vector.shape_cast %142 : vector<1x128x128xbf16> to vector<128x128xbf16>
    %cst_115 = arith.constant dense<0.000000e+00> : vector<256x128xf32>
    %144 = tpu.matmul %141, %143, %cst_115 {dimension_numbers = #tpu.dot_dimension_numbers<[1], [0], [0], [1], [0, 0, 1, 1], [], []>} : vector<256x128xbf16>, vector<128x128xbf16>, vector<256x128xf32> -> vector<256x128xf32>
    %145 = arith.addf %136, %144 : vector<256x128xf32>
    %c2_i32_116 = arith.constant 2 : i32
    %146 = arith.addi %0, %c2_i32_116 : i32
    %c0_117 = arith.constant 0 : index
    %147 = arith.index_cast %146 : i32 to index
    %c1_118 = arith.constant 1 : index
    %c0_119 = arith.constant 0 : index
    %148 = vector.load %arg3[%c0_117, %147, %c1_118, %c0_119] : memref<1x18x18x128xbf16, #tpu.memory_space<vmem>>, vector<1x16x16x128xbf16>
    %149 = vector.shape_cast %148 : vector<1x16x16x128xbf16> to vector<16x16x128xbf16>
    %150 = vector.shape_cast %149 : vector<16x16x128xbf16> to vector<256x128xbf16>
    %c7_120 = arith.constant 7 : index
    %c0_121 = arith.constant 0 : index
    %c0_122 = arith.constant 0 : index
    %151 = vector.load %arg5[%c7_120, %c0_121, %c0_122] : memref<9x128x128xbf16, #tpu.memory_space<vmem>>, vector<1x128x128xbf16>
    %152 = vector.shape_cast %151 : vector<1x128x128xbf16> to vector<128x128xbf16>
    %cst_123 = arith.constant dense<0.000000e+00> : vector<256x128xf32>
    %153 = tpu.matmul %150, %152, %cst_123 {dimension_numbers = #tpu.dot_dimension_numbers<[1], [0], [0], [1], [0, 0, 1, 1], [], []>} : vector<256x128xbf16>, vector<128x128xbf16>, vector<256x128xf32> -> vector<256x128xf32>
    %154 = arith.addf %145, %153 : vector<256x128xf32>
    %c2_i32_124 = arith.constant 2 : i32
    %155 = arith.addi %0, %c2_i32_124 : i32
    %c0_125 = arith.constant 0 : index
    %156 = arith.index_cast %155 : i32 to index
    %c2_126 = arith.constant 2 : index
    %c0_127 = arith.constant 0 : index
    %157 = vector.load %arg3[%c0_125, %156, %c2_126, %c0_127] : memref<1x18x18x128xbf16, #tpu.memory_space<vmem>>, vector<1x16x16x128xbf16>
    %158 = vector.shape_cast %157 : vector<1x16x16x128xbf16> to vector<16x16x128xbf16>
    %159 = vector.shape_cast %158 : vector<16x16x128xbf16> to vector<256x128xbf16>
    %c8_128 = arith.constant 8 : index
    %c0_129 = arith.constant 0 : index
    %c0_130 = arith.constant 0 : index
    %160 = vector.load %arg5[%c8_128, %c0_129, %c0_130] : memref<9x128x128xbf16, #tpu.memory_space<vmem>>, vector<1x128x128xbf16>
    %161 = vector.shape_cast %160 : vector<1x128x128xbf16> to vector<128x128xbf16>
    %cst_131 = arith.constant dense<0.000000e+00> : vector<256x128xf32>
    %162 = tpu.matmul %159, %161, %cst_131 {dimension_numbers = #tpu.dot_dimension_numbers<[1], [0], [0], [1], [0, 0, 1, 1], [], []>} : vector<256x128xbf16>, vector<128x128xbf16>, vector<256x128xf32> -> vector<256x128xf32>
    %163 = arith.addf %154, %162 : vector<256x128xf32>
    %c0_132 = arith.constant 0 : index
    %c0_133 = arith.constant 0 : index
    %164 = vector.load %arg6[%c0_132, %c0_133] : memref<1x128xf32, #tpu.memory_space<vmem>>, vector<1x128xf32>
    %165 = vector.broadcast %164 : vector<1x128xf32> to vector<256x128xf32>
    %166 = arith.addf %163, %165 : vector<256x128xf32>
    %cst_134 = arith.constant 0.000000e+00 : f32
    %167 = vector.broadcast %cst_134 : f32 to vector<256x128xf32>
    %168 = arith.maximumf %166, %167 : vector<256x128xf32>
    %169 = vector.shape_cast %168 : vector<256x128xf32> to vector<16x16x128xf32>
    %170 = arith.truncf %169 : vector<16x16x128xf32> to vector<16x16x128xbf16>
    %c0_135 = arith.constant 0 : index
    %c0_136 = arith.constant 0 : index
    %c0_137 = arith.constant 0 : index
    %c0_138 = arith.constant 0 : index
    %171 = vector.load %arg7[%c0_135, %c0_136, %c0_137, %c0_138] : memref<1x16x16x128xbf16, #tpu.memory_space<vmem>>, vector<1x16x16x128xbf16>
    %172 = vector.shape_cast %171 : vector<1x16x16x128xbf16> to vector<16x16x128xbf16>
    %173 = vector.shape_cast %170 : vector<16x16x128xbf16> to vector<1x16x16x128xbf16>
    tpu.vector_store %arg7[%c0_135, %c0_136, %c0_137, %c0_138], %173 {strides = array<i32>} : memref<1x16x16x128xbf16, #tpu.memory_space<vmem>>, vector<1x16x16x128xbf16>,
    return
  }
  func.func @transform_0(%arg0: i32, %arg1: i32) -> (i32, i32, i32, i32) {
    %c0_i32 = arith.constant 0 : i32
    %c0_i32_0 = arith.constant 0 : i32
    %c0_i32_1 = arith.constant 0 : i32
    %c0_i32_2 = arith.constant 0 : i32
    return %arg0, %c0_i32, %c0_i32_0, %c0_i32_1 : i32, i32, i32, i32
  }
  func.func @transform_1(%arg0: i32, %arg1: i32) -> (i32, i32, i32, i32) {
    %c0_i32 = arith.constant 0 : i32
    %c0_i32_0 = arith.constant 0 : i32
    %c0_i32_1 = arith.constant 0 : i32
    %c0_i32_2 = arith.constant 0 : i32
    return %arg0, %c0_i32, %c0_i32_0, %c0_i32_1 : i32, i32, i32, i32
  }
  func.func @transform_2(%arg0: i32, %arg1: i32) -> (i32, i32, i32) {
    %c0_i32 = arith.constant 0 : i32
    %c0_i32_0 = arith.constant 0 : i32
    %c0_i32_1 = arith.constant 0 : i32
    %c0_i32_2 = arith.constant 0 : i32
    return %c0_i32, %c0_i32_0, %c0_i32_1 : i32, i32, i32
  }
  func.func @transform_3(%arg0: i32, %arg1: i32) -> (i32, i32, i32) {
    %c0_i32 = arith.constant 0 : i32
    %c0_i32_0 = arith.constant 0 : i32
    %c0_i32_1 = arith.constant 0 : i32
    %c0_i32_2 = arith.constant 0 : i32
    return %c0_i32, %c0_i32_0, %c0_i32_1 : i32, i32, i32
  }
  func.func @transform_4(%arg0: i32, %arg1: i32) -> (i32, i32) {
    %c0_i32 = arith.constant 0 : i32
    %c0_i32_0 = arith.constant 0 : i32
    %c0_i32_1 = arith.constant 0 : i32
    return %c0_i32, %c0_i32_0 : i32, i32
  }
  func.func @transform_5(%arg0: i32, %arg1: i32) -> (i32, i32, i32, i32) {
    %c0_i32 = arith.constant 0 : i32
    %c0_i32_0 = arith.constant 0 : i32
    %c0_i32_1 = arith.constant 0 : i32
    return %arg0, %arg1, %c0_i32, %c0_i32_0 : i32, i32, i32, i32
  }
}

module attributes {stable_mosaic.version = 11 : i64} {
  func.func @kernel(%arg0: i32, %arg1: i32, %arg2: memref<1x18x18x128xbf16, #tpu.memory_space<vmem>>, %arg3: memref<9x128x128xbf16, #tpu.memory_space<vmem>>, %arg4: memref<1x128xf32, #tpu.memory_space<vmem>>, %arg5: memref<1x16x16x128xf32, #tpu.memory_space<vmem>>) attributes {dimension_semantics = [#tpu.dimension_semantics<parallel>, #tpu.dimension_semantics<parallel>], iteration_bounds = array<i64: 2, 1>, scalar_prefetch = 0 : i64, scratch_operands = 0 : i64, tpu.core_type = #tpu.core_type<tc>, window_params = [{transform_indices = @transform_0, window_bounds = array<i64: 1, 18, 18, 128>}, {pipeline_mode = #tpu.pipeline_mode<synchronous>, transform_indices = @transform_1, window_bounds = array<i64: 9, 128, 128>}, {pipeline_mode = #tpu.pipeline_mode<synchronous>, transform_indices = @transform_2, window_bounds = array<i64: 1, 128>}, {transform_indices = @transform_3, window_bounds = array<i64: 1, 16, 16, 128>}]} {
    %c16_i32 = arith.constant 16 : i32
    %0 = arith.muli %arg1, %c16_i32 : i32
    %cst = arith.constant 0.000000e+00 : f32
    %1 = vector.broadcast %cst : f32 to vector<256x128xf32>
    %c0_i32 = arith.constant 0 : i32
    %2 = arith.addi %0, %c0_i32 : i32
    %c0 = arith.constant 0 : index
    %3 = arith.index_cast %2 : i32 to index
    %c0_0 = arith.constant 0 : index
    %c0_1 = arith.constant 0 : index
    %4 = vector.load %arg2[%c0, %3, %c0_0, %c0_1] : memref<1x18x18x128xbf16, #tpu.memory_space<vmem>>, vector<1x16x16x128xbf16>
    %5 = vector.shape_cast %4 : vector<1x16x16x128xbf16> to vector<16x16x128xbf16>
    %6 = vector.shape_cast %5 : vector<16x16x128xbf16> to vector<256x128xbf16>
    %c0_2 = arith.constant 0 : index
    %c0_3 = arith.constant 0 : index
    %c0_4 = arith.constant 0 : index
    %7 = vector.load %arg3[%c0_2, %c0_3, %c0_4] : memref<9x128x128xbf16, #tpu.memory_space<vmem>>, vector<1x128x128xbf16>
    %8 = vector.shape_cast %7 : vector<1x128x128xbf16> to vector<128x128xbf16>
    %cst_5 = arith.constant dense<0.000000e+00> : vector<256x128xf32>
    %9 = tpu.matmul %6, %8, %cst_5 {dimension_numbers = #tpu.dot_dimension_numbers<[1], [0], [0], [1], [0, 0, 1, 1], [], []>} : vector<256x128xbf16>, vector<128x128xbf16>, vector<256x128xf32> -> vector<256x128xf32>
    %10 = arith.addf %1, %9 : vector<256x128xf32>
    %c0_i32_6 = arith.constant 0 : i32
    %11 = arith.addi %0, %c0_i32_6 : i32
    %c0_7 = arith.constant 0 : index
    %12 = arith.index_cast %11 : i32 to index
    %c1 = arith.constant 1 : index
    %c0_8 = arith.constant 0 : index
    %13 = vector.load %arg2[%c0_7, %12, %c1, %c0_8] : memref<1x18x18x128xbf16, #tpu.memory_space<vmem>>, vector<1x16x16x128xbf16>
    %14 = vector.shape_cast %13 : vector<1x16x16x128xbf16> to vector<16x16x128xbf16>
    %15 = vector.shape_cast %14 : vector<16x16x128xbf16> to vector<256x128xbf16>
    %c1_9 = arith.constant 1 : index
    %c0_10 = arith.constant 0 : index
    %c0_11 = arith.constant 0 : index
    %16 = vector.load %arg3[%c1_9, %c0_10, %c0_11] : memref<9x128x128xbf16, #tpu.memory_space<vmem>>, vector<1x128x128xbf16>
    %17 = vector.shape_cast %16 : vector<1x128x128xbf16> to vector<128x128xbf16>
    %cst_12 = arith.constant dense<0.000000e+00> : vector<256x128xf32>
    %18 = tpu.matmul %15, %17, %cst_12 {dimension_numbers = #tpu.dot_dimension_numbers<[1], [0], [0], [1], [0, 0, 1, 1], [], []>} : vector<256x128xbf16>, vector<128x128xbf16>, vector<256x128xf32> -> vector<256x128xf32>
    %19 = arith.addf %10, %18 : vector<256x128xf32>
    %c0_i32_13 = arith.constant 0 : i32
    %20 = arith.addi %0, %c0_i32_13 : i32
    %c0_14 = arith.constant 0 : index
    %21 = arith.index_cast %20 : i32 to index
    %c2 = arith.constant 2 : index
    %c0_15 = arith.constant 0 : index
    %22 = vector.load %arg2[%c0_14, %21, %c2, %c0_15] : memref<1x18x18x128xbf16, #tpu.memory_space<vmem>>, vector<1x16x16x128xbf16>
    %23 = vector.shape_cast %22 : vector<1x16x16x128xbf16> to vector<16x16x128xbf16>
    %24 = vector.shape_cast %23 : vector<16x16x128xbf16> to vector<256x128xbf16>
    %c2_16 = arith.constant 2 : index
    %c0_17 = arith.constant 0 : index
    %c0_18 = arith.constant 0 : index
    %25 = vector.load %arg3[%c2_16, %c0_17, %c0_18] : memref<9x128x128xbf16, #tpu.memory_space<vmem>>, vector<1x128x128xbf16>
    %26 = vector.shape_cast %25 : vector<1x128x128xbf16> to vector<128x128xbf16>
    %cst_19 = arith.constant dense<0.000000e+00> : vector<256x128xf32>
    %27 = tpu.matmul %24, %26, %cst_19 {dimension_numbers = #tpu.dot_dimension_numbers<[1], [0], [0], [1], [0, 0, 1, 1], [], []>} : vector<256x128xbf16>, vector<128x128xbf16>, vector<256x128xf32> -> vector<256x128xf32>
    %28 = arith.addf %19, %27 : vector<256x128xf32>
    %c1_i32 = arith.constant 1 : i32
    %29 = arith.addi %0, %c1_i32 : i32
    %c0_20 = arith.constant 0 : index
    %30 = arith.index_cast %29 : i32 to index
    %c0_21 = arith.constant 0 : index
    %c0_22 = arith.constant 0 : index
    %31 = vector.load %arg2[%c0_20, %30, %c0_21, %c0_22] : memref<1x18x18x128xbf16, #tpu.memory_space<vmem>>, vector<1x16x16x128xbf16>
    %32 = vector.shape_cast %31 : vector<1x16x16x128xbf16> to vector<16x16x128xbf16>
    %33 = vector.shape_cast %32 : vector<16x16x128xbf16> to vector<256x128xbf16>
    %c3 = arith.constant 3 : index
    %c0_23 = arith.constant 0 : index
    %c0_24 = arith.constant 0 : index
    %34 = vector.load %arg3[%c3, %c0_23, %c0_24] : memref<9x128x128xbf16, #tpu.memory_space<vmem>>, vector<1x128x128xbf16>
    %35 = vector.shape_cast %34 : vector<1x128x128xbf16> to vector<128x128xbf16>
    %cst_25 = arith.constant dense<0.000000e+00> : vector<256x128xf32>
    %36 = tpu.matmul %33, %35, %cst_25 {dimension_numbers = #tpu.dot_dimension_numbers<[1], [0], [0], [1], [0, 0, 1, 1], [], []>} : vector<256x128xbf16>, vector<128x128xbf16>, vector<256x128xf32> -> vector<256x128xf32>
    %37 = arith.addf %28, %36 : vector<256x128xf32>
    %c1_i32_26 = arith.constant 1 : i32
    %38 = arith.addi %0, %c1_i32_26 : i32
    %c0_27 = arith.constant 0 : index
    %39 = arith.index_cast %38 : i32 to index
    %c1_28 = arith.constant 1 : index
    %c0_29 = arith.constant 0 : index
    %40 = vector.load %arg2[%c0_27, %39, %c1_28, %c0_29] : memref<1x18x18x128xbf16, #tpu.memory_space<vmem>>, vector<1x16x16x128xbf16>
    %41 = vector.shape_cast %40 : vector<1x16x16x128xbf16> to vector<16x16x128xbf16>
    %42 = vector.shape_cast %41 : vector<16x16x128xbf16> to vector<256x128xbf16>
    %c4 = arith.constant 4 : index
    %c0_30 = arith.constant 0 : index
    %c0_31 = arith.constant 0 : index
    %43 = vector.load %arg3[%c4, %c0_30, %c0_31] : memref<9x128x128xbf16, #tpu.memory_space<vmem>>, vector<1x128x128xbf16>
    %44 = vector.shape_cast %43 : vector<1x128x128xbf16> to vector<128x128xbf16>
    %cst_32 = arith.constant dense<0.000000e+00> : vector<256x128xf32>
    %45 = tpu.matmul %42, %44, %cst_32 {dimension_numbers = #tpu.dot_dimension_numbers<[1], [0], [0], [1], [0, 0, 1, 1], [], []>} : vector<256x128xbf16>, vector<128x128xbf16>, vector<256x128xf32> -> vector<256x128xf32>
    %46 = arith.addf %37, %45 : vector<256x128xf32>
    %c1_i32_33 = arith.constant 1 : i32
    %47 = arith.addi %0, %c1_i32_33 : i32
    %c0_34 = arith.constant 0 : index
    %48 = arith.index_cast %47 : i32 to index
    %c2_35 = arith.constant 2 : index
    %c0_36 = arith.constant 0 : index
    %49 = vector.load %arg2[%c0_34, %48, %c2_35, %c0_36] : memref<1x18x18x128xbf16, #tpu.memory_space<vmem>>, vector<1x16x16x128xbf16>
    %50 = vector.shape_cast %49 : vector<1x16x16x128xbf16> to vector<16x16x128xbf16>
    %51 = vector.shape_cast %50 : vector<16x16x128xbf16> to vector<256x128xbf16>
    %c5 = arith.constant 5 : index
    %c0_37 = arith.constant 0 : index
    %c0_38 = arith.constant 0 : index
    %52 = vector.load %arg3[%c5, %c0_37, %c0_38] : memref<9x128x128xbf16, #tpu.memory_space<vmem>>, vector<1x128x128xbf16>
    %53 = vector.shape_cast %52 : vector<1x128x128xbf16> to vector<128x128xbf16>
    %cst_39 = arith.constant dense<0.000000e+00> : vector<256x128xf32>
    %54 = tpu.matmul %51, %53, %cst_39 {dimension_numbers = #tpu.dot_dimension_numbers<[1], [0], [0], [1], [0, 0, 1, 1], [], []>} : vector<256x128xbf16>, vector<128x128xbf16>, vector<256x128xf32> -> vector<256x128xf32>
    %55 = arith.addf %46, %54 : vector<256x128xf32>
    %c2_i32 = arith.constant 2 : i32
    %56 = arith.addi %0, %c2_i32 : i32
    %c0_40 = arith.constant 0 : index
    %57 = arith.index_cast %56 : i32 to index
    %c0_41 = arith.constant 0 : index
    %c0_42 = arith.constant 0 : index
    %58 = vector.load %arg2[%c0_40, %57, %c0_41, %c0_42] : memref<1x18x18x128xbf16, #tpu.memory_space<vmem>>, vector<1x16x16x128xbf16>
    %59 = vector.shape_cast %58 : vector<1x16x16x128xbf16> to vector<16x16x128xbf16>
    %60 = vector.shape_cast %59 : vector<16x16x128xbf16> to vector<256x128xbf16>
    %c6 = arith.constant 6 : index
    %c0_43 = arith.constant 0 : index
    %c0_44 = arith.constant 0 : index
    %61 = vector.load %arg3[%c6, %c0_43, %c0_44] : memref<9x128x128xbf16, #tpu.memory_space<vmem>>, vector<1x128x128xbf16>
    %62 = vector.shape_cast %61 : vector<1x128x128xbf16> to vector<128x128xbf16>
    %cst_45 = arith.constant dense<0.000000e+00> : vector<256x128xf32>
    %63 = tpu.matmul %60, %62, %cst_45 {dimension_numbers = #tpu.dot_dimension_numbers<[1], [0], [0], [1], [0, 0, 1, 1], [], []>} : vector<256x128xbf16>, vector<128x128xbf16>, vector<256x128xf32> -> vector<256x128xf32>
    %64 = arith.addf %55, %63 : vector<256x128xf32>
    %c2_i32_46 = arith.constant 2 : i32
    %65 = arith.addi %0, %c2_i32_46 : i32
    %c0_47 = arith.constant 0 : index
    %66 = arith.index_cast %65 : i32 to index
    %c1_48 = arith.constant 1 : index
    %c0_49 = arith.constant 0 : index
    %67 = vector.load %arg2[%c0_47, %66, %c1_48, %c0_49] : memref<1x18x18x128xbf16, #tpu.memory_space<vmem>>, vector<1x16x16x128xbf16>
    %68 = vector.shape_cast %67 : vector<1x16x16x128xbf16> to vector<16x16x128xbf16>
    %69 = vector.shape_cast %68 : vector<16x16x128xbf16> to vector<256x128xbf16>
    %c7 = arith.constant 7 : index
    %c0_50 = arith.constant 0 : index
    %c0_51 = arith.constant 0 : index
    %70 = vector.load %arg3[%c7, %c0_50, %c0_51] : memref<9x128x128xbf16, #tpu.memory_space<vmem>>, vector<1x128x128xbf16>
    %71 = vector.shape_cast %70 : vector<1x128x128xbf16> to vector<128x128xbf16>
    %cst_52 = arith.constant dense<0.000000e+00> : vector<256x128xf32>
    %72 = tpu.matmul %69, %71, %cst_52 {dimension_numbers = #tpu.dot_dimension_numbers<[1], [0], [0], [1], [0, 0, 1, 1], [], []>} : vector<256x128xbf16>, vector<128x128xbf16>, vector<256x128xf32> -> vector<256x128xf32>
    %73 = arith.addf %64, %72 : vector<256x128xf32>
    %c2_i32_53 = arith.constant 2 : i32
    %74 = arith.addi %0, %c2_i32_53 : i32
    %c0_54 = arith.constant 0 : index
    %75 = arith.index_cast %74 : i32 to index
    %c2_55 = arith.constant 2 : index
    %c0_56 = arith.constant 0 : index
    %76 = vector.load %arg2[%c0_54, %75, %c2_55, %c0_56] : memref<1x18x18x128xbf16, #tpu.memory_space<vmem>>, vector<1x16x16x128xbf16>
    %77 = vector.shape_cast %76 : vector<1x16x16x128xbf16> to vector<16x16x128xbf16>
    %78 = vector.shape_cast %77 : vector<16x16x128xbf16> to vector<256x128xbf16>
    %c8 = arith.constant 8 : index
    %c0_57 = arith.constant 0 : index
    %c0_58 = arith.constant 0 : index
    %79 = vector.load %arg3[%c8, %c0_57, %c0_58] : memref<9x128x128xbf16, #tpu.memory_space<vmem>>, vector<1x128x128xbf16>
    %80 = vector.shape_cast %79 : vector<1x128x128xbf16> to vector<128x128xbf16>
    %cst_59 = arith.constant dense<0.000000e+00> : vector<256x128xf32>
    %81 = tpu.matmul %78, %80, %cst_59 {dimension_numbers = #tpu.dot_dimension_numbers<[1], [0], [0], [1], [0, 0, 1, 1], [], []>} : vector<256x128xbf16>, vector<128x128xbf16>, vector<256x128xf32> -> vector<256x128xf32>
    %82 = arith.addf %73, %81 : vector<256x128xf32>
    %c0_60 = arith.constant 0 : index
    %c0_61 = arith.constant 0 : index
    %83 = vector.load %arg4[%c0_60, %c0_61] : memref<1x128xf32, #tpu.memory_space<vmem>>, vector<1x128xf32>
    %84 = vector.broadcast %83 : vector<1x128xf32> to vector<256x128xf32>
    %85 = arith.addf %82, %84 : vector<256x128xf32>
    %cst_62 = arith.constant 0.000000e+00 : f32
    %86 = vector.broadcast %cst_62 : f32 to vector<256x128xf32>
    %87 = arith.maximumf %85, %86 : vector<256x128xf32>
    %88 = vector.shape_cast %87 : vector<256x128xf32> to vector<16x16x128xf32>
    %c0_63 = arith.constant 0 : index
    %c0_64 = arith.constant 0 : index
    %c0_65 = arith.constant 0 : index
    %c0_66 = arith.constant 0 : index
    %89 = vector.load %arg5[%c0_63, %c0_64, %c0_65, %c0_66] : memref<1x16x16x128xf32, #tpu.memory_space<vmem>>, vector<1x16x16x128xf32>
    %90 = vector.shape_cast %89 : vector<1x16x16x128xf32> to vector<16x16x128xf32>
    %91 = vector.shape_cast %88 : vector<16x16x128xf32> to vector<1x16x16x128xf32>
    tpu.vector_store %arg5[%c0_63, %c0_64, %c0_65, %c0_66], %91 {strides = array<i32>} : memref<1x16x16x128xf32, #tpu.memory_space<vmem>>, vector<1x16x16x128xf32>,
    return
  }
  func.func @transform_0(%arg0: i32, %arg1: i32) -> (i32, i32, i32, i32) {
    %c0_i32 = arith.constant 0 : i32
    %c0_i32_0 = arith.constant 0 : i32
    %c0_i32_1 = arith.constant 0 : i32
    %c0_i32_2 = arith.constant 0 : i32
    return %arg0, %c0_i32, %c0_i32_0, %c0_i32_1 : i32, i32, i32, i32
  }
  func.func @transform_1(%arg0: i32, %arg1: i32) -> (i32, i32, i32) {
    %c0_i32 = arith.constant 0 : i32
    %c0_i32_0 = arith.constant 0 : i32
    %c0_i32_1 = arith.constant 0 : i32
    %c0_i32_2 = arith.constant 0 : i32
    return %c0_i32, %c0_i32_0, %c0_i32_1 : i32, i32, i32
  }
  func.func @transform_2(%arg0: i32, %arg1: i32) -> (i32, i32) {
    %c0_i32 = arith.constant 0 : i32
    %c0_i32_0 = arith.constant 0 : i32
    %c0_i32_1 = arith.constant 0 : i32
    return %c0_i32, %c0_i32_0 : i32, i32
  }
  func.func @transform_3(%arg0: i32, %arg1: i32) -> (i32, i32, i32, i32) {
    %c0_i32 = arith.constant 0 : i32
    %c0_i32_0 = arith.constant 0 : i32
    %c0_i32_1 = arith.constant 0 : i32
    return %arg0, %arg1, %c0_i32, %c0_i32_0 : i32, i32, i32, i32
  }
}

</mosaic_0001>

<bundles_post_ra>
// kernel: up_forward.3
= control target key start
LH: loop header
LB: loop body
LE: loop exit
PB: predicated region body
PF: predicated region fallthrough
CT: control target
= control target key end

     0   :  { %8 = vsyncpa [#allocation3], 0  ;;  %s7334_s0 = inlined_call_operand.vmem [shape: bf16[2,18,18,128], index: 0, kind: input, shape index: {}]   ;;  %s7335_s1 = inlined_call_operand.vmem [shape: bf16[9,128,128], index: 1, kind: input, shape index: {}]   ;;  %s7336_s2 = inlined_call_operand.vmem [shape: f32[1,128], index: 2, kind: input, shape index: {}]   ;;  %s7337_s3 = inlined_call_operand.hbm [shape: f32[2,16,16,128], index: 3, kind: output, shape index: {}]  }
   0x1   :  { %10 = vsyncpa [#allocation3 + $0x1], 0  ;;  %s5777_s12 = smov 0   ;;  %s5779_s13 = smov 0  }
   0x2   :  { %s5781_s14 = smov 0   ;;  %s5783_s15 = smov 0  }
   0x3   :  { %s5785_s16 = smov 0   ;;  %s5787_s17 = smov 0  }
   0x4 LB: > { %s4557_s18 = sadd.s32 4294967295, %s5753_s17   ;;  %s4558_s19 = sadd.s32 4294967294, %s5753_s17   ;;  %s5753_s17 = sphi %s5787_s17, %s16_s17   ;;  %s5749_s16 = sphi %s5785_s16, %s7352_s16   ;;  %s5745_s15 = sphi %s5783_s15, %s7351_s15   ;;  %s5741_s14 = sphi %s5781_s14, %s7350_s14   ;;  %s5737_s13 = sphi %s5779_s13, %s7349_s13   ;;  %s5733_s12 = sphi %s5777_s12, %s7348_s12  }
   0x5   : > { %s28_s20 = sadd.s32 1, %s5749_s16  ;;  %s105_s21 = sadd.s32 1, %s5741_s14 }
   0x6   : > { %p30_p0 = scmp.ge.s32.totalorder %s28_s20, 2  ;;  %p115_p1 = scmp.ne.s32.totalorder %s5741_s14, %s5737_s13 }
   0x7   : > { %p116_p2 = scmp.eq.s32.totalorder %s4557_s18, 1  ;;  %p121_p3 = scmp.ne.s32.totalorder %s5737_s13, %s5733_s12 }
   0x8   : > { %s7354_s20 = smov (%p30_p0, %s28_s20), 0  ;;  %p122_p5 = scmp.eq.s32.totalorder %s4558_s19, 1 }
   0x9   : > { %p5817_p4 = por %p116_p2, %p115_p1  ;;  %s100_s23 = ssub.s32 %s5749_s16, %s7354_s20 }
   0xa   : > { %p4561_p6 = scmp.ge.s32.totalorder %s5753_s17, 1  ;;  %p103_p7 = scmp.eq.s32.totalorder %s100_s23, 0 }
   0xb   : > { %p5824_p8 = por %p122_p5, %p121_p3  ;;  %p154_p9 = scmp.lt.s32.totalorder %s5753_s17, 3 }
   0xc   : > { %s5830_s25 = scalar_select %p103_p7, %s5741_s14, %s105_s21  }
   0xd   : > { %p155_p10 = pnand %p4561_p6, %p154_p9 }
   0xf   : > { %158 = sbr.rel (%p155_p10) target bundleno = 771 (0x303), region = 32 }
  0x14   : > { %v5448_v0 = vld [vmem:[%s7335_s1 + $0x78] sm:$0xff]  ;;  %p178_p11 = scmp.lt.s32.totalorder %s5745_s15, 1  ;;  %v5447_v1 = vld [vmem:[%s7335_s1 + $0x70] sm:$0xff]  ;;  %v5446_v2 = vld [vmem:[%s7335_s1 + $0x68] sm:$0xff]  ;;  %vm252_vm0 = vsmask.f32 3328 }
  0x15   : > { %5538 = vmatpush.bf16.msra.mxu1 %v5448_v0  ;;  %5539 = vmatpush.bf16.msra.mxu2 %v5448_v0  ;;  %vm253_vm1 = vsmask.f32 7440  ;;  %v5445_v6 = vld [vmem:[%s7335_s1 + $0x60] sm:$0xff]  ;;  %v5444_v35 = vld [vmem:[%s7335_s1 + $0x58] sm:$0xff]  ;;  %v5443_v54 = vld [vmem:[%s7335_s1 + $0x50] sm:$0xff]  ;;  %vm1138_vm3 = vcmask 1042432  }
  0x16   : > { %s179_s30 = scalar_select %p178_p11, %s5745_s15, 1  ;;  %5540 = vmatpush.bf16.msra.mxu3 %v5448_v0  ;;  %768 = vmatpush.bf16.msra.mxu0 %v5448_v0  ;;  %vm5861_vm2 = vmor %vm252_vm0, %vm253_vm1  ;;  %vm1139_vm4 = vcmask 1046532  }
  0x17   : > { %vm6161_vm5 = vmor %vm1138_vm3, %vm1139_vm4  ;;  %s5537_s10 = sshll.u32 %s5745_s15, 8 }
  0x18   : > { %s5562_s4 = smul.u32 216, %s179_s30  ;;  %s175_s30 = sand.u32 1, %s5737_s13  }
  0x19   : > { %5541 = vmatpush.bf16.msra.mxu1 %v5447_v1  ;;  %5542 = vmatpush.bf16.msra.mxu2 %v5447_v1  ;;  %s7011_s6 = sshll.u32 %s175_s30, 8  ;;  %s4470_s19 = scalar_lea.hbm %s7337_s3, %s5537_s10 }
  0x1a   : > { %s5846_s9 = scalar_lea.vmem %s7334_s0, %s5562_s4  ;;  %5543 = vmatpush.bf16.msra.mxu3 %v5447_v1  ;;  %769 = vmatpush.bf16.msra.mxu0 %v5447_v1  ;;  %s7028_s7 = scalar_lea.vmem [#allocation2], %s7011_s6 }
  0x1b   : > { %v196_v3 = vld [vmem:[%s5846_s9 + $0x30] sm:$0xf]  ;;  %v197_v4 = vld [vmem:[%s5846_s9 + $0x34] sm:$0xf]  ;;  %v240_v5 = vld [vmem:[%s5846_s9 + $0x38] sm:$0x1] }
  0x1c   : > { %v352_v7 = vshrl.u32 %v196_v3, 16  ;;  %v355_v8 = vshll.u32 %v196_v3, 16  ;;  %v361_v9 = vshll.u32 %v197_v4, 16  ;;  %v365_v10 = vshrl.u32 %v197_v4, 16  ;;  %v204_v11 = vld [vmem:[%s5846_s9 + $0x60] sm:$0xf] }
  0x1d   : > { %v371_v12 = vshll.u32 %v240_v5, 16  ;;  %v205_v13 = vld [vmem:[%s5846_s9 + $0x64] sm:$0xf]  ;;  %v244_v14 = vld [vmem:[%s5846_s9 + $0x68] sm:$0x1]  ;;  %v448_v15 = vshrl.u32 %v204_v11, 16  ;;  %5544 = vmatpush.bf16.msra.mxu1 %v5446_v2  ;;  %5545 = vmatpush.bf16.msra.mxu2 %v5446_v2 }
  0x1e   : > { %v354_v16 = vrot.slane %v352_v7, 4  ;;  %v357_v17 = vrot.slane %v355_v8, 5  ;;  %v363_v18 = vrot.slane %v361_v9, 5  ;;  %v367_v19 = vrot.slane %v365_v10, 4  ;;  %v212_v20 = vld [vmem:[%s5846_s9 + $0x90] sm:$0xf]  ;;  %5546 = vmatpush.bf16.msra.mxu3 %v5446_v2  ;;  %770 = vmatpush.bf16.msra.mxu0 %v5446_v2 }
  0x1f   : > { %v373_v21 = vrot.slane %v371_v12, 5  ;;  %v450_v22 = vrot.slane %v448_v15, 4  ;;  %v451_v23 = vshll.u32 %v204_v11, 16  ;;  %v457_v24 = vshll.u32 %v205_v13, 16  ;;  %v213_v29 = vld [vmem:[%s5846_s9 + $0x94] sm:$0xf] }
  0x20   : > { %v358_v25 = vor.u32 %v357_v17, %v354_v16  ;;  %v368_v26 = vor.u32 %v367_v19, %v363_v18  ;;  %v461_v27 = vshrl.u32 %v205_v13, 16  ;;  %v467_v28 = vshll.u32 %v244_v14, 16  ;;  %v248_v41 = vld [vmem:[%s5846_s9 + $0x98] sm:$0x1]  ;;  %v188_v49 = vld [vmem:[%s5846_s9] sm:$0xf] }
  0x21   : > { %v453_v31 = vrot.slane %v451_v23, 5  ;;  %v459_v32 = vrot.slane %v457_v24, 5  ;;  %v544_v33 = vshrl.u32 %v212_v20, 16  ;;  %v547_v34 = vshll.u32 %v212_v20, 16  ;;  %5547 = vmatpush.bf16.msra.mxu1 %v5445_v6  ;;  %5548 = vmatpush.bf16.msra.mxu2 %v5445_v6  ;;  %v5886_v62 = vld [vmem:[%s5846_s9 + $0x4] sm:$0xf] }
  0x22   : > { %v359_v36 = vrot.slane %v358_v25, 4  ;;  %v369_v37 = vrot.slane %v368_v26, 4  ;;  %v463_v38 = vrot.slane %v461_v27, 4  ;;  %v469_v39 = vrot.slane %v467_v28, 5  ;;  %5549 = vmatpush.bf16.msra.mxu3 %v5445_v6  ;;  %771 = vmatpush.bf16.msra.mxu0 %v5445_v6  ;;  %v5893_v4 = vld [vmem:[%s5846_s9 + $0x8] sm:$0x1] }
  0x23   : > { %v454_v40 = vor.u32 %v453_v31, %v450_v22  ;;  %v546_v42 = vrot.slane %v544_v33, 4  ;;  %v549_v43 = vrot.slane %v547_v34, 5  ;;  %v553_v44 = vshll.u32 %v213_v29, 16  ;;  %v198_v5 = vld [vmem:[%s5846_s9 + $0x3c] sm:$0xf]  ;;  %v5442_v10 = vld [vmem:[%s7335_s1 + $0x48] sm:$0xff] }
  0x24   : > { %v364_v45 = vsel %vm5861_vm2, %v359_v36, %v363_v18  ;;  %v374_v46 = vsel %vm5861_vm2, %v369_v37, %v373_v21  ;;  %v464_v47 = vor.u32 %v463_v38, %v459_v32  ;;  %v557_v48 = vshrl.u32 %v213_v29, 16  ;;  %v199_v15 = vld [vmem:[%s5846_s9 + $0x40] sm:$0xf]  ;;  %v241_v19 = vld [vmem:[%s5846_s9 + $0x44] sm:$0x1]  ;;  %v5456_v37 = vld [vmem:[%s7335_s1 + $0xb8] sm:$0xff] }
  0x25   : > { %v5874_v50 = vunpack.c.l.b16 %v364_v45  ;;  %v5876_v51 = vunpack.c.l.b16 %v374_v46  ;;  %v455_v52 = vrot.slane %v454_v40, 4  ;;  %v550_v53 = vor.u32 %v549_v43, %v546_v42  ;;  %5550 = vmatpush.bf16.msra.mxu1 %v5444_v35  ;;  %5551 = vmatpush.bf16.msra.mxu2 %v5444_v35  ;;  %v206_v25 = vld [vmem:[%s5846_s9 + $0x6c] sm:$0xf]  ;;  %v5441_v31 = vld [vmem:[%s7335_s1 + $0x40] sm:$0xff]  ;;  %v207_v40 = vld [vmem:[%s5846_s9 + $0x70] sm:$0xf] }
  0x26   : > { %v465_v55 = vrot.slane %v464_v47, 4  ;;  %v555_v56 = vrot.slane %v553_v44, 5  ;;  %v559_v57 = vrot.slane %v557_v48, 4  ;;  %v563_v58 = vshll.u32 %v248_v41, 16  ;;  %5552 = vmatpush.bf16.msra.mxu3 %v5444_v35  ;;  %772 = vmatpush.bf16.msra.mxu0 %v5444_v35  ;;  %v5480_v43 = vld [vmem:[%s7335_s1 + $0xf8] sm:$0xff]  ;;  %s4471_s21 = sshll.u32 %s7028_s7, 4  ;;  %s4472_s21 = int_to_ptr.vmem [resolvable:$true] %s4471_s21 }
  0x27   : > { %v692_v59 = vpack.c.b16 %v5876_v51, %v5874_v50  ;;  %v460_v60 = vsel %vm5861_vm2, %v455_v52, %v459_v32  ;;  %v551_v61 = vrot.slane %v550_v53, 4  ;;  %v256_v63 = vshrl.u32 %v188_v49, 16  ;;  %v245_v47 = vld [vmem:[%s5846_s9 + $0x74] sm:$0x1]  ;;  %s4473_s23 = sshll.u32 %s4470_s19, 4  ;;  %s4456_s15 = scalar_lea.sflag [#allocation3], %s175_s30  ;;  %s4474_s23 = int_to_ptr.hbm [resolvable:$true] %s4473_s23 }
  0x28   : > { %v470_v0 = vsel %vm5861_vm2, %v465_v55, %v469_v39  ;;  %v5890_v1 = vunpack.c.l.b16 %v460_v60  ;;  %v560_v2 = vor.u32 %v559_v57, %v555_v56  ;;  %v565_v3 = vrot.slane %v563_v58, 5  ;;  %v5440_v57 = vld [vmem:[%s7335_s1 + $0x38] sm:$0xff]  ;;  %s5689_s26 = sshra.s32 %s4474_s23, 4  ;;  %s5695_s4 = scalar_lea.hbm %s7337_s3, 512  ;;  %s5690_s26 = int_to_ptr.hbm [resolvable:$true] %s5689_s26 }
  0x29   : > { %v5896_v6 = vunpack.c.l.b16 %v470_v0  ;;  %v556_v7 = vsel %vm5861_vm2, %v551_v61, %v555_v56  ;;  %v258_v8 = vrot.slane %v256_v63, 4  ;;  %v259_v9 = vshll.u32 %v188_v49, 16  ;;  %5553 = vmatpush.bf16.msra.mxu1 %v5443_v54  ;;  %5554 = vmatpush.bf16.msra.mxu2 %v5443_v54  ;;  %v5455_v63 = vld [vmem:[%s7335_s1 + $0xb0] sm:$0xff]  ;;  %s5691_s27 = scalar_lea.hbm %s5690_s26, 256  ;;  %p5696_p1 = scmp.lt.s32.totalorder %s5690_s26, %s7337_s3 }
  0x2a   : > { %v561_v11 = vrot.slane %v560_v2, 4  ;;  %v5903_v12 = vunpack.c.l.b16 %v556_v7  ;;  %v265_v13 = vshll.u32 %v5886_v62, 16  ;;  %v269_v14 = vshrl.u32 %v5886_v62, 16  ;;  %5555 = vmatpush.bf16.msra.mxu3 %v5443_v54  ;;  %773 = vmatpush.bf16.msra.mxu0 %v5443_v54  ;;  %v214_v54 = vld [vmem:[%s5846_s9 + $0x9c] sm:$0xf]  ;;  %p5692_p12 = scmp.ne.s32.totalorder %s5690_s26, %s5691_s27  ;;  %p5697_p2 = scmp.lt.s32.totalorder %s5695_s4, %s5691_s27 }
  0x2b   : > { %v696_v16 = vpack.c.b16 %v5896_v6, %v5890_v1  ;;  %v261_v17 = vrot.slane %v259_v9, 5  ;;  %v275_v18 = vshll.u32 %v5893_v4, 16  ;;  %v376_v20 = vshrl.u32 %v198_v5, 16 }
  0x2c   : > { %v566_v21 = vsel %vm5861_vm2, %v561_v11, %v565_v3  ;;  %v267_v22 = vrot.slane %v265_v13, 5  ;;  %v271_v23 = vrot.slane %v269_v14, 4  ;;  %v379_v24 = vshll.u32 %v198_v5, 16  ;;  %v5479_v3 = vld [vmem:[%s7335_s1 + $0xf0] sm:$0xff]  ;;  %v5488_v11 = vld [vmem:[%s7335_s1 + $0x138] sm:$0xff]  ;;  %p5693_p13 = pnand %p5692_p12, %p5817_p4  ;;  %p5698_p3 = por %p5697_p2, %p5696_p1 }
  0x2d   : > { %v681_v26 = vunpack.c.l.b16 %v566_v21  ;;  %v262_v27 = vor.u32 %v261_v17, %v258_v8  ;;  %v277_v28 = vrot.slane %v275_v18, 5  ;;  %v378_v29 = vrot.slane %v376_v20, 4  ;;  %5556 = vmatpush.bf16.msra.mxu1 %v5442_v10  ;;  %5557 = vmatpush.bf16.msra.mxu2 %v5442_v10  ;;  %v215_v8 = vld [vmem:[%s5846_s9 + $0xa0] sm:$0xf]  ;;  %v190_v17 = vld [vmem:[%s5846_s9 + $0xc] sm:$0xf] }
  0x2e   : > { %v272_v32 = vor.u32 %v271_v23, %v267_v22  ;;  %v381_v33 = vrot.slane %v379_v24, 5  ;;  %v385_v34 = vshll.u32 %v199_v15, 16  ;;  %v389_v35 = vshrl.u32 %v199_v15, 16  ;;  %5558 = vmatpush.bf16.msra.mxu3 %v5442_v10  ;;  %774 = vmatpush.bf16.msra.mxu0 %v5442_v10  ;;  %v249_v15 = vld [vmem:[%s5846_s9 + $0xa4] sm:$0x1]  ;;  %v5439_v18 = vld [vmem:[%s7335_s1 + $0x30] sm:$0xff]  ;;  %p5694_p0 = pneg %p5693_p13 }
  0x2f   : > { %v700_v36 = vpack.c.b16 %v681_v26, %v5903_v12  ;;  %v263_v38 = vrot.slane %v262_v27, 4  ;;  %v395_v39 = vshll.u32 %v241_v19, 16  ;;  %v472_v41 = vshrl.u32 %v206_v25, 16  ;;  %v5454_v23 = vld [vmem:[%s7335_s1 + $0xa8] sm:$0xff]  ;;  %v5965_v27 = vld [vmem:[%s5846_s9 + $0x10] sm:$0xf] }
  0x30   : > { %v273_v42 = vrot.slane %v272_v32, 4  ;;  %v382_v44 = vor.u32 %v381_v33, %v378_v29  ;;  %v387_v45 = vrot.slane %v385_v34, 5  ;;  %v391_v46 = vrot.slane %v389_v35, 4  ;;  %v5478_v29 = vld [vmem:[%s7335_s1 + $0xe8] sm:$0xff]  ;;  %v5975_v35 = vld [vmem:[%s5846_s9 + $0x14] sm:$0x1]  ;;  %p5699_p5 = pnand %p5698_p3, %p5694_p0 }
  0x31   : > { %v268_v48 = vsel %vm5861_vm2, %v263_v38, %v267_v22  ;;  %v397_v49 = vrot.slane %v395_v39, 5  ;;  %v474_v52 = vrot.slane %v472_v41, 4  ;;  %v475_v53 = vshll.u32 %v206_v25, 16  ;;  %5559 = vmatpush.bf16.msra.mxu1 %v5441_v31  ;;  %5560 = vmatpush.bf16.msra.mxu2 %v5441_v31  ;;  %v5438_v41 = vld [vmem:[%s7335_s1 + $0x28] sm:$0xff] }
  0x32   : > { %v278_v55 = vsel %vm5861_vm2, %v273_v42, %v277_v28  ;;  %v656_v56 = vunpack.c.l.b16 %v268_v48  ;;  %v383_v58 = vrot.slane %v382_v44, 4  ;;  %v392_v60 = vor.u32 %v391_v46, %v387_v45  ;;  %5561 = vmatpush.bf16.msra.mxu3 %v5441_v31  ;;  %775 = vmatpush.bf16.msra.mxu0 %v5441_v31  ;;  %v200_v46 = vld [vmem:[%s5846_s9 + $0x48] sm:$0xf] }
  0x33   : > { %v657_v61 = vunpack.c.l.b16 %v278_v55  ;;  %v477_v0 = vrot.slane %v475_v53, 5  ;;  %v481_v1 = vshll.u32 %v207_v40, 16  ;;  %v485_v2 = vshrl.u32 %v207_v40, 16  ;;  %v5453_v53 = vld [vmem:[%s7335_s1 + $0xa0] sm:$0xff] }
  0x34   : > { %v388_v5 = vsel %vm5861_vm2, %v383_v58, %v387_v45  ;;  %v393_v6 = vrot.slane %v392_v60, 4  ;;  %v491_v7 = vshll.u32 %v245_v47, 16  ;;  %v568_v9 = vshrl.u32 %v214_v54, 16  ;;  %796 = vmatmul.bf16.vlgmr.msra.gmra.mxu1 %v692_v59  ;;  %816 = vmatmul.bf16.vlgmr.msra.gmra.mxu2 %v696_v16  ;;  %v5486_v60 = vld [vmem:[%s7335_s1 + $0x128] sm:$0xff] }
  0x35   : > { %1382 = vmatpush.bf16.msrb.mxu2 %v5456_v37  ;;  %v688_v10 = vpack.c.b16 %v657_v61, %v656_v56  ;;  %v5950_v12 = vunpack.c.l.b16 %v388_v5  ;;  %v478_v13 = vor.u32 %v477_v0, %v474_v52  ;;  %v483_v14 = vrot.slane %v481_v1, 5  ;;  %836 = vmatmul.bf16.vlgmr.msra.gmra.mxu3 %v700_v36  ;;  %v5487_v36 = vld [vmem:[%s7335_s1 + $0x130] sm:$0xff]  ;;  %v5437_v61 = vld [vmem:[%s7335_s1 + $0x20] sm:$0xff] }
  0x36   : > { %1700 = vmatpush.bf16.msrb.mxu3 %v5480_v43  ;;  %1001 = vmatpush.bf16.msrb.mxu1 %v5440_v57  ;;  %v398_v50 = vsel %vm5861_vm2, %v393_v6, %v397_v49  ;;  %v487_v51 = vrot.slane %v485_v2, 4  ;;  %v493_v59 = vrot.slane %v491_v7, 5  ;;  %v570_v16 = vrot.slane %v568_v9, 4  ;;  %v6004_v2 = vld [vmem:[%s5846_s9 + $0x4c] sm:$0xf] }
  0x37   : > { %776 = vmatmul.bf16.vlgmr.msra.gmra.mxu0 %v688_v10  ;;  %v5959_v19 = vunpack.c.l.b16 %v398_v50  ;;  %v479_v20 = vrot.slane %v478_v13, 4  ;;  %v571_v21 = vshll.u32 %v214_v54, 16  ;;  %v577_v22 = vshll.u32 %v215_v8, 16  ;;  %v5477_v54 = vld [vmem:[%s7335_s1 + $0xe0] sm:$0xff]  ;;  %v208_v10 = vld [vmem:[%s5846_s9 + $0x78] sm:$0xf] }
  0x38   : > { %v488_v24 = vor.u32 %v487_v51, %v483_v14  ;;  %v581_v25 = vshrl.u32 %v215_v8, 16  ;;  %v587_v26 = vshll.u32 %v249_v15, 16  ;;  %v280_v28 = vshrl.u32 %v190_v17, 16  ;;  %2382 = vmatpush.bf16.msrb.mxu0 %v5488_v11  ;;  %v242_v8 = vld [vmem:[%s5846_s9 + $0x50] sm:$0x1] }
  0x39   : > { %1383 = vmatpush.bf16.msrb.mxu2 %v5455_v63  ;;  %v693_v31 = vpack.c.b16 %v5959_v19, %v5950_v12  ;;  %v484_v32 = vsel %vm5861_vm2, %v479_v20, %v483_v14  ;;  %v573_v33 = vrot.slane %v571_v21, 5  ;;  %v579_v34 = vrot.slane %v577_v22, 5 }
  0x3a   : > { %1701 = vmatpush.bf16.msrb.mxu3 %v5479_v3  ;;  %1002 = vmatpush.bf16.msrb.mxu1 %v5439_v18  ;;  %v489_v37 = vrot.slane %v488_v24, 4  ;;  %v5980_v38 = vunpack.c.l.b16 %v484_v32  ;;  %v583_v39 = vrot.slane %v581_v25, 4  ;;  %v589_v40 = vrot.slane %v587_v26, 5  ;;  %v5476_v18 = vld [vmem:[%s7335_s1 + $0xd8] sm:$0xff]  ;;  %v5485_v24 = vld [vmem:[%s7335_s1 + $0x120] sm:$0xff] }
  0x3b   : > { %v574_v42 = vor.u32 %v573_v33, %v570_v16  ;;  %v282_v43 = vrot.slane %v280_v28, 4  ;;  %v283_v44 = vshll.u32 %v190_v17, 16  ;;  %v289_v45 = vshll.u32 %v5965_v27, 16  ;;  %v5452_v17 = vld [vmem:[%s7335_s1 + $0x98] sm:$0xff]  ;;  %v246_v33 = vld [vmem:[%s5846_s9 + $0x80] sm:$0x1] }
  0x3c   : > { %v494_v47 = vsel %vm5861_vm2, %v489_v37, %v493_v59  ;;  %v584_v48 = vor.u32 %v583_v39, %v579_v34  ;;  %v293_v49 = vshrl.u32 %v5965_v27, 16  ;;  %v299_v52 = vshll.u32 %v5975_v35, 16  ;;  %2383 = vmatpush.bf16.msrb.mxu0 %v5487_v36  ;;  %v209_v32 = vld [vmem:[%s5846_s9 + $0x7c] sm:$0xf] }
  0x3d   : > { %1384 = vmatpush.bf16.msrb.mxu2 %v5454_v23  ;;  %v675_v55 = vunpack.c.l.b16 %v494_v47  ;;  %v575_v56 = vrot.slane %v574_v42, 4  ;;  %v285_v57 = vrot.slane %v283_v44, 5  ;;  %v291_v58 = vrot.slane %v289_v45, 5  ;;  %v5475_v42 = vld [vmem:[%s7335_s1 + $0xd0] sm:$0xff] }
  0x3e   : > { %1702 = vmatpush.bf16.msrb.mxu3 %v5478_v29  ;;  %v585_v63 = vrot.slane %v584_v48, 4  ;;  %v295_v0 = vrot.slane %v293_v49, 4  ;;  %v301_v1 = vrot.slane %v299_v52, 5  ;;  %1003 = vmatpush.bf16.msrb.mxu1 %v5438_v41  ;;  %v400_v3 = vshrl.u32 %v200_v46, 16  ;;  %v5451_v41 = vld [vmem:[%s7335_s1 + $0x90] sm:$0xff] }
  0x3f   : > { %v697_v5 = vpack.c.b16 %v675_v55, %v5980_v38  ;;  %v580_v6 = vsel %vm5861_vm2, %v575_v56, %v579_v34  ;;  %v286_v7 = vor.u32 %v285_v57, %v282_v43  ;;  %v403_v9 = vshll.u32 %v200_v46, 16  ;;  %v5436_v34 = vld [vmem:[%s7335_s1 + $0x18] sm:$0xff]  ;;  %v5435_v56 = vld [vmem:[%s7335_s1 + $0x10] sm:$0xff] }
  0x40   : > { %v590_v11 = vsel %vm5861_vm2, %v585_v63, %v589_v40  ;;  %v682_v13 = vunpack.c.l.b16 %v580_v6  ;;  %v296_v14 = vor.u32 %v295_v0, %v291_v58  ;;  %v402_v15 = vrot.slane %v400_v3, 4  ;;  %2384 = vmatpush.bf16.msrb.mxu0 %v5486_v60  ;;  %v216_v40 = vld [vmem:[%s5846_s9 + $0xa8] sm:$0xf]  ;;  %v250_v63 = vld [vmem:[%s5846_s9 + $0xb0] sm:$0x1] }
  0x41   : > { %1385 = vmatpush.bf16.msrb.mxu2 %v5453_v53  ;;  %v683_v50 = vunpack.c.l.b16 %v590_v11  ;;  %v287_v51 = vrot.slane %v286_v7, 4  ;;  %v405_v59 = vrot.slane %v403_v9, 5  ;;  %v409_v16 = vshll.u32 %v6004_v2, 16  ;;  %v5484_v53 = vld [vmem:[%s7335_s1 + $0x118] sm:$0xff] }
  0x42   : > { %1703 = vmatpush.bf16.msrb.mxu3 %v5477_v54  ;;  %v297_v20 = vrot.slane %v296_v14, 4  ;;  %1004 = vmatpush.bf16.msrb.mxu1 %v5437_v61  ;;  %v413_v21 = vshrl.u32 %v6004_v2, 16  ;;  %v419_v22 = vshll.u32 %v242_v8, 16  ;;  %v496_v23 = vshrl.u32 %v208_v10, 16  ;;  %v192_v6 = vld [vmem:[%s5846_s9 + $0x18] sm:$0xf] }
  0x43   : > { %v701_v25 = vpack.c.b16 %v683_v50, %v682_v13  ;;  %v292_v26 = vsel %vm5861_vm2, %v287_v51, %v291_v58  ;;  %v406_v28 = vor.u32 %v405_v59, %v402_v15  ;;  %v411_v29 = vrot.slane %v409_v16, 5  ;;  %v6062_v59 = vld [vmem:[%s5846_s9 + $0x1c] sm:$0xf] }
  0x44   : > { %v302_v36 = vsel %vm5861_vm2, %v297_v20, %v301_v1  ;;  %v658_v37 = vunpack.c.l.b16 %v292_v26  ;;  %v415_v38 = vrot.slane %v413_v21, 4  ;;  %v421_v39 = vrot.slane %v419_v22, 5  ;;  %801 = vmatmul.bf16.gmra.mxu1 %v693_v31  ;;  %821 = vmatmul.bf16.gmra.mxu2 %v697_v5  ;;  %v217_v31 = vld [vmem:[%s5846_s9 + $0xac] sm:$0xf] }
  0x45   : > { %1386 = vmatpush.bf16.msrb.mxu2 %v5452_v17  ;;  %v659_v43 = vunpack.c.l.b16 %v302_v36  ;;  %v407_v44 = vrot.slane %v406_v28, 4  ;;  %v498_v45 = vrot.slane %v496_v23, 4  ;;  %v499_v46 = vshll.u32 %v208_v10, 16  ;;  %841 = vmatmul.bf16.gmra.mxu3 %v701_v25  ;;  %v5450_v17 = vld [vmem:[%s7335_s1 + $0x88] sm:$0xff]  ;;  %v202_v25 = vld [vmem:[%s5846_s9 + $0x54] sm:$0xf] }
  0x46   : > { %1704 = vmatpush.bf16.msrb.mxu3 %v5476_v18  ;;  %v416_v47 = vor.u32 %v415_v38, %v411_v29  ;;  %v505_v48 = vshll.u32 %v209_v32, 16  ;;  %v509_v49 = vshrl.u32 %v209_v32, 16  ;;  %v515_v52 = vshll.u32 %v246_v33, 16  ;;  %2385 = vmatpush.bf16.msrb.mxu0 %v5485_v24  ;;  %v6068_v24 = vld [vmem:[%s5846_s9 + $0x20] sm:$0x1]  ;;  %v5474_v38 = vld [vmem:[%s7335_s1 + $0xc8] sm:$0xff] }
  0x47   : > { %v689_v54 = vpack.c.b16 %v659_v43, %v658_v37  ;;  %v412_v12 = vsel %vm5861_vm2, %v407_v44, %v411_v29  ;;  %v501_v19 = vrot.slane %v499_v46, 5  ;;  %v592_v55 = vshrl.u32 %v216_v40, 16  ;;  %1005 = vmatpush.bf16.msrb.mxu1 %v5436_v34 }
  0x48   : > { %v417_v57 = vrot.slane %v416_v47, 4  ;;  %v6052_v58 = vunpack.c.l.b16 %v412_v12  ;;  %v507_v60 = vrot.slane %v505_v48, 5  ;;  %v511_v61 = vrot.slane %v509_v49, 4 }
  0x49   : > { %1387 = vmatpush.bf16.msrb.mxu2 %v5451_v41  ;;  %781 = vmatmul.bf16.gmra.mxu0 %v689_v54  ;;  %v502_v0 = vor.u32 %v501_v19, %v498_v45  ;;  %v517_v1 = vrot.slane %v515_v52, 5  ;;  %v594_v3 = vrot.slane %v592_v55, 4  ;;  %v595_v5 = vshll.u32 %v216_v40, 16  ;;  %v5434_v40 = vld [vmem:[%s7335_s1 + $0x8] sm:$0xff]  ;;  %v5449_v45 = vld [vmem:[%s7335_s1 + $0x80] sm:$0xff] }
  0x4a   : > { %1705 = vmatpush.bf16.msrb.mxu3 %v5475_v42  ;;  %v422_v7 = vsel %vm5861_vm2, %v417_v57, %v421_v39  ;;  %v512_v8 = vor.u32 %v511_v61, %v507_v60  ;;  %v601_v9 = vshll.u32 %v217_v31, 16  ;;  %v605_v10 = vshrl.u32 %v217_v31, 16  ;;  %2386 = vmatpush.bf16.msrb.mxu0 %v5484_v53  ;;  %v5483_v39 = vld [vmem:[%s7335_s1 + $0x110] sm:$0xff]  ;;  %v6091_v52 = vld [vmem:[%s5846_s9 + $0x58] sm:$0xf]  ;;  %v5482_v57 = vld [vmem:[%s7335_s1 + $0x108] sm:$0xff] }
  0x4b   : > { %v669_v11 = vunpack.c.l.b16 %v422_v7  ;;  %v503_v13 = vrot.slane %v502_v0, 4  ;;  %v597_v14 = vrot.slane %v595_v5, 5  ;;  %v611_v15 = vshll.u32 %v250_v63, 16  ;;  %1006 = vmatpush.bf16.msrb.mxu1 %v5435_v56  ;;  %v6094_v53 = vld [vmem:[%s5846_s9 + $0x5c] sm:$0x1]  ;;  %v5473_v56 = vld [vmem:[%s7335_s1 + $0xc0] sm:$0xff] }
  0x4c   : > { %v513_v18 = vrot.slane %v512_v8, 4  ;;  %v603_v50 = vrot.slane %v601_v9, 5  ;;  %v607_v51 = vrot.slane %v605_v10, 4  ;;  %v304_v16 = vshrl.u32 %v192_v6, 16  ;;  %v210_v55 = vld [vmem:[%s5846_s9 + $0x84] sm:$0xf] }
  0x4d   : > { %v694_v20 = vpack.c.b16 %v669_v11, %v6052_v58  ;;  %v508_v21 = vsel %vm5861_vm2, %v503_v13, %v507_v60  ;;  %v598_v22 = vor.u32 %v597_v14, %v594_v3  ;;  %v613_v23 = vrot.slane %v611_v15, 5  ;;  %1388 = vmatpush.bf16.msrb.mxu2 %v5450_v17  ;;  %v5433_v0 = vld [vmem:[%s7335_s1] sm:$0xff]  ;;  %v211_v10 = vld [vmem:[%s5846_s9 + $0x88] sm:$0xf] }
  0x4e   : > { %v518_v26 = vsel %vm5861_vm2, %v513_v18, %v517_v1  ;;  %v676_v28 = vunpack.c.l.b16 %v508_v21  ;;  %v608_v29 = vor.u32 %v607_v51, %v603_v50  ;;  %v306_v32 = vrot.slane %v304_v16, 4  ;;  %1706 = vmatpush.bf16.msrb.mxu3 %v5474_v38  ;;  %2387 = vmatpush.bf16.msrb.mxu0 %v5483_v39  ;;  %v5481_v18 = vld [vmem:[%s7335_s1 + $0x100] sm:$0xff]  ;;  %v247_v16 = vld [vmem:[%s5846_s9 + $0x8c] sm:$0x1]  ;;  %v219_v39 = vld [vmem:[%s5846_s9 + $0xb8] sm:$0xf] }
  0x4f   : > { %v677_v33 = vunpack.c.l.b16 %v518_v26  ;;  %v599_v34 = vrot.slane %v598_v22, 4  ;;  %v307_v36 = vshll.u32 %v192_v6, 16  ;;  %v313_v37 = vshll.u32 %v6062_v59, 16  ;;  %1007 = vmatpush.bf16.msrb.mxu1 %v5434_v40  ;;  %v218_v22 = vld [vmem:[%s5846_s9 + $0xb4] sm:$0xf] }
  0x50   : > { %v609_v41 = vrot.slane %v608_v29, 4  ;;  %v317_v42 = vshrl.u32 %v6062_v59, 16  ;;  %v323_v43 = vshll.u32 %v6068_v24, 16  ;;  %v424_v44 = vshrl.u32 %v202_v25, 16 }
  0x51   : > { %v698_v46 = vpack.c.b16 %v677_v33, %v676_v28  ;;  %v604_v47 = vsel %vm5861_vm2, %v599_v34, %v603_v50  ;;  %v309_v48 = vrot.slane %v307_v36, 5  ;;  %v315_v49 = vrot.slane %v313_v37, 5  ;;  %1389 = vmatpush.bf16.msrb.mxu2 %v5449_v45  ;;  %v251_v45 = vld [vmem:[%s5846_s9 + $0xbc] sm:$0x1] }
  0x52   : > { %v614_v54 = vsel %vm5861_vm2, %v609_v41, %v613_v23  ;;  %v684_v12 = vunpack.c.l.b16 %v604_v47  ;;  %v319_v19 = vrot.slane %v317_v42, 4  ;;  %v325_v31 = vrot.slane %v323_v43, 5  ;;  %1707 = vmatpush.bf16.msrb.mxu3 %v5473_v56  ;;  %2388 = vmatpush.bf16.msrb.mxu0 %v5482_v57  ;;  %v5520_v47 = vld [vmem:[%s7335_s1 + $0x1b8] sm:$0xff] }
  0x53   : > { %v685_v58 = vunpack.c.l.b16 %v614_v54  ;;  %v310_v60 = vor.u32 %v309_v48, %v306_v32  ;;  %v426_v61 = vrot.slane %v424_v44, 4  ;;  %v427_v63 = vshll.u32 %v202_v25, 16  ;;  %1008 = vmatpush.bf16.msrb.mxu1 %v5433_v0 }
  0x54   : > { %v320_v1 = vor.u32 %v319_v19, %v315_v49  ;;  %v433_v3 = vshll.u32 %v6091_v52, 16  ;;  %v437_v5 = vshrl.u32 %v6091_v52, 16  ;;  %v443_v6 = vshll.u32 %v6094_v53, 16  ;;  %806 = vmatmul.bf16.gmra.mxu1 %v694_v20  ;;  %826 = vmatmul.bf16.gmra.mxu2 %v698_v46  ;;  %v194_v46 = vld [vmem:[%s5846_s9 + $0x24] sm:$0xf] }
  0x55   : > { %v702_v7 = vpack.c.b16 %v685_v58, %v684_v12  ;;  %v311_v8 = vrot.slane %v310_v60, 4  ;;  %v429_v9 = vrot.slane %v427_v63, 5  ;;  %v520_v11 = vshrl.u32 %v210_v55, 16  ;;  %3126 = vmatpush.bf16.msra.mxu2 %v5520_v47 }
  0x56   : > { %v321_v13 = vrot.slane %v320_v1, 4  ;;  %v435_v14 = vrot.slane %v433_v3, 5  ;;  %v439_v15 = vrot.slane %v437_v5, 4  ;;  %v445_v17 = vrot.slane %v443_v6, 5  ;;  %2389 = vmatpush.bf16.msrb.mxu0 %v5481_v18  ;;  %v5528_v6 = vld [vmem:[%s7335_s1 + $0x1f8] sm:$0xff] }
  0x57   : > { %846 = vmatmul.bf16.gmra.mxu3 %v702_v7  ;;  %v316_v50 = vsel %vm5861_vm2, %v311_v8, %v315_v49  ;;  %v430_v51 = vor.u32 %v429_v9, %v426_v61  ;;  %v522_v20 = vrot.slane %v520_v11, 4  ;;  %v523_v21 = vshll.u32 %v210_v55, 16  ;;  %v6132_v61 = vld [vmem:[%s5846_s9 + $0x28] sm:$0xf]  ;;  %v5496_v7 = vld [vmem:[%s7335_s1 + $0x178] sm:$0xff] }
  0x58   : > { %v326_v23 = vsel %vm5861_vm2, %v321_v13, %v325_v31  ;;  %v660_v25 = vunpack.c.l.b16 %v316_v50  ;;  %v440_v26 = vor.u32 %v439_v15, %v435_v14  ;;  %v529_v28 = vshll.u32 %v211_v10, 16  ;;  %v5536_v8 = vld [vmem:[%s7335_s1 + $0x238] sm:$0xff]  ;;  %3808 = vmatpush.bf16.msra.mxu3 %v5528_v6  ;;  %2808 = vmatpush.bf16.msra.mxu1 %v5496_v7 }
  0x59   : > { %v661_v29 = vunpack.c.l.b16 %v326_v23  ;;  %v431_v32 = vrot.slane %v430_v51, 4  ;;  %v525_v33 = vrot.slane %v523_v21, 5  ;;  %v533_v34 = vshrl.u32 %v211_v10, 16 }
  0x5a   : > { %v441_v36 = vrot.slane %v440_v26, 4  ;;  %v531_v37 = vrot.slane %v529_v28, 5  ;;  %v539_v38 = vshll.u32 %v247_v16, 16  ;;  %v616_v40 = vshrl.u32 %v218_v22, 16  ;;  %4234 = vmatpush.bf16.msra.mxu0 %v5536_v8  ;;  %v1090_v26 = vld [vmem:[%s5846_s9] sm:$0xe] }
  0x5b   : > { %v690_v41 = vpack.c.b16 %v661_v29, %v660_v25  ;;  %v436_v42 = vsel %vm5861_vm2, %v431_v32, %v435_v14  ;;  %v526_v43 = vor.u32 %v525_v33, %v522_v20  ;;  %v535_v44 = vrot.slane %v533_v34, 4  ;;  %v6146_v14 = vld [vmem:[%s5846_s9 + $0x2c] sm:$0x1] }
  0x5c   : > { %v446_v48 = vsel %vm5861_vm2, %v441_v36, %v445_v17  ;;  %v670_v49 = vunpack.c.l.b16 %v436_v42  ;;  %v541_v54 = vrot.slane %v539_v38, 5  ;;  %v618_v12 = vrot.slane %v616_v40, 4  ;;  %v4916_v38 = vld [vmem:[%s5846_s9 + $0xc] sm:$0xf] }
  0x5d   : > { %786 = vmatmul.bf16.gmra.mxu0 %v690_v41  ;;  %v671_v19 = vunpack.c.l.b16 %v446_v48  ;;  %v527_v31 = vrot.slane %v526_v43, 4  ;;  %v536_v55 = vor.u32 %v535_v44, %v531_v37  ;;  %v619_v56 = vshll.u32 %v218_v22, 16 }
  0x5e   : > { %v625_v57 = vshll.u32 %v219_v39, 16  ;;  %v629_v58 = vshrl.u32 %v219_v39, 16  ;;  %v635_v60 = vshll.u32 %v251_v45, 16  ;;  %v328_v63 = vshrl.u32 %v194_v46, 16  ;;  %v4917_v39 = vld [vmem:[%s5846_s9 + $0x10] sm:$0xf] }
  0x5f   : > { %v695_v0 = vpack.c.b16 %v671_v19, %v670_v49  ;;  %v532_v1 = vsel %vm5861_vm2, %v527_v31, %v531_v37  ;;  %v537_v3 = vrot.slane %v536_v55, 4  ;;  %v621_v5 = vrot.slane %v619_v56, 5 }
  0x60   : > { %v678_v9 = vunpack.c.l.b16 %v532_v1  ;;  %v627_v10 = vrot.slane %v625_v57, 5  ;;  %v631_v11 = vrot.slane %v629_v58, 4  ;;  %v637_v13 = vrot.slane %v635_v60, 5  ;;  %v4918_v58 = vld [vmem:[%s5846_s9 + $0x14] sm:$0x1] }
  0x61   : > { %v542_v15 = vsel %vm5861_vm2, %v537_v3, %v541_v54  ;;  %v622_v17 = vor.u32 %v621_v5, %v618_v12  ;;  %v330_v18 = vrot.slane %v328_v63, 4  ;;  %v331_v50 = vshll.u32 %v194_v46, 16 }
  0x62   : > { %v679_v51 = vunpack.c.l.b16 %v542_v15  ;;  %v632_v16 = vor.u32 %v631_v11, %v627_v10  ;;  %v337_v20 = vshll.u32 %v6132_v61, 16  ;;  %v341_v21 = vshrl.u32 %v6132_v61, 16 }
  0x63   : > { %v623_v22 = vrot.slane %v622_v17, 4  ;;  %v333_v23 = vrot.slane %v331_v50, 5  ;;  %v347_v25 = vshll.u32 %v6146_v14, 16  ;;  %v4708_v44 = vrot.slane %v1090_v26, 9  ;;  %v4919_v50 = vld [vmem:[%s5846_s9 + $0x18] sm:$0xf] }
  0x64   : > { %v699_v28 = vpack.c.b16 %v679_v51, %v678_v9  ;;  %v633_v29 = vrot.slane %v632_v16, 4  ;;  %v339_v32 = vrot.slane %v337_v20, 5  ;;  %v343_v33 = vrot.slane %v341_v21, 4  ;;  %811 = vmatmul.bf16.gmra.mxu1 %v695_v0  ;;  %v5417_v51 = vld [vmem:[%s5846_s9] sm:$0xff]  ;;  %v4920_v16 = vld [vmem:[%s5846_s9 + $0x1c] sm:$0xf] }
  0x65   : > { %v628_v34 = vsel %vm5861_vm2, %v623_v22, %v627_v10  ;;  %v334_v36 = vor.u32 %v333_v23, %v330_v18  ;;  %v349_v37 = vrot.slane %v347_v25, 5  ;;  %v1143_v47 = vrot.slane %v5886_v62, 5  ;;  %v1091_v21 = vld [vmem:[%s5846_s9 + $0xc] sm:$0xe] }
  0x66   : > { %831 = vmatmul.bf16.gmra.mxu2 %v699_v28  ;;  %v638_v40 = vsel %vm5861_vm2, %v633_v29, %v637_v13  ;;  %v686_v41 = vunpack.c.l.b16 %v628_v34  ;;  %v344_v42 = vor.u32 %v343_v33, %v339_v32  ;;  %v1146_v48 = vrot.slane %v5893_v4, 5  ;;  %v5457_v34 = vld [vmem:[%s5846_s9 + $0xc] sm:$0xff] }
  0x67   : > { %v687_v45 = vunpack.c.l.b16 %v638_v40  ;;  %v335_v46 = vrot.slane %v334_v36, 4  ;;  %v1870_v54 = vshrl.u32 %v4916_v38, 16  ;;  %v1873_v12 = vshll.u32 %v4916_v38, 16 }
  0x68   : > { %v345_v49 = vrot.slane %v344_v42, 4  ;;  %v1879_v19 = vshll.u32 %v4917_v39, 16  ;;  %v1144_v56 = vsel %vm6161_vm5, %v4708_v44, %v1143_v47  ;;  %v1145_v57 = vrot.slane %v1143_v47, 4  ;;  %v4921_v44 = vld [vmem:[%s5846_s9 + $0x20] sm:$0x1] }
  0x69   : > { %v703_v31 = vpack.c.b16 %v687_v45, %v686_v41  ;;  %v340_v55 = vsel %vm5861_vm2, %v335_v46, %v339_v32  ;;  %v1270_v62 = vunpack.c.l.b16 %v1144_v56  ;;  %v1872_v0 = vrot.slane %v1870_v54, 4  ;;  %v5495_v56 = vld [vmem:[%s7335_s1 + $0x170] sm:$0xff] }
  0x6a   : > { %v350_v60 = vsel %vm5861_vm2, %v345_v49, %v349_v37  ;;  %v662_v63 = vunpack.c.l.b16 %v340_v55  ;;  %v1147_v1 = vsel %vm6161_vm5, %v1145_v57, %v1146_v48  ;;  %v1875_v3 = vrot.slane %v1873_v12, 5  ;;  %v5519_v48 = vld [vmem:[%s7335_s1 + $0x1b0] sm:$0xff]  ;;  %2809 = vmatpush.bf16.msra.mxu1 %v5495_v56 }
  0x6b   : > { %851 = vmatmul.bf16.gmra.mxu3 %v703_v31  ;;  %v663_v4 = vunpack.c.l.b16 %v350_v60  ;;  %v1271_v5 = vunpack.c.l.b16 %v1147_v1  ;;  %v1881_v6 = vrot.slane %v1879_v19, 5  ;;  %v1883_v7 = vshrl.u32 %v4917_v39, 16  ;;  %3127 = vmatpush.bf16.msra.mxu2 %v5519_v48  ;;  %v4922_v31 = vld [vmem:[%s5846_s9 + $0x24] sm:$0xf]  ;;  %v5527_v55 = vld [vmem:[%s7335_s1 + $0x1f0] sm:$0xff] }
  0x6c   : > { %v1889_v8 = vshll.u32 %v4918_v58, 16  ;;  %v1876_v10 = vor.u32 %v1875_v3, %v1872_v0  ;;  %v1150_v22 = vrot.slane %v5965_v27, 5  ;;  %v1894_v23 = vshrl.u32 %v4919_v50, 16  ;;  %v5535_v57 = vld [vmem:[%s7335_s1 + $0x230] sm:$0xff]  ;;  %3809 = vmatpush.bf16.msra.mxu3 %v5527_v55  ;;  %v1093_v48 = vld [vmem:[%s5846_s9 + $0x24] sm:$0xe] }
  0x6d   : > { %v691_v9 = vpack.c.b16 %v663_v4, %v662_v63  ;;  %v1302_v11 = vpack.c.b16 %v1271_v5, %v1270_v62  ;;  %v1885_v13 = vrot.slane %v1883_v7, 4  ;;  %v1897_v25 = vshll.u32 %v4919_v50, 16  ;;  %v4923_v62 = vld [vmem:[%s5846_s9 + $0x28] sm:$0xf]  ;;  %v5418_v0 = vld [vmem:[%s5846_s9 + $0xc] sm:$0xff]  ;;  %4235 = vmatpush.bf16.msra.mxu0 %v5535_v57 }
  0x6e   : > { %v1877_v15 = vrot.slane %v1876_v10, 4  ;;  %v1891_v18 = vrot.slane %v1889_v8, 5  ;;  %v1903_v29 = vshll.u32 %v4920_v16, 16  ;;  %v1907_v32 = vshrl.u32 %v4920_v16, 16 }
  0x6f   : > { %791 = vmatmul.bf16.gmra.mxu0 %v691_v9  ;;  %v1886_v17 = vor.u32 %v1885_v13, %v1881_v6  ;;  %v4709_v33 = vrot.slane %v1091_v21, 9  ;;  %v1152_v38 = vrot.slane %v1150_v22, 4  ;;  %v1153_v27 = vrot.slane %v5975_v35, 5  ;;  %v4924_v21 = vld [vmem:[%s5846_s9 + $0x2c] sm:$0x1] }
  0x70   : > { %v1882_v26 = vsel %vm5861_vm2, %v1877_v15, %v1881_v6  ;;  %v1896_v39 = vrot.slane %v1894_v23, 4  ;;  %v1899_v40 = vrot.slane %v1897_v25, 5  ;;  %v1905_v41 = vrot.slane %v1903_v29, 5  ;;  %v1092_v6 = vld [vmem:[%s5846_s9 + $0x18] sm:$0xe] }
  0x71   : > { %v1887_v20 = vrot.slane %v1886_v17, 4  ;;  %v2270_v36 = vunpack.c.l.b16 %v1882_v26  ;;  %v1909_v42 = vrot.slane %v1907_v32, 4  ;;  %v1151_v46 = vsel %vm6161_vm5, %v4709_v33, %v1150_v22 }
  0x72   : > { %v1154_v47 = vsel %vm6161_vm5, %v1152_v38, %v1153_v27  ;;  %v1900_v35 = vor.u32 %v1899_v40, %v1896_v39  ;;  %v1913_v54 = vshll.u32 %v4921_v44, 16  ;;  %v1272_v12 = vunpack.c.l.b16 %v1151_v46  ;;  %v4926_v38 = vld [vmem:[%s5846_s9 + $0x34] sm:$0xf]  ;;  %v5419_v27 = vld [vmem:[%s5846_s9 + $0x18] sm:$0xff] }
  0x73   : > { %v1892_v28 = vsel %vm5861_vm2, %v1887_v20, %v1891_v18  ;;  %v1910_v49 = vor.u32 %v1909_v42, %v1905_v41  ;;  %v1273_v19 = vunpack.c.l.b16 %v1154_v47  ;;  %v1157_v1 = vrot.slane %v6062_v59, 5  ;;  %v5458_v18 = vld [vmem:[%s5846_s9 + $0x18] sm:$0xff] }
  0x74   : > { %1009 = vmatmul.bf16.vlgmr.msrb.gmra.mxu1 %v5417_v51  ;;  %v2271_v37 = vunpack.c.l.b16 %v1892_v28  ;;  %v1901_v58 = vrot.slane %v1900_v35, 4  ;;  %v1915_v63 = vrot.slane %v1913_v54, 5  ;;  %v1918_v3 = vshrl.u32 %v4922_v31, 16 }
  0x75   : > { %v1911_v60 = vrot.slane %v1910_v49, 4  ;;  %v1303_v4 = vpack.c.b16 %v1273_v19, %v1272_v12  ;;  %v1921_v5 = vshll.u32 %v4922_v31, 16  ;;  %v1927_v7 = vshll.u32 %v4923_v62, 16  ;;  %v5459_v31 = vld [vmem:[%s5846_s9 + $0x24] sm:$0xff] }
  0x76   : > { %1390 = vmatmul.bf16.vlgmr.msrb.gmra.mxu2 %v1302_v11  ;;  %v2302_v45 = vpack.c.b16 %v2271_v37, %v2270_v36  ;;  %v1931_v8 = vshrl.u32 %v4923_v62, 16  ;;  %v1906_v9 = vsel %vm5861_vm2, %v1901_v58, %v1905_v41  ;;  %v1160_v11 = vrot.slane %v6068_v24, 5  ;;  %v4925_v37 = vld [vmem:[%s5846_s9 + $0x30] sm:$0xf] }
  0x77   : > { %v1916_v10 = vsel %vm5861_vm2, %v1911_v60, %v1915_v63  ;;  %v4710_v13 = vrot.slane %v1092_v6, 9  ;;  %v1159_v59 = vrot.slane %v1157_v1, 4  ;;  %v1920_v15 = vrot.slane %v1918_v3, 4  ;;  %v4928_v6 = vld [vmem:[%s5846_s9 + $0x3c] sm:$0xf] }
  0x78   : > { %v1923_v17 = vrot.slane %v1921_v5, 5  ;;  %v2272_v50 = vunpack.c.l.b16 %v1906_v9  ;;  %v2273_v51 = vunpack.c.l.b16 %v1916_v10  ;;  %v1929_v16 = vrot.slane %v1927_v7, 5  ;;  %v4929_v7 = vld [vmem:[%s5846_s9 + $0x40] sm:$0xf] }
  0x79   : > { %v1933_v20 = vrot.slane %v1931_v8, 4  ;;  %v1158_v22 = vsel %vm6161_vm5, %v4710_v13, %v1157_v1  ;;  %v1161_v25 = vsel %vm6161_vm5, %v1159_v59, %v1160_v11  ;;  %v1937_v28 = vshll.u32 %v4924_v21, 16  ;;  %v5518_v1 = vld [vmem:[%s7335_s1 + $0x1a8] sm:$0xff]  ;;  %v5621_v21 = vld [vmem:[%s5846_s9 + $0x34] sm:$0xf] }
  0x7a   : > { %v1924_v23 = vor.u32 %v1923_v17, %v1920_v15  ;;  %v2303_v24 = vpack.c.b16 %v2273_v51, %v2272_v50  ;;  %v1274_v29 = vunpack.c.l.b16 %v1158_v22  ;;  %v1275_v32 = vunpack.c.l.b16 %v1161_v25  ;;  %3128 = vmatpush.bf16.msra.mxu2 %v5518_v1  ;;  %v5526_v11 = vld [vmem:[%s7335_s1 + $0x1e8] sm:$0xff]  ;;  %v1095_v1 = vld [vmem:[%s5846_s9 + $0x3c] sm:$0xe] }
  0x7b   : > { %1708 = vmatmul.bf16.vlgmr.msrb.gmra.mxu3 %v5457_v34  ;;  %v1934_v26 = vor.u32 %v1933_v20, %v1929_v16  ;;  %v1939_v36 = vrot.slane %v1937_v28, 5  ;;  %v1942_v41 = vshrl.u32 %v4925_v37, 16  ;;  %v1945_v42 = vshll.u32 %v4925_v37, 16  ;;  %v5494_v13 = vld [vmem:[%s7335_s1 + $0x168] sm:$0xff]  ;;  %v5622_v37 = vld [vmem:[%s5846_s9 + $0x38] sm:$0x1] }
  0x7c   : > { %v1925_v33 = vrot.slane %v1924_v23, 4  ;;  %v1304_v39 = vpack.c.b16 %v1275_v32, %v1274_v29  ;;  %v1951_v46 = vshll.u32 %v4926_v38, 16  ;;  %v1955_v47 = vshrl.u32 %v4926_v38, 16  ;;  %v5534_v59 = vld [vmem:[%s7335_s1 + $0x228] sm:$0xff]  ;;  %3810 = vmatpush.bf16.msra.mxu3 %v5526_v11  ;;  %2810 = vmatpush.bf16.msra.mxu1 %v5494_v13  ;;  %v5624_v13 = vld [vmem:[%s5846_s9 + $0x44] sm:$0x1] }
  0x7d   : > { %v1935_v34 = vrot.slane %v1934_v26, 4  ;;  %v1167_v54 = vrot.slane %v6146_v14, 5  ;;  %v1944_v12 = vrot.slane %v1942_v41, 4  ;;  %v1947_v19 = vrot.slane %v1945_v42, 5  ;;  %v5420_v15 = vld [vmem:[%s5846_s9 + $0x24] sm:$0xff]  ;;  %4236 = vmatpush.bf16.msra.mxu0 %v5534_v59 }
  0x7e   : > { %v1930_v40 = vsel %vm5861_vm2, %v1925_v33, %v1929_v16  ;;  %v4711_v55 = vrot.slane %v1093_v48, 9  ;;  %v1953_v57 = vrot.slane %v1951_v46, 5  ;;  %v1957_v58 = vrot.slane %v1955_v47, 4  ;;  %v5460_v33 = vld [vmem:[%s5846_s9 + $0x30] sm:$0xff] }
  0x7f   : > { %2390 = vmatmul.bf16.vlgmr.msrb.gmra.mxu0 %v2302_v45  ;;  %v1940_v44 = vsel %vm5861_vm2, %v1935_v34, %v1939_v36  ;;  %v1164_v45 = vrot.slane %v6132_v61, 5  ;;  %v2274_v35 = vunpack.c.l.b16 %v1930_v40  ;;  %v4927_v61 = vld [vmem:[%s5846_s9 + $0x38] sm:$0x1]  ;;  %v1948_v63 = vor.u32 %v1947_v19, %v1944_v12  ;;  %v4931_v12 = vld [vmem:[%s5846_s9 + $0x48] sm:$0xf] }
  0x80   : > { %v2275_v49 = vunpack.c.l.b16 %v1940_v44  ;;  %v1958_v14 = vor.u32 %v1957_v58, %v1953_v57  ;;  %v1966_v17 = vshrl.u32 %v4928_v6, 16  ;;  %v1975_v51 = vshll.u32 %v4929_v7, 16  ;;  %v4932_v19 = vld [vmem:[%s5846_s9 + $0x4c] sm:$0xf] }
  0x81   : > { %v1166_v56 = vrot.slane %v1164_v45, 4  ;;  %v1165_v62 = vsel %vm6161_vm5, %v4711_v55, %v1164_v45  ;;  %v1949_v8 = vrot.slane %v1948_v63, 4  ;;  %v1171_v22 = vrot.slane %v5621_v21, 5 }
  0x82   : > { %v2304_v60 = vpack.c.b16 %v2275_v49, %v2274_v35  ;;  %v1276_v3 = vunpack.c.l.b16 %v1165_v62  ;;  %v1959_v9 = vrot.slane %v1958_v14, 4  ;;  %v1979_v23 = vshrl.u32 %v4929_v7, 16  ;;  %v5623_v62 = vld [vmem:[%s5846_s9 + $0x40] sm:$0xf] }
  0x83   : > { %v1954_v16 = vsel %vm5861_vm2, %v1949_v8, %v1953_v57  ;;  %v1968_v25 = vrot.slane %v1966_v17, 4  ;;  %v1977_v32 = vrot.slane %v1975_v51, 5  ;;  %v1173_v36 = vrot.slane %v1171_v22, 4 }
  0x84   : > { %1014 = vmatmul.bf16.gmra.mxu1 %v5418_v0  ;;  %v1168_v0 = vsel %vm6161_vm5, %v1166_v56, %v1167_v54  ;;  %v2276_v28 = vunpack.c.l.b16 %v1954_v16  ;;  %v1174_v38 = vrot.slane %v5622_v37, 5  ;;  %v1990_v58 = vshrl.u32 %v4931_v12, 16  ;;  %v4935_v37 = vld [vmem:[%s5846_s9 + $0x58] sm:$0xf] }
  0x85   : > { %v1277_v5 = vunpack.c.l.b16 %v1168_v0  ;;  %v1178_v0 = vrot.slane %v5623_v62, 5  ;;  %v2003_v14 = vshrl.u32 %v4932_v19, 16  ;;  %v1181_v59 = vrot.slane %v5624_v13, 5 }
  0x86   : > { %1395 = vmatmul.bf16.gmra.mxu2 %v1303_v4  ;;  %v1961_v4 = vshll.u32 %v4927_v61, 16  ;;  %v1175_v44 = vsel %vm6161_vm5, %v1173_v36, %v1174_v38  ;;  %v1993_v61 = vshll.u32 %v4931_v12, 16  ;;  %v5525_v38 = vld [vmem:[%s7335_s1 + $0x1e0] sm:$0xff]  ;;  %v2027_v12 = vshrl.u32 %v4935_v37, 16 }
  0x87   : > { %v1305_v50 = vpack.c.b16 %v1277_v5, %v1276_v3  ;;  %v1279_v35 = vunpack.c.l.b16 %v1175_v44  ;;  %v1180_v11 = vrot.slane %v1178_v0, 4  ;;  %3811 = vmatpush.bf16.msra.mxu3 %v5525_v38 }
  0x88   : > { %v1963_v10 = vrot.slane %v1961_v4, 5  ;;  %v1995_v7 = vrot.slane %v1993_v61, 5 }
  0x8a   : > { %v1964_v20 = vsel %vm5861_vm2, %v1959_v9, %v1963_v10  ;;  %v5461_v9 = vld [vmem:[%s5846_s9 + $0x3c] sm:$0xff]  ;;  %v4713_v10 = vrot.slane %v1095_v1, 9 }
  0x8b   : > { %1713 = vmatmul.bf16.gmra.mxu3 %v5458_v18  ;;  %v1969_v18 = vshll.u32 %v4928_v6, 16  ;;  %v2277_v29 = vunpack.c.l.b16 %v1964_v20  ;;  %v1992_v6 = vrot.slane %v1990_v58, 4 }
  0x8c   : > { %v1179_v21 = vsel %vm6161_vm5, %v4713_v10, %v1178_v0 }
  0x8d   : > { %v1971_v26 = vrot.slane %v1969_v18, 5  ;;  %v2305_v41 = vpack.c.b16 %v2277_v29, %v2276_v28  ;;  %v4933_v18 = vld [vmem:[%s5846_s9 + $0x50] sm:$0x1]  ;;  %v1996_v20 = vor.u32 %v1995_v7, %v1992_v6  ;;  %v1280_v28 = vunpack.c.l.b16 %v1179_v21 }
  0x8f   : > { %2395 = vmatmul.bf16.gmra.mxu0 %v2303_v24  ;;  %v1094_v24 = vld [vmem:[%s5846_s9 + $0x30] sm:$0xe]  ;;  %v1972_v40 = vor.u32 %v1971_v26, %v1968_v25  ;;  %v5517_v25 = vld [vmem:[%s7335_s1 + $0x1a0] sm:$0xff] }
  0x90   : > { %v4712_v34 = vrot.slane %v1094_v24, 9  ;;  %v2009_v24 = vshll.u32 %v4933_v18, 16  ;;  %3129 = vmatpush.bf16.msra.mxu2 %v5517_v25 }
  0x91   : > { %v1973_v47 = vrot.slane %v1972_v40, 4 }
  0x92   : > { %v1172_v42 = vsel %vm6161_vm5, %v4712_v34, %v1171_v22  ;;  %v1182_v22 = vsel %vm6161_vm5, %v1180_v11, %v1181_v59  ;;  %v2011_v36 = vrot.slane %v2009_v24, 5 }
  0x93   : > { %v1278_v48 = vunpack.c.l.b16 %v1172_v42  ;;  %v1978_v55 = vsel %vm5861_vm2, %v1973_v47, %v1977_v32  ;;  %v1281_v29 = vunpack.c.l.b16 %v1182_v22  ;;  %v2023_v47 = vshll.u32 %v4935_v37, 16  ;;  %v4937_v22 = vld [vmem:[%s5846_s9 + $0x60] sm:$0xf] }
  0x94   : > { %1019 = vmatmul.bf16.gmra.mxu1 %v5419_v27  ;;  %v1981_v27 = vrot.slane %v1979_v23, 4  ;;  %v2278_v3 = vunpack.c.l.b16 %v1978_v55  ;;  %v2041_v37 = vshll.u32 %v4937_v22, 16 }
  0x95   : > { %v1306_v57 = vpack.c.b16 %v1279_v35, %v1278_v48  ;;  %v5533_v48 = vld [vmem:[%s7335_s1 + $0x220] sm:$0xff] }
  0x96   : > { %1400 = vmatmul.bf16.gmra.mxu2 %v1304_v39  ;;  %v4930_v39 = vld [vmem:[%s5846_s9 + $0x44] sm:$0x1]  ;;  %v1982_v45 = vor.u32 %v1981_v27, %v1977_v32  ;;  %v1997_v32 = vrot.slane %v1996_v20, 4  ;;  %4237 = vmatpush.bf16.msra.mxu0 %v5533_v48 }
  0x97   : > { %v1985_v46 = vshll.u32 %v4930_v39, 16  ;;  %v5493_v27 = vld [vmem:[%s7335_s1 + $0x160] sm:$0xff] }
  0x98   : > { %v1983_v49 = vrot.slane %v1982_v45, 4  ;;  %2811 = vmatpush.bf16.msra.mxu1 %v5493_v27 }
  0x99   : > { %v1987_v54 = vrot.slane %v1985_v46, 5  ;;  %v1307_v46 = vpack.c.b16 %v1281_v29, %v1280_v28  ;;  %v5423_v29 = vld [vmem:[%s5846_s9 + $0x48] sm:$0xff] }
  0x9b   : > { %1718 = vmatmul.bf16.gmra.mxu3 %v5459_v31  ;;  %v5421_v31 = vld [vmem:[%s5846_s9 + $0x30] sm:$0xff]  ;;  %v1988_v63 = vsel %vm5861_vm2, %v1983_v49, %v1987_v54  ;;  %v1185_v54 = vrot.slane %v6004_v2, 5 }
  0x9c   : > { %v2279_v5 = vunpack.c.l.b16 %v1988_v63  ;;  %v5462_v63 = vld [vmem:[%s5846_s9 + $0x48] sm:$0xff] }
  0x9d   : > { %v1187_v0 = vrot.slane %v1185_v54, 4 }
  0x9e   : > { %v2306_v51 = vpack.c.b16 %v2279_v5, %v2278_v3  ;;  %v2029_v3 = vrot.slane %v2027_v12, 4  ;;  %v4936_v5 = vld [vmem:[%s5846_s9 + $0x5c] sm:$0x1] }
  0x9f   : > { %2400 = vmatmul.bf16.gmra.mxu0 %v2304_v60  ;;  %v1999_v60 = vshll.u32 %v4932_v19, 16  ;;  %v1096_v19 = vld [vmem:[%s5846_s9 + $0x48] sm:$0xe]  ;;  %v2033_v59 = vshll.u32 %v4936_v5, 16  ;;  %v5516_v5 = vld [vmem:[%s7335_s1 + $0x198] sm:$0xff] }
  0xa0   : > { %v4714_v62 = vrot.slane %v1096_v19, 9  ;;  %3130 = vmatpush.bf16.msra.mxu2 %v5516_v5 }
  0xa1   : > { %v2001_v8 = vrot.slane %v1999_v60, 5  ;;  %v2025_v60 = vrot.slane %v2023_v47, 5  ;;  %v2035_v21 = vrot.slane %v2033_v59, 5  ;;  %v4940_v59 = vld [vmem:[%s5846_s9 + $0x6c] sm:$0xf] }
  0xa2   : > { %v1186_v10 = vsel %vm6161_vm5, %v4714_v62, %v1185_v54  ;;  %v5463_v54 = vld [vmem:[%s5846_s9 + $0x54] sm:$0xff] }
  0xa3   : > { %v2002_v35 = vsel %vm5861_vm2, %v1997_v32, %v2001_v8  ;;  %v2030_v13 = vor.u32 %v2029_v3, %v2025_v60  ;;  %v1282_v18 = vunpack.c.l.b16 %v1186_v10 }
  0xa4   : > { %1024 = vmatmul.bf16.gmra.mxu1 %v5420_v15  ;;  %v2005_v15 = vrot.slane %v2003_v14, 4  ;;  %v2280_v58 = vunpack.c.l.b16 %v2002_v35  ;;  %v5625_v14 = vld [vmem:[%s5846_s9 + $0x50] sm:$0x1]  ;;  %v2043_v35 = vrot.slane %v2041_v37, 5  ;;  %v5626_v37 = vld [vmem:[%s5846_s9 + $0x64] sm:$0xf] }
  0xa5   : > { %v1188_v1 = vrot.slane %v5625_v14, 5  ;;  %v2031_v20 = vrot.slane %v2030_v13, 4 }
  0xa6   : > { %1405 = vmatmul.bf16.gmra.mxu2 %v1305_v50  ;;  %v2006_v23 = vor.u32 %v2005_v15, %v2001_v8 }
  0xa7   : > { %v1189_v11 = vsel %vm6161_vm5, %v1187_v0, %v1188_v1  ;;  %v2036_v27 = vsel %vm5861_vm2, %v2031_v20, %v2035_v21  ;;  %v5424_v20 = vld [vmem:[%s5846_s9 + $0x54] sm:$0xff]  ;;  %v4941_v21 = vld [vmem:[%s5846_s9 + $0x70] sm:$0xf] }
  0xa8   : > { %v2007_v34 = vrot.slane %v2006_v23, 4  ;;  %v4938_v23 = vld [vmem:[%s5846_s9 + $0x64] sm:$0xf]  ;;  %v2283_v47 = vunpack.c.l.b16 %v2036_v27  ;;  %v2065_v27 = vshll.u32 %v4940_v59, 16 }
  0xa9   : > { %v2047_v38 = vshll.u32 %v4938_v23, 16 }
  0xaa   : > { %v2012_v49 = vsel %vm5861_vm2, %v2007_v34, %v2011_v36  ;;  %v2038_v36 = vshrl.u32 %v4937_v22, 16 }
  0xab   : > { %1723 = vmatmul.bf16.gmra.mxu3 %v5460_v33  ;;  %v4934_v33 = vld [vmem:[%s5846_s9 + $0x54] sm:$0xf]  ;;  %v2281_v61 = vunpack.c.l.b16 %v2012_v49  ;;  %v2049_v49 = vrot.slane %v2047_v38, 5  ;;  %v1199_v38 = vrot.slane %v5626_v37, 5 }
  0xac   : > { %v2014_v42 = vshrl.u32 %v4934_v33, 16  ;;  %v2017_v44 = vshll.u32 %v4934_v33, 16  ;;  %v2040_v48 = vrot.slane %v2038_v36, 4 }
  0xad   : > { %v2307_v8 = vpack.c.b16 %v2281_v61, %v2280_v58  ;;  %v4939_v61 = vld [vmem:[%s5846_s9 + $0x68] sm:$0x1] }
  0xae   : > { %v2019_v55 = vrot.slane %v2017_v44, 5  ;;  %v1097_v44 = vld [vmem:[%s5846_s9 + $0x54] sm:$0xe]  ;;  %v2044_v62 = vor.u32 %v2043_v35, %v2040_v48  ;;  %v2057_v3 = vshll.u32 %v4939_v61, 16  ;;  %v2067_v61 = vrot.slane %v2065_v27, 5  ;;  %v5425_v27 = vld [vmem:[%s5846_s9 + $0x60] sm:$0xff] }
  0xaf   : > { %2405 = vmatmul.bf16.gmra.mxu0 %v2305_v41  ;;  %v5422_v41 = vld [vmem:[%s5846_s9 + $0x3c] sm:$0xff]  ;;  %v4715_v12 = vrot.slane %v1097_v44, 9  ;;  %v2071_v44 = vshll.u32 %v4941_v21, 16 }
  0xb0   : > { %v2045_v10 = vrot.slane %v2044_v62, 4  ;;  %v2059_v13 = vrot.slane %v2057_v3, 5 }
  0xb1   : > { %v6269_v56 = vpop.f32.mrf.mxu1 }
  0xb4   : > { %v6274_v4 = vpop.f32.mrf.mxu0  ;;  %1029 = vmatmul.bf16.gmra.mxu1 %v5421_v31  ;;  %v2016_v31 = vrot.slane %v2014_v42, 4  ;;  %v2051_v42 = vshrl.u32 %v4938_v23, 16 }
  0xb6   : > { %1410 = vmatmul.bf16.gmra.mxu2 %v1306_v57  ;;  %v2020_v7 = vor.u32 %v2019_v55, %v2016_v31  ;;  %v1195_v31 = vrot.slane %v6094_v53, 5  ;;  %v2053_v55 = vrot.slane %v2051_v42, 4  ;;  %v1098_v42 = vld [vmem:[%s5846_s9 + $0x60] sm:$0xe] }
  0xb7   : > { %v6279_v17 = vpop.f32.mrf.mxu2 }
  0xb8   : > { %v6282_v50 = vpop.f32.mrf.mxu3  ;;  %v2021_v15 = vrot.slane %v2020_v7, 4  ;;  %v2054_v1 = vor.u32 %v2053_v55, %v2049_v49 }
  0xb9   : > { %v6284_v16 = vpop.f32.mrf.mxu1 }
  0xba   : > { %v2026_v32 = vsel %vm5861_vm2, %v2021_v15, %v2025_v60  ;;  %v5524_v15 = vld [vmem:[%s7335_s1 + $0x1d8] sm:$0xff] }
  0xbb   : > { %1728 = vmatmul.bf16.gmra.mxu3 %v5461_v9 }
  0xbc   : > { %v6293_v26 = vpop.f32.mrf.mxu0  ;;  %3812 = vmatpush.bf16.msra.mxu3 %v5524_v15 }
  0xbf   : > { %2410 = vmatmul.bf16.gmra.mxu0 %v2306_v51  ;;  %v6303_v39 = vpop.f32.mrf.mxu2  ;;  %v1283_v51 = vunpack.c.l.b16 %v1189_v11  ;;  %v2055_v11 = vrot.slane %v2054_v1, 4 }
  0xc0   : > { %v6305_v40 = vpop.f32.mrf.mxu3 }
  0xc1   : > { %v6308_v45 = vpop.f32.mrf.mxu1  ;;  %v1308_v34 = vpack.c.b16 %v1283_v51, %v1282_v18  ;;  %v5492_v18 = vld [vmem:[%s7335_s1 + $0x158] sm:$0xff]  ;;  %v2060_v36 = vsel %vm5861_vm2, %v2055_v11, %v2059_v13 }
  0xc2   : > { %2812 = vmatpush.bf16.msra.mxu1 %v5492_v18  ;;  %v2285_v35 = vunpack.c.l.b16 %v2060_v36 }
  0xc4   : > { %1034 = vmatmul.bf16.gmra.mxu1 %v5422_v41  ;;  %v1192_v41 = vrot.slane %v6091_v52, 5 }
  0xc6   : > { %v6319_v57 = vpop.f32.mrf.mxu0  ;;  %1415 = vmatmul.bf16.gmra.mxu2 %v1307_v46  ;;  %v2282_v46 = vunpack.c.l.b16 %v2026_v32  ;;  %v1194_v19 = vrot.slane %v1192_v41, 4  ;;  %v1193_v14 = vsel %vm6161_vm5, %v4715_v12, %v1192_v41  ;;  %v4716_v12 = vrot.slane %v1098_v42, 9 }
  0xc7   : > { %v6323_v2 = vpop.f32.mrf.mxu2  ;;  %v1284_v7 = vunpack.c.l.b16 %v1193_v14 }
  0xc8   : > { %v6326_v6 = vpop.f32.mrf.mxu3  ;;  %v2308_v60 = vpack.c.b16 %v2283_v47, %v2282_v46  ;;  %v1196_v53 = vsel %vm6161_vm5, %v1194_v19, %v1195_v31  ;;  %v2075_v46 = vshrl.u32 %v4941_v21, 16  ;;  %v5532_v47 = vld [vmem:[%s7335_s1 + $0x218] sm:$0xff]  ;;  %v1201_v19 = vrot.slane %v1199_v38, 4  ;;  %v5627_v31 = vld [vmem:[%s5846_s9 + $0x68] sm:$0x1] }
  0xc9   : > { %v6328_v9 = vpop.f32.mrf.mxu1  ;;  %4238 = vmatpush.bf16.msra.mxu0 %v5532_v47  ;;  %v1202_v55 = vrot.slane %v5627_v31, 5  ;;  %v1200_v5 = vsel %vm6161_vm5, %v4716_v12, %v1199_v38  ;;  %v4944_v21 = vld [vmem:[%s5846_s9 + $0x7c] sm:$0xf]  ;;  %v5628_v47 = vld [vmem:[%s5846_s9 + $0x70] sm:$0xf] }
  0xca   : > { %v2077_v62 = vrot.slane %v2075_v46, 4  ;;  %v1286_v18 = vunpack.c.l.b16 %v1200_v5  ;;  %v2095_v42 = vshll.u32 %v4944_v21, 16 }
  0xcb   : > { %1733 = vmatmul.bf16.gmra.mxu3 %v5462_v63 }
  0xce   : > { %v6336_v24 = vpop.f32.mrf.mxu0 }
  0xcf   : > { %2415 = vmatmul.bf16.gmra.mxu0 %v2307_v8  ;;  %v6338_v25 = vpop.f32.mrf.mxu2  ;;  %v1285_v8 = vunpack.c.l.b16 %v1196_v53  ;;  %v4942_v53 = vld [vmem:[%s5846_s9 + $0x74] sm:$0x1] }
  0xd0   : > { %v6340_v28 = vpop.f32.mrf.mxu3  ;;  %v2081_v13 = vshll.u32 %v4942_v53, 16 }
  0xd1   : > { %v6345_v33 = vpop.f32.mrf.mxu1  ;;  %v1309_v23 = vpack.c.b16 %v1285_v8, %v1284_v7  ;;  %v1203_v7 = vsel %vm6161_vm5, %v1201_v19, %v1202_v55 }
  0xd4   : > { %1039 = vmatmul.bf16.gmra.mxu1 %v5423_v29  ;;  %v2062_v29 = vshrl.u32 %v4940_v59, 16  ;;  %v4943_v59 = vld [vmem:[%s5846_s9 + $0x78] sm:$0xf] }
  0xd5   : > { %v2086_v36 = vshrl.u32 %v4943_v59, 16  ;;  %v2089_v37 = vshll.u32 %v4943_v59, 16 }
  0xd6   : > { %1420 = vmatmul.bf16.gmra.mxu2 %v1308_v34  ;;  %v2050_v34 = vsel %vm5861_vm2, %v2045_v10, %v2049_v49  ;;  %v2064_v49 = vrot.slane %v2062_v29, 4 }
  0xd7   : > { %v6353_v58 = vpop.f32.mrf.mxu2  ;;  %v2284_v48 = vunpack.c.l.b16 %v2050_v34  ;;  %v2083_v34 = vrot.slane %v2081_v13, 5  ;;  %v2088_v55 = vrot.slane %v2086_v36, 4  ;;  %v5465_v13 = vld [vmem:[%s5846_s9 + $0x6c] sm:$0xff] }
  0xd8   : > { %v2068_v8 = vor.u32 %v2067_v61, %v2064_v49  ;;  %v2091_v61 = vrot.slane %v2089_v37, 5 }
  0xd9   : > { %v6360_v0 = vpop.f32.mrf.mxu1  ;;  %v2309_v1 = vpack.c.b16 %v2285_v35, %v2284_v48  ;;  %v1206_v48 = vrot.slane %v5628_v47, 5  ;;  %v5515_v47 = vld [vmem:[%s7335_s1 + $0x190] sm:$0xff] }
  0xda   : > { %v6356_v52 = vpop.f32.mrf.mxu0  ;;  %v6358_v63 = vpop.f32.mrf.mxu3  ;;  %3131 = vmatpush.bf16.msra.mxu2 %v5515_v47 }
  0xdb   : > { %1738 = vmatmul.bf16.gmra.mxu3 %v5463_v54  ;;  %v5464_v54 = vld [vmem:[%s5846_s9 + $0x60] sm:$0xff] }
  0xdf   : > { %2420 = vmatmul.bf16.gmra.mxu0 %v2308_v60  ;;  %v6376_v51 = vpop.f32.mrf.mxu2  ;;  %v2073_v60 = vrot.slane %v2071_v44, 5  ;;  %v2099_v44 = vshrl.u32 %v4944_v21, 16 }
  0xe1   : > { %v6382_v32 = vpop.f32.mrf.mxu1  ;;  %v2078_v11 = vor.u32 %v2077_v62, %v2073_v60  ;;  %v2097_v62 = vrot.slane %v2095_v42, 5  ;;  %v2101_v53 = vrot.slane %v2099_v44, 4 }
  0xe2   : > { %v6380_v22 = vpop.f32.mrf.mxu0  ;;  %v6389_v41 = vpop.f32.mrf.mxu3 }
  0xe3   : > { %v2079_v29 = vrot.slane %v2078_v11, 4  ;;  %v4945_v11 = vld [vmem:[%s5846_s9 + $0x80] sm:$0x1]  ;;  %v2102_v21 = vor.u32 %v2101_v53, %v2097_v62  ;;  %v5491_v53 = vld [vmem:[%s7335_s1 + $0x150] sm:$0xff] }
  0xe4   : > { %1044 = vmatmul.bf16.gmra.mxu1 %v5424_v20  ;;  %v1287_v20 = vunpack.c.l.b16 %v1203_v7  ;;  %v5629_v7 = vld [vmem:[%s5846_s9 + $0x74] sm:$0x1] }
  0xe5   : > { %v2084_v31 = vsel %vm5861_vm2, %v2079_v29, %v2083_v34  ;;  %2813 = vmatpush.bf16.msra.mxu1 %v5491_v53 }
  0xe6   : > { %1425 = vmatmul.bf16.gmra.mxu2 %v1309_v23  ;;  %v2069_v23 = vrot.slane %v2068_v8, 4  ;;  %v1310_v46 = vpack.c.b16 %v1287_v20, %v1286_v18  ;;  %v1209_v8 = vrot.slane %v5629_v7, 5  ;;  %v2287_v18 = vunpack.c.l.b16 %v2084_v31  ;;  %v4946_v31 = vld [vmem:[%s5846_s9 + $0x84] sm:$0xf]  ;;  %v5426_v7 = vld [vmem:[%s5846_s9 + $0x6c] sm:$0xff] }
  0xe8   : > { %v2074_v49 = vsel %vm5861_vm2, %v2069_v23, %v2073_v60  ;;  %v1208_v60 = vrot.slane %v1206_v48, 4  ;;  %v2105_v23 = vshll.u32 %v4945_v11, 16 }
  0xe9   : > { %v6397_v14 = vpop.f32.mrf.mxu2  ;;  %v6400_v3 = vpop.f32.mrf.mxu1  ;;  %v2286_v59 = vunpack.c.l.b16 %v2074_v49 }
  0xea   : > { %v1210_v36 = vsel %vm6161_vm5, %v1208_v60, %v1209_v8 }
  0xeb   : > { %1743 = vmatmul.bf16.gmra.mxu3 %v5464_v54  ;;  %v1099_v54 = vld [vmem:[%s5846_s9 + $0x6c] sm:$0xe]  ;;  %v2310_v37 = vpack.c.b16 %v2287_v18, %v2286_v59  ;;  %v1289_v49 = vunpack.c.l.b16 %v1210_v36 }
  0xec   : > { %v6406_v10 = vpop.f32.mrf.mxu0  ;;  %v4717_v5 = vrot.slane %v1099_v54, 9  ;;  %v2103_v54 = vrot.slane %v2102_v21, 4 }
  0xee   : > { %v6409_v15 = vpop.f32.mrf.mxu3  ;;  %v1207_v34 = vsel %vm6161_vm5, %v4717_v5, %v1206_v48  ;;  %v2107_v48 = vrot.slane %v2105_v23, 5 }
  0xef   : > { %2425 = vmatmul.bf16.gmra.mxu0 %v2309_v1 }
  0xf0   : > { %v2108_v11 = vsel %vm5861_vm2, %v2103_v54, %v2107_v48 }
  0xf1   : > { %v6412_v38 = vpop.f32.mrf.mxu2  ;;  %v1010_v35 = vpop.f32.mrf.mxu1 }
  0xf2   : > { %v1011_v19 = vadd.f32 %v1010_v35, %v6274_v4  ;;  %v2092_v4 = vor.u32 %v2091_v61, %v2088_v55  ;;  %v1288_v35 = vunpack.c.l.b16 %v1207_v34  ;;  %v4947_v61 = vld [vmem:[%s5846_s9 + $0x88] sm:$0xf] }
  0xf3   : > { %v2123_v21 = vshrl.u32 %v4947_v61, 16 }
  0xf4   : > { %v6419_v12 = vpop.f32.mrf.mxu0  ;;  %1049 = vmatmul.bf16.gmra.mxu1 %v5425_v27  ;;  %v1311_v8 = vpack.c.b16 %v1289_v49, %v1288_v35 }
  0xf5   : > { %v2125_v54 = vrot.slane %v2123_v21, 4 }
  0xf6   : > { %v6424_v1 = vpop.f32.mrf.mxu3  ;;  %1430 = vmatmul.bf16.gmra.mxu2 %v1310_v46  ;;  %v2093_v46 = vrot.slane %v2092_v4, 4  ;;  %v2113_v4 = vshll.u32 %v4946_v31, 16 }
  0xf8   : > { %v2098_v5 = vsel %vm5861_vm2, %v2093_v46, %v2097_v62  ;;  %v2115_v35 = vrot.slane %v2113_v4, 5 }
  0xf9   : > { %v1391_v20 = vpop.f32.mrf.mxu2  ;;  %v1012_v27 = vpop.f32.mrf.mxu1 }
  0xfa   : > { %v1471_v29 = vadd.f32 %v1391_v20, %v1011_v19  ;;  %v1013_v44 = vadd.f32 %v1012_v27, %v6293_v26  ;;  %v5523_v26 = vld [vmem:[%s7335_s1 + $0x1d0] sm:$0xff]  ;;  %v2119_v20 = vshll.u32 %v4947_v61, 16 }
  0xfb   : > { %1748 = vmatmul.bf16.gmra.mxu3 %v5465_v13  ;;  %v2110_v13 = vshrl.u32 %v4946_v31, 16  ;;  %v5531_v27 = vld [vmem:[%s7335_s1 + $0x210] sm:$0xff] }
  0xfc   : > { %v2391_v42 = vpop.f32.mrf.mxu0  ;;  %3813 = vmatpush.bf16.msra.mxu3 %v5523_v26  ;;  %v2121_v49 = vrot.slane %v2119_v20, 5  ;;  %4239 = vmatpush.bf16.msra.mxu0 %v5531_v27  ;;  %v4948_v26 = vld [vmem:[%s5846_s9 + $0x8c] sm:$0x1] }
  0xfd   : > { %v2112_v47 = vrot.slane %v2110_v13, 4  ;;  %v2129_v4 = vshll.u32 %v4948_v26, 16  ;;  %v5632_v26 = vld [vmem:[%s5846_s9 + $0x88] sm:$0xf] }
  0xfe   : > { %v1709_v19 = vpop.f32.mrf.mxu3 }
  0xff   : > { %2430 = vmatmul.bf16.gmra.mxu0 %v2310_v37  ;;  %v1789_v55 = vadd.f32 %v1709_v19, %v1471_v29  ;;  %v5630_v29 = vld [vmem:[%s5846_s9 + $0x7c] sm:$0xf]  ;;  %v1100_v37 = vld [vmem:[%s5846_s9 + $0x78] sm:$0xe] }
 0x100   : > { %v1213_v34 = vrot.slane %v5630_v29, 5  ;;  %v5466_v19 = vld [vmem:[%s5846_s9 + $0x78] sm:$0xff] }
 0x101   : > { %v1393_v60 = vpop.f32.mrf.mxu2  ;;  %v6450_v59 = vadd.f32 %v2391_v42, %v1789_v55  ;;  %v1015_v23 = vpop.f32.mrf.mxu1  ;;  %v2288_v42 = vunpack.c.l.b16 %v2098_v5  ;;  %v5631_v55 = vld [vmem:[%s5846_s9 + $0x80] sm:$0x1] }
 0x102   : > { %v1472_v18 = vadd.f32 %v1393_v60, %v1013_v44  ;;  %v1016_v36 = vadd.f32 %v1015_v23, %v6319_v57  ;;  %v2289_v44 = vunpack.c.l.b16 %v2108_v11  ;;  %v4718_v57 = vrot.slane %v1100_v37, 9 }
 0x103   : > { %v1215_v31 = vrot.slane %v1213_v34, 4  ;;  %v1216_v61 = vrot.slane %v5631_v55, 5  ;;  %v2116_v23 = vor.u32 %v2115_v35, %v2112_v47  ;;  %v5427_v47 = vld [vmem:[%s5846_s9 + $0x78] sm:$0xff]  ;;  %v4950_v35 = vld [vmem:[%s5846_s9 + $0x94] sm:$0xf] }
 0x104   : > { %v2393_v62 = vpop.f32.mrf.mxu0  ;;  %1054 = vmatmul.bf16.gmra.mxu1 %v5426_v7  ;;  %v2311_v60 = vpack.c.b16 %v2289_v44, %v2288_v42  ;;  %v1214_v11 = vsel %vm6161_vm5, %v4718_v57, %v1213_v34  ;;  %v2131_v44 = vrot.slane %v2129_v4, 5  ;;  %v4949_v34 = vld [vmem:[%s5846_s9 + $0x90] sm:$0xf] }
 0x105   : > { %v1217_v13 = vsel %vm6161_vm5, %v1215_v31, %v1216_v61  ;;  %v2117_v27 = vrot.slane %v2116_v23, 4  ;;  %v2134_v57 = vshrl.u32 %v4949_v34, 16  ;;  %v1101_v23 = vld [vmem:[%s5846_s9 + $0x84] sm:$0xe] }
 0x106   : > { %v1711_v46 = vpop.f32.mrf.mxu3  ;;  %1435 = vmatmul.bf16.gmra.mxu2 %v1311_v8 }
 0x107   : > { %v1790_v48 = vadd.f32 %v1711_v46, %v1472_v18  ;;  %v2126_v18 = vor.u32 %v2125_v54, %v2121_v49  ;;  %v2122_v55 = vsel %vm5861_vm2, %v2117_v27, %v2121_v49  ;;  %v2136_v49 = vrot.slane %v2134_v57, 4 }
 0x109   : > { %v1396_v53 = vpop.f32.mrf.mxu2  ;;  %v6461_v5 = vadd.f32 %v2393_v62, %v1790_v48  ;;  %v1017_v8 = vpop.f32.mrf.mxu1  ;;  %v1291_v62 = vunpack.c.l.b16 %v1217_v13  ;;  %v2127_v42 = vrot.slane %v2126_v18, 4  ;;  %v2290_v18 = vunpack.c.l.b16 %v2122_v55 }
 0x10a   : > { %v1473_v7 = vadd.f32 %v1396_v53, %v1016_v36  ;;  %v1018_v21 = vadd.f32 %v1017_v8, %v6336_v24  ;;  %v1290_v36 = vunpack.c.l.b16 %v1214_v11  ;;  %v2137_v24 = vshll.u32 %v4949_v34, 16  ;;  %v4951_v34 = vld [vmem:[%s5846_s9 + $0x98] sm:$0x1] }
 0x10b   : > { %1753 = vmatmul.bf16.gmra.mxu3 %v5466_v19  ;;  %v2132_v61 = vsel %vm5861_vm2, %v2127_v42, %v2131_v44  ;;  %v1220_v53 = vrot.slane %v5632_v26, 5  ;;  %v2143_v8 = vshll.u32 %v4950_v35, 16  ;;  %v2147_v11 = vshrl.u32 %v4950_v35, 16 }
 0x10c   : > { %v2396_v20 = vpop.f32.mrf.mxu0  ;;  %v1312_v19 = vpack.c.b16 %v1291_v62, %v1290_v36  ;;  %v2291_v4 = vunpack.c.l.b16 %v2132_v61  ;;  %v4719_v36 = vrot.slane %v1101_v23, 9  ;;  %v2153_v26 = vshll.u32 %v4951_v34, 16 }
 0x10d   : > { %v1222_v62 = vrot.slane %v1220_v53, 4  ;;  %v6482_v42 = vrot.slane %v2143_v8, 5 }
 0x10e   : > { %v1714_v29 = vpop.f32.mrf.mxu3  ;;  %v2312_v35 = vpack.c.b16 %v2291_v4, %v2290_v18  ;;  %v5490_v4 = vld [vmem:[%s7335_s1 + $0x148] sm:$0xff] }
 0x10f   : > { %2435 = vmatmul.bf16.gmra.mxu0 %v2311_v60  ;;  %v1791_v37 = vadd.f32 %v1714_v29, %v1473_v7  ;;  %v5467_v29 = vld [vmem:[%s5846_s9 + $0x84] sm:$0xff]  ;;  %2814 = vmatpush.bf16.msra.mxu1 %v5490_v4 }
 0x111   : > { %v1398_v46 = vpop.f32.mrf.mxu2  ;;  %v6471_v48 = vadd.f32 %v2396_v20, %v1791_v37  ;;  %v1020_v31 = vpop.f32.mrf.mxu1  ;;  %v2139_v20 = vrot.slane %v2137_v24, 5  ;;  %v5633_v37 = vld [vmem:[%s5846_s9 + $0x8c] sm:$0x1] }
 0x112   : > { %v1474_v54 = vadd.f32 %v1398_v46, %v1018_v21  ;;  %v1021_v7 = vadd.f32 %v1020_v31, %v6356_v52  ;;  %v1223_v27 = vrot.slane %v5633_v37, 5  ;;  %v2149_v52 = vrot.slane %v2147_v11, 4 }
 0x113   : > { %v2140_v24 = vor.u32 %v2139_v20, %v2136_v49  ;;  %v2155_v20 = vrot.slane %v2153_v26, 5 }
 0x114   : > { %v2398_v60 = vpop.f32.mrf.mxu0  ;;  %1059 = vmatmul.bf16.gmra.mxu1 %v5427_v47  ;;  %v1224_v57 = vsel %vm6161_vm5, %v1222_v62, %v1223_v27  ;;  %v2150_v61 = vor.u32 %v2149_v52, %v6482_v42  ;;  %v5428_v62 = vld [vmem:[%s5846_s9 + $0x84] sm:$0xff] }
 0x115   : > { %v1293_v11 = vunpack.c.l.b16 %v1224_v57  ;;  %v2141_v18 = vrot.slane %v2140_v24, 4  ;;  %v1102_v57 = vld [vmem:[%s5846_s9 + $0x90] sm:$0xe] }
 0x116   : > { %v1716_v13 = vpop.f32.mrf.mxu3  ;;  %1440 = vmatmul.bf16.gmra.mxu2 %v1312_v19  ;;  %v2151_v49 = vrot.slane %v2150_v61, 4 }
 0x117   : > { %v1792_v21 = vadd.f32 %v1716_v13, %v1474_v54  ;;  %v1221_v54 = vsel %vm6161_vm5, %v4719_v36, %v1220_v53  ;;  %v4953_v53 = vld [vmem:[%s5846_s9 + $0xa0] sm:$0xf] }
 0x118   : > { %v1292_v8 = vunpack.c.l.b16 %v1221_v54  ;;  %v2167_v37 = vshll.u32 %v4953_v53, 16  ;;  %v2171_v27 = vshrl.u32 %v4953_v53, 16  ;;  %v2146_v54 = vsel %vm5861_vm2, %v2141_v18, %v6482_v42  ;;  %v5635_v53 = vld [vmem:[%s5846_s9 + $0x98] sm:$0x1] }
 0x119   : > { %v1401_v44 = vpop.f32.mrf.mxu2  ;;  %v6485_v47 = vadd.f32 %v2398_v60, %v1792_v21  ;;  %v1022_v19 = vpop.f32.mrf.mxu1  ;;  %v5514_v60 = vld [vmem:[%s7335_s1 + $0x188] sm:$0xff]  ;;  %v2156_v26 = vsel %vm5861_vm2, %v2151_v49, %v2155_v20  ;;  %v4720_v42 = vrot.slane %v1102_v57, 9  ;;  %v2292_v4 = vunpack.c.l.b16 %v2146_v54 }
 0x11a   : > { %v1475_v46 = vadd.f32 %v1401_v44, %v1021_v7  ;;  %v1023_v55 = vadd.f32 %v1022_v19, %v6380_v22  ;;  %v4952_v7 = vld [vmem:[%s5846_s9 + $0x9c] sm:$0xf]  ;;  %3132 = vmatpush.bf16.msra.mxu2 %v5514_v60  ;;  %v5522_v22 = vld [vmem:[%s7335_s1 + $0x1c8] sm:$0xff]  ;;  %v1313_v34 = vpack.c.b16 %v1293_v11, %v1292_v8  ;;  %v2293_v49 = vunpack.c.l.b16 %v2156_v26 }
 0x11b   : > { %1758 = vmatmul.bf16.gmra.mxu3 %v5467_v29  ;;  %v2158_v21 = vshrl.u32 %v4952_v7, 16  ;;  %v2161_v29 = vshll.u32 %v4952_v7, 16  ;;  %v5530_v60 = vld [vmem:[%s7335_s1 + $0x208] sm:$0xff]  ;;  %v2169_v7 = vrot.slane %v2167_v37, 5 }
 0x11c   : > { %v2401_v31 = vpop.f32.mrf.mxu0  ;;  %3814 = vmatpush.bf16.msra.mxu3 %v5522_v22  ;;  %4240 = vmatpush.bf16.msra.mxu0 %v5530_v60  ;;  %v5468_v22 = vld [vmem:[%s5846_s9 + $0x90] sm:$0xff] }
 0x11e   : > { %v1719_v23 = vpop.f32.mrf.mxu3 }
 0x11f   : > { %2440 = vmatmul.bf16.gmra.mxu0 %v2312_v35  ;;  %v1793_v13 = vadd.f32 %v1719_v23, %v1475_v46  ;;  %v5634_v46 = vld [vmem:[%s5846_s9 + $0x94] sm:$0xf]  ;;  %v2173_v23 = vrot.slane %v2171_v27, 4 }
 0x120   : > { %v1227_v35 = vrot.slane %v5634_v46, 5 }
 0x121   : > { %v1403_v36 = vpop.f32.mrf.mxu2  ;;  %v6505_v52 = vadd.f32 %v2401_v31, %v1793_v13  ;;  %v1025_v19 = vpop.f32.mrf.mxu1  ;;  %v2160_v31 = vrot.slane %v2158_v21, 4  ;;  %v1230_v13 = vrot.slane %v5635_v53, 5 }
 0x122   : > { %v1476_v44 = vadd.f32 %v1403_v36, %v1023_v55  ;;  %v1026_v61 = vadd.f32 %v1025_v19, %v6406_v10  ;;  %v2163_v55 = vrot.slane %v2161_v29, 5  ;;  %v1229_v11 = vrot.slane %v1227_v35, 4  ;;  %v4954_v10 = vld [vmem:[%s5846_s9 + $0xa4] sm:$0x1] }
 0x123   : > { %v2174_v29 = vor.u32 %v2173_v23, %v2169_v7  ;;  %v2177_v36 = vshll.u32 %v4954_v10, 16  ;;  %v1228_v37 = vsel %vm6161_vm5, %v4720_v42, %v1227_v35  ;;  %v4955_v35 = vld [vmem:[%s5846_s9 + $0xa8] sm:$0xf] }
 0x124   : > { %v2403_v24 = vpop.f32.mrf.mxu0  ;;  %1064 = vmatmul.bf16.gmra.mxu1 %v5428_v62  ;;  %v2164_v20 = vor.u32 %v2163_v55, %v2160_v31  ;;  %v1231_v27 = vsel %vm6161_vm5, %v1229_v11, %v1230_v13  ;;  %v1294_v26 = vunpack.c.l.b16 %v1228_v37  ;;  %v5429_v11 = vld [vmem:[%s5846_s9 + $0x90] sm:$0xff]  ;;  %v2182_v13 = vshrl.u32 %v4955_v35, 16 }
 0x125   : > { %v1295_v31 = vunpack.c.l.b16 %v1231_v27  ;;  %v2179_v55 = vrot.slane %v2177_v36, 5 }
 0x126   : > { %v1721_v8 = vpop.f32.mrf.mxu3  ;;  %1445 = vmatmul.bf16.gmra.mxu2 %v1313_v34  ;;  %v2165_v57 = vrot.slane %v2164_v20, 4 }
 0x127   : > { %v1794_v18 = vadd.f32 %v1721_v8, %v1476_v44  ;;  %v2313_v44 = vpack.c.b16 %v2293_v49, %v2292_v4  ;;  %v4956_v8 = vld [vmem:[%s5846_s9 + $0xac] sm:$0xf]  ;;  %v1314_v53 = vpack.c.b16 %v1295_v31, %v1294_v26  ;;  %v5469_v26 = vld [vmem:[%s5846_s9 + $0x9c] sm:$0xff] }
 0x128   : > { %v2191_v4 = vshll.u32 %v4956_v8, 16  ;;  %v2195_v49 = vshrl.u32 %v4956_v8, 16  ;;  %v4957_v8 = vld [vmem:[%s5846_s9 + $0xb0] sm:$0x1] }
 0x129   : > { %v1406_v21 = vpop.f32.mrf.mxu2  ;;  %v6525_v34 = vadd.f32 %v2403_v24, %v1794_v18  ;;  %v1027_v46 = vpop.f32.mrf.mxu1  ;;  %v2170_v24 = vsel %vm5861_vm2, %v2165_v57, %v2169_v7  ;;  %v1103_v7 = vld [vmem:[%s5846_s9 + $0x9c] sm:$0xe] }
 0x12a   : > { %v1477_v62 = vadd.f32 %v1406_v21, %v1026_v61  ;;  %v1028_v54 = vadd.f32 %v1027_v46, %v6419_v12  ;;  %v2175_v61 = vrot.slane %v2174_v29, 4  ;;  %v5636_v21 = vld [vmem:[%s5846_s9 + $0xa0] sm:$0xf]  ;;  %v4721_v31 = vrot.slane %v1103_v7, 9 }
 0x12b   : > { %1763 = vmatmul.bf16.gmra.mxu3 %v5468_v22  ;;  %v2185_v22 = vshll.u32 %v4955_v35, 16  ;;  %v1234_v29 = vrot.slane %v5636_v21, 5 }
 0x12c   : > { %v2406_v19 = vpop.f32.mrf.mxu0  ;;  %v2180_v12 = vsel %vm5861_vm2, %v2175_v61, %v2179_v55  ;;  %v5637_v55 = vld [vmem:[%s5846_s9 + $0xa4] sm:$0x1] }
 0x12d   : > { %v2295_v37 = vunpack.c.l.b16 %v2180_v12  ;;  %v2187_v46 = vrot.slane %v2185_v22, 5  ;;  %v1236_v61 = vrot.slane %v1234_v29, 4  ;;  %v1235_v12 = vsel %vm6161_vm5, %v4721_v31, %v1234_v29 }
 0x12e   : > { %v1724_v60 = vpop.f32.mrf.mxu3 }
 0x12f   : > { %2445 = vmatmul.bf16.gmra.mxu0 %v2313_v44  ;;  %v1795_v23 = vadd.f32 %v1724_v60, %v1477_v62  ;;  %v2294_v62 = vunpack.c.l.b16 %v2170_v24  ;;  %v2184_v44 = vrot.slane %v2182_v13, 4  ;;  %v1237_v60 = vrot.slane %v5637_v55, 5  ;;  %v5430_v55 = vld [vmem:[%s5846_s9 + $0x9c] sm:$0xff] }
 0x131   : > { %v1408_v42 = vpop.f32.mrf.mxu2  ;;  %v6535_v10 = vadd.f32 %v2406_v19, %v1795_v23  ;;  %v1030_v20 = vpop.f32.mrf.mxu1  ;;  %v6539_v19 = vrot.slane %v2191_v4, 5  ;;  %v2314_v24 = vpack.c.b16 %v2295_v37, %v2294_v62  ;;  %v1238_v13 = vsel %vm6161_vm5, %v1236_v61, %v1237_v60  ;;  %v4959_v62 = vld [vmem:[%s5846_s9 + $0xb8] sm:$0xf] }
 0x132   : > { %v1478_v18 = vadd.f32 %v1408_v42, %v1028_v54  ;;  %v2197_v54 = vrot.slane %v2195_v49, 4  ;;  %v1031_v35 = vadd.f32 %v1030_v20, %v6269_v56  ;;  %v2201_v56 = vshll.u32 %v4957_v8, 16  ;;  %v5513_v49 = vld [vmem:[%s7335_s1 + $0x180] sm:$0xff]  ;;  %v4958_v20 = vld [vmem:[%s5846_s9 + $0xb4] sm:$0xf] }
 0x133   : > { %v1297_v7 = vunpack.c.l.b16 %v1238_v13  ;;  %3133 = vmatpush.bf16.msra.mxu2 %v5513_v49  ;;  %v2209_v31 = vshll.u32 %v4958_v20, 16  ;;  %v2215_v60 = vshll.u32 %v4959_v62, 16  ;;  %v5529_v49 = vld [vmem:[%s7335_s1 + $0x200] sm:$0xff] }
 0x134   : > { %v2408_v36 = vpop.f32.mrf.mxu0  ;;  %1069 = vmatmul.bf16.gmra.mxu1 %v5429_v11  ;;  %v2198_v22 = vor.u32 %v2197_v54, %v6539_v19  ;;  %4241 = vmatpush.bf16.msra.mxu0 %v5529_v49 }
 0x136   : > { %v1726_v27 = vpop.f32.mrf.mxu3  ;;  %1450 = vmatmul.bf16.gmra.mxu2 %v1314_v53 }
 0x137   : > { %v1796_v57 = vadd.f32 %v1726_v27, %v1478_v18  ;;  %v2188_v18 = vor.u32 %v2187_v46, %v2184_v44  ;;  %v2199_v27 = vrot.slane %v2198_v22, 4  ;;  %v5521_v44 = vld [vmem:[%s7335_s1 + $0x1c0] sm:$0xff] }
 0x138   : > { %v5489_v46 = vld [vmem:[%s7335_s1 + $0x140] sm:$0xff]  ;;  %3815 = vmatpush.bf16.msra.mxu3 %v5521_v44 }
 0x139   : > { %v1411_v23 = vpop.f32.mrf.mxu2  ;;  %v6545_v11 = vadd.f32 %v2408_v36, %v1796_v57  ;;  %v1032_v53 = vpop.f32.mrf.mxu1  ;;  %v1296_v36 = vunpack.c.l.b16 %v1235_v12  ;;  %v2189_v37 = vrot.slane %v2188_v18, 4  ;;  %v2203_v57 = vrot.slane %v2201_v56, 5  ;;  %2815 = vmatpush.bf16.msra.mxu1 %v5489_v46  ;;  %v1104_v18 = vld [vmem:[%s5846_s9 + $0xa8] sm:$0xe] }
 0x13a   : > { %v1479_v42 = vadd.f32 %v1411_v23, %v1031_v35  ;;  %v1033_v54 = vadd.f32 %v1032_v53, %v6284_v16  ;;  %v2219_v35 = vshrl.u32 %v4959_v62, 16 }
 0x13b   : > { %1768 = vmatmul.bf16.gmra.mxu3 %v5469_v26  ;;  %v2206_v26 = vshrl.u32 %v4958_v20, 16  ;;  %v2194_v53 = vsel %vm5861_vm2, %v2189_v37, %v6539_v19  ;;  %v2204_v22 = vsel %vm5861_vm2, %v2199_v27, %v2203_v57  ;;  %v2217_v20 = vrot.slane %v2215_v60, 5  ;;  %v4960_v19 = vld [vmem:[%s5846_s9 + $0xbc] sm:$0x1]  ;;  %v5470_v27 = vld [vmem:[%s5846_s9 + $0xa8] sm:$0xff] }
 0x13c   : > { %v2411_v4 = vpop.f32.mrf.mxu0  ;;  %v2296_v46 = vunpack.c.l.b16 %v2194_v53 }
 0x13d   : > { %v2208_v56 = vrot.slane %v2206_v26, 4 }
 0x13e   : > { %v1729_v21 = vpop.f32.mrf.mxu3 }
 0x13f   : > { %2450 = vmatmul.bf16.gmra.mxu0 %v2314_v24  ;;  %v1797_v29 = vadd.f32 %v1729_v21, %v1479_v42  ;;  %v1315_v24 = vpack.c.b16 %v1297_v7, %v1296_v36  ;;  %v5638_v42 = vld [vmem:[%s5846_s9 + $0xac] sm:$0xf]  ;;  %v2221_v21 = vrot.slane %v2219_v35, 4  ;;  %v4722_v7 = vrot.slane %v1104_v18, 9 }
 0x140   : > { %v1241_v12 = vrot.slane %v5638_v42, 5 }
 0x141   : > { %v1413_v61 = vpop.f32.mrf.mxu2  ;;  %v6565_v23 = vadd.f32 %v2411_v4, %v1797_v29  ;;  %v1035_v13 = vpop.f32.mrf.mxu1  ;;  %v2211_v4 = vrot.slane %v2209_v31, 5  ;;  %v5639_v29 = vld [vmem:[%s5846_s9 + $0xb0] sm:$0x1] }
 0x142   : > { %v1480_v8 = vadd.f32 %v1413_v61, %v1033_v54  ;;  %v1243_v62 = vrot.slane %v1241_v12, 4  ;;  %v1244_v44 = vrot.slane %v5639_v29, 5  ;;  %v2297_v54 = vunpack.c.l.b16 %v2204_v22 }
 0x143   : > { %v1036_v57 = vadd.f32 %v1035_v13, %v6308_v45  ;;  %v2212_v26 = vor.u32 %v2211_v4, %v2208_v56  ;;  %v2222_v61 = vor.u32 %v2221_v21, %v2217_v20  ;;  %v1242_v35 = vsel %vm6161_vm5, %v4722_v7, %v1241_v12  ;;  %v4961_v21 = vld [vmem:[%s5846_s9 + $0xc0] sm:$0xf]  ;;  %v5640_v7 = vld [vmem:[%s5846_s9 + $0x10] sm:$0xf] }
 0x144   : > { %v2413_v16 = vpop.f32.mrf.mxu0  ;;  %1074 = vmatmul.bf16.gmra.mxu1 %v5430_v55  ;;  %v2225_v55 = vshll.u32 %v4960_v19, 16  ;;  %v2315_v42 = vpack.c.b16 %v2297_v54, %v2296_v46  ;;  %v1298_v53 = vunpack.c.l.b16 %v1242_v35  ;;  %v5642_v35 = vld [vmem:[%s5846_s9 + $0x14] sm:$0x1] }
 0x145   : > { %v2213_v13 = vrot.slane %v2212_v26, 4  ;;  %v2223_v56 = vrot.slane %v2222_v61, 4  ;;  %v2233_v26 = vshll.u32 %v4961_v21, 16 }
 0x146   : > { %v1731_v36 = vpop.f32.mrf.mxu3  ;;  %1455 = vmatmul.bf16.gmra.mxu2 %v1315_v24  ;;  %v1245_v24 = vsel %vm6161_vm5, %v1243_v62, %v1244_v44  ;;  %v2227_v4 = vrot.slane %v2225_v55, 5  ;;  %v2569_v62 = vrot.slane %v5640_v7, 5  ;;  %v5431_v44 = vld [vmem:[%s5846_s9 + $0xa8] sm:$0xff]  ;;  %v5641_v55 = vld [vmem:[%s5846_s9 + $0xb8] sm:$0xf] }
 0x147   : > { %v1798_v37 = vadd.f32 %v1731_v36, %v1480_v8  ;;  %v1299_v22 = vunpack.c.l.b16 %v1245_v24  ;;  %v4962_v36 = vld [vmem:[%s5846_s9 + $0xc4] sm:$0xf]  ;;  %v2572_v24 = vrot.slane %v5642_v35, 5  ;;  %v5471_v7 = vld [vmem:[%s5846_s9 + $0xb4] sm:$0xff] }
 0x149   : > { %v1416_v31 = vpop.f32.mrf.mxu2  ;;  %v6585_v8 = vadd.f32 %v2413_v16, %v1798_v37  ;;  %v1037_v18 = vpop.f32.mrf.mxu1  ;;  %v1316_v19 = vpack.c.b16 %v1299_v22, %v1298_v53  ;;  %v2218_v37 = vsel %vm5861_vm2, %v2213_v13, %v2217_v20  ;;  %v2243_v20 = vshrl.u32 %v4962_v36, 16  ;;  %v5012_v53 = vld [vmem:[%s5846_s9 + $0xc] sm:$0xe] }
 0x14a   : > { %v1481_v60 = vadd.f32 %v1416_v31, %v1036_v57  ;;  %v1038_v16 = vadd.f32 %v1037_v18, %v6328_v9  ;;  %v2230_v57 = vshrl.u32 %v4961_v21, 16  ;;  %v2239_v31 = vshll.u32 %v4962_v36, 16  ;;  %v1105_v18 = vld [vmem:[%s5846_s9 + $0xb4] sm:$0xe] }
 0x14b   : > { %1773 = vmatmul.bf16.gmra.mxu3 %v5470_v27  ;;  %v2228_v27 = vsel %vm5861_vm2, %v2223_v56, %v2227_v4  ;;  %v1248_v9 = vrot.slane %v5641_v55, 5  ;;  %v2298_v13 = vunpack.c.l.b16 %v2218_v37  ;;  %v2235_v4 = vrot.slane %v2233_v26, 5  ;;  %v5643_v55 = vld [vmem:[%s5846_s9 + $0xbc] sm:$0x1] }
 0x14c   : > { %v2416_v45 = vpop.f32.mrf.mxu0  ;;  %v2232_v56 = vrot.slane %v2230_v57, 4  ;;  %v1251_v35 = vrot.slane %v5643_v55, 5  ;;  %v4963_v57 = vld [vmem:[%s5846_s9 + $0xc8] sm:$0x1] }
 0x14e   : > { %v1734_v49 = vpop.f32.mrf.mxu3 }
 0x14f   : > { %2455 = vmatmul.bf16.gmra.mxu0 %v2315_v42  ;;  %v1799_v12 = vadd.f32 %v1734_v49, %v1481_v60  ;;  %v2571_v60 = vrot.slane %v2569_v62, 4  ;;  %v6602_v49 = vrot.slane %v2239_v31, 5 }
 0x151   : > { %v1418_v29 = vpop.f32.mrf.mxu2  ;;  %v6596_v46 = vadd.f32 %v2416_v45, %v1799_v12  ;;  %v1040_v61 = vpop.f32.mrf.mxu1  ;;  %v2299_v45 = vunpack.c.l.b16 %v2228_v27  ;;  %v5028_v12 = vrot.slane %v5012_v53, 9  ;;  %v2573_v37 = vsel %vm6161_vm5, %v2571_v60, %v2572_v24 }
 0x152   : > { %v1482_v54 = vadd.f32 %v1418_v29, %v1038_v16  ;;  %v4723_v16 = vrot.slane %v1105_v18, 9  ;;  %v1250_v29 = vrot.slane %v1248_v9, 4  ;;  %v1041_v36 = vadd.f32 %v1040_v61, %v6345_v33  ;;  %v5236_v18 = vld [vmem:[%s5846_s9 + $0x18] sm:$0xf] }
 0x153   : > { %7344 = vst [vmem:[#allocation5_spill] sm:$0xff] %v6596_v46  ;;  %v2316_v31 = vpack.c.b16 %v2299_v45, %v2298_v13  ;;  %v2249_v45 = vshll.u32 %v4963_v57, 16  ;;  %v3299_v55 = vshll.u32 %v5236_v18, 16 }
 0x154   : > { %v2418_v42 = vpop.f32.mrf.mxu0  ;;  %1079 = vmatmul.bf16.gmra.mxu1 %v5431_v44  ;;  %v2245_v44 = vrot.slane %v2243_v20, 4  ;;  %v1249_v33 = vsel %vm6161_vm5, %v4723_v16, %v1248_v9  ;;  %v1252_v61 = vsel %vm6161_vm5, %v1250_v29, %v1251_v35 }
 0x155   : > { %v1301_v9 = vunpack.c.l.b16 %v1252_v61  ;;  %v3301_v57 = vrot.slane %v3299_v55, 5 }
 0x156   : > { %v1736_v22 = vpop.f32.mrf.mxu3  ;;  %1460 = vmatmul.bf16.gmra.mxu2 %v1316_v19  ;;  %v2570_v19 = vsel %vm6161_vm5, %v5028_v12, %v2569_v62  ;;  %v6620_v62 = vld [vmem:[%s5846_s9 + $0x1c] sm:$0xf]  ;;  %v2236_v12 = vor.u32 %v2235_v4, %v2232_v56  ;;  %v2246_v13 = vor.u32 %v2245_v44, %v6602_v49  ;;  %v2251_v4 = vrot.slane %v2249_v45, 5 }
 0x157   : > { %v1800_v21 = vadd.f32 %v1736_v22, %v1482_v54  ;;  %v2696_v26 = vunpack.c.l.b16 %v2570_v19  ;;  %v2697_v54 = vunpack.c.l.b16 %v2573_v37  ;;  %v1300_v19 = vunpack.c.l.b16 %v1249_v33  ;;  %v5432_v37 = vld [vmem:[%s5846_s9 + $0xb4] sm:$0xff] }
 0x158   : > { %v3305_v16 = vshll.u32 %v6620_v62, 16  ;;  %v3309_v29 = vshrl.u32 %v6620_v62, 16  ;;  %v2247_v56 = vrot.slane %v2246_v13, 4 }
 0x159   : > { %v1421_v27 = vpop.f32.mrf.mxu2  ;;  %v1042_v22 = vpop.f32.mrf.mxu1  ;;  %v6617_v20 = vpack.c.b16 %v2697_v54, %v2696_v26  ;;  %v6622_v60 = vadd.f32 %v2418_v42, %v1800_v21  ;;  %v2237_v21 = vrot.slane %v2236_v12, 4 }
 0x15a   : > { %v1483_v53 = vadd.f32 %v1421_v27, %v1041_v36  ;;  %v1043_v42 = vadd.f32 %v1042_v22, %v6360_v0  ;;  %v3307_v33 = vrot.slane %v3305_v16, 5  ;;  %v3311_v61 = vrot.slane %v3309_v29, 4 }
 0x15b   : > { %1778 = vmatmul.bf16.gmra.mxu3 %v5471_v7  ;;  %7345 = vst [vmem:[#allocation6_spill] sm:$0xff] %v6622_v60  ;;  %v3296_v7 = vshrl.u32 %v5236_v18, 16  ;;  %v1317_v18 = vpack.c.b16 %v1301_v9, %v1300_v19  ;;  %v2242_v0 = vsel %vm5861_vm2, %v2237_v21, %v6602_v49  ;;  %v3995_v21 = vrot.slane %v6620_v62, 5 }
 0x15c   : > { %v2421_v24 = vpop.f32.mrf.mxu0  ;;  %v3312_v12 = vor.u32 %v3311_v61, %v3307_v33  ;;  %v2300_v55 = vunpack.c.l.b16 %v2242_v0 }
 0x15d   : > { %v3298_v27 = vrot.slane %v3296_v7, 4  ;;  %v5472_v7 = vld [vmem:[%s5846_s9 + $0xc0] sm:$0xff]  ;;  %v3997_v62 = vrot.slane %v3995_v21, 4 }
 0x15e   : > { %v1739_v36 = vpop.f32.mrf.mxu3  ;;  %v3313_v29 = vrot.slane %v3312_v12, 4 }
 0x15f   : > { %2460 = vmatmul.bf16.gmra.mxu0 %v2316_v31  ;;  %v1801_v35 = vadd.f32 %v1739_v36, %v1483_v53  ;;  %v5238_v31 = vld [vmem:[%s5846_s9 + $0x20] sm:$0x1]  ;;  %v2252_v53 = vsel %vm5861_vm2, %v2247_v56, %v2251_v4  ;;  %v3302_v22 = vor.u32 %v3301_v57, %v3298_v27  ;;  %v6645_v57 = vld [vmem:[%s5846_s9 + $0x28] sm:$0xf] }
 0x160   : > { %v3315_v13 = vshll.u32 %v5238_v31, 16  ;;  %v2301_v36 = vunpack.c.l.b16 %v2252_v53  ;;  %v3998_v53 = vrot.slane %v5238_v31, 5 }
 0x161   : > { %v1423_v44 = vpop.f32.mrf.mxu2  ;;  %v6629_v26 = vadd.f32 %v2421_v24, %v1801_v35  ;;  %v1045_v60 = vpop.f32.mrf.mxu1  ;;  %v3303_v49 = vrot.slane %v3302_v22, 4  ;;  %v3329_v22 = vshll.u32 %v6645_v57, 16 }
 0x162   : > { %v1484_v54 = vadd.f32 %v1423_v44, %v1043_v42  ;;  %v1046_v19 = vadd.f32 %v1045_v60, %v6382_v32  ;;  %v3317_v35 = vrot.slane %v3315_v13, 5  ;;  %v5332_v42 = vld [vmem:[%s5846_s9 + $0x18] sm:$0xe]  ;;  %v2317_v56 = vpack.c.b16 %v2301_v36, %v2300_v55  ;;  %v5239_v44 = vld [vmem:[%s5846_s9 + $0x24] sm:$0xf] }
 0x163   : > { %v3308_v32 = vsel %vm5861_vm2, %v3303_v49, %v3307_v33  ;;  %v5348_v60 = vrot.slane %v5332_v42, 9  ;;  %v3320_v61 = vshrl.u32 %v5239_v44, 16  ;;  %v3323_v0 = vshll.u32 %v5239_v44, 16  ;;  %v5013_v49 = vld [vmem:[%s5846_s9 + $0x18] sm:$0xe] }
 0x164   : > { %v2423_v46 = vpop.f32.mrf.mxu0  ;;  %1084 = vmatmul.bf16.gmra.mxu1 %v5432_v37  ;;  %v3696_v13 = vunpack.c.l.b16 %v3308_v32  ;;  %v6663_v42 = vrot.slane %v3329_v22, 5  ;;  %v6666_v44 = vld [vmem:[%s5846_s9 + $0x2c] sm:$0x1] }
 0x165   : > { %v3325_v31 = vrot.slane %v3323_v0, 5  ;;  %v3339_v22 = vshll.u32 %v6666_v44, 16 }
 0x166   : > { %v1741_v24 = vpop.f32.mrf.mxu3  ;;  %1465 = vmatmul.bf16.gmra.mxu2 %v1317_v18  ;;  %v3318_v18 = vsel %vm5861_vm2, %v3313_v29, %v3317_v35  ;;  %v3996_v35 = vsel %vm6161_vm5, %v5348_v60, %v3995_v21 }
 0x167   : > { %v1802_v45 = vadd.f32 %v1741_v24, %v1484_v54  ;;  %v3333_v24 = vshrl.u32 %v6645_v57, 16  ;;  %v4122_v21 = vunpack.c.l.b16 %v3996_v35 }
 0x169   : > { %v1426_v9 = vpop.f32.mrf.mxu2  ;;  %v1047_v4 = vpop.f32.mrf.mxu1  ;;  %v6642_v37 = vadd.f32 %v2423_v46, %v1802_v45  ;;  %v5644_v45 = vld [vmem:[%s5846_s9 + $0x1c] sm:$0xf] }
 0x16a   : > { %v1485_v16 = vadd.f32 %v1426_v9, %v1046_v19  ;;  %v1048_v12 = vadd.f32 %v1047_v4, %v6400_v3  ;;  %v5497_v19 = vld [vmem:[%s5846_s9 + $0x18] sm:$0xff]  ;;  %v3697_v9 = vunpack.c.l.b16 %v3318_v18  ;;  %v3999_v3 = vsel %vm6161_vm5, %v3997_v62, %v3998_v53 }
 0x16b   : > { %1783 = vmatmul.bf16.gmra.mxu3 %v5472_v7  ;;  %v2576_v7 = vrot.slane %v5644_v45, 5  ;;  %v4123_v60 = vunpack.c.l.b16 %v3999_v3  ;;  %v5242_v45 = vld [vmem:[%s5846_s9 + $0x30] sm:$0xf] }
 0x16c   : > { %v2426_v27 = vpop.f32.mrf.mxu0 }
 0x16d   : > { %v2578_v32 = vrot.slane %v2576_v7, 4 }
 0x16e   : > { %v1744_v54 = vpop.f32.mrf.mxu3 }
 0x16f   : > { %2465 = vmatmul.bf16.gmra.mxu0 %v2317_v56  ;;  %v1803_v46 = vadd.f32 %v1744_v54, %v1485_v16  ;;  %v3322_v16 = vrot.slane %v3320_v61, 4  ;;  %v3335_v56 = vrot.slane %v3333_v24, 4  ;;  %v5645_v54 = vld [vmem:[%s5846_s9 + $0x20] sm:$0x1] }
 0x170   : > { %v2579_v18 = vrot.slane %v5645_v54, 5 }
 0x171   : > { %v1428_v33 = vpop.f32.mrf.mxu2  ;;  %v6655_v55 = vadd.f32 %v2426_v27, %v1803_v46  ;;  %v1050_v29 = vpop.f32.mrf.mxu1  ;;  %v5029_v27 = vrot.slane %v5013_v49, 9  ;;  %v3326_v0 = vor.u32 %v3325_v31, %v3322_v16  ;;  %v3728_v46 = vpack.c.b16 %v3697_v9, %v3696_v13 }
 0x172   : > { %v1486_v36 = vadd.f32 %v1428_v33, %v1048_v12  ;;  %v3336_v53 = vor.u32 %v3335_v56, %v6663_v42  ;;  %v1051_v24 = vadd.f32 %v1050_v29, %v6279_v17  ;;  %v2580_v33 = vsel %vm6161_vm5, %v2578_v32, %v2579_v18  ;;  %v5333_v56 = vld [vmem:[%s5846_s9 + $0x24] sm:$0xe] }
 0x173   : > { %v2577_v12 = vsel %vm6161_vm5, %v5029_v27, %v2576_v7  ;;  %v3327_v16 = vrot.slane %v3326_v0, 4  ;;  %v3341_v31 = vrot.slane %v3339_v22, 5  ;;  %v4002_v17 = vrot.slane %v6645_v57, 5 }
 0x174   : > { %v2428_v4 = vpop.f32.mrf.mxu0  ;;  %2816 = vmatmul.bf16.vlgmr.msra.gmra.mxu1 %v6617_v20  ;;  %v3337_v9 = vrot.slane %v3336_v53, 4  ;;  %v2698_v7 = vunpack.c.l.b16 %v2577_v12  ;;  %v2699_v3 = vunpack.c.l.b16 %v2580_v33  ;;  %v3344_v27 = vshrl.u32 %v5242_v45, 16 }
 0x175   : > { %v3347_v32 = vshll.u32 %v5242_v45, 16  ;;  %v4004_v0 = vrot.slane %v4002_v17, 4  ;;  %v4005_v53 = vrot.slane %v6666_v44, 5 }
 0x176   : > { %v1746_v61 = vpop.f32.mrf.mxu3  ;;  %3134 = vmatmul.bf16.vlgmr.msra.gmra.mxu2 %v5497_v19  ;;  %v4154_v19 = vpack.c.b16 %v4123_v60, %v4122_v21  ;;  %v3332_v21 = vsel %vm5861_vm2, %v3327_v16, %v6663_v42  ;;  %v5349_v60 = vrot.slane %v5333_v56, 9  ;;  %v3346_v22 = vrot.slane %v3344_v27, 4 }
 0x177   : > { %v1804_v62 = vadd.f32 %v1746_v61, %v1486_v36  ;;  %v6679_v36 = vld [vmem:[%s5846_s9 + $0x34] sm:$0xf]  ;;  %v4006_v56 = vsel %vm6161_vm5, %v4004_v0, %v4005_v53 }
 0x178   : > { %v3353_v54 = vshll.u32 %v6679_v36, 16  ;;  %v3357_v18 = vshrl.u32 %v6679_v36, 16 }
 0x179   : > { %v1431_v20 = vpop.f32.mrf.mxu2  ;;  %v1052_v13 = vpop.f32.mrf.mxu1  ;;  %v6682_v29 = vadd.f32 %v2428_v4, %v1804_v62  ;;  %v3342_v4 = vsel %vm5861_vm2, %v3337_v9, %v3341_v31  ;;  %v6701_v9 = vld [vmem:[%s5846_s9 + $0x38] sm:$0x1] }
 0x17a   : > { %v1487_v49 = vadd.f32 %v1431_v20, %v1051_v24  ;;  %v1053_v62 = vadd.f32 %v1052_v13, %v6303_v39  ;;  %v3349_v20 = vrot.slane %v3347_v32, 5  ;;  %v6694_v42 = vrot.slane %v3353_v54, 5 }
 0x17b   : > { %3816 = vmatmul.bf16.vlgmr.msra.gmra.mxu3 %v3728_v46  ;;  %v2729_v46 = vpack.c.b16 %v2699_v3, %v2698_v7  ;;  %v3359_v12 = vrot.slane %v3357_v18, 4  ;;  %v3698_v13 = vunpack.c.l.b16 %v3332_v21  ;;  %v3699_v31 = vunpack.c.l.b16 %v3342_v4  ;;  %v5014_v7 = vld [vmem:[%s5846_s9 + $0x24] sm:$0xe]  ;;  %v5647_v21 = vld [vmem:[%s5846_s9 + $0x2c] sm:$0x1] }
 0x17c   : > { %v2431_v35 = vpop.f32.mrf.mxu0  ;;  %v4003_v3 = vsel %vm6161_vm5, %v5349_v60, %v4002_v17  ;;  %v3363_v32 = vshll.u32 %v6701_v9, 16  ;;  %v5030_v18 = vrot.slane %v5014_v7, 9  ;;  %v4125_v60 = vunpack.c.l.b16 %v4006_v56  ;;  %v5245_v7 = vld [vmem:[%s5846_s9 + $0x3c] sm:$0xf] }
 0x17d   : > { %v3360_v27 = vor.u32 %v3359_v12, %v6694_v42  ;;  %v4124_v17 = vunpack.c.l.b16 %v4003_v3  ;;  %v6722_v3 = vld [vmem:[%s5846_s9 + $0x40] sm:$0xf] }
 0x17e   : > { %v1749_v61 = vpop.f32.mrf.mxu3 }
 0x17f   : > { %4242 = vmatmul.bf16.vlgmr.msra.gmra.mxu0 %v4154_v19  ;;  %v1805_v57 = vadd.f32 %v1749_v61, %v1487_v49  ;;  %v5498_v19 = vld [vmem:[%s5846_s9 + $0x24] sm:$0xff] }
 0x180   : > { %v5646_v49 = vld [vmem:[%s5846_s9 + $0x28] sm:$0xf] }
 0x181   : > { %v1433_v24 = vpop.f32.mrf.mxu2  ;;  %v6696_v33 = vadd.f32 %v2431_v35, %v1805_v57  ;;  %v2583_v16 = vrot.slane %v5646_v49, 5  ;;  %v1055_v39 = vpop.f32.mrf.mxu1  ;;  %v3350_v35 = vor.u32 %v3349_v20, %v3346_v22  ;;  %v2586_v57 = vrot.slane %v5647_v21, 5  ;;  %v5334_v49 = vld [vmem:[%s5846_s9 + $0x30] sm:$0xe] }
 0x182   : > { %v1488_v45 = vadd.f32 %v1433_v24, %v1053_v62  ;;  %v3729_v62 = vpack.c.b16 %v3699_v31, %v3698_v13  ;;  %v1056_v0 = vadd.f32 %v1055_v39, %v6323_v2  ;;  %v3361_v22 = vrot.slane %v3360_v27, 4 }
 0x183   : > { %v2585_v61 = vrot.slane %v2583_v16, 4  ;;  %v3351_v53 = vrot.slane %v3350_v35, 4  ;;  %v3365_v24 = vrot.slane %v3363_v32, 5  ;;  %v2584_v12 = vsel %vm6161_vm5, %v5030_v18, %v2583_v16 }
 0x184   : > { %v2433_v44 = vpop.f32.mrf.mxu0  ;;  %2821 = vmatmul.bf16.gmra.mxu1 %v2729_v46  ;;  %v4155_v13 = vpack.c.b16 %v4125_v60, %v4124_v17  ;;  %v2700_v56 = vunpack.c.l.b16 %v2584_v12  ;;  %v5350_v27 = vrot.slane %v5334_v49, 9  ;;  %v3368_v18 = vshrl.u32 %v5245_v7, 16  ;;  %v5015_v12 = vld [vmem:[%s5846_s9 + $0x30] sm:$0xe] }
 0x185   : > { %v3356_v16 = vsel %vm5861_vm2, %v3351_v53, %v6694_v42  ;;  %v4012_v21 = vrot.slane %v6701_v9, 5 }
 0x186   : > { %v1751_v54 = vpop.f32.mrf.mxu3  ;;  %3139 = vmatmul.bf16.gmra.mxu2 %v5498_v19  ;;  %v2587_v19 = vsel %vm6161_vm5, %v2585_v61, %v2586_v57  ;;  %v3377_v57 = vshll.u32 %v6722_v3, 16  ;;  %v3700_v60 = vunpack.c.l.b16 %v3356_v16  ;;  %v3370_v9 = vrot.slane %v3368_v18, 4 }
 0x187   : > { %v1806_v4 = vadd.f32 %v1751_v54, %v1488_v45  ;;  %v4009_v45 = vrot.slane %v6679_v36, 5  ;;  %v2701_v35 = vunpack.c.l.b16 %v2587_v19  ;;  %v3366_v36 = vsel %vm5861_vm2, %v3361_v22, %v3365_v24  ;;  %v5499_v24 = vld [vmem:[%s5846_s9 + $0x30] sm:$0xff] }
 0x189   : > { %v1436_v46 = vpop.f32.mrf.mxu2  ;;  %v1057_v31 = vpop.f32.mrf.mxu1  ;;  %v6719_v2 = vadd.f32 %v2433_v44, %v1806_v4  ;;  %v4011_v54 = vrot.slane %v4009_v45, 4  ;;  %v3371_v44 = vshll.u32 %v5245_v7, 16  ;;  %v3381_v4 = vshrl.u32 %v6722_v3, 16 }
 0x18a   : > { %v1489_v20 = vadd.f32 %v1436_v46, %v1056_v0  ;;  %v1058_v42 = vadd.f32 %v1057_v31, %v6338_v25  ;;  %v2730_v17 = vpack.c.b16 %v2701_v35, %v2700_v56  ;;  %v5648_v0 = vld [vmem:[%s5846_s9 + $0x34] sm:$0xf]  ;;  %v6742_v31 = vrot.slane %v3377_v57, 5 }
 0x18b   : > { %3821 = vmatmul.bf16.gmra.mxu3 %v3729_v62  ;;  %v2590_v46 = vrot.slane %v5648_v0, 5  ;;  %v3373_v19 = vrot.slane %v3371_v44, 5  ;;  %v4013_v25 = vsel %vm6161_vm5, %v4011_v54, %v4012_v21  ;;  %v3383_v7 = vrot.slane %v3381_v4, 4  ;;  %v5248_v0 = vld [vmem:[%s5846_s9 + $0x48] sm:$0xf] }
 0x18c   : > { %v2436_v39 = vpop.f32.mrf.mxu0  ;;  %v5031_v35 = vrot.slane %v5015_v12, 9 }
 0x18d   : > { %v2592_v16 = vrot.slane %v2590_v46, 4  ;;  %v3384_v21 = vor.u32 %v3383_v7, %v6742_v31  ;;  %v5335_v7 = vld [vmem:[%s5846_s9 + $0x3c] sm:$0xe] }
 0x18e   : > { %v1754_v32 = vpop.f32.mrf.mxu3 }
 0x18f   : > { %4247 = vmatmul.bf16.gmra.mxu0 %v4155_v13  ;;  %v1807_v61 = vadd.f32 %v1754_v32, %v1489_v20  ;;  %v3701_v20 = vunpack.c.l.b16 %v3366_v36  ;;  %v4010_v13 = vsel %vm6161_vm5, %v5350_v27, %v4009_v45  ;;  %v5649_v32 = vld [vmem:[%s5846_s9 + $0x38] sm:$0x1]  ;;  %v4127_v45 = vunpack.c.l.b16 %v4013_v25 }
 0x190   : > { %v2593_v36 = vrot.slane %v5649_v32, 5  ;;  %v4126_v44 = vunpack.c.l.b16 %v4010_v13  ;;  %v3374_v27 = vor.u32 %v3373_v19, %v3370_v9 }
 0x191   : > { %v1438_v62 = vpop.f32.mrf.mxu2  ;;  %v6734_v53 = vadd.f32 %v2436_v39, %v1807_v61  ;;  %v1060_v49 = vpop.f32.mrf.mxu1  ;;  %v6745_v39 = vld [vmem:[%s5846_s9 + $0x44] sm:$0x1]  ;;  %v3730_v54 = vpack.c.b16 %v3701_v20, %v3700_v60  ;;  %v3385_v20 = vrot.slane %v3384_v21, 4 }
 0x192   : > { %v1490_v22 = vadd.f32 %v1438_v62, %v1058_v42  ;;  %v3387_v57 = vshll.u32 %v6745_v39, 16  ;;  %v1061_v4 = vadd.f32 %v1060_v49, %v6353_v58  ;;  %v2591_v62 = vsel %vm6161_vm5, %v5031_v35, %v2590_v46 }
 0x193   : > { %v3375_v9 = vrot.slane %v3374_v27, 4  ;;  %v4016_v58 = vrot.slane %v6722_v3, 5  ;;  %v2702_v46 = vunpack.c.l.b16 %v2591_v62  ;;  %v3392_v35 = vshrl.u32 %v5248_v0, 16 }
 0x194   : > { %v2438_v56 = vpop.f32.mrf.mxu0  ;;  %2826 = vmatmul.bf16.gmra.mxu1 %v2730_v17  ;;  %v2594_v17 = vsel %vm6161_vm5, %v2592_v16, %v2593_v36  ;;  %v3389_v19 = vrot.slane %v3387_v57, 5  ;;  %v3395_v16 = vshll.u32 %v5248_v0, 16  ;;  %v4019_v21 = vrot.slane %v6745_v39, 5 }
 0x195   : > { %v2703_v25 = vunpack.c.l.b16 %v2594_v17  ;;  %v4018_v27 = vrot.slane %v4016_v58, 4  ;;  %v3394_v57 = vrot.slane %v3392_v35, 4 }
 0x196   : > { %v1756_v18 = vpop.f32.mrf.mxu3  ;;  %3144 = vmatmul.bf16.gmra.mxu2 %v5499_v24  ;;  %v4156_v24 = vpack.c.b16 %v4127_v45, %v4126_v44  ;;  %v3380_v44 = vsel %vm5861_vm2, %v3375_v9, %v6742_v31  ;;  %v5351_v45 = vrot.slane %v5335_v7, 9 }
 0x197   : > { %v1808_v61 = vadd.f32 %v1756_v18, %v1490_v22  ;;  %v6757_v22 = vld [vmem:[%s5846_s9 + $0x4c] sm:$0xf]  ;;  %v4020_v7 = vsel %vm6161_vm5, %v4018_v27, %v4019_v21 }
 0x198   : > { %v3401_v32 = vshll.u32 %v6757_v22, 16  ;;  %v3405_v36 = vshrl.u32 %v6757_v22, 16 }
 0x199   : > { %v1441_v42 = vpop.f32.mrf.mxu2  ;;  %v1062_v60 = vpop.f32.mrf.mxu1  ;;  %v6760_v49 = vadd.f32 %v2438_v56, %v1808_v61  ;;  %v3390_v56 = vsel %vm5861_vm2, %v3385_v20, %v3389_v19  ;;  %v6779_v20 = vld [vmem:[%s5846_s9 + $0x50] sm:$0x1] }
 0x19a   : > { %v1491_v12 = vadd.f32 %v1441_v42, %v1061_v4  ;;  %v1063_v61 = vadd.f32 %v1062_v60, %v6376_v51  ;;  %v3397_v42 = vrot.slane %v3395_v16, 5  ;;  %v6772_v31 = vrot.slane %v3401_v32, 5 }
 0x19b   : > { %3826 = vmatmul.bf16.gmra.mxu3 %v3730_v54  ;;  %v2731_v54 = vpack.c.b16 %v2703_v25, %v2702_v46  ;;  %v3407_v62 = vrot.slane %v3405_v36, 4  ;;  %v3702_v60 = vunpack.c.l.b16 %v3380_v44  ;;  %v3703_v19 = vunpack.c.l.b16 %v3390_v56  ;;  %v5016_v46 = vld [vmem:[%s5846_s9 + $0x3c] sm:$0xe]  ;;  %v5651_v44 = vld [vmem:[%s5846_s9 + $0x44] sm:$0x1] }
 0x19c   : > { %v2441_v13 = vpop.f32.mrf.mxu0  ;;  %v4017_v25 = vsel %vm6161_vm5, %v5351_v45, %v4016_v58  ;;  %v3411_v16 = vshll.u32 %v6779_v20, 16  ;;  %v5032_v36 = vrot.slane %v5016_v46, 9  ;;  %v4129_v45 = vunpack.c.l.b16 %v4020_v7  ;;  %v5251_v46 = vld [vmem:[%s5846_s9 + $0x54] sm:$0xf] }
 0x19d   : > { %v3408_v35 = vor.u32 %v3407_v62, %v6772_v31  ;;  %v4128_v58 = vunpack.c.l.b16 %v4017_v25  ;;  %v6800_v25 = vld [vmem:[%s5846_s9 + $0x58] sm:$0xf] }
 0x19e   : > { %v1759_v18 = vpop.f32.mrf.mxu3 }
 0x19f   : > { %4252 = vmatmul.bf16.gmra.mxu0 %v4156_v24  ;;  %v1809_v3 = vadd.f32 %v1759_v18, %v1491_v12  ;;  %v5500_v24 = vld [vmem:[%s5846_s9 + $0x3c] sm:$0xff] }
 0x1a0   : > { %v5650_v12 = vld [vmem:[%s5846_s9 + $0x40] sm:$0xf] }
 0x1a1   : > { %v1443_v4 = vpop.f32.mrf.mxu2  ;;  %v6774_v17 = vadd.f32 %v2441_v13, %v1809_v3  ;;  %v2597_v9 = vrot.slane %v5650_v12, 5  ;;  %v1065_v51 = vpop.f32.mrf.mxu1  ;;  %v3398_v13 = vor.u32 %v3397_v42, %v3394_v57  ;;  %v2600_v3 = vrot.slane %v5651_v44, 5  ;;  %v5336_v12 = vld [vmem:[%s5846_s9 + $0x48] sm:$0xe] }
 0x1a2   : > { %v1492_v0 = vadd.f32 %v1443_v4, %v1063_v61  ;;  %v3731_v61 = vpack.c.b16 %v3703_v19, %v3702_v60  ;;  %v1066_v27 = vadd.f32 %v1065_v51, %v6397_v14  ;;  %v3409_v57 = vrot.slane %v3408_v35, 4 }
 0x1a3   : > { %v2599_v18 = vrot.slane %v2597_v9, 4  ;;  %v3399_v21 = vrot.slane %v3398_v13, 4  ;;  %v3413_v4 = vrot.slane %v3411_v16, 5  ;;  %v2598_v62 = vsel %vm6161_vm5, %v5032_v36, %v2597_v9 }
 0x1a4   : > { %v2443_v39 = vpop.f32.mrf.mxu0  ;;  %2831 = vmatmul.bf16.gmra.mxu1 %v2731_v54  ;;  %v4157_v60 = vpack.c.b16 %v4129_v45, %v4128_v58  ;;  %v2704_v7 = vunpack.c.l.b16 %v2598_v62  ;;  %v5352_v35 = vrot.slane %v5336_v12, 9  ;;  %v3416_v36 = vshrl.u32 %v5251_v46, 16  ;;  %v5017_v62 = vld [vmem:[%s5846_s9 + $0x48] sm:$0xe] }
 0x1a5   : > { %v3404_v9 = vsel %vm5861_vm2, %v3399_v21, %v6772_v31  ;;  %v4026_v44 = vrot.slane %v6779_v20, 5 }
 0x1a6   : > { %v1761_v32 = vpop.f32.mrf.mxu3  ;;  %3149 = vmatmul.bf16.gmra.mxu2 %v5500_v24  ;;  %v2601_v24 = vsel %vm6161_vm5, %v2599_v18, %v2600_v3  ;;  %v3425_v3 = vshll.u32 %v6800_v25, 16  ;;  %v3704_v45 = vunpack.c.l.b16 %v3404_v9  ;;  %v3418_v20 = vrot.slane %v3416_v36, 4 }
 0x1a7   : > { %v1810_v56 = vadd.f32 %v1761_v32, %v1492_v0  ;;  %v4023_v0 = vrot.slane %v6757_v22, 5  ;;  %v2705_v13 = vunpack.c.l.b16 %v2601_v24  ;;  %v3414_v22 = vsel %vm5861_vm2, %v3409_v57, %v3413_v4  ;;  %v5501_v4 = vld [vmem:[%s5846_s9 + $0x48] sm:$0xff] }
 0x1a9   : > { %v1446_v54 = vpop.f32.mrf.mxu2  ;;  %v1067_v19 = vpop.f32.mrf.mxu1  ;;  %v6797_v14 = vadd.f32 %v2443_v39, %v1810_v56  ;;  %v4025_v32 = vrot.slane %v4023_v0, 4  ;;  %v3419_v39 = vshll.u32 %v5251_v46, 16  ;;  %v3429_v56 = vshrl.u32 %v6800_v25, 16 }
 0x1aa   : > { %v1493_v42 = vadd.f32 %v1446_v54, %v1066_v27  ;;  %v1068_v31 = vadd.f32 %v1067_v19, %v6412_v38  ;;  %v2732_v58 = vpack.c.b16 %v2705_v13, %v2704_v7  ;;  %v5652_v27 = vld [vmem:[%s5846_s9 + $0x4c] sm:$0xf]  ;;  %v6820_v19 = vrot.slane %v3425_v3, 5 }
 0x1ab   : > { %3831 = vmatmul.bf16.gmra.mxu3 %v3731_v61  ;;  %v2604_v54 = vrot.slane %v5652_v27, 5  ;;  %v3421_v24 = vrot.slane %v3419_v39, 5  ;;  %v4027_v38 = vsel %vm6161_vm5, %v4025_v32, %v4026_v44  ;;  %v3431_v46 = vrot.slane %v3429_v56, 4  ;;  %v5254_v27 = vld [vmem:[%s5846_s9 + $0x60] sm:$0xf] }
 0x1ac   : > { %v2446_v51 = vpop.f32.mrf.mxu0  ;;  %v5033_v13 = vrot.slane %v5017_v62, 9 }
 0x1ad   : > { %v2606_v9 = vrot.slane %v2604_v54, 4  ;;  %v3432_v44 = vor.u32 %v3431_v46, %v6820_v19  ;;  %v5337_v46 = vld [vmem:[%s5846_s9 + $0x54] sm:$0xe] }
 0x1ae   : > { %v1764_v16 = vpop.f32.mrf.mxu3 }
 0x1af   : > { %4257 = vmatmul.bf16.gmra.mxu0 %v4157_v60  ;;  %v1811_v18 = vadd.f32 %v1764_v16, %v1493_v42  ;;  %v3705_v42 = vunpack.c.l.b16 %v3414_v22  ;;  %v4024_v60 = vsel %vm6161_vm5, %v5352_v35, %v4023_v0  ;;  %v5653_v16 = vld [vmem:[%s5846_s9 + $0x50] sm:$0x1]  ;;  %v4131_v0 = vunpack.c.l.b16 %v4027_v38 }
 0x1b0   : > { %v2607_v22 = vrot.slane %v5653_v16, 5  ;;  %v4130_v39 = vunpack.c.l.b16 %v4024_v60  ;;  %v3422_v35 = vor.u32 %v3421_v24, %v3418_v20 }
 0x1b1   : > { %v1448_v61 = vpop.f32.mrf.mxu2  ;;  %v6812_v21 = vadd.f32 %v2446_v51, %v1811_v18  ;;  %v1070_v12 = vpop.f32.mrf.mxu1  ;;  %v6823_v51 = vld [vmem:[%s5846_s9 + $0x5c] sm:$0x1]  ;;  %v3732_v32 = vpack.c.b16 %v3705_v42, %v3704_v45  ;;  %v3433_v42 = vrot.slane %v3432_v44, 4 }
 0x1b2   : > { %v1494_v57 = vadd.f32 %v1448_v61, %v1068_v31  ;;  %v3435_v3 = vshll.u32 %v6823_v51, 16  ;;  %v1071_v56 = vadd.f32 %v1070_v12, %v6282_v50  ;;  %v2605_v61 = vsel %vm6161_vm5, %v5033_v13, %v2604_v54 }
 0x1b3   : > { %v3423_v20 = vrot.slane %v3422_v35, 4  ;;  %v4030_v50 = vrot.slane %v6800_v25, 5  ;;  %v2706_v54 = vunpack.c.l.b16 %v2605_v61  ;;  %v3440_v13 = vshrl.u32 %v5254_v27, 16 }
 0x1b4   : > { %v2448_v7 = vpop.f32.mrf.mxu0  ;;  %2836 = vmatmul.bf16.gmra.mxu1 %v2732_v58  ;;  %v2608_v58 = vsel %vm6161_vm5, %v2606_v9, %v2607_v22  ;;  %v3437_v24 = vrot.slane %v3435_v3, 5  ;;  %v3443_v9 = vshll.u32 %v5254_v27, 16  ;;  %v4033_v44 = vrot.slane %v6823_v51, 5 }
 0x1b5   : > { %v2707_v38 = vunpack.c.l.b16 %v2608_v58  ;;  %v4032_v35 = vrot.slane %v4030_v50, 4  ;;  %v3442_v3 = vrot.slane %v3440_v13, 4 }
 0x1b6   : > { %v1766_v36 = vpop.f32.mrf.mxu3  ;;  %3154 = vmatmul.bf16.gmra.mxu2 %v5501_v4  ;;  %v4158_v4 = vpack.c.b16 %v4131_v0, %v4130_v39  ;;  %v3428_v39 = vsel %vm5861_vm2, %v3423_v20, %v6820_v19  ;;  %v5353_v0 = vrot.slane %v5337_v46, 9 }
 0x1b7   : > { %v1812_v18 = vadd.f32 %v1766_v36, %v1494_v57  ;;  %v6835_v57 = vld [vmem:[%s5846_s9 + $0x64] sm:$0xf]  ;;  %v4034_v46 = vsel %vm6161_vm5, %v4032_v35, %v4033_v44 }
 0x1b8   : > { %v3449_v16 = vshll.u32 %v6835_v57, 16  ;;  %v3453_v22 = vshrl.u32 %v6835_v57, 16 }
 0x1b9   : > { %v1451_v31 = vpop.f32.mrf.mxu2  ;;  %v1072_v45 = vpop.f32.mrf.mxu1  ;;  %v6838_v12 = vadd.f32 %v2448_v7, %v1812_v18  ;;  %v3438_v7 = vsel %vm5861_vm2, %v3433_v42, %v3437_v24  ;;  %v6857_v42 = vld [vmem:[%s5846_s9 + $0x68] sm:$0x1] }
 0x1ba   : > { %v1495_v62 = vadd.f32 %v1451_v31, %v1071_v56  ;;  %v1073_v18 = vadd.f32 %v1072_v45, %v6305_v40  ;;  %v3445_v31 = vrot.slane %v3443_v9, 5  ;;  %v6850_v19 = vrot.slane %v3449_v16, 5 }
 0x1bb   : > { %3836 = vmatmul.bf16.gmra.mxu3 %v3732_v32  ;;  %v2733_v32 = vpack.c.b16 %v2707_v38, %v2706_v54  ;;  %v3455_v61 = vrot.slane %v3453_v22, 4  ;;  %v3706_v45 = vunpack.c.l.b16 %v3428_v39  ;;  %v3707_v24 = vunpack.c.l.b16 %v3438_v7  ;;  %v5018_v54 = vld [vmem:[%s5846_s9 + $0x54] sm:$0xe]  ;;  %v5655_v39 = vld [vmem:[%s5846_s9 + $0x5c] sm:$0x1] }
 0x1bc   : > { %v2451_v60 = vpop.f32.mrf.mxu0  ;;  %v4031_v38 = vsel %vm6161_vm5, %v5353_v0, %v4030_v50  ;;  %v3459_v9 = vshll.u32 %v6857_v42, 16  ;;  %v5034_v22 = vrot.slane %v5018_v54, 9  ;;  %v4133_v0 = vunpack.c.l.b16 %v4034_v46  ;;  %v5257_v54 = vld [vmem:[%s5846_s9 + $0x6c] sm:$0xf] }
 0x1bd   : > { %v3456_v13 = vor.u32 %v3455_v61, %v6850_v19  ;;  %v4132_v50 = vunpack.c.l.b16 %v4031_v38  ;;  %v6878_v38 = vld [vmem:[%s5846_s9 + $0x70] sm:$0xf] }
 0x1be   : > { %v1769_v36 = vpop.f32.mrf.mxu3 }
 0x1bf   : > { %4262 = vmatmul.bf16.gmra.mxu0 %v4158_v4  ;;  %v1813_v25 = vadd.f32 %v1769_v36, %v1495_v62  ;;  %v5502_v4 = vld [vmem:[%s5846_s9 + $0x54] sm:$0xff] }
 0x1c0   : > { %v5654_v62 = vld [vmem:[%s5846_s9 + $0x58] sm:$0xf] }
 0x1c1   : > { %v1453_v56 = vpop.f32.mrf.mxu2  ;;  %v6852_v58 = vadd.f32 %v2451_v60, %v1813_v25  ;;  %v2611_v20 = vrot.slane %v5654_v62, 5  ;;  %v1075_v40 = vpop.f32.mrf.mxu1  ;;  %v3446_v60 = vor.u32 %v3445_v31, %v3442_v3  ;;  %v2614_v25 = vrot.slane %v5655_v39, 5  ;;  %v5338_v62 = vld [vmem:[%s5846_s9 + $0x60] sm:$0xe] }
 0x1c2   : > { %v1496_v27 = vadd.f32 %v1453_v56, %v1073_v18  ;;  %v3733_v18 = vpack.c.b16 %v3707_v24, %v3706_v45  ;;  %v1076_v35 = vadd.f32 %v1075_v40, %v6326_v6  ;;  %v3457_v3 = vrot.slane %v3456_v13, 4 }
 0x1c3   : > { %v2613_v36 = vrot.slane %v2611_v20, 4  ;;  %v3447_v44 = vrot.slane %v3446_v60, 4  ;;  %v3461_v56 = vrot.slane %v3459_v9, 5  ;;  %v2612_v61 = vsel %vm6161_vm5, %v5034_v22, %v2611_v20 }
 0x1c4   : > { %v2453_v51 = vpop.f32.mrf.mxu0  ;;  %2841 = vmatmul.bf16.gmra.mxu1 %v2733_v32  ;;  %v4159_v45 = vpack.c.b16 %v4133_v0, %v4132_v50  ;;  %v2708_v46 = vunpack.c.l.b16 %v2612_v61  ;;  %v5354_v13 = vrot.slane %v5338_v62, 9  ;;  %v3464_v22 = vshrl.u32 %v5257_v54, 16  ;;  %v5019_v61 = vld [vmem:[%s5846_s9 + $0x60] sm:$0xe] }
 0x1c5   : > { %v3452_v20 = vsel %vm5861_vm2, %v3447_v44, %v6850_v19  ;;  %v4040_v39 = vrot.slane %v6857_v42, 5 }
 0x1c6   : > { %v1771_v16 = vpop.f32.mrf.mxu3  ;;  %3159 = vmatmul.bf16.gmra.mxu2 %v5502_v4  ;;  %v2615_v4 = vsel %vm6161_vm5, %v2613_v36, %v2614_v25  ;;  %v3473_v25 = vshll.u32 %v6878_v38, 16  ;;  %v3708_v0 = vunpack.c.l.b16 %v3452_v20  ;;  %v3466_v42 = vrot.slane %v3464_v22, 4 }
 0x1c7   : > { %v1814_v7 = vadd.f32 %v1771_v16, %v1496_v27  ;;  %v4037_v27 = vrot.slane %v6835_v57, 5  ;;  %v2709_v60 = vunpack.c.l.b16 %v2615_v4  ;;  %v3462_v57 = vsel %vm5861_vm2, %v3457_v3, %v3461_v56  ;;  %v5503_v56 = vld [vmem:[%s5846_s9 + $0x60] sm:$0xff] }
 0x1c9   : > { %v1456_v32 = vpop.f32.mrf.mxu2  ;;  %v1077_v24 = vpop.f32.mrf.mxu1  ;;  %v6875_v6 = vadd.f32 %v2453_v51, %v1814_v7  ;;  %v4039_v16 = vrot.slane %v4037_v27, 4  ;;  %v3467_v51 = vshll.u32 %v5257_v54, 16  ;;  %v3477_v7 = vshrl.u32 %v6878_v38, 16 }
 0x1ca   : > { %v1497_v31 = vadd.f32 %v1456_v32, %v1076_v35  ;;  %v1078_v19 = vadd.f32 %v1077_v24, %v6340_v28  ;;  %v2734_v50 = vpack.c.b16 %v2709_v60, %v2708_v46  ;;  %v5656_v35 = vld [vmem:[%s5846_s9 + $0x64] sm:$0xf]  ;;  %v6898_v24 = vrot.slane %v3473_v25, 5 }
 0x1cb   : > { %3841 = vmatmul.bf16.gmra.mxu3 %v3733_v18  ;;  %v2618_v32 = vrot.slane %v5656_v35, 5  ;;  %v3469_v4 = vrot.slane %v3467_v51, 5  ;;  %v4041_v28 = vsel %vm6161_vm5, %v4039_v16, %v4040_v39  ;;  %v3479_v54 = vrot.slane %v3477_v7, 4  ;;  %v5260_v35 = vld [vmem:[%s5846_s9 + $0x78] sm:$0xf] }
 0x1cc   : > { %v2456_v40 = vpop.f32.mrf.mxu0  ;;  %v5035_v60 = vrot.slane %v5019_v61, 9 }
 0x1cd   : > { %v2620_v20 = vrot.slane %v2618_v32, 4  ;;  %v3480_v39 = vor.u32 %v3479_v54, %v6898_v24  ;;  %v5339_v54 = vld [vmem:[%s5846_s9 + $0x6c] sm:$0xe] }
 0x1ce   : > { %v1774_v9 = vpop.f32.mrf.mxu3 }
 0x1cf   : > { %4267 = vmatmul.bf16.gmra.mxu0 %v4159_v45  ;;  %v1815_v36 = vadd.f32 %v1774_v9, %v1497_v31  ;;  %v3709_v31 = vunpack.c.l.b16 %v3462_v57  ;;  %v4038_v45 = vsel %vm6161_vm5, %v5354_v13, %v4037_v27  ;;  %v5657_v9 = vld [vmem:[%s5846_s9 + $0x68] sm:$0x1]  ;;  %v4135_v27 = vunpack.c.l.b16 %v4041_v28 }
 0x1d0   : > { %v2621_v57 = vrot.slane %v5657_v9, 5  ;;  %v4134_v51 = vunpack.c.l.b16 %v4038_v45  ;;  %v3470_v13 = vor.u32 %v3469_v4, %v3466_v42 }
 0x1d1   : > { %v1458_v18 = vpop.f32.mrf.mxu2  ;;  %v6890_v44 = vadd.f32 %v2456_v40, %v1815_v36  ;;  %v1080_v62 = vpop.f32.mrf.mxu1  ;;  %v6901_v40 = vld [vmem:[%s5846_s9 + $0x74] sm:$0x1]  ;;  %v3734_v16 = vpack.c.b16 %v3709_v31, %v3708_v0  ;;  %v3481_v31 = vrot.slane %v3480_v39, 4 }
 0x1d2   : > { %v1498_v3 = vadd.f32 %v1458_v18, %v1078_v19  ;;  %v3483_v25 = vshll.u32 %v6901_v40, 16  ;;  %v1081_v7 = vadd.f32 %v1080_v62, %v6358_v63  ;;  %v2619_v18 = vsel %vm6161_vm5, %v5035_v60, %v2618_v32 }
 0x1d3   : > { %v3471_v42 = vrot.slane %v3470_v13, 4  ;;  %v4044_v63 = vrot.slane %v6878_v38, 5  ;;  %v2710_v32 = vunpack.c.l.b16 %v2619_v18  ;;  %v3488_v60 = vshrl.u32 %v5260_v35, 16 }
 0x1d4   : > { %v2458_v46 = vpop.f32.mrf.mxu0  ;;  %2846 = vmatmul.bf16.gmra.mxu1 %v2734_v50  ;;  %v2622_v50 = vsel %vm6161_vm5, %v2620_v20, %v2621_v57  ;;  %v3485_v4 = vrot.slane %v3483_v25, 5  ;;  %v3491_v20 = vshll.u32 %v5260_v35, 16  ;;  %v4047_v39 = vrot.slane %v6901_v40, 5 }
 0x1d5   : > { %v2711_v28 = vunpack.c.l.b16 %v2622_v50  ;;  %v4046_v13 = vrot.slane %v4044_v63, 4  ;;  %v3490_v25 = vrot.slane %v3488_v60, 4 }
 0x1d6   : > { %v1776_v22 = vpop.f32.mrf.mxu3  ;;  %3164 = vmatmul.bf16.gmra.mxu2 %v5503_v56  ;;  %v4160_v56 = vpack.c.b16 %v4135_v27, %v4134_v51  ;;  %v3476_v51 = vsel %vm5861_vm2, %v3471_v42, %v6898_v24  ;;  %v5355_v27 = vrot.slane %v5339_v54, 9 }
 0x1d7   : > { %v1816_v36 = vadd.f32 %v1776_v22, %v1498_v3  ;;  %v6913_v3 = vld [vmem:[%s5846_s9 + $0x7c] sm:$0xf]  ;;  %v4048_v54 = vsel %vm6161_vm5, %v4046_v13, %v4047_v39 }
 0x1d8   : > { %v3497_v9 = vshll.u32 %v6913_v3, 16  ;;  %v3501_v57 = vshrl.u32 %v6913_v3, 16 }
 0x1d9   : > { %v1461_v19 = vpop.f32.mrf.mxu2  ;;  %v1082_v0 = vpop.f32.mrf.mxu1  ;;  %v6916_v62 = vadd.f32 %v2458_v46, %v1816_v36  ;;  %v3486_v46 = vsel %vm5861_vm2, %v3481_v31, %v3485_v4  ;;  %v6935_v31 = vld [vmem:[%s5846_s9 + $0x80] sm:$0x1] }
 0x1da   : > { %v1499_v61 = vadd.f32 %v1461_v19, %v1081_v7  ;;  %v1083_v36 = vadd.f32 %v1082_v0, %v6389_v41  ;;  %v3493_v19 = vrot.slane %v3491_v20, 5  ;;  %v6928_v24 = vrot.slane %v3497_v9, 5 }
 0x1db   : > { %3846 = vmatmul.bf16.gmra.mxu3 %v3734_v16  ;;  %v2735_v16 = vpack.c.b16 %v2711_v28, %v2710_v32  ;;  %v3503_v18 = vrot.slane %v3501_v57, 4  ;;  %v3710_v0 = vunpack.c.l.b16 %v3476_v51  ;;  %v3711_v4 = vunpack.c.l.b16 %v3486_v46  ;;  %v5020_v32 = vld [vmem:[%s5846_s9 + $0x6c] sm:$0xe]  ;;  %v5659_v51 = vld [vmem:[%s5846_s9 + $0x74] sm:$0x1] }
 0x1dc   : > { %v2461_v45 = vpop.f32.mrf.mxu0  ;;  %v4045_v28 = vsel %vm6161_vm5, %v5355_v27, %v4044_v63  ;;  %v3507_v20 = vshll.u32 %v6935_v31, 16  ;;  %v5036_v57 = vrot.slane %v5020_v32, 9  ;;  %v4137_v27 = vunpack.c.l.b16 %v4048_v54  ;;  %v5263_v32 = vld [vmem:[%s5846_s9 + $0x84] sm:$0xf] }
 0x1dd   : > { %v3504_v60 = vor.u32 %v3503_v18, %v6928_v24  ;;  %v4136_v63 = vunpack.c.l.b16 %v4045_v28  ;;  %v6956_v28 = vld [vmem:[%s5846_s9 + $0x88] sm:$0xf] }
 0x1de   : > { %v1779_v22 = vpop.f32.mrf.mxu3 }
 0x1df   : > { %4272 = vmatmul.bf16.gmra.mxu0 %v4160_v56  ;;  %v1817_v38 = vadd.f32 %v1779_v22, %v1499_v61  ;;  %v5504_v56 = vld [vmem:[%s5846_s9 + $0x6c] sm:$0xff] }
 0x1e0   : > { %v5658_v61 = vld [vmem:[%s5846_s9 + $0x70] sm:$0xf] }
 0x1e1   : > { %v1463_v7 = vpop.f32.mrf.mxu2  ;;  %v6930_v50 = vadd.f32 %v2461_v45, %v1817_v38  ;;  %v2625_v42 = vrot.slane %v5658_v61, 5  ;;  %v1085_v41 = vpop.f32.mrf.mxu1  ;;  %v3494_v45 = vor.u32 %v3493_v19, %v3490_v25  ;;  %v2628_v38 = vrot.slane %v5659_v51, 5  ;;  %v5340_v61 = vld [vmem:[%s5846_s9 + $0x78] sm:$0xe] }
 0x1e2   : > { %v1500_v35 = vadd.f32 %v1463_v7, %v1083_v36  ;;  %v3735_v36 = vpack.c.b16 %v3711_v4, %v3710_v0  ;;  %v1086_v13 = vadd.f32 %v1085_v41, %v6409_v15  ;;  %v3505_v25 = vrot.slane %v3504_v60, 4 }
 0x1e3   : > { %v2627_v22 = vrot.slane %v2625_v42, 4  ;;  %v3495_v39 = vrot.slane %v3494_v45, 4  ;;  %v3509_v7 = vrot.slane %v3507_v20, 5  ;;  %v2626_v18 = vsel %vm6161_vm5, %v5036_v57, %v2625_v42 }
 0x1e4   : > { %v2463_v40 = vpop.f32.mrf.mxu0  ;;  %2851 = vmatmul.bf16.gmra.mxu1 %v2735_v16  ;;  %v4161_v0 = vpack.c.b16 %v4137_v27, %v4136_v63  ;;  %v2712_v54 = vunpack.c.l.b16 %v2626_v18  ;;  %v5356_v60 = vrot.slane %v5340_v61, 9  ;;  %v3512_v57 = vshrl.u32 %v5263_v32, 16 }
 0x1e5   : > { %v3500_v42 = vsel %vm5861_vm2, %v3495_v39, %v6928_v24  ;;  %v3515_v51 = vshll.u32 %v5263_v32, 16 }
 0x1e6   : > { %v1781_v9 = vpop.f32.mrf.mxu3  ;;  %3169 = vmatmul.bf16.gmra.mxu2 %v5504_v56  ;;  %v2629_v56 = vsel %vm6161_vm5, %v2627_v22, %v2628_v38  ;;  %v3521_v38 = vshll.u32 %v6956_v28, 16  ;;  %v3712_v27 = vunpack.c.l.b16 %v3500_v42  ;;  %v3514_v61 = vrot.slane %v3512_v57, 4  ;;  %v5661_v42 = vld [vmem:[%s5846_s9 + $0x80] sm:$0x1] }
 0x1e7   : > { %v1818_v46 = vadd.f32 %v1781_v9, %v1500_v35  ;;  %v4051_v35 = vrot.slane %v6913_v3, 5  ;;  %v2713_v45 = vunpack.c.l.b16 %v2629_v56  ;;  %v3510_v3 = vsel %vm5861_vm2, %v3505_v25, %v3509_v7  ;;  %v5505_v25 = vld [vmem:[%s5846_s9 + $0x78] sm:$0xff] }
 0x1e8   : > { %v3713_v7 = vunpack.c.l.b16 %v3510_v3  ;;  %v5021_v56 = vld [vmem:[%s5846_s9 + $0x78] sm:$0xe]  ;;  %v5265_v3 = vld [vmem:[%s5846_s9 + $0x8c] sm:$0x1] }
 0x1e9   : > { %v1466_v16 = vpop.f32.mrf.mxu2  ;;  %v1087_v4 = vpop.f32.mrf.mxu1  ;;  %v6953_v15 = vadd.f32 %v2463_v40, %v1818_v46  ;;  %v4053_v9 = vrot.slane %v4051_v35, 4  ;;  %v4054_v40 = vrot.slane %v6935_v31, 5  ;;  %v3525_v46 = vshrl.u32 %v6956_v28, 16 }
 0x1ea   : > { %v1501_v19 = vadd.f32 %v1466_v16, %v1086_v13  ;;  %v1088_v24 = vadd.f32 %v1087_v4, %v6424_v1  ;;  %v2736_v63 = vpack.c.b16 %v2713_v45, %v2712_v54  ;;  %v5660_v13 = vld [vmem:[%s5846_s9 + $0x7c] sm:$0xf]  ;;  %v6976_v4 = vrot.slane %v3521_v38, 5 }
 0x1eb   : > { %3851 = vmatmul.bf16.gmra.mxu3 %v3735_v36  ;;  %v2632_v16 = vrot.slane %v5660_v13, 5  ;;  %v4055_v18 = vsel %vm6161_vm5, %v4053_v9, %v4054_v40  ;;  %v3527_v32 = vrot.slane %v3525_v46, 4  ;;  %v5037_v54 = vrot.slane %v5021_v56, 9  ;;  %v5341_v13 = vld [vmem:[%s5846_s9 + $0x84] sm:$0xe] }
 0x1ec   : > { %v2466_v41 = vpop.f32.mrf.mxu0  ;;  %v3736_v40 = vpack.c.b16 %v3713_v7, %v3712_v27  ;;  %v3531_v38 = vshll.u32 %v5265_v3, 16  ;;  %v5266_v27 = vld [vmem:[%s5846_s9 + $0x90] sm:$0xf] }
 0x1ed   : > { %v2634_v45 = vrot.slane %v2632_v16, 4 }
 0x1ee   : > { %v1784_v20 = vpop.f32.mrf.mxu3 }
 0x1ef   : > { %4277 = vmatmul.bf16.gmra.mxu0 %v4161_v0  ;;  %v1819_v22 = vadd.f32 %v1784_v20, %v1501_v19  ;;  %v4052_v19 = vsel %vm6161_vm5, %v5356_v60, %v4051_v35  ;;  %v3517_v0 = vrot.slane %v3515_v51, 5  ;;  %v2635_v20 = vrot.slane %v5661_v42, 5 }
 0x1f0   : > { %v4138_v35 = vunpack.c.l.b16 %v4052_v19  ;;  %v4139_v60 = vunpack.c.l.b16 %v4055_v18  ;;  %v3528_v51 = vor.u32 %v3527_v32, %v6976_v4  ;;  %v4058_v19 = vrot.slane %v6956_v28, 5 }
 0x1f1   : > { %v1468_v36 = vpop.f32.mrf.mxu2  ;;  %v6968_v39 = vadd.f32 %v2466_v41, %v1819_v22  ;;  %v2817_v1 = vpop.f32.mrf.mxu1  ;;  %v3518_v57 = vor.u32 %v3517_v0, %v3514_v61  ;;  %v6990_v61 = vld [vmem:[%s5846_s9 + $0x94] sm:$0xf]  ;;  %v3533_v32 = vrot.slane %v3531_v38, 5  ;;  %v3539_v42 = vshll.u32 %v5266_v27, 16 }
 0x1f2   : > { %v1502_v31 = vadd.f32 %v1468_v36, %v1088_v24  ;;  %v2897_v46 = vadd.f32 %v2817_v1, %v6450_v59  ;;  %v2633_v36 = vsel %vm6161_vm5, %v5037_v54, %v2632_v16  ;;  %v3529_v56 = vrot.slane %v3528_v51, 4 }
 0x1f3   : > { %v3519_v18 = vrot.slane %v3518_v57, 4  ;;  %v2714_v16 = vunpack.c.l.b16 %v2633_v36  ;;  %v5357_v54 = vrot.slane %v5341_v13, 9  ;;  %v5506_v13 = vld [vmem:[%s5846_s9 + $0x84] sm:$0xff] }
 0x1f4   : > { %v2468_v41 = vpop.f32.mrf.mxu0  ;;  %2856 = vmatmul.bf16.gmra.mxu1 %v2736_v63  ;;  %v2636_v63 = vsel %vm6161_vm5, %v2634_v45, %v2635_v20  ;;  %v3536_v45 = vshrl.u32 %v5266_v27, 16  ;;  %v4060_v20 = vrot.slane %v4058_v19, 4 }
 0x1f5   : > { %v2715_v0 = vunpack.c.l.b16 %v2636_v63  ;;  %v3524_v57 = vsel %vm5861_vm2, %v3519_v18, %v6976_v4  ;;  %v4059_v51 = vsel %vm6161_vm5, %v5357_v54, %v4058_v19  ;;  %v3541_v63 = vrot.slane %v3539_v42, 5 }
 0x1f6   : > { %v1786_v22 = vpop.f32.mrf.mxu3  ;;  %3174 = vmatmul.bf16.gmra.mxu2 %v5505_v25  ;;  %v4162_v25 = vpack.c.b16 %v4139_v60, %v4138_v35  ;;  %v3545_v35 = vshll.u32 %v6990_v61, 16  ;;  %v3549_v60 = vshrl.u32 %v6990_v61, 16  ;;  %v3538_v36 = vrot.slane %v3536_v45, 4 }
 0x1f7   : > { %v1820_v9 = vadd.f32 %v1786_v22, %v1502_v31  ;;  %v4061_v22 = vrot.slane %v5265_v3, 5  ;;  %v3534_v3 = vsel %vm5861_vm2, %v3529_v56, %v3533_v32  ;;  %v7023_v32 = vld [vmem:[%s5846_s9 + $0x98] sm:$0x1]  ;;  %v4140_v45 = vunpack.c.l.b16 %v4059_v51 }
 0x1f8   : > { %v3551_v19 = vrot.slane %v3549_v60, 4  ;;  %v5663_v60 = vld [vmem:[%s5846_s9 + $0x8c] sm:$0x1] }
 0x1f9   : > { %v3135_v24 = vpop.f32.mrf.mxu2  ;;  %v2819_v7 = vpop.f32.mrf.mxu1  ;;  %v6992_v59 = vadd.f32 %v2468_v41, %v1820_v9  ;;  %v7000_v9 = vld [vmem:[%s7336_s2] ss:$0 sm:$0xff]  ;;  %v4062_v4 = vsel %vm6161_vm5, %v4060_v20, %v4061_v22 }
 0x1fa   : > { %v3215_v31 = vadd.f32 %v3135_v24, %v2897_v46  ;;  %v2898_v46 = vadd.f32 %v2819_v7, %v6461_v5  ;;  %v3715_v5 = vunpack.c.l.b16 %v3534_v3  ;;  %v5022_v7 = vld [vmem:[%s5846_s9 + $0x84] sm:$0xe]  ;;  %v4141_v42 = vunpack.c.l.b16 %v4062_v4 }
 0x1fb   : > { %3856 = vmatmul.bf16.gmra.mxu3 %v3736_v40  ;;  %v2737_v40 = vpack.c.b16 %v2715_v0, %v2714_v16  ;;  %v3714_v16 = vunpack.c.l.b16 %v3524_v57  ;;  %v5038_v22 = vrot.slane %v5022_v7, 9 }
 0x1fc   : > { %v4243_v1 = vpop.f32.mrf.mxu0 }
 0x1fe   : > { %v3817_v28 = vpop.f32.mrf.mxu3 }
 0x1ff   : > { %4282 = vmatmul.bf16.gmra.mxu0 %v4162_v25  ;;  %v3897_v41 = vadd.f32 %v3817_v28, %v3215_v31  ;;  %v5662_v25 = vld [vmem:[%s5846_s9 + $0x88] sm:$0xf]  ;;  %v7018_v31 = vrot.slane %v3545_v35, 5  ;;  %v3542_v28 = vor.u32 %v3541_v63, %v3538_v36  ;;  %v5269_v63 = vld [vmem:[%s5846_s9 + $0x9c] sm:$0xf] }
 0x200   : > { %v2639_v27 = vrot.slane %v5662_v25, 5 }
 0x201   : > { %v4323_v38 = vadd.f32 %v4243_v1, %v3897_v41  ;;  %v3137_v24 = vpop.f32.mrf.mxu2  ;;  %v2822_v1 = vpop.f32.mrf.mxu1  ;;  %v2642_v41 = vrot.slane %v5663_v60, 5  ;;  %v3552_v57 = vor.u32 %v3551_v19, %v7018_v31  ;;  %v3543_v25 = vrot.slane %v3542_v28, 4 }
 0x202   : > { %v3216_v56 = vadd.f32 %v3137_v24, %v2898_v46  ;;  %v2641_v35 = vrot.slane %v2639_v27, 4  ;;  %v2899_v46 = vadd.f32 %v2822_v1, %v6471_v48  ;;  %v4163_v24 = vpack.c.b16 %v4141_v42, %v4140_v45  ;;  %v5342_v48 = vld [vmem:[%s5846_s9 + $0x90] sm:$0xe] }
 0x203   : > { %v4359_v18 = vadd.f32 %v7000_v9, %v4323_v38  ;;  %v3737_v38 = vpack.c.b16 %v3715_v5, %v3714_v16  ;;  %v3553_v19 = vrot.slane %v3552_v57, 4  ;;  %v4065_v1 = vrot.slane %v6990_v61, 5 }
 0x204   : > { %v4245_v0 = vpop.f32.mrf.mxu0  ;;  %2861 = vmatmul.bf16.gmra.mxu1 %v2737_v40  ;;  %v3555_v40 = vshll.u32 %v7023_v32, 16  ;;  %v2643_v4 = vsel %vm6161_vm5, %v2641_v35, %v2642_v41  ;;  %v5358_v35 = vrot.slane %v5342_v48, 9  ;;  %v4068_v57 = vrot.slane %v7023_v32, 5  ;;  %v5023_v48 = vld [vmem:[%s5846_s9 + $0x90] sm:$0xe] }
 0x205   : > { %v4391_v54 = vmax.f32 %v4359_v18, 0.0  ;;  %v2717_v42 = vunpack.c.l.b16 %v2643_v4  ;;  %v4067_v41 = vrot.slane %v4065_v1, 4  ;;  %v5664_v4 = vld [vmem:[%s5846_s9 + $0x94] sm:$0xf] }
 0x206   : > { %v3819_v20 = vpop.f32.mrf.mxu3  ;;  %3179 = vmatmul.bf16.gmra.mxu2 %v5506_v13  ;;  %v2640_v13 = vsel %vm6161_vm5, %v5038_v22, %v2639_v27  ;;  %v3557_v5 = vrot.slane %v3555_v40, 5  ;;  %v3548_v22 = vsel %vm5861_vm2, %v3543_v25, %v7018_v31  ;;  %v2646_v25 = vrot.slane %v5664_v4, 5 }
 0x207   : > { %4423 = vst [vmem:[%s7028_s7] sm:$0xff] %v4391_v54  ;;  %v3898_v3 = vadd.f32 %v3819_v20, %v3216_v56  ;;  %v3563_v54 = vshll.u32 %v5269_v63, 16  ;;  %v2716_v45 = vunpack.c.l.b16 %v2640_v13  ;;  %v7042_v20 = vld [vmem:[%s5846_s9 + $0xa0] sm:$0xf]  ;;  %v3716_v13 = vunpack.c.l.b16 %v3548_v22 }
 0x208   : > { %v3558_v61 = vsel %vm5861_vm2, %v3553_v19, %v3557_v5  ;;  %v3569_v40 = vshll.u32 %v7042_v20, 16  ;;  %v4066_v5 = vsel %vm6161_vm5, %v5358_v35, %v4065_v1  ;;  %v2648_v22 = vrot.slane %v2646_v25, 4 }
 0x209   : > { %v4324_v51 = vadd.f32 %v4245_v0, %v3898_v3  ;;  %v3140_v36 = vpop.f32.mrf.mxu2  ;;  %v2824_v16 = vpop.f32.mrf.mxu1  ;;  %v3560_v0 = vshrl.u32 %v5269_v63, 16  ;;  %v2738_v63 = vpack.c.b16 %v2717_v42, %v2716_v45  ;;  %v7063_v45 = vld [vmem:[%s5846_s9 + $0xa4] sm:$0x1] }
 0x20a   : > { %v3217_v56 = vadd.f32 %v3140_v36, %v2899_v46  ;;  %v2900_v46 = vadd.f32 %v2824_v16, %v6485_v47  ;;  %v4069_v47 = vsel %vm6161_vm5, %v4067_v41, %v4068_v57 }
 0x20b   : > { %v4360_v18 = vadd.f32 %v7000_v9, %v4324_v51  ;;  %3861 = vmatmul.bf16.gmra.mxu3 %v3737_v38  ;;  %v3562_v3 = vrot.slane %v3560_v0, 4  ;;  %v3565_v38 = vrot.slane %v3563_v54, 5  ;;  %v3573_v51 = vshrl.u32 %v7042_v20, 16 }
 0x20c   : > { %v4248_v7 = vpop.f32.mrf.mxu0  ;;  %v3571_v0 = vrot.slane %v3569_v40, 5 }
 0x20d   : > { %v4392_v27 = vmax.f32 %v4360_v18, 0.0  ;;  %v3566_v16 = vor.u32 %v3565_v38, %v3562_v3  ;;  %v3575_v54 = vrot.slane %v3573_v51, 4  ;;  %v3579_v3 = vshll.u32 %v7063_v45, 16 }
 0x20e   : > { %v3822_v28 = vpop.f32.mrf.mxu3 }
 0x20f   : > { %4424 = vst [vmem:[%s7028_s7 + $0x8] sm:$0xff] %v4392_v27  ;;  %4287 = vmatmul.bf16.gmra.mxu0 %v4163_v24  ;;  %v3899_v60 = vadd.f32 %v3822_v28, %v3217_v56  ;;  %v5507_v24 = vld [vmem:[%s5846_s9 + $0x90] sm:$0xff]  ;;  %v3717_v56 = vunpack.c.l.b16 %v3558_v61  ;;  %v5039_v28 = vrot.slane %v5023_v48, 9  ;;  %v3567_v41 = vrot.slane %v3566_v16, 4  ;;  %v7078_v48 = vld [vmem:[%s5846_s9 + $0xac] sm:$0xf] }
 0x210   : > { %v3576_v57 = vor.u32 %v3575_v54, %v3571_v0 }
 0x211   : > { %v4325_v31 = vadd.f32 %v4248_v7, %v3899_v60  ;;  %v3142_v36 = vpop.f32.mrf.mxu2  ;;  %v2827_v18 = vpop.f32.mrf.mxu1  ;;  %v5665_v60 = vld [vmem:[%s5846_s9 + $0x98] sm:$0x1]  ;;  %v3738_v61 = vpack.c.b16 %v3717_v56, %v3716_v13  ;;  %v4072_v56 = vrot.slane %v7042_v20, 5  ;;  %v3593_v20 = vshll.u32 %v7078_v48, 16 }
 0x212   : > { %v3218_v32 = vadd.f32 %v3142_v36, %v2900_v46  ;;  %v2649_v1 = vrot.slane %v5665_v60, 5  ;;  %v4143_v46 = vunpack.c.l.b16 %v4069_v47  ;;  %v2901_v40 = vadd.f32 %v2827_v18, %v6505_v52 }
 0x213   : > { %v4361_v19 = vadd.f32 %v7000_v9, %v4325_v31  ;;  %v4142_v31 = vunpack.c.l.b16 %v4066_v5  ;;  %v2647_v36 = vsel %vm6161_vm5, %v5039_v28, %v2646_v25  ;;  %v5272_v5 = vld [vmem:[%s5846_s9 + $0xa8] sm:$0xf]  ;;  %v3572_v25 = vsel %vm5861_vm2, %v3567_v41, %v3571_v0 }
 0x214   : > { %v4250_v7 = vpop.f32.mrf.mxu0  ;;  %2866 = vmatmul.bf16.gmra.mxu1 %v2738_v63  ;;  %v2650_v63 = vsel %vm6161_vm5, %v2648_v22, %v2649_v1  ;;  %v3577_v18 = vrot.slane %v3576_v57, 4  ;;  %v2718_v16 = vunpack.c.l.b16 %v2647_v36  ;;  %v3584_v28 = vshrl.u32 %v5272_v5, 16  ;;  %v5024_v36 = vld [vmem:[%s5846_s9 + $0x9c] sm:$0xe] }
 0x215   : > { %v4393_v27 = vmax.f32 %v4361_v19, 0.0  ;;  %v4164_v4 = vpack.c.b16 %v4143_v46, %v4142_v31  ;;  %v2719_v54 = vunpack.c.l.b16 %v2650_v63  ;;  %v3587_v22 = vshll.u32 %v5272_v5, 16  ;;  %v5666_v46 = vld [vmem:[%s5846_s9 + $0xa0] sm:$0xf] }
 0x216   : > { %v3824_v42 = vpop.f32.mrf.mxu3  ;;  %3184 = vmatmul.bf16.gmra.mxu2 %v5507_v24  ;;  %v5343_v24 = vld [vmem:[%s5846_s9 + $0x9c] sm:$0xe]  ;;  %v3597_v60 = vshrl.u32 %v7078_v48, 16  ;;  %v4074_v0 = vrot.slane %v4072_v56, 4  ;;  %v3718_v31 = vunpack.c.l.b16 %v3572_v25  ;;  %v2653_v41 = vrot.slane %v5666_v46, 5 }
 0x217   : > { %4425 = vst [vmem:[%s7028_s7 + $0x10] sm:$0xff] %v4393_v27  ;;  %v3900_v35 = vadd.f32 %v3824_v42, %v3218_v32  ;;  %v5359_v27 = vrot.slane %v5343_v24, 9  ;;  %v5508_v63 = vld [vmem:[%s5846_s9 + $0x9c] sm:$0xff]  ;;  %v3586_v24 = vrot.slane %v3584_v28, 4 }
 0x219   : > { %v4326_v38 = vadd.f32 %v4250_v7, %v3900_v35  ;;  %v3145_v51 = vpop.f32.mrf.mxu2  ;;  %v2829_v32 = vpop.f32.mrf.mxu1  ;;  %v3581_v7 = vrot.slane %v3579_v3, 5  ;;  %v4075_v35 = vrot.slane %v7063_v45, 5  ;;  %v3589_v45 = vrot.slane %v3587_v22, 5 }
 0x21a   : > { %v3219_v19 = vadd.f32 %v3145_v51, %v2901_v40  ;;  %v2902_v3 = vadd.f32 %v2829_v32, %v6525_v34  ;;  %v2739_v40 = vpack.c.b16 %v2719_v54, %v2718_v16  ;;  %v4073_v51 = vsel %vm6161_vm5, %v5359_v27, %v4072_v56  ;;  %v7100_v32 = vld [vmem:[%s5846_s9 + $0xb0] sm:$0x1] }
 0x21b   : > { %v4362_v13 = vadd.f32 %v7000_v9, %v4326_v38  ;;  %3866 = vmatmul.bf16.gmra.mxu3 %v3738_v61  ;;  %v3582_v61 = vsel %vm5861_vm2, %v3577_v18, %v3581_v7  ;;  %v4076_v34 = vsel %vm6161_vm5, %v4074_v0, %v4075_v35  ;;  %v5040_v18 = vrot.slane %v5024_v36, 9 }
 0x21c   : > { %v4253_v52 = vpop.f32.mrf.mxu0  ;;  %v3719_v25 = vunpack.c.l.b16 %v3582_v61  ;;  %v2655_v7 = vrot.slane %v2653_v41, 4  ;;  %v4144_v27 = vunpack.c.l.b16 %v4073_v51  ;;  %v4145_v28 = vunpack.c.l.b16 %v4076_v34 }
 0x21d   : > { %v4394_v47 = vmax.f32 %v4362_v13, 0.0  ;;  %v7094_v13 = vrot.slane %v3593_v20, 5  ;;  %v3590_v22 = vor.u32 %v3589_v45, %v3586_v24  ;;  %v2654_v35 = vsel %vm6161_vm5, %v5040_v18, %v2653_v41  ;;  %v7113_v24 = vld [vmem:[%s5846_s9 + $0xb8] sm:$0xf] }
 0x21e   : > { %v3827_v42 = vpop.f32.mrf.mxu3  ;;  %v3739_v0 = vpack.c.b16 %v3719_v25, %v3718_v31  ;;  %v5344_v25 = vld [vmem:[%s5846_s9 + $0xa8] sm:$0xe]  ;;  %v3617_v18 = vshll.u32 %v7113_v24, 16 }
 0x21f   : > { %4426 = vst [vmem:[%s7028_s7 + $0x18] sm:$0xff] %v4394_v47  ;;  %4292 = vmatmul.bf16.gmra.mxu0 %v4164_v4  ;;  %v3901_v1 = vadd.f32 %v3827_v42, %v3219_v19  ;;  %v3599_v4 = vrot.slane %v3597_v60, 4  ;;  %v5667_v47 = vld [vmem:[%s5846_s9 + $0xa4] sm:$0x1]  ;;  %v3603_v60 = vshll.u32 %v7100_v32, 16  ;;  %v3591_v51 = vrot.slane %v3590_v22, 4 }
 0x220   : > { %v2656_v16 = vrot.slane %v5667_v47, 5  ;;  %v4082_v22 = vrot.slane %v7100_v32, 5 }
 0x221   : > { %v4327_v57 = vadd.f32 %v4253_v52, %v3901_v1  ;;  %v3147_v38 = vpop.f32.mrf.mxu2  ;;  %v2832_v52 = vpop.f32.mrf.mxu1  ;;  %v3600_v20 = vor.u32 %v3599_v4, %v7094_v13  ;;  %v2720_v4 = vunpack.c.l.b16 %v2654_v35  ;;  %v7128_v35 = vrot.slane %v3617_v18, 5  ;;  %v5669_v18 = vld [vmem:[%s5846_s9 + $0xb0] sm:$0x1] }
 0x222   : > { %v3220_v5 = vadd.f32 %v3147_v38, %v2902_v3  ;;  %v2657_v61 = vsel %vm6161_vm5, %v2655_v7, %v2656_v16  ;;  %v5275_v38 = vld [vmem:[%s5846_s9 + $0xb4] sm:$0xf]  ;;  %v3621_v7 = vshrl.u32 %v7113_v24, 16  ;;  %v3596_v16 = vsel %vm5861_vm2, %v3591_v51, %v7094_v13 }
 0x223   : > { %v4363_v19 = vadd.f32 %v7000_v9, %v4327_v57  ;;  %v2903_v57 = vadd.f32 %v2832_v52, %v6535_v10  ;;  %v3601_v36 = vrot.slane %v3600_v20, 4  ;;  %v4079_v10 = vrot.slane %v7078_v48, 5 }
 0x224   : > { %v4255_v56 = vpop.f32.mrf.mxu0  ;;  %2871 = vmatmul.bf16.gmra.mxu1 %v2739_v40  ;;  %v4165_v40 = vpack.c.b16 %v4145_v28, %v4144_v27  ;;  %v3608_v52 = vshrl.u32 %v5275_v38, 16  ;;  %v3611_v34 = vshll.u32 %v5275_v38, 16  ;;  %v7133_v38 = vld [vmem:[%s5846_s9 + $0xbc] sm:$0x1]  ;;  %v3720_v32 = vunpack.c.l.b16 %v3596_v16 }
 0x225   : > { %v4395_v54 = vmax.f32 %v4363_v19, 0.0  ;;  %v2721_v19 = vunpack.c.l.b16 %v2657_v61  ;;  %v4081_v28 = vrot.slane %v4079_v10, 4  ;;  %v3623_v61 = vrot.slane %v3621_v7, 4 }
 0x226   : > { %v3829_v42 = vpop.f32.mrf.mxu3  ;;  %3189 = vmatmul.bf16.gmra.mxu2 %v5508_v63  ;;  %v3605_v63 = vrot.slane %v3603_v60, 5  ;;  %v3610_v20 = vrot.slane %v3608_v52, 4  ;;  %v3613_v60 = vrot.slane %v3611_v34, 5  ;;  %v2663_v7 = vrot.slane %v5669_v18, 5 }
 0x227   : > { %4427 = vst [vmem:[%s7028_s7 + $0x20] sm:$0xff] %v4395_v54  ;;  %v3902_v1 = vadd.f32 %v3829_v42, %v3220_v5  ;;  %v2740_v27 = vpack.c.b16 %v2721_v19, %v2720_v4  ;;  %v5360_v42 = vrot.slane %v5344_v25, 9  ;;  %v3627_v25 = vshll.u32 %v7133_v38, 16 }
 0x228   : > { %v3606_v48 = vsel %vm5861_vm2, %v3601_v36, %v3605_v63  ;;  %v3614_v4 = vor.u32 %v3613_v60, %v3610_v20  ;;  %v5345_v60 = vld [vmem:[%s5846_s9 + $0xb4] sm:$0xe] }
 0x229   : > { %v4328_v46 = vadd.f32 %v4255_v56, %v3902_v1  ;;  %v3150_v3 = vpop.f32.mrf.mxu2  ;;  %v2834_v45 = vpop.f32.mrf.mxu1  ;;  %v3721_v63 = vunpack.c.l.b16 %v3606_v48  ;;  %v3629_v20 = vrot.slane %v3627_v25, 5 }
 0x22a   : > { %v3221_v41 = vadd.f32 %v3150_v3, %v2903_v57  ;;  %v2904_v13 = vadd.f32 %v2834_v45, %v6545_v11  ;;  %v5668_v57 = vld [vmem:[%s5846_s9 + $0xac] sm:$0xf]  ;;  %v4080_v11 = vsel %vm6161_vm5, %v5360_v42, %v4079_v10  ;;  %v4083_v45 = vsel %vm6161_vm5, %v4081_v28, %v4082_v22 }
 0x22b   : > { %v4364_v31 = vadd.f32 %v7000_v9, %v4328_v46  ;;  %3871 = vmatmul.bf16.gmra.mxu3 %v3739_v0  ;;  %v5509_v46 = vld [vmem:[%s5846_s9 + $0xa8] sm:$0xff]  ;;  %v2660_v3 = vrot.slane %v5668_v57, 5  ;;  %v3740_v10 = vpack.c.b16 %v3721_v63, %v3720_v32  ;;  %v4146_v16 = vunpack.c.l.b16 %v4080_v11 }
 0x22c   : > { %v4258_v5 = vpop.f32.mrf.mxu0  ;;  %v3615_v48 = vrot.slane %v3614_v4, 4  ;;  %v5361_v32 = vrot.slane %v5345_v60, 9  ;;  %v4089_v4 = vrot.slane %v7133_v38, 5 }
 0x22d   : > { %v4396_v56 = vmax.f32 %v4364_v31, 0.0  ;;  %v5025_v31 = vld [vmem:[%s5846_s9 + $0xa8] sm:$0xe] }
 0x22e   : > { %v3832_v47 = vpop.f32.mrf.mxu3  ;;  %v5041_v34 = vrot.slane %v5025_v31, 9 }
 0x22f   : > { %4428 = vst [vmem:[%s7028_s7 + $0x28] sm:$0xff] %v4396_v56  ;;  %4297 = vmatmul.bf16.gmra.mxu0 %v4165_v40  ;;  %v3903_v54 = vadd.f32 %v3832_v47, %v3221_v41  ;;  %v2662_v56 = vrot.slane %v2660_v3, 4 }
 0x231   : > { %v4329_v1 = vadd.f32 %v4258_v5, %v3903_v54  ;;  %v3152_v0 = vpop.f32.mrf.mxu2  ;;  %v2837_v36 = vpop.f32.mrf.mxu1  ;;  %v3624_v5 = vor.u32 %v3623_v61, %v7128_v35  ;;  %v4147_v54 = vunpack.c.l.b16 %v4083_v45 }
 0x232   : > { %v3222_v51 = vadd.f32 %v3152_v0, %v2904_v13  ;;  %v2664_v13 = vsel %vm6161_vm5, %v2662_v56, %v2663_v7  ;;  %v4086_v0 = vrot.slane %v7113_v24, 5 }
 0x233   : > { %v4365_v40 = vadd.f32 %v7000_v9, %v4329_v1  ;;  %v3625_v22 = vrot.slane %v3624_v5, 4  ;;  %v2661_v1 = vsel %vm6161_vm5, %v5041_v34, %v2660_v3  ;;  %v7158_v3 = vld [vmem:[%s5846_s9 + $0xc4] sm:$0xf] }
 0x234   : > { %v4260_v41 = vpop.f32.mrf.mxu0  ;;  %2876 = vmatmul.bf16.gmra.mxu1 %v2740_v27  ;;  %v2905_v27 = vadd.f32 %v2837_v36, %v6565_v23  ;;  %v3620_v36 = vsel %vm5861_vm2, %v3615_v48, %v7128_v35  ;;  %v2722_v31 = vunpack.c.l.b16 %v2661_v1  ;;  %v4088_v45 = vrot.slane %v4086_v0, 4  ;;  %v5670_v48 = vld [vmem:[%s5846_s9 + $0xb8] sm:$0xf] }
 0x235   : > { %v4397_v19 = vmax.f32 %v4365_v40, 0.0  ;;  %v5278_v40 = vld [vmem:[%s5846_s9 + $0xc0] sm:$0xf]  ;;  %v3630_v24 = vsel %vm5861_vm2, %v3625_v22, %v3629_v20  ;;  %v3641_v25 = vshll.u32 %v7158_v3, 16  ;;  %v3722_v34 = vunpack.c.l.b16 %v3620_v36 }
 0x236   : > { %v3834_v52 = vpop.f32.mrf.mxu3  ;;  %3194 = vmatmul.bf16.gmra.mxu2 %v5509_v46  ;;  %v4166_v46 = vpack.c.b16 %v4147_v54, %v4146_v16  ;;  %v3635_v5 = vshll.u32 %v5278_v40, 16  ;;  %v3723_v56 = vunpack.c.l.b16 %v3630_v24  ;;  %v4087_v38 = vsel %vm6161_vm5, %v5361_v32, %v4086_v0  ;;  %v5510_v16 = vld [vmem:[%s5846_s9 + $0xb4] sm:$0xff]  ;;  %v5671_v32 = vld [vmem:[%s5846_s9 + $0xbc] sm:$0x1] }
 0x237   : > { %4429 = vst [vmem:[%s7028_s7 + $0x30] sm:$0xff] %v4397_v19  ;;  %v3904_v47 = vadd.f32 %v3834_v52, %v3222_v51  ;;  %v3632_v19 = vshrl.u32 %v5278_v40, 16  ;;  %v3645_v52 = vshrl.u32 %v7158_v3, 16  ;;  %v4090_v54 = vsel %vm6161_vm5, %v4088_v45, %v4089_v4 }
 0x238   : > { %v3643_v1 = vrot.slane %v3641_v25, 5  ;;  %v3741_v24 = vpack.c.b16 %v3723_v56, %v3722_v34 }
 0x239   : > { %v4330_v42 = vadd.f32 %v4260_v41, %v3904_v47  ;;  %v3155_v28 = vpop.f32.mrf.mxu2  ;;  %v2839_v23 = vpop.f32.mrf.mxu1  ;;  %v2723_v41 = vunpack.c.l.b16 %v2664_v13  ;;  %v3647_v13 = vrot.slane %v3645_v52, 4 }
 0x23a   : > { %v3223_v57 = vadd.f32 %v3155_v28, %v2905_v27  ;;  %v2906_v7 = vadd.f32 %v2839_v23, %v6585_v8  ;;  %v3634_v27 = vrot.slane %v3632_v19, 4  ;;  %v3637_v28 = vrot.slane %v3635_v5, 5  ;;  %v5026_v8 = vld [vmem:[%s5846_s9 + $0xb4] sm:$0xe]  ;;  %v7346_v19 = vld [vmem:[#allocation5_spill] sm:$0xff] }
 0x23b   : > { %v4366_v61 = vadd.f32 %v7000_v9, %v4330_v42  ;;  %3876 = vmatmul.bf16.gmra.mxu3 %v3740_v10  ;;  %v2741_v10 = vpack.c.b16 %v2723_v41, %v2722_v31  ;;  %v2667_v42 = vrot.slane %v5670_v48, 5  ;;  %v4149_v23 = vunpack.c.l.b16 %v4090_v54 }
 0x23c   : > { %v4263_v51 = vpop.f32.mrf.mxu0  ;;  %v3638_v31 = vor.u32 %v3637_v28, %v3634_v27  ;;  %v4093_v48 = vrot.slane %v7158_v3, 5  ;;  %v5281_v27 = vld [vmem:[%s5846_s9 + $0xcc] sm:$0xf] }
 0x23d   : > { %v4398_v63 = vmax.f32 %v4366_v61, 0.0  ;;  %v2669_v36 = vrot.slane %v2667_v42, 4  ;;  %v3656_v3 = vshrl.u32 %v5281_v27, 16 }
 0x23e   : > { %v3837_v11 = vpop.f32.mrf.mxu3 }
 0x23f   : > { %4430 = vst [vmem:[%s7028_s7 + $0x38] sm:$0xff] %v4398_v63  ;;  %4302 = vmatmul.bf16.gmra.mxu0 %v4166_v46  ;;  %v3905_v35 = vadd.f32 %v3837_v11, %v3223_v57  ;;  %v7176_v46 = vld [vmem:[%s5846_s9 + $0xc8] sm:$0x1]  ;;  %v4148_v57 = vunpack.c.l.b16 %v4087_v38  ;;  %v2670_v63 = vrot.slane %v5671_v32, 5  ;;  %v3648_v11 = vor.u32 %v3647_v13, %v3643_v1 }
 0x240   : > { %v3651_v45 = vshll.u32 %v7176_v46, 16  ;;  %v7347_v32 = vld [vmem:[#allocation6_spill] sm:$0xff] }
 0x241   : > { %v4331_v18 = vadd.f32 %v4263_v51, %v3905_v35  ;;  %v3157_v47 = vpop.f32.mrf.mxu2  ;;  %v2842_v60 = vpop.f32.mrf.mxu1  ;;  %v5042_v51 = vrot.slane %v5026_v8, 9  ;;  %v4167_v25 = vpack.c.b16 %v4149_v23, %v4148_v57  ;;  %v3659_v57 = vshll.u32 %v5281_v27, 16 }
 0x242   : > { %v3224_v20 = vadd.f32 %v3157_v47, %v2906_v7  ;;  %v2907_v5 = vadd.f32 %v2842_v60, %v7346_v19  ;;  %v3639_v7 = vrot.slane %v3638_v31, 4  ;;  %v3653_v38 = vrot.slane %v3651_v45, 5 }
 0x243   : > { %v4367_v22 = vadd.f32 %v7000_v9, %v4331_v18  ;;  %v2668_v52 = vsel %vm6161_vm5, %v5042_v51, %v2667_v42  ;;  %v2671_v18 = vsel %vm6161_vm5, %v2669_v36, %v2670_v63  ;;  %v4095_v23 = vrot.slane %v4093_v48, 4 }
 0x244   : > { %v4265_v61 = vpop.f32.mrf.mxu0  ;;  %2881 = vmatmul.bf16.gmra.mxu1 %v2741_v10  ;;  %v3649_v10 = vrot.slane %v3648_v11, 4  ;;  %v2724_v42 = vunpack.c.l.b16 %v2668_v52  ;;  %v3644_v8 = vsel %vm5861_vm2, %v3639_v7, %v3643_v1  ;;  %v3658_v52 = vrot.slane %v3656_v3, 4 }
 0x245   : > { %v4399_v0 = vmax.f32 %v4367_v22, 0.0  ;;  %v2725_v22 = vunpack.c.l.b16 %v2671_v18  ;;  %v3724_v11 = vunpack.c.l.b16 %v3644_v8  ;;  %v3661_v18 = vrot.slane %v3659_v57, 5 }
 0x246   : > { %v3839_v40 = vpop.f32.mrf.mxu3  ;;  %3199 = vmatmul.bf16.gmra.mxu2 %v5510_v16  ;;  %v5346_v16 = vld [vmem:[%s5846_s9 + $0xc0] sm:$0xe] }
 0x247   : > { %4431 = vst [vmem:[%s7028_s7 + $0x40] sm:$0xff] %v4399_v0  ;;  %v3906_v41 = vadd.f32 %v3839_v40, %v3224_v20  ;;  %v7191_v20 = vld [vmem:[%s5846_s9 + $0xd0] sm:$0xf]  ;;  %v5362_v13 = vrot.slane %v5346_v16, 9  ;;  %v3654_v0 = vsel %vm5861_vm2, %v3649_v10, %v3653_v38  ;;  %v4096_v40 = vrot.slane %v7176_v46, 5 }
 0x248   : > { %v3665_v51 = vshll.u32 %v7191_v20, 16  ;;  %v3669_v36 = vshrl.u32 %v7191_v20, 16  ;;  %v3725_v45 = vunpack.c.l.b16 %v3654_v0  ;;  %v5027_v46 = vld [vmem:[%s5846_s9 + $0xc0] sm:$0xe]  ;;  %v5283_v16 = vld [vmem:[%s5846_s9 + $0xd4] sm:$0x1] }
 0x249   : > { %v4332_v4 = vadd.f32 %v4265_v61, %v3906_v41  ;;  %v3160_v35 = vpop.f32.mrf.mxu2  ;;  %v2844_v47 = vpop.f32.mrf.mxu1  ;;  %v2742_v41 = vpack.c.b16 %v2725_v22, %v2724_v42  ;;  %v5673_v22 = vld [vmem:[%s5846_s9 + $0xc8] sm:$0x1]  ;;  %v3675_v3 = vshll.u32 %v5283_v16, 16 }
 0x24a   : > { %v3225_v56 = vadd.f32 %v3160_v35, %v2907_v5  ;;  %v2908_v63 = vadd.f32 %v2844_v47, %v7347_v32  ;;  %v3667_v47 = vrot.slane %v3665_v51, 5  ;;  %v3671_v10 = vrot.slane %v3669_v36, 4 }
 0x24b   : > { %v4368_v34 = vadd.f32 %v7000_v9, %v4332_v4  ;;  %3881 = vmatmul.bf16.gmra.mxu3 %v3741_v24  ;;  %v5511_v24 = vld [vmem:[%s5846_s9 + $0xc0] sm:$0xff]  ;;  %v3742_v27 = vpack.c.b16 %v3725_v45, %v3724_v11  ;;  %v3677_v45 = vrot.slane %v3675_v3, 5 }
 0x24c   : > { %v4268_v54 = vpop.f32.mrf.mxu0  ;;  %v5672_v4 = vld [vmem:[%s5846_s9 + $0xc4] sm:$0xf] }
 0x24d   : > { %v4400_v28 = vmax.f32 %v4368_v34, 0.0  ;;  %v2674_v19 = vrot.slane %v5672_v4, 5  ;;  %v4094_v34 = vsel %vm6161_vm5, %v5362_v13, %v4093_v48  ;;  %v3662_v48 = vor.u32 %v3661_v18, %v3658_v52 }
 0x24e   : > { %v3842_v60 = vpop.f32.mrf.mxu3  ;;  %v3672_v13 = vor.u32 %v3671_v10, %v3667_v47 }
 0x24f   : > { %4432 = vst [vmem:[%s7028_s7 + $0x48] sm:$0xff] %v4400_v28  ;;  %4307 = vmatmul.bf16.gmra.mxu0 %v4167_v25  ;;  %v3907_v61 = vadd.f32 %v3842_v60, %v3225_v56  ;;  %v4097_v56 = vsel %vm6161_vm5, %v4095_v23, %v4096_v40  ;;  %v5043_v28 = vrot.slane %v5027_v46, 9  ;;  %v2676_v42 = vrot.slane %v2674_v19, 4 }
 0x250   : > { %v2677_v60 = vrot.slane %v5673_v22, 5  ;;  %v4151_v0 = vunpack.c.l.b16 %v4097_v56  ;;  %v3673_v11 = vrot.slane %v3672_v13, 4  ;;  %v4103_v56 = vrot.slane %v5283_v16, 5 }
 0x251   : > { %v4333_v1 = vadd.f32 %v4268_v54, %v3907_v61  ;;  %v3162_v31 = vpop.f32.mrf.mxu2  ;;  %v2847_v25 = vpop.f32.mrf.mxu1  ;;  %v4150_v61 = vunpack.c.l.b16 %v4094_v34  ;;  %v2675_v51 = vsel %vm6161_vm5, %v5043_v28, %v2674_v19 }
 0x252   : > { %v3226_v35 = vadd.f32 %v3162_v31, %v2908_v63  ;;  %v2909_v23 = vadd.f32 %v2847_v25, %v6629_v26  ;;  %v2678_v36 = vsel %vm6161_vm5, %v2676_v42, %v2677_v60  ;;  %v4100_v26 = vrot.slane %v7191_v20, 5 }
 0x253   : > { %v4369_v5 = vadd.f32 %v7000_v9, %v4333_v1  ;;  %v4168_v32 = vpack.c.b16 %v4151_v0, %v4150_v61  ;;  %v2727_v19 = vunpack.c.l.b16 %v2678_v36  ;;  %v3678_v18 = vsel %vm5861_vm2, %v3673_v11, %v3677_v45 }
 0x254   : > { %v4270_v7 = vpop.f32.mrf.mxu0  ;;  %2886 = vmatmul.bf16.gmra.mxu1 %v2742_v41  ;;  %v3663_v41 = vrot.slane %v3662_v48, 4  ;;  %v4102_v34 = vrot.slane %v4100_v26, 4 }
 0x255   : > { %v4401_v38 = vmax.f32 %v4369_v5, 0.0  ;;  %v2726_v5 = vunpack.c.l.b16 %v2675_v51 }
 0x256   : > { %v3844_v54 = vpop.f32.mrf.mxu3  ;;  %3204 = vmatmul.bf16.gmra.mxu2 %v5511_v24  ;;  %v3668_v52 = vsel %vm5861_vm2, %v3663_v41, %v3667_v47  ;;  %v4104_v16 = vsel %vm6161_vm5, %v4102_v34, %v4103_v56 }
 0x257   : > { %4433 = vst [vmem:[%s7028_s7 + $0x50] sm:$0xff] %v4401_v38  ;;  %v3908_v8 = vadd.f32 %v3844_v54, %v3226_v35  ;;  %v5347_v35 = vld [vmem:[%s5846_s9 + $0xcc] sm:$0xe]  ;;  %v2743_v54 = vpack.c.b16 %v2727_v19, %v2726_v5  ;;  %v3726_v60 = vunpack.c.l.b16 %v3668_v52  ;;  %v4153_v3 = vunpack.c.l.b16 %v4104_v16 }
 0x259   : > { %v4334_v57 = vadd.f32 %v4270_v7, %v3908_v8  ;;  %v3165_v40 = vpop.f32.mrf.mxu2  ;;  %v2849_v31 = vpop.f32.mrf.mxu1  ;;  %v5363_v7 = vrot.slane %v5347_v35, 9  ;;  %v3727_v8 = vunpack.c.l.b16 %v3678_v18 }
 0x25a   : > { %v3227_v63 = vadd.f32 %v3165_v40, %v2909_v23  ;;  %v2910_v20 = vadd.f32 %v2849_v31, %v6642_v37 }
 0x25b   : > { %v4370_v1 = vadd.f32 %v7000_v9, %v4334_v57  ;;  %3886 = vmatmul.bf16.gmra.mxu3 %v3742_v27  ;;  %v5512_v27 = vld [vmem:[%s5846_s9 + $0xcc] sm:$0xff]  ;;  %v4101_v30 = vsel %vm6161_vm5, %v5363_v7, %v4100_v26  ;;  %v3743_v48 = vpack.c.b16 %v3727_v8, %v3726_v60 }
 0x25c   : > { %v4273_v24 = vpop.f32.mrf.mxu0  ;;  %v4152_v13 = vunpack.c.l.b16 %v4101_v30 }
 0x25d   : > { %v4402_v4 = vmax.f32 %v4370_v1, 0.0 }
 0x25e   : > { %v3847_v25 = vpop.f32.mrf.mxu3  ;;  %v4169_v36 = vpack.c.b16 %v4153_v3, %v4152_v13 }
 0x25f   : > { %4434 = vst [vmem:[%s7028_s7 + $0x58] sm:$0xff] %v4402_v4  ;;  %4312 = vmatmul.bf16.gmra.mxu0 %v4168_v32  ;;  %v3909_v46 = vadd.f32 %v3847_v25, %v3227_v63 }
 0x261   : > { %v4335_v10 = vadd.f32 %v4273_v24, %v3909_v46  ;;  %v3167_v38 = vpop.f32.mrf.mxu2  ;;  %v2852_v22 = vpop.f32.mrf.mxu1 }
 0x262   : > { %v3228_v42 = vadd.f32 %v3167_v38, %v2910_v20  ;;  %v2911_v23 = vadd.f32 %v2852_v22, %v6655_v55 }
 0x263   : > { %v4371_v28 = vadd.f32 %v7000_v9, %v4335_v10 }
 0x264   : > { %v4275_v47 = vpop.f32.mrf.mxu0  ;;  %2891 = vmatmul.bf16.gmra.mxu1 %v2743_v54 }
 0x265   : > { %v4403_v61 = vmax.f32 %v4371_v28, 0.0 }
 0x266   : > { %v3849_v37 = vpop.f32.mrf.mxu3  ;;  %3209 = vmatmul.bf16.gmra.mxu2 %v5512_v27 }
 0x267   : > { %4435 = vst [vmem:[%s7028_s7 + $0x60] sm:$0xff] %v4403_v61  ;;  %v3910_v0 = vadd.f32 %v3849_v37, %v3228_v42 }
 0x269   : > { %v4336_v57 = vadd.f32 %v4275_v47, %v3910_v0  ;;  %v3170_v40 = vpop.f32.mrf.mxu2  ;;  %v2854_v1 = vpop.f32.mrf.mxu1 }
 0x26a   : > { %v3229_v43 = vadd.f32 %v3170_v40, %v2911_v23  ;;  %v2912_v11 = vadd.f32 %v2854_v1, %v6682_v29 }
 0x26b   : > { %v4372_v51 = vadd.f32 %v7000_v9, %v4336_v57  ;;  %3891 = vmatmul.bf16.gmra.mxu3 %v3743_v48 }
 0x26c   : > { %v4278_v32 = vpop.f32.mrf.mxu0 }
 0x26d   : > { %v4404_v63 = vmax.f32 %v4372_v51, 0.0 }
 0x26e   : > { %v3852_v31 = vpop.f32.mrf.mxu3 }
 0x26f   : > { %4436 = vst [vmem:[%s7028_s7 + $0x68] sm:$0xff] %v4404_v63  ;;  %4317 = vmatmul.bf16.gmra.mxu0 %v4169_v36  ;;  %v3911_v41 = vadd.f32 %v3852_v31, %v3229_v43 }
 0x271   : > { %v4337_v24 = vadd.f32 %v4278_v32, %v3911_v41  ;;  %v3172_v45 = vpop.f32.mrf.mxu2  ;;  %v2857_v4 = vpop.f32.mrf.mxu1 }
 0x272   : > { %v3230_v26 = vadd.f32 %v3172_v45, %v2912_v11  ;;  %v2913_v52 = vadd.f32 %v2857_v4, %v6696_v33 }
 0x273   : > { %v4373_v55 = vadd.f32 %v7000_v9, %v4337_v24 }
 0x274   : > { %v4280_v5 = vpop.f32.mrf.mxu0 }
 0x275   : > { %v4405_v19 = vmax.f32 %v4373_v55, 0.0 }
 0x276   : > { %v3854_v35 = vpop.f32.mrf.mxu3 }
 0x277   : > { %4437 = vst [vmem:[%s7028_s7 + $0x70] sm:$0xff] %v4405_v19  ;;  %v3912_v25 = vadd.f32 %v3854_v35, %v3230_v26 }
 0x279   : > { %v4338_v46 = vadd.f32 %v4280_v5, %v3912_v25  ;;  %v3175_v18 = vpop.f32.mrf.mxu2  ;;  %v2859_v29 = vpop.f32.mrf.mxu1 }
 0x27a   : > { %v3231_v34 = vadd.f32 %v3175_v18, %v2913_v52  ;;  %v2914_v27 = vadd.f32 %v2859_v29, %v6719_v2  ;;  %v7259_v18 = vld [vmem:[%s7336_s2] ss:$0 sm:$0xff] }
 0x27b   : > { %v4374_v7 = vadd.f32 %v7000_v9, %v4338_v46 }
 0x27c   : > { %v4283_v56 = vpop.f32.mrf.mxu0 }
 0x27d   : > { %v4406_v10 = vmax.f32 %v4374_v7, 0.0 }
 0x27e   : > { %v3857_v20 = vpop.f32.mrf.mxu3 }
 0x27f   : > { %4438 = vst [vmem:[%s7028_s7 + $0x78] sm:$0xff] %v4406_v10  ;;  %v3913_v38 = vadd.f32 %v3857_v20, %v3231_v34 }
 0x281   : > { %v4339_v54 = vadd.f32 %v4283_v56, %v3913_v38  ;;  %v3177_v28 = vpop.f32.mrf.mxu2  ;;  %v2862_v33 = vpop.f32.mrf.mxu1 }
 0x282   : > { %v3232_v22 = vadd.f32 %v3177_v28, %v2914_v27  ;;  %v2915_v61 = vadd.f32 %v2862_v33, %v6734_v53 }
 0x283   : > { %v4375_v42 = vadd.f32 %v7000_v9, %v4339_v54 }
 0x284   : > { %v4285_v60 = vpop.f32.mrf.mxu0 }
 0x285   : > { %v4407_v8 = vmax.f32 %v4375_v42, 0.0 }
 0x286   : > { %v3859_v47 = vpop.f32.mrf.mxu3 }
 0x287   : > { %4439 = vst [vmem:[%s7028_s7 + $0x80] sm:$0xff] %v4407_v8  ;;  %v3914_v30 = vadd.f32 %v3859_v47, %v3232_v22 }
 0x289   : > { %v4340_v16 = vadd.f32 %v4285_v60, %v3914_v30  ;;  %v3180_v37 = vpop.f32.mrf.mxu2  ;;  %v2864_v2 = vpop.f32.mrf.mxu1 }
 0x28a   : > { %v3233_v48 = vadd.f32 %v3180_v37, %v2915_v61  ;;  %v2916_v51 = vadd.f32 %v2864_v2, %v6760_v49 }
 0x28b   : > { %v4376_v0 = vadd.f32 %v7000_v9, %v4340_v16 }
 0x28c   : > { %v4288_v13 = vpop.f32.mrf.mxu0 }
 0x28d   : > { %v4408_v3 = vmax.f32 %v4376_v0, 0.0 }
 0x28e   : > { %v3862_v57 = vpop.f32.mrf.mxu3 }
 0x28f   : > { %4440 = vst [vmem:[%s7028_s7 + $0x88] sm:$0xff] %v4408_v3  ;;  %v3915_v23 = vadd.f32 %v3862_v57, %v3233_v48 }
 0x291   : > { %v4341_v40 = vadd.f32 %v4288_v13, %v3915_v23  ;;  %v3182_v36 = vpop.f32.mrf.mxu2  ;;  %v2867_v53 = vpop.f32.mrf.mxu1 }
 0x292   : > { %v3234_v1 = vadd.f32 %v3182_v36, %v2916_v51  ;;  %v2917_v11 = vadd.f32 %v2867_v53, %v6774_v17 }
 0x293   : > { %v4377_v43 = vadd.f32 %v7000_v9, %v4341_v40 }
 0x294   : > { %v4290_v32 = vpop.f32.mrf.mxu0 }
 0x295   : > { %v4409_v63 = vmax.f32 %v4377_v43, 0.0 }
 0x296   : > { %v3864_v31 = vpop.f32.mrf.mxu3 }
 0x297   : > { %4441 = vst [vmem:[%s7028_s7 + $0x90] sm:$0xff] %v4409_v63  ;;  %v3916_v41 = vadd.f32 %v3864_v31, %v3234_v1 }
 0x299   : > { %v4342_v24 = vadd.f32 %v4290_v32, %v3916_v41  ;;  %v3185_v45 = vpop.f32.mrf.mxu2  ;;  %v2869_v4 = vpop.f32.mrf.mxu1 }
 0x29a   : > { %v3235_v26 = vadd.f32 %v3185_v45, %v2917_v11  ;;  %v2918_v46 = vadd.f32 %v2869_v4, %v6797_v14 }
 0x29b   : > { %v4378_v55 = vadd.f32 %v7000_v9, %v4342_v24 }
 0x29c   : > { %v4293_v49 = vpop.f32.mrf.mxu0 }
 0x29d   : > { %v4410_v5 = vmax.f32 %v4378_v55, 0.0 }
 0x29e   : > { %v3867_v19 = vpop.f32.mrf.mxu3 }
 0x29f   : > { %4442 = vst [vmem:[%s7028_s7 + $0x98] sm:$0xff] %v4410_v5  ;;  %v3917_v35 = vadd.f32 %v3867_v19, %v3235_v26 }
 0x2a1   : > { %v4343_v25 = vadd.f32 %v4293_v49, %v3917_v35  ;;  %v3187_v52 = vpop.f32.mrf.mxu2  ;;  %v2872_v7 = vpop.f32.mrf.mxu1 }
 0x2a2   : > { %v3236_v9 = vadd.f32 %v3187_v52, %v2918_v46  ;;  %v2919_v38 = vadd.f32 %v2872_v7, %v6812_v21 }
 0x2a3   : > { %v4379_v17 = vadd.f32 %v7259_v18, %v4343_v25 }
 0x2a4   : > { %v4295_v34 = vpop.f32.mrf.mxu0 }
 0x2a5   : > { %v4411_v29 = vmax.f32 %v4379_v17, 0.0 }
 0x2a6   : > { %v3869_v56 = vpop.f32.mrf.mxu3 }
 0x2a7   : > { %4443 = vst [vmem:[%s7028_s7 + $0xa0] sm:$0xff] %v4411_v29  ;;  %v3918_v10 = vadd.f32 %v3869_v56, %v3236_v9 }
 0x2a9   : > { %v4344_v20 = vadd.f32 %v4295_v34, %v3918_v10  ;;  %v3190_v14 = vpop.f32.mrf.mxu2  ;;  %v2874_v28 = vpop.f32.mrf.mxu1 }
 0x2aa   : > { %v3237_v27 = vadd.f32 %v3190_v14, %v2919_v38  ;;  %v2920_v47 = vadd.f32 %v2874_v28, %v6838_v12 }
 0x2ab   : > { %v4380_v54 = vadd.f32 %v7259_v18, %v4344_v20 }
 0x2ac   : > { %v4298_v42 = vpop.f32.mrf.mxu0 }
 0x2ad   : > { %v4412_v22 = vmax.f32 %v4380_v54, 0.0 }
 0x2ae   : > { %v3872_v33 = vpop.f32.mrf.mxu3 }
 0x2af   : > { %4444 = vst [vmem:[%s7028_s7 + $0xa8] sm:$0xff] %v4412_v22  ;;  %v3919_v60 = vadd.f32 %v3872_v33, %v3237_v27 }
 0x2b1   : > { %v4345_v8 = vadd.f32 %v4298_v42, %v3919_v60  ;;  %v3192_v30 = vpop.f32.mrf.mxu2  ;;  %v2877_v21 = vpop.f32.mrf.mxu1 }
 0x2b2   : > { %v3238_v61 = vadd.f32 %v3192_v30, %v2920_v47  ;;  %v2921_v3 = vadd.f32 %v2877_v21, %v6852_v58 }
 0x2b3   : > { %v4381_v16 = vadd.f32 %v7259_v18, %v4345_v8 }
 0x2b4   : > { %v4300_v37 = vpop.f32.mrf.mxu0 }
 0x2b5   : > { %v4413_v0 = vmax.f32 %v4381_v16, 0.0 }
 0x2b6   : > { %v3874_v48 = vpop.f32.mrf.mxu3 }
 0x2b7   : > { %4445 = vst [vmem:[%s7028_s7 + $0xb0] sm:$0xff] %v4413_v0  ;;  %v3920_v2 = vadd.f32 %v3874_v48, %v3238_v61 }
 0x2b9   : > { %v4346_v13 = vadd.f32 %v4300_v37, %v3920_v2  ;;  %v3195_v57 = vpop.f32.mrf.mxu2  ;;  %v2879_v12 = vpop.f32.mrf.mxu1 }
 0x2ba   : > { %v3239_v40 = vadd.f32 %v3195_v57, %v2921_v3  ;;  %v2922_v32 = vadd.f32 %v2879_v12, %v6875_v6 }
 0x2bb   : > { %v4382_v23 = vadd.f32 %v7259_v18, %v4346_v13 }
 0x2bc   : > { %v4303_v51 = vpop.f32.mrf.mxu0 }
 0x2bd   : > { %v4414_v36 = vmax.f32 %v4382_v23, 0.0 }
 0x2be   : > { %v3877_v43 = vpop.f32.mrf.mxu3 }
 0x2bf   : > { %4446 = vst [vmem:[%s7028_s7 + $0xb8] sm:$0xff] %v4414_v36  ;;  %v3921_v1 = vadd.f32 %v3877_v43, %v3239_v40 }
 0x2c1   : > { %v4347_v53 = vadd.f32 %v4303_v51, %v3921_v1  ;;  %v3197_v63 = vpop.f32.mrf.mxu2  ;;  %v2882_v58 = vpop.f32.mrf.mxu1 }
 0x2c2   : > { %v3240_v41 = vadd.f32 %v3197_v63, %v2922_v32  ;;  %v2923_v4 = vadd.f32 %v2882_v58, %v6890_v44 }
 0x2c3   : > { %v4383_v31 = vadd.f32 %v7259_v18, %v4347_v53 }
 0x2c4   : > { %v4305_v24 = vpop.f32.mrf.mxu0 }
 0x2c5   : > { %v4415_v11 = vmax.f32 %v4383_v31, 0.0 }
 0x2c6   : > { %v3879_v45 = vpop.f32.mrf.mxu3 }
 0x2c7   : > { %4447 = vst [vmem:[%s7028_s7 + $0xc0] sm:$0xff] %v4415_v11  ;;  %v3922_v55 = vadd.f32 %v3879_v45, %v3240_v41 }
 0x2c9   : > { %v4348_v26 = vadd.f32 %v4305_v24, %v3922_v55  ;;  %v3200_v49 = vpop.f32.mrf.mxu2  ;;  %v2884_v6 = vpop.f32.mrf.mxu1 }
 0x2ca   : > { %v3241_v19 = vadd.f32 %v3200_v49, %v2923_v4  ;;  %v2924_v9 = vadd.f32 %v2884_v6, %v6916_v62 }
 0x2cb   : > { %v4384_v5 = vadd.f32 %v7259_v18, %v4348_v26 }
 0x2cc   : > { %v4308_v35 = vpop.f32.mrf.mxu0 }
 0x2cd   : > { %v4416_v25 = vmax.f32 %v4384_v5, 0.0 }
 0x2ce   : > { %v3882_v46 = vpop.f32.mrf.mxu3 }
 0x2cf   : > { %4448 = vst [vmem:[%s7028_s7 + $0xc8] sm:$0xff] %v4416_v25  ;;  %v3923_v52 = vadd.f32 %v3882_v46, %v3241_v19 }
 0x2d1   : > { %v4349_v17 = vadd.f32 %v4308_v35, %v3923_v52  ;;  %v3202_v7 = vpop.f32.mrf.mxu2  ;;  %v2887_v44 = vpop.f32.mrf.mxu1 }
 0x2d2   : > { %v3242_v29 = vadd.f32 %v3202_v7, %v2924_v9  ;;  %v2925_v54 = vadd.f32 %v2887_v44, %v6930_v50 }
 0x2d3   : > { %v4385_v34 = vadd.f32 %v7259_v18, %v4349_v17 }
 0x2d4   : > { %v4310_v56 = vpop.f32.mrf.mxu0 }
 0x2d5   : > { %v4417_v10 = vmax.f32 %v4385_v34, 0.0 }
 0x2d6   : > { %v3884_v20 = vpop.f32.mrf.mxu3 }
 0x2d7   : > { %4449 = vst [vmem:[%s7028_s7 + $0xd0] sm:$0xff] %v4417_v10  ;;  %v3924_v38 = vadd.f32 %v3884_v20, %v3242_v29 }
 0x2d9   : > { %v4350_v14 = vadd.f32 %v4310_v56, %v3924_v38  ;;  %v3205_v27 = vpop.f32.mrf.mxu2  ;;  %v2889_v62 = vpop.f32.mrf.mxu1 }
 0x2da   : > { %v3243_v42 = vadd.f32 %v3205_v27, %v2925_v54  ;;  %v2926_v30 = vadd.f32 %v2889_v62, %v6953_v15 }
 0x2db   : > { %v4386_v28 = vadd.f32 %v7259_v18, %v4350_v14 }
 0x2dc   : > { %v4313_v22 = vpop.f32.mrf.mxu0 }
 0x2dd   : > { %v4418_v33 = vmax.f32 %v4386_v28, 0.0 }
 0x2de   : > { %v3887_v60 = vpop.f32.mrf.mxu3 }
 0x2df   : > { %4450 = vst [vmem:[%s7028_s7 + $0xd8] sm:$0xff] %v4418_v33  ;;  %v3925_v8 = vadd.f32 %v3887_v60, %v3243_v42 }
 0x2e1   : > { %v4351_v47 = vadd.f32 %v4313_v22, %v3925_v8  ;;  %v3207_v16 = vpop.f32.mrf.mxu2  ;;  %v2892_v50 = vpop.f32.mrf.mxu1 }
 0x2e2   : > { %v3244_v21 = vadd.f32 %v3207_v16, %v2926_v30  ;;  %v2927_v3 = vadd.f32 %v2892_v50, %v6968_v39 }
 0x2e3   : > { %v4387_v61 = vadd.f32 %v7259_v18, %v4351_v47 }
 0x2e4   : > { %v4315_v37 = vpop.f32.mrf.mxu0 }
 0x2e5   : > { %v4419_v0 = vmax.f32 %v4387_v61, 0.0 }
 0x2e6   : > { %v3889_v48 = vpop.f32.mrf.mxu3 }
 0x2e7   : > { %4451 = vst [vmem:[%s7028_s7 + $0xe0] sm:$0xff] %v4419_v0  ;;  %v3926_v2 = vadd.f32 %v3889_v48, %v3244_v21 }
 0x2e9   : > { %v4352_v13 = vadd.f32 %v4315_v37, %v3926_v2  ;;  %v3210_v57 = vpop.f32.mrf.mxu2  ;;  %v2894_v12 = vpop.f32.mrf.mxu1 }
 0x2ea   : > { %v3245_v40 = vadd.f32 %v3210_v57, %v2927_v3  ;;  %v2928_v53 = vadd.f32 %v2894_v12, %v6992_v59 }
 0x2eb   : > { %v4388_v23 = vadd.f32 %v7259_v18, %v4352_v13 }
 0x2ec   : > { %v4318_v51 = vpop.f32.mrf.mxu0 }
 0x2ed   : > { %v4420_v15 = vmax.f32 %v4388_v23, 0.0 }
 0x2ee   : > { %v3892_v36 = vpop.f32.mrf.mxu3 }
 0x2ef   : > { %4452 = vst [vmem:[%s7028_s7 + $0xe8] sm:$0xff] %v4420_v15  ;;  %v3927_v43 = vadd.f32 %v3892_v36, %v3245_v40 }
 0x2f1   : > { %v4353_v1 = vadd.f32 %v4318_v51, %v3927_v43  ;;  %v3212_v32 = vpop.f32.mrf.mxu2 }
 0x2f2   : > { %v3246_v39 = vadd.f32 %v3212_v32, %v2928_v53 }
 0x2f3   : > { %v4389_v63 = vadd.f32 %v7259_v18, %v4353_v1 }
 0x2f4   : > { %v4320_v24 = vpop.f32.mrf.mxu0 }
 0x2f5   : > { %v4421_v31 = vmax.f32 %v4389_v63, 0.0 }
 0x2f6   : > { %v3894_v41 = vpop.f32.mrf.mxu3 }
 0x2f7   : > { %4453 = vst [vmem:[%s7028_s7 + $0xf0] sm:$0xff] %v4421_v31  ;;  %v3928_v58 = vadd.f32 %v3894_v41, %v3246_v39 }
 0x2f9   : > { %v4354_v11 = vadd.f32 %v4320_v24, %v3928_v58 }
 0x2fb   : > { %v4390_v59 = vadd.f32 %v7259_v18, %v4354_v11 }
 0x2fd   : > { %v4422_v45 = vmax.f32 %v4390_v59, 0.0 }
 0x2ff   : > { %4454 = vst [vmem:[%s7028_s7 + $0xf8] sm:$0xff] %v4422_v45 }
 0x300   : > { %5702 = shalt.err (!%p5699_p5)
}
 0x301   : > { %s5755_s30 = smov 128   ;;  %s5756_s7 = smov 8  }
 0x302   : > { %5563 = dma.vmem_to_hbm [thread:$0]  (%p5817_p4), %s4472_s21, 4096, %s4474_s23, %s4456_s15, %s5755_s30, %s5755_s30, %s5756_s7  }
 0x303 PF: > { %p5569_p6 = scmp.ge.s32.totalorder %s5753_s17, 2  ;;  %s4488_s9 = sand.u32 1, %s5733_s12  }
 0x304   : > { %s4489_s8 = scalar_lea.sflag [#allocation3], %s4488_s9 }
 0x305   : > { %p5566_p7 = pnand %p5569_p6, %p5824_p8 }
 0x307   : > { %p5567_p9 = pneg %p5566_p7 }
 0x309   : > { %5728 = dma.done.wait (%p5567_p9), %s4489_s8, 4096  }
 0x30a   : > { %5730 = vsyncadd (%p5567_p9), %s4489_s8, 4294963200  ;;  %s16_s17 = sadd.s32 1, %s5753_s17   ;;  %s7348_s12 = smov %s5737_s13 }
 0x30b   : > { %p13_p10 = scmp.ge.s32.totalorder %s16_s17, 4   ;;  %s7349_s13 = smov %s5741_s14 }
 0x30c   : > { %s7350_s14 = smov %s5830_s25  ;;  %s7351_s15 = smov %s5749_s16 }
 0x30d   : > { %s7352_s16 = smov %s7354_s20  ;;  %15 = sbr.rel (!%p13_p10) target bundleno = 4 (0x4), region = 78 }
 0x312   :  { %4495 = vsyncpa [#allocation3], 1 }
 0x313   :  { %4497 = vsyncpa [#allocation3 + $0x1], 1 }

// kernel: up_forward.2
= control target key start
LH: loop header
LB: loop body
LE: loop exit
PB: predicated region body
PF: predicated region fallthrough
CT: control target
= control target key end

     0   :  { %s11152_s18 = smov 0   ;;  %s11154_s19 = smov 0   ;;  %s14096_s0 = inlined_call_operand.vmem [shape: bf16[2,18,18,128], index: 0, kind: input, shape index: {}]   ;;  %s14097_s1 = inlined_call_operand.vmem [shape: bf16[2,18,18,128], index: 1, kind: input, shape index: {}]   ;;  %s14098_s2 = inlined_call_operand.vmem [shape: bf16[9,128,128], index: 2, kind: input, shape index: {}]   ;;  %s14099_s3 = inlined_call_operand.vmem [shape: bf16[9,128,128], index: 3, kind: input, shape index: {}]   ;;  %s14100_s4 = inlined_call_operand.vmem [shape: f32[1,128], index: 4, kind: input, shape index: {}]   ;;  %s14101_s5 = inlined_call_operand.vmem [shape: bf16[2,16,16,128], index: 5, kind: output, shape index: {}]  }
   0x1   :  { %s11156_s20 = smov 0  }
   0x2 LB: > { %s27_s21 = sadd.s32 1, %s11116_s19  ;;  %p8967_p0 = scmp.ge.s32.totalorder %s11120_s20, 1  ;;  %s11120_s20 = sphi %s11156_s20, %s15_s20   ;;  %s11116_s19 = sphi %s11154_s19, %s14145_s19   ;;  %s11112_s18 = sphi %s11152_s18, %s14144_s18  }
   0x3   : > { %p29_p1 = scmp.ge.s32.totalorder %s27_s21, 2  ;;  %p211_p2 = scmp.lt.s32.totalorder %s11120_s20, 3 }
   0x5   : > { %s14147_s21 = smov (%p29_p1, %s27_s21), 0  ;;  %p212_p3 = pnand %p8967_p0, %p211_p2 }
   0x7   : > { %215 = sbr.rel (%p212_p3) target bundleno = 1335 (0x537), region = 40 }
   0xc   : > { %v10702_v0 = vld [vmem:[%s14098_s2 + $0x78] sm:$0xff]  ;;  %p249_p4 = scmp.lt.s32.totalorder %s11112_s18, 1  ;;  %v10701_v2 = vld [vmem:[%s14098_s2 + $0x70] sm:$0xff]  ;;  %v10700_v4 = vld [vmem:[%s14098_s2 + $0x68] sm:$0xff]  ;;  %vm338_vm0 = vsmask.f32 3328 }
   0xd   : > { %v10694_v1 = vld [vmem:[%s14098_s2 + $0x38] sm:$0xff]  ;;  %11006 = vmatpush.bf16.msra.mxu2 %v10702_v0  ;;  %v10693_v3 = vld [vmem:[%s14098_s2 + $0x30] sm:$0xff]  ;;  %854 = vmatpush.bf16.msra.mxu0 %v10702_v0  ;;  %v10692_v5 = vld [vmem:[%s14098_s2 + $0x28] sm:$0xff]  ;;  %vm339_vm1 = vsmask.f32 7440  ;;  %vm1224_vm3 = vcmask 1042432  }
   0xe   : > { %11014 = vmatpush.bf16.msra.mxu3 %v10694_v1  ;;  %s14149_s18 = smov (!%p249_p4, %s11112_s18), 1  ;;  %1087 = vmatpush.bf16.msra.mxu1 %v10694_v1  ;;  %v10699_v14 = vld [vmem:[%s14098_s2 + $0x60] sm:$0xff]  ;;  %v10698_v30 = vld [vmem:[%s14098_s2 + $0x58] sm:$0xff]  ;;  %v10697_v38 = vld [vmem:[%s14098_s2 + $0x50] sm:$0xff]  ;;  %vm1225_vm4 = vcmask 1046532  }
   0xf   : > { %s11022_s30 = smul.u32 216, %s14149_s18  ;;  %v10691_v15 = vld [vmem:[%s14098_s2 + $0x20] sm:$0xff]  ;;  %v10690_v31 = vld [vmem:[%s14098_s2 + $0x18] sm:$0xff]  ;;  %v10689_v41 = vld [vmem:[%s14098_s2 + $0x10] sm:$0xff] }
  0x10   : > { %vm11230_vm2 = vmor %vm338_vm0, %vm339_vm1  ;;  %v10696_v56 = vld [vmem:[%s14098_s2 + $0x48] sm:$0xff] }
  0x11   : > { %11007 = vmatpush.bf16.msra.mxu2 %v10701_v2  ;;  %s11196_s12 = scalar_lea.vmem %s14096_s0, %s11022_s30  ;;  %855 = vmatpush.bf16.msra.mxu0 %v10701_v2  ;;  %v10688_v57 = vld [vmem:[%s14098_s2 + $0x8] sm:$0xff]  ;;  %vm11554_vm5 = vmor %vm1224_vm3, %vm1225_vm4  ;;  %s12185_s23 = scalar_lea.vmem %s14097_s1, %s11022_s30 }
  0x12   : > { %11015 = vmatpush.bf16.msra.mxu3 %v10693_v3  ;;  %1088 = vmatpush.bf16.msra.mxu1 %v10693_v3  ;;  %v290_v6 = vld [vmem:[%s11196_s12 + $0x60] sm:$0xf]  ;;  %v291_v7 = vld [vmem:[%s11196_s12 + $0x64] sm:$0xf]  ;;  %v330_v20 = vld [vmem:[%s11196_s12 + $0x68] sm:$0x1] }
  0x13   : > { %v534_v8 = vshrl.u32 %v290_v6, 16  ;;  %v537_v9 = vshll.u32 %v290_v6, 16  ;;  %v543_v10 = vshll.u32 %v291_v7, 16  ;;  %v547_v11 = vshrl.u32 %v291_v7, 16  ;;  %v274_v12 = vld [vmem:[%s11196_s12] sm:$0xf] }
  0x14   : > { %v11202_v13 = vld [vmem:[%s11196_s12 + $0x4] sm:$0xf]  ;;  %v342_v21 = vshrl.u32 %v274_v12, 16  ;;  %v345_v22 = vshll.u32 %v274_v12, 16  ;;  %v322_v24 = vld [vmem:[%s11196_s12 + $0x8] sm:$0x1] }
  0x15   : > { %11008 = vmatpush.bf16.msra.mxu2 %v10700_v4  ;;  %v536_v16 = vrot.slane %v534_v8, 4  ;;  %v539_v17 = vrot.slane %v537_v9, 5  ;;  %v11210_v18 = vrot.slane %v543_v10, 5  ;;  %v549_v19 = vrot.slane %v547_v11, 4  ;;  %856 = vmatpush.bf16.msra.mxu0 %v10700_v4  ;;  %v292_v40 = vld [vmem:[%s11196_s12 + $0x6c] sm:$0xf] }
  0x16   : > { %11016 = vmatpush.bf16.msra.mxu3 %v10692_v5  ;;  %1089 = vmatpush.bf16.msra.mxu1 %v10692_v5  ;;  %v351_v23 = vshll.u32 %v11202_v13, 16  ;;  %v355_v25 = vshrl.u32 %v11202_v13, 16  ;;  %v344_v27 = vrot.slane %v342_v21, 4  ;;  %v347_v28 = vrot.slane %v345_v22, 5  ;;  %v293_v45 = vld [vmem:[%s11196_s12 + $0x70] sm:$0xf] }
  0x17   : > { %v540_v26 = vor.u32 %v539_v17, %v536_v16  ;;  %v550_v32 = vor.u32 %v549_v19, %v11210_v18  ;;  %v553_v33 = vshll.u32 %v330_v20, 16  ;;  %v361_v36 = vshll.u32 %v322_v24, 16  ;;  %v276_v49 = vld [vmem:[%s11196_s12 + $0xc] sm:$0xf]  ;;  %v11237_v51 = vld [vmem:[%s11196_s12 + $0x10] sm:$0xf] }
  0x18   : > { %v353_v29 = vrot.slane %v351_v23, 5  ;;  %v357_v34 = vrot.slane %v355_v25, 4  ;;  %v348_v35 = vor.u32 %v347_v28, %v344_v27  ;;  %v558_v50 = vshrl.u32 %v292_v40, 16  ;;  %v10695_v7 = vld [vmem:[%s14098_s2 + $0x40] sm:$0xff]  ;;  %v331_v11 = vld [vmem:[%s11196_s12 + $0x74] sm:$0x1] }
  0x19   : > { %11009 = vmatpush.bf16.msra.mxu2 %v10699_v14  ;;  %857 = vmatpush.bf16.msra.mxu0 %v10699_v14  ;;  %v541_v39 = vrot.slane %v540_v26, 4  ;;  %v551_v43 = vrot.slane %v550_v32, 4  ;;  %v555_v44 = vrot.slane %v553_v33, 5  ;;  %v363_v48 = vrot.slane %v361_v36, 5  ;;  %v10687_v8 = vld [vmem:[%s14098_s2] sm:$0xff]  ;;  %v10710_v17 = vld [vmem:[%s14098_s2 + $0xb8] sm:$0xff] }
  0x1a   : > { %11017 = vmatpush.bf16.msra.mxu3 %v10691_v15  ;;  %1090 = vmatpush.bf16.msra.mxu1 %v10691_v15  ;;  %v358_v37 = vor.u32 %v357_v34, %v353_v29  ;;  %v349_v46 = vrot.slane %v348_v35, 4  ;;  %v561_v53 = vshll.u32 %v292_v40, 16  ;;  %v567_v54 = vshll.u32 %v293_v45, 16  ;;  %v11274_v19 = vld [vmem:[%s11196_s12 + $0x14] sm:$0x1]  ;;  %v10679_v21 = vld [vmem:[%s11196_s12 + $0x60] sm:$0xff] }
  0x1b   : > { %v546_v52 = vsel %vm11230_vm2, %v541_v39, %v11210_v18  ;;  %v571_v55 = vshrl.u32 %v293_v45, 16  ;;  %v556_v58 = vsel %vm11230_vm2, %v551_v43, %v555_v44  ;;  %v366_v59 = vshrl.u32 %v276_v49, 16  ;;  %v10734_v18 = vld [vmem:[%s14098_s2 + $0xf8] sm:$0xff]  ;;  %v10671_v26 = vld [vmem:[%s11196_s12] sm:$0xff]  ;;  %v10709_v34 = vld [vmem:[%s14098_s2 + $0xb0] sm:$0xff] }
  0x1c   : > { %v359_v47 = vrot.slane %v358_v37, 4  ;;  %v369_v60 = vshll.u32 %v276_v49, 16  ;;  %v354_v61 = vsel %vm11230_vm2, %v349_v46, %v353_v29  ;;  %v375_v63 = vshll.u32 %v11237_v51, 16  ;;  %v294_v28 = vld [vmem:[%s11196_s12 + $0x78] sm:$0xf]  ;;  %v10733_v35 = vld [vmem:[%s14098_s2 + $0xf0] sm:$0xff] }
  0x1d   : > { %11010 = vmatpush.bf16.msra.mxu2 %v10698_v30  ;;  %858 = vmatpush.bf16.msra.mxu0 %v10698_v30  ;;  %v379_v0 = vshrl.u32 %v11237_v51, 16  ;;  %v758_v1 = vunpack.c.l.b16 %v546_v52  ;;  %v560_v2 = vrot.slane %v558_v50, 4  ;;  %v759_v3 = vunpack.c.l.b16 %v556_v58  ;;  %v10742_v29 = vld [vmem:[%s14098_s2 + $0x138] sm:$0xff]  ;;  %v10749_v49 = vld [vmem:[%s14098_s2 + $0x170] sm:$0xff]  ;;  %v10708_v50 = vld [vmem:[%s14098_s2 + $0xa8] sm:$0xff] }
  0x1e   : > { %11018 = vmatpush.bf16.msra.mxu3 %v10690_v31  ;;  %1091 = vmatpush.bf16.msra.mxu1 %v10690_v31  ;;  %v364_v62 = vsel %vm11230_vm2, %v359_v47, %v363_v48  ;;  %v563_v4 = vrot.slane %v561_v53, 5  ;;  %v11256_v5 = vrot.slane %v567_v54, 5  ;;  %v573_v6 = vrot.slane %v571_v55, 4  ;;  %v10750_v30 = vld [vmem:[%s14098_s2 + $0x178] sm:$0xff]  ;;  %v10741_v48 = vld [vmem:[%s14098_s2 + $0x130] sm:$0xff]  ;;  %v10732_v53 = vld [vmem:[%s14098_s2 + $0xe8] sm:$0xff] }
  0x1f   : > { %v742_v9 = vunpack.c.l.b16 %v354_v61  ;;  %v743_v10 = vunpack.c.l.b16 %v364_v62  ;;  %v368_v12 = vrot.slane %v366_v59, 4  ;;  %v371_v14 = vrot.slane %v369_v60, 5  ;;  %v295_v33 = vld [vmem:[%s11196_s12 + $0x7c] sm:$0xf]  ;;  %v278_v45 = vld [vmem:[%s11196_s12 + $0x18] sm:$0xf] }
  0x20   : > { %v11265_v15 = vrot.slane %v375_v63, 5  ;;  %v381_v16 = vrot.slane %v379_v0, 4  ;;  %v782_v20 = vpack.c.b16 %v759_v3, %v758_v1  ;;  %v564_v22 = vor.u32 %v563_v4, %v560_v2  ;;  %v11306_v52 = vld [vmem:[%s11196_s12 + $0x1c] sm:$0xf]  ;;  %v332_v59 = vld [vmem:[%s11196_s12 + $0x80] sm:$0x1] }
  0x21   : > { %11011 = vmatpush.bf16.msra.mxu2 %v10697_v38  ;;  %859 = vmatpush.bf16.msra.mxu0 %v10697_v38  ;;  %v574_v23 = vor.u32 %v573_v6, %v11256_v5  ;;  %v577_v24 = vshll.u32 %v331_v11, 16  ;;  %v774_v25 = vpack.c.b16 %v743_v10, %v742_v9  ;;  %v372_v27 = vor.u32 %v371_v14, %v368_v12  ;;  %v10740_v3 = vld [vmem:[%s14098_s2 + $0x128] sm:$0xff] }
  0x22   : > { %11019 = vmatpush.bf16.msra.mxu3 %v10689_v41  ;;  %1092 = vmatpush.bf16.msra.mxu1 %v10689_v41  ;;  %v382_v31 = vor.u32 %v381_v16, %v11265_v15  ;;  %v385_v32 = vshll.u32 %v11274_v19, 16  ;;  %v565_v36 = vrot.slane %v564_v22, 4  ;;  %v582_v39 = vshrl.u32 %v294_v28, 16  ;;  %v10748_v4 = vld [vmem:[%s14098_s2 + $0x168] sm:$0xff] }
  0x23   : > { %v575_v37 = vrot.slane %v574_v23, 4  ;;  %v579_v38 = vrot.slane %v577_v24, 5  ;;  %v373_v40 = vrot.slane %v372_v27, 4  ;;  %v585_v41 = vshll.u32 %v294_v28, 16  ;;  %v10672_v22 = vld [vmem:[%s11196_s12 + $0xc] sm:$0xff] }
  0x24   : > { %v591_v43 = vshll.u32 %v295_v33, 16  ;;  %v595_v44 = vshrl.u32 %v295_v33, 16  ;;  %v383_v46 = vrot.slane %v382_v31, 4  ;;  %v387_v47 = vrot.slane %v385_v32, 5  ;;  %v10707_v31 = vld [vmem:[%s14098_s2 + $0xa0] sm:$0xff] }
  0x25   : > { %11012 = vmatpush.bf16.msra.mxu2 %v10696_v56  ;;  %860 = vmatpush.bf16.msra.mxu0 %v10696_v56  ;;  %v570_v54 = vsel %vm11230_vm2, %v565_v36, %v11256_v5  ;;  %v580_v55 = vsel %vm11230_vm2, %v575_v37, %v579_v38  ;;  %v584_v56 = vrot.slane %v582_v39, 4  ;;  %v378_v58 = vsel %vm11230_vm2, %v373_v40, %v11265_v15  ;;  %v280_v32 = vld [vmem:[%s11196_s12 + $0x24] sm:$0xf]  ;;  %v11346_v33 = vld [vmem:[%s11196_s12 + $0x28] sm:$0xf] }
  0x26   : > { %11020 = vmatpush.bf16.msra.mxu3 %v10688_v57  ;;  %1093 = vmatpush.bf16.msra.mxu1 %v10688_v57  ;;  %v390_v57 = vshrl.u32 %v278_v45, 16  ;;  %v587_v60 = vrot.slane %v585_v41, 5  ;;  %v11320_v61 = vrot.slane %v591_v43, 5  ;;  %v597_v62 = vrot.slane %v595_v44, 4  ;;  %v10739_v36 = vld [vmem:[%s14098_s2 + $0x120] sm:$0xff] }
  0x27   : > { %v388_v63 = vsel %vm11230_vm2, %v383_v46, %v387_v47  ;;  %v393_v0 = vshll.u32 %v278_v45, 16  ;;  %v399_v1 = vshll.u32 %v11306_v52, 16  ;;  %v403_v2 = vshrl.u32 %v11306_v52, 16  ;;  %v10747_v37 = vld [vmem:[%s14098_s2 + $0x160] sm:$0xff] }
  0x28   : > { %v760_v5 = vunpack.c.l.b16 %v570_v54  ;;  %v761_v6 = vunpack.c.l.b16 %v580_v55  ;;  %v745_v9 = vunpack.c.l.b16 %v388_v63  ;;  %v588_v10 = vor.u32 %v587_v60, %v584_v56 }
  0x29   : > { %11013 = vmatpush.bf16.msra.mxu2 %v10695_v7  ;;  %861 = vmatpush.bf16.msra.mxu0 %v10695_v7  ;;  %v601_v7 = vshll.u32 %v332_v59, 16  ;;  %v392_v11 = vrot.slane %v390_v57, 4  ;;  %v598_v12 = vor.u32 %v597_v62, %v11320_v61  ;;  %v395_v14 = vrot.slane %v393_v0, 5 }
  0x2a   : > { %11021 = vmatpush.bf16.msra.mxu3 %v10687_v8  ;;  %1094 = vmatpush.bf16.msra.mxu1 %v10687_v8  ;;  %v744_v8 = vunpack.c.l.b16 %v378_v58  ;;  %v401_v15 = vrot.slane %v399_v1, 5  ;;  %v405_v16 = vrot.slane %v403_v2, 4  ;;  %v589_v23 = vrot.slane %v588_v10, 4 }
  0x2b   : > { %v603_v24 = vrot.slane %v601_v7, 5  ;;  %v414_v47 = vshrl.u32 %v280_v32, 16 }
  0x2c   : > { %902 = vmatmul.bf16.vlgmr.msra.gmra.mxu2 %v782_v20  ;;  %862 = vmatmul.bf16.vlgmr.msra.gmra.mxu0 %v774_v25  ;;  %v10680_v20 = vld [vmem:[%s11196_s12 + $0x6c] sm:$0xff]  ;;  %v599_v25 = vrot.slane %v598_v12, 4  ;;  %v406_v27 = vor.u32 %v405_v16, %v401_v15 }
  0x2d   : > { %1468 = vmatpush.bf16.msrb.mxu2 %v10710_v17  ;;  %1135 = vmatmul.bf16.vlgmr.msra.gmra.mxu3 %v10679_v21  ;;  %v11334_v17 = vld [vmem:[%s11196_s12 + $0x20] sm:$0x1]  ;;  %v775_v21 = vpack.c.b16 %v745_v9, %v744_v8  ;;  %v416_v62 = vrot.slane %v414_v47, 4  ;;  %v10681_v8 = vld [vmem:[%s11196_s12 + $0x78] sm:$0xff]  ;;  %v298_v16 = vld [vmem:[%s11196_s12 + $0x90] sm:$0xf] }
  0x2e   : > { %1786 = vmatpush.bf16.msrb.mxu3 %v10734_v18  ;;  %1095 = vmatmul.bf16.vlgmr.msra.gmra.mxu1 %v10671_v26  ;;  %v783_v18 = vpack.c.b16 %v761_v6, %v760_v5  ;;  %v396_v26 = vor.u32 %v395_v14, %v392_v11  ;;  %v409_v28 = vshll.u32 %v11334_v17, 16  ;;  %v604_v38 = vsel %vm11230_vm2, %v599_v25, %v603_v24 }
  0x2f   : > { %2468 = vmatpush.bf16.msrb.mxu0 %v10742_v29  ;;  %2894 = vmatpush.bf16.msrb.mxu1 %v10750_v30  ;;  %v296_v29 = vld [vmem:[%s11196_s12 + $0x84] sm:$0xf]  ;;  %v297_v30 = vld [vmem:[%s11196_s12 + $0x88] sm:$0xf]  ;;  %v407_v40 = vrot.slane %v406_v27, 4  ;;  %v763_v54 = vunpack.c.l.b16 %v604_v38  ;;  %v630_v27 = vshrl.u32 %v298_v16, 16 }
  0x30   : > { %v397_v39 = vrot.slane %v396_v26, 4  ;;  %v411_v41 = vrot.slane %v409_v28, 5  ;;  %v606_v43 = vshrl.u32 %v296_v29, 16  ;;  %v609_v44 = vshll.u32 %v296_v29, 16  ;;  %v10706_v26 = vld [vmem:[%s14098_s2 + $0x98] sm:$0xff] }
  0x31   : > { %1469 = vmatpush.bf16.msrb.mxu2 %v10709_v34  ;;  %v594_v34 = vsel %vm11230_vm2, %v589_v23, %v11320_v61  ;;  %v615_v45 = vshll.u32 %v297_v30, 16  ;;  %v619_v46 = vshrl.u32 %v297_v30, 16  ;;  %v333_v61 = vld [vmem:[%s11196_s12 + $0x8c] sm:$0x1]  ;;  %v633_v28 = vshll.u32 %v298_v16, 16  ;;  %v10730_v30 = vld [vmem:[%s14098_s2 + $0xd8] sm:$0xff] }
  0x32   : > { %1787 = vmatpush.bf16.msrb.mxu3 %v10733_v35  ;;  %v10731_v35 = vld [vmem:[%s14098_s2 + $0xe0] sm:$0xff]  ;;  %v402_v55 = vsel %vm11230_vm2, %v397_v39, %v401_v15  ;;  %v412_v56 = vsel %vm11230_vm2, %v407_v40, %v411_v41  ;;  %v608_v57 = vrot.slane %v606_v43, 4  ;;  %v611_v58 = vrot.slane %v609_v44, 5  ;;  %v10673_v15 = vld [vmem:[%s11196_s12 + $0x18] sm:$0xff] }
  0x33   : > { %2469 = vmatpush.bf16.msrb.mxu0 %v10741_v48  ;;  %2895 = vmatpush.bf16.msrb.mxu1 %v10749_v49  ;;  %v417_v48 = vshll.u32 %v280_v32, 16  ;;  %v423_v49 = vshll.u32 %v11346_v33, 16  ;;  %v617_v59 = vrot.slane %v615_v45, 5  ;;  %v621_v60 = vrot.slane %v619_v46, 4  ;;  %v10746_v32 = vld [vmem:[%s14098_s2 + $0x158] sm:$0xff] }
  0x34   : > { %v746_v2 = vunpack.c.l.b16 %v402_v55  ;;  %v612_v6 = vor.u32 %v611_v58, %v608_v57  ;;  %v625_v7 = vshll.u32 %v333_v61, 16  ;;  %v632_v41 = vrot.slane %v630_v27, 4  ;;  %v334_v46 = vld [vmem:[%s11196_s12 + $0x98] sm:$0x1]  ;;  %v284_v16 = vld [vmem:[%s11196_s12 + $0x3c] sm:$0xf] }
  0x35   : > { %1470 = vmatpush.bf16.msrb.mxu2 %v10708_v50  ;;  %v427_v50 = vshrl.u32 %v11346_v33, 16  ;;  %v419_v63 = vrot.slane %v417_v48, 5  ;;  %v425_v0 = vrot.slane %v423_v49, 5  ;;  %v622_v9 = vor.u32 %v621_v60, %v617_v59 }
  0x36   : > { %1788 = vmatpush.bf16.msrb.mxu3 %v10732_v53  ;;  %v762_v53 = vunpack.c.l.b16 %v594_v34  ;;  %v635_v43 = vrot.slane %v633_v28, 5  ;;  %v649_v58 = vshll.u32 %v334_v46, 16 }
  0x37   : > { %2470 = vmatpush.bf16.msrb.mxu0 %v10740_v3  ;;  %2896 = vmatpush.bf16.msrb.mxu1 %v10748_v4  ;;  %v429_v1 = vrot.slane %v427_v50, 4  ;;  %v747_v3 = vunpack.c.l.b16 %v412_v56  ;;  %v11370_v4 = vld [vmem:[%s11196_s12 + $0x2c] sm:$0x1]  ;;  %v420_v10 = vor.u32 %v419_v63, %v416_v62 }
  0x38   : > { %v784_v5 = vpack.c.b16 %v763_v54, %v762_v53  ;;  %v433_v12 = vshll.u32 %v11370_v4, 16  ;;  %v636_v57 = vor.u32 %v635_v43, %v632_v41 }
  0x39   : > { %1471 = vmatpush.bf16.msrb.mxu2 %v10707_v31  ;;  %v430_v11 = vor.u32 %v429_v1, %v425_v0  ;;  %v776_v14 = vpack.c.b16 %v747_v3, %v746_v2  ;;  %v421_v23 = vrot.slane %v420_v10, 4  ;;  %v10738_v31 = vld [vmem:[%s14098_s2 + $0x118] sm:$0xff]  ;;  %v10682_v2 = vld [vmem:[%s11196_s12 + $0x84] sm:$0xff] }
  0x3a   : > { %1789 = vmatpush.bf16.msrb.mxu3 %v10731_v35  ;;  %v435_v25 = vrot.slane %v433_v12, 5  ;;  %v282_v35 = vld [vmem:[%s11196_s12 + $0x30] sm:$0xf]  ;;  %v300_v12 = vld [vmem:[%s11196_s12 + $0x9c] sm:$0xf] }
  0x3b   : > { %2471 = vmatpush.bf16.msrb.mxu0 %v10739_v36  ;;  %2897 = vmatpush.bf16.msrb.mxu1 %v10747_v37  ;;  %v431_v24 = vrot.slane %v430_v11, 4  ;;  %v11391_v36 = vld [vmem:[%s11196_s12 + $0x34] sm:$0xf]  ;;  %v426_v39 = vsel %vm11230_vm2, %v421_v23, %v425_v0  ;;  %v438_v45 = vshrl.u32 %v282_v35, 16  ;;  %v441_v48 = vshll.u32 %v282_v35, 16 }
  0x3c   : > { %907 = vmatmul.bf16.gmra.mxu2 %v783_v18  ;;  %867 = vmatmul.bf16.gmra.mxu0 %v775_v21  ;;  %v299_v18 = vld [vmem:[%s11196_s12 + $0x94] sm:$0xf]  ;;  %v627_v21 = vrot.slane %v625_v7, 5  ;;  %v447_v49 = vshll.u32 %v11391_v36, 16  ;;  %v451_v50 = vshrl.u32 %v11391_v36, 16  ;;  %v748_v55 = vunpack.c.l.b16 %v426_v39 }
  0x3d   : > { %1140 = vmatmul.bf16.gmra.mxu3 %v10680_v20  ;;  %v613_v20 = vrot.slane %v612_v6, 4  ;;  %v639_v29 = vshll.u32 %v299_v18, 16  ;;  %v643_v34 = vshrl.u32 %v299_v18, 16  ;;  %1472 = vmatpush.bf16.msrb.mxu2 %v10706_v26  ;;  %v436_v40 = vsel %vm11230_vm2, %v431_v24, %v435_v25  ;;  %v11405_v0 = vld [vmem:[%s11196_s12 + $0x38] sm:$0x1]  ;;  %v10745_v23 = vld [vmem:[%s14098_s2 + $0x150] sm:$0xff] }
  0x3e   : > { %1100 = vmatmul.bf16.gmra.mxu1 %v10672_v22  ;;  %v623_v22 = vrot.slane %v622_v9, 4  ;;  %1790 = vmatpush.bf16.msrb.mxu3 %v10730_v30  ;;  %v749_v56 = vunpack.c.l.b16 %v436_v40  ;;  %v443_v61 = vrot.slane %v441_v48, 5  ;;  %v449_v62 = vrot.slane %v447_v49, 5  ;;  %v11417_v18 = vld [vmem:[%s11196_s12 + $0x40] sm:$0xf] }
  0x3f   : > { %2472 = vmatpush.bf16.msrb.mxu0 %v10738_v31  ;;  %v618_v37 = vsel %vm11230_vm2, %v613_v20, %v617_v59  ;;  %2898 = vmatpush.bf16.msrb.mxu1 %v10746_v32  ;;  %v641_v44 = vrot.slane %v639_v29, 5  ;;  %v645_v47 = vrot.slane %v643_v34, 4  ;;  %v440_v59 = vrot.slane %v438_v45, 4 }
  0x40   : > { %v628_v38 = vsel %vm11230_vm2, %v623_v22, %v627_v21  ;;  %v764_v53 = vunpack.c.l.b16 %v618_v37  ;;  %v453_v63 = vrot.slane %v451_v50, 4  ;;  %v777_v3 = vpack.c.b16 %v749_v56, %v748_v55  ;;  %v10729_v21 = vld [vmem:[%s14098_s2 + $0xd0] sm:$0xff]  ;;  %v11440_v56 = vld [vmem:[%s11196_s12 + $0x44] sm:$0x1] }
  0x41   : > { %v765_v54 = vunpack.c.l.b16 %v628_v38  ;;  %v646_v60 = vor.u32 %v645_v47, %v641_v44  ;;  %v637_v6 = vrot.slane %v636_v57, 4  ;;  %v651_v7 = vrot.slane %v649_v58, 5  ;;  %v10737_v22 = vld [vmem:[%s14098_s2 + $0x110] sm:$0xff]  ;;  %v335_v47 = vld [vmem:[%s11196_s12 + $0xa4] sm:$0x1] }
  0x42   : > { %v444_v9 = vor.u32 %v443_v61, %v440_v59  ;;  %v454_v10 = vor.u32 %v453_v63, %v449_v62  ;;  %v457_v11 = vshll.u32 %v11405_v0, 16  ;;  %v654_v28 = vshrl.u32 %v300_v12, 16  ;;  %1791 = vmatpush.bf16.msrb.mxu3 %v10729_v21  ;;  %v10683_v61 = vld [vmem:[%s11196_s12 + $0x90] sm:$0xff] }
  0x43   : > { %v785_v1 = vpack.c.b16 %v765_v54, %v764_v53  ;;  %v642_v20 = vsel %vm11230_vm2, %v637_v6, %v641_v44  ;;  %v657_v29 = vshll.u32 %v300_v12, 16  ;;  %2473 = vmatpush.bf16.msrb.mxu0 %v10737_v22  ;;  %v462_v32 = vshrl.u32 %v284_v16, 16  ;;  %2899 = vmatpush.bf16.msrb.mxu1 %v10745_v23  ;;  %v303_v6 = vld [vmem:[%s11196_s12 + $0xac] sm:$0xf] }
  0x44   : > { %v445_v25 = vrot.slane %v444_v9, 4  ;;  %v455_v26 = vrot.slane %v454_v10, 4  ;;  %v459_v27 = vrot.slane %v457_v11, 5  ;;  %v465_v34 = vshll.u32 %v284_v16, 16  ;;  %v10728_v22 = vld [vmem:[%s14098_s2 + $0xc8] sm:$0xff] }
  0x45   : > { %v471_v35 = vshll.u32 %v11417_v18, 16  ;;  %v475_v37 = vshrl.u32 %v11417_v18, 16  ;;  %v766_v38 = vunpack.c.l.b16 %v642_v20  ;;  %v656_v43 = vrot.slane %v654_v28, 4  ;;  %v10736_v23 = vld [vmem:[%s14098_s2 + $0x108] sm:$0xff] }
  0x46   : > { %v450_v40 = vsel %vm11230_vm2, %v445_v25, %v449_v62  ;;  %v460_v41 = vsel %vm11230_vm2, %v455_v26, %v459_v27  ;;  %v659_v44 = vrot.slane %v657_v29, 5  ;;  %v464_v48 = vrot.slane %v462_v32, 4  ;;  %v286_v25 = vld [vmem:[%s11196_s12 + $0x48] sm:$0xf]  ;;  %v11461_v26 = vld [vmem:[%s11196_s12 + $0x4c] sm:$0xf]  ;;  %1792 = vmatpush.bf16.msrb.mxu3 %v10728_v22 }
  0x47   : > { %v467_v49 = vrot.slane %v465_v34, 5  ;;  %v473_v50 = vrot.slane %v471_v35, 5  ;;  %v477_v53 = vrot.slane %v475_v37, 4  ;;  %v750_v54 = vunpack.c.l.b16 %v450_v40  ;;  %2474 = vmatpush.bf16.msrb.mxu0 %v10736_v23  ;;  %v336_v37 = vld [vmem:[%s11196_s12 + $0xb0] sm:$0x1] }
  0x48   : > { %v751_v55 = vunpack.c.l.b16 %v460_v41  ;;  %v660_v57 = vor.u32 %v659_v44, %v656_v43  ;;  %v673_v59 = vshll.u32 %v335_v47, 16  ;;  %v687_v20 = vshll.u32 %v303_v6, 16 }
  0x49   : > { %v468_v62 = vor.u32 %v467_v49, %v464_v48  ;;  %v478_v63 = vor.u32 %v477_v53, %v473_v50  ;;  %v691_v21 = vshrl.u32 %v303_v6, 16  ;;  %v495_v40 = vshll.u32 %v11461_v26, 16  ;;  %v304_v6 = vld [vmem:[%s11196_s12 + $0xb4] sm:$0xf] }
  0x4a   : > { %v675_v9 = vrot.slane %v673_v59, 5  ;;  %v689_v34 = vrot.slane %v687_v20, 5  ;;  %v499_v41 = vshrl.u32 %v11461_v26, 16  ;;  %v697_v49 = vshll.u32 %v336_v37, 16  ;;  %v10684_v59 = vld [vmem:[%s11196_s12 + $0x9c] sm:$0xff] }
  0x4b   : > { %v469_v10 = vrot.slane %v468_v62, 4  ;;  %v479_v11 = vrot.slane %v478_v63, 4  ;;  %v693_v35 = vrot.slane %v691_v21, 4  ;;  %v702_v23 = vshrl.u32 %v304_v6, 16 }
  0x4c   : > { %912 = vmatmul.bf16.gmra.mxu2 %v784_v5  ;;  %872 = vmatmul.bf16.gmra.mxu0 %v776_v14  ;;  %v10674_v5 = vld [vmem:[%s11196_s12 + $0x24] sm:$0xff]  ;;  %v301_v14 = vld [vmem:[%s11196_s12 + $0xa0] sm:$0xf]  ;;  %v699_v63 = vrot.slane %v697_v49, 5 }
  0x4d   : > { %1145 = vmatmul.bf16.gmra.mxu3 %v10681_v8  ;;  %v647_v8 = vrot.slane %v646_v60, 4  ;;  %v663_v30 = vshll.u32 %v301_v14, 16  ;;  %v667_v31 = vshrl.u32 %v301_v14, 16  ;;  %v474_v29 = vsel %vm11230_vm2, %v469_v10, %v473_v50  ;;  %v11487_v10 = vld [vmem:[%s11196_s12 + $0x58] sm:$0xf] }
  0x4e   : > { %1105 = vmatmul.bf16.gmra.mxu1 %v10673_v15  ;;  %v10705_v15 = vld [vmem:[%s14098_s2 + $0x90] sm:$0xff]  ;;  %v694_v48 = vor.u32 %v693_v35, %v689_v34 }
  0x4f   : > { %v652_v24 = vsel %vm11230_vm2, %v647_v8, %v651_v7  ;;  %1473 = vmatpush.bf16.msrb.mxu2 %v10705_v15  ;;  %v665_v45 = vrot.slane %v663_v30, 5  ;;  %v669_v46 = vrot.slane %v667_v31, 4  ;;  %v661_v7 = vrot.slane %v660_v57, 4  ;;  %v10704_v15 = vld [vmem:[%s14098_s2 + $0x88] sm:$0xff]  ;;  %v11475_v57 = vld [vmem:[%s11196_s12 + $0x50] sm:$0x1] }
  0x50   : > { %v767_v39 = vunpack.c.l.b16 %v652_v24  ;;  %v10744_v24 = vld [vmem:[%s14098_s2 + $0x148] sm:$0xff] }
  0x51   : > { %v670_v58 = vor.u32 %v669_v46, %v665_v45  ;;  %v666_v27 = vsel %vm11230_vm2, %v661_v7, %v665_v45  ;;  %2900 = vmatpush.bf16.msrb.mxu1 %v10744_v24  ;;  %v752_v45 = vunpack.c.l.b16 %v474_v29  ;;  %v305_v7 = vld [vmem:[%s11196_s12 + $0xb8] sm:$0xf]  ;;  %v705_v24 = vshll.u32 %v304_v6, 16 }
  0x52   : > { %v786_v60 = vpack.c.b16 %v767_v39, %v766_v38  ;;  %v486_v38 = vshrl.u32 %v286_v25, 16  ;;  %v489_v39 = vshll.u32 %v286_v25, 16  ;;  %v768_v43 = vunpack.c.l.b16 %v666_v27 }
  0x53   : > { %v671_v8 = vrot.slane %v670_v58, 4  ;;  %1474 = vmatpush.bf16.msrb.mxu2 %v10704_v15  ;;  %v10743_v15 = vld [vmem:[%s14098_s2 + $0x140] sm:$0xff]  ;;  %v711_v25 = vshll.u32 %v305_v7, 16  ;;  %v715_v27 = vshrl.u32 %v305_v7, 16 }
  0x54   : > { %v488_v50 = vrot.slane %v486_v38, 4  ;;  %v491_v53 = vrot.slane %v489_v39, 5  ;;  %v704_v38 = vrot.slane %v702_v23, 4  ;;  %v707_v39 = vrot.slane %v705_v24, 5 }
  0x55   : > { %v676_v28 = vsel %vm11230_vm2, %v671_v8, %v675_v9  ;;  %v10703_v8 = vld [vmem:[%s14098_s2 + $0x80] sm:$0xff]  ;;  %v288_v9 = vld [vmem:[%s11196_s12 + $0x54] sm:$0xf]  ;;  %2901 = vmatpush.bf16.msrb.mxu1 %v10743_v15 }
  0x56   : > { %v769_v44 = vunpack.c.l.b16 %v676_v28  ;;  %v510_v28 = vshrl.u32 %v288_v9, 16  ;;  %v513_v29 = vshll.u32 %v288_v9, 16  ;;  %v10774_v9 = vld [vmem:[%s14098_s2 + $0x1b8] sm:$0xff] }
  0x57   : > { %1475 = vmatpush.bf16.msrb.mxu2 %v10703_v8 }
  0x58   : > { %v787_v58 = vpack.c.b16 %v769_v44, %v768_v43  ;;  %v337_v43 = vld [vmem:[%s11196_s12 + $0xbc] sm:$0x1]  ;;  %v512_v44 = vrot.slane %v510_v28, 4 }
  0x5b   : > { %3212 = vmatpush.bf16.msra.mxu2 %v10774_v9 }
  0x5c   : > { %917 = vmatmul.bf16.gmra.mxu2 %v785_v1  ;;  %877 = vmatmul.bf16.gmra.mxu0 %v777_v3  ;;  %v481_v1 = vshll.u32 %v11440_v56, 16  ;;  %v10675_v3 = vld [vmem:[%s11196_s12 + $0x30] sm:$0xff] }
  0x5d   : > { %1150 = vmatmul.bf16.gmra.mxu3 %v10682_v2  ;;  %v778_v2 = vpack.c.b16 %v751_v55, %v750_v54  ;;  %v497_v54 = vrot.slane %v495_v40, 5  ;;  %v501_v55 = vrot.slane %v499_v41, 4  ;;  %v713_v40 = vrot.slane %v711_v25, 5 }
  0x5e   : > { %1110 = vmatmul.bf16.gmra.mxu1 %v10674_v5  ;;  %v302_v5 = vld [vmem:[%s11196_s12 + $0xa8] sm:$0xf]  ;;  %v483_v12 = vrot.slane %v481_v1, 5  ;;  %v695_v1 = vrot.slane %v694_v48, 4  ;;  %v717_v41 = vrot.slane %v715_v27, 4  ;;  %v10790_v27 = vld [vmem:[%s14098_s2 + $0x238] sm:$0xff] }
  0x5f   : > { %v678_v14 = vshrl.u32 %v302_v5, 16  ;;  %v681_v16 = vshll.u32 %v302_v5, 16  ;;  %v505_v5 = vshll.u32 %v11475_v57, 16 }
  0x60   : > { %v484_v30 = vsel %vm11230_vm2, %v479_v11, %v483_v12  ;;  %v10727_v12 = vld [vmem:[%s14098_s2 + $0xc0] sm:$0xff] }
  0x61   : > { %v680_v31 = vrot.slane %v678_v14, 4  ;;  %v683_v32 = vrot.slane %v681_v16, 5  ;;  %v753_v46 = vunpack.c.l.b16 %v484_v30  ;;  %v10735_v14 = vld [vmem:[%s14098_s2 + $0x100] sm:$0xff]  ;;  %v700_v16 = vsel %vm11230_vm2, %v695_v1, %v699_v63  ;;  %1793 = vmatpush.bf16.msrb.mxu3 %v10727_v12  ;;  %v10677_v1 = vld [vmem:[%s11196_s12 + $0x48] sm:$0xff] }
  0x62   : > { %v507_v22 = vrot.slane %v505_v5, 5  ;;  %2475 = vmatpush.bf16.msrb.mxu0 %v10735_v14  ;;  %v519_v30 = vshll.u32 %v11487_v10, 16  ;;  %v9324_v12 = vld [vmem:[%s11196_s12 + $0xc] sm:$0xf]  ;;  %v11523_v14 = vld [vmem:[%s11196_s12 + $0x10] sm:$0xf] }
  0x63   : > { %v684_v47 = vor.u32 %v683_v32, %v680_v31  ;;  %v523_v31 = vshrl.u32 %v11487_v10, 16  ;;  %v1959_v23 = vshll.u32 %v9324_v12, 16  ;;  %v1965_v24 = vshll.u32 %v11523_v14, 16 }
  0x64   : > { %v1969_v25 = vshrl.u32 %v11523_v14, 16 }
  0x65   : > { %v685_v62 = vrot.slane %v684_v47, 4  ;;  %v525_v47 = vrot.slane %v523_v31, 4 }
  0x66   : > { %4320 = vmatpush.bf16.msra.mxu0 %v10790_v27 }
  0x67   : > { %v690_v11 = vsel %vm11230_vm2, %v685_v62, %v689_v34  ;;  %v771_v34 = vunpack.c.l.b16 %v700_v16 }
  0x68   : > { %v770_v32 = vunpack.c.l.b16 %v690_v11  ;;  %v10782_v11 = vld [vmem:[%s14098_s2 + $0x1f8] sm:$0xff] }
  0x69   : > { %3894 = vmatpush.bf16.msra.mxu3 %v10782_v11 }
  0x6c   : > { %922 = vmatmul.bf16.gmra.mxu2 %v786_v60  ;;  %882 = vmatmul.bf16.gmra.mxu0 %v778_v2  ;;  %v779_v60 = vpack.c.b16 %v753_v46, %v752_v45  ;;  %v492_v2 = vor.u32 %v491_v53, %v488_v50  ;;  %v515_v45 = vrot.slane %v513_v29, 5  ;;  %v521_v46 = vrot.slane %v519_v30, 5  ;;  %v11510_v50 = vld [vmem:[%s11196_s12 + $0x5c] sm:$0x1] }
  0x6d   : > { %1155 = vmatmul.bf16.gmra.mxu3 %v10683_v61  ;;  %v10676_v61 = vld [vmem:[%s11196_s12 + $0x3c] sm:$0xff]  ;;  %v788_v53 = vpack.c.b16 %v771_v34, %v770_v32  ;;  %v529_v62 = vshll.u32 %v11510_v50, 16  ;;  %v1961_v34 = vrot.slane %v1959_v23, 5 }
  0x6e   : > { %1115 = vmatmul.bf16.gmra.mxu1 %v10675_v3  ;;  %v502_v3 = vor.u32 %v501_v55, %v497_v54  ;;  %v493_v20 = vrot.slane %v492_v2, 4  ;;  %v721_v55 = vshll.u32 %v337_v43, 16 }
  0x6f   : > { %v531_v8 = vrot.slane %v529_v62, 5 }
  0x70   : > { %v503_v21 = vrot.slane %v502_v3, 4  ;;  %v498_v35 = vsel %vm11230_vm2, %v493_v20, %v497_v54  ;;  %v708_v54 = vor.u32 %v707_v39, %v704_v38  ;;  %v723_v3 = vrot.slane %v721_v55, 5  ;;  %v9326_v38 = vld [vmem:[%s11196_s12 + $0x14] sm:$0x1] }
  0x71   : > { %v754_v48 = vunpack.c.l.b16 %v498_v35  ;;  %v1967_v35 = vrot.slane %v1965_v24, 5 }
  0x72   : > { %v508_v37 = vsel %vm11230_vm2, %v503_v21, %v507_v22  ;;  %v709_v2 = vrot.slane %v708_v54, 4  ;;  %v1956_v22 = vshrl.u32 %v9324_v12, 16  ;;  %v9420_v54 = vld [vmem:[%s11196_s12 + $0xc] sm:$0xe] }
  0x73   : > { %v755_v49 = vunpack.c.l.b16 %v508_v37  ;;  %v1971_v37 = vrot.slane %v1969_v25, 4 }
  0x74   : > { %v714_v15 = vsel %vm11230_vm2, %v709_v2, %v713_v40  ;;  %v1958_v32 = vrot.slane %v1956_v22, 4 }
  0x75   : > { %v780_v63 = vpack.c.b16 %v755_v49, %v754_v48  ;;  %v772_v28 = vunpack.c.l.b16 %v714_v15  ;;  %v1972_v48 = vor.u32 %v1971_v37, %v1967_v35  ;;  %v1975_v49 = vshll.u32 %v9326_v38, 16  ;;  %v1177_v37 = vld [vmem:[%s11196_s12 + $0xc] sm:$0xe] }
  0x77   : > { %v1977_v2 = vrot.slane %v1975_v49, 5 }
  0x7c   : > { %927 = vmatmul.bf16.gmra.mxu2 %v787_v58  ;;  %887 = vmatmul.bf16.gmra.mxu0 %v779_v60  ;;  %v10685_v58 = vld [vmem:[%s11196_s12 + $0xa8] sm:$0xff]  ;;  %v516_v60 = vor.u32 %v515_v45, %v512_v44  ;;  %v10678_v44 = vld [vmem:[%s11196_s12 + $0x54] sm:$0xff]  ;;  %v1176_v45 = vld [vmem:[%s11196_s12] sm:$0xe] }
  0x7d   : > { %1160 = vmatmul.bf16.gmra.mxu3 %v10684_v59  ;;  %v718_v59 = vor.u32 %v717_v41, %v713_v40  ;;  %v10686_v40 = vld [vmem:[%s11196_s12 + $0xb4] sm:$0xff]  ;;  %v9116_v55 = vrot.slane %v1176_v45, 9 }
  0x7e   : > { %1120 = vmatmul.bf16.gmra.mxu1 %v10676_v61  ;;  %v526_v61 = vor.u32 %v525_v47, %v521_v46  ;;  %v517_v6 = vrot.slane %v516_v60, 4  ;;  %v10814_v41 = vld [vmem:[%s14099_s3 + $0x38] sm:$0xff]  ;;  %v1962_v47 = vor.u32 %v1961_v34, %v1958_v32  ;;  %v9329_v34 = vld [vmem:[%s11196_s12 + $0x20] sm:$0x1] }
  0x7f   : > { %v719_v5 = vrot.slane %v718_v59, 4  ;;  %4635 = vmatpush.bf16.msra.mxu1 %v10814_v41  ;;  %v11550_v59 = vld [vmem:[%s11196_s12 + $0x1c] sm:$0xf]  ;;  %v10711_v41 = vld [vmem:[%s11196_s12 + $0xc] sm:$0xff] }
  0x80   : > { %v527_v7 = vrot.slane %v526_v61, 4  ;;  %v522_v20 = vsel %vm11230_vm2, %v517_v6, %v521_v46  ;;  %v1229_v46 = vrot.slane %v11202_v13, 5  ;;  %v11048_v13 = vld [vmem:[%s11196_s12 + $0x8] sm:$0x1]  ;;  %v1963_v62 = vrot.slane %v1962_v47, 4 }
  0x81   : > { %v724_v16 = vsel %vm11230_vm2, %v719_v5, %v723_v3  ;;  %v756_v30 = vunpack.c.l.b16 %v522_v20  ;;  %v1232_v61 = vrot.slane %v11048_v13, 5  ;;  %v9436_v3 = vrot.slane %v9420_v54, 9  ;;  %v9421_v47 = vld [vmem:[%s11196_s12 + $0x18] sm:$0xe] }
  0x82   : > { %v532_v21 = vsel %vm11230_vm2, %v527_v7, %v531_v8  ;;  %v773_v29 = vunpack.c.l.b16 %v724_v16  ;;  %v1231_v60 = vrot.slane %v1229_v46, 4  ;;  %v2658_v6 = vrot.slane %v9326_v38, 5 }
  0x83   : > { %v757_v31 = vunpack.c.l.b16 %v532_v21  ;;  %v1989_v9 = vshll.u32 %v11550_v59, 16  ;;  %v1993_v11 = vshrl.u32 %v11550_v59, 16  ;;  %v1230_v12 = vsel %vm11554_vm5, %v9116_v55, %v1229_v46 }
  0x84   : > { %v789_v39 = vpack.c.b16 %v773_v29, %v772_v28  ;;  %v1968_v15 = vsel %vm11230_vm2, %v1963_v62, %v1967_v35  ;;  %v1356_v27 = vunpack.c.l.b16 %v1230_v12  ;;  %v1236_v35 = vrot.slane %v11237_v51, 5 }
  0x85   : > { %v781_v43 = vpack.c.b16 %v757_v31, %v756_v30  ;;  %v1991_v24 = vrot.slane %v1989_v9, 5  ;;  %v1995_v25 = vrot.slane %v1993_v11, 4  ;;  %v2356_v29 = vunpack.c.l.b16 %v1968_v15 }
  0x86   : > { %v1238_v54 = vrot.slane %v1236_v35, 4  ;;  %v1239_v51 = vrot.slane %v11274_v19, 5  ;;  %v2665_v62 = vrot.slane %v9329_v34, 5  ;;  %v9330_v19 = vld [vmem:[%s11196_s12 + $0x24] sm:$0xf] }
  0x8c   : > { %932 = vmatmul.bf16.gmra.mxu2 %v788_v53  ;;  %892 = vmatmul.bf16.gmra.mxu0 %v780_v63  ;;  %v2655_v53 = vrot.slane %v11523_v14, 5  ;;  %v1973_v63 = vrot.slane %v1972_v48, 4  ;;  %v1233_v14 = vsel %vm11554_vm5, %v1231_v60, %v1232_v61  ;;  %v9437_v61 = vrot.slane %v9421_v47, 9 }
  0x8d   : > { %1165 = vmatmul.bf16.gmra.mxu3 %v10685_v58  ;;  %v9327_v58 = vld [vmem:[%s11196_s12 + $0x18] sm:$0xf]  ;;  %v1357_v28 = vunpack.c.l.b16 %v1233_v14 }
  0x8e   : > { %1125 = vmatmul.bf16.gmra.mxu1 %v10677_v1  ;;  %v2657_v5 = vrot.slane %v2655_v53, 4  ;;  %v1980_v7 = vshrl.u32 %v9327_v58, 16  ;;  %v1983_v8 = vshll.u32 %v9327_v58, 16  ;;  %v1978_v16 = vsel %vm11230_vm2, %v1973_v63, %v1977_v2  ;;  %v10773_v63 = vld [vmem:[%s14098_s2 + $0x1b0] sm:$0xff] }
  0x8f   : > { %v2656_v20 = vsel %vm11554_vm5, %v9436_v3, %v2655_v53  ;;  %v2357_v30 = vunpack.c.l.b16 %v1978_v16  ;;  %v9117_v53 = vrot.slane %v1177_v37, 9  ;;  %v10781_v2 = vld [vmem:[%s14098_s2 + $0x1f0] sm:$0xff]  ;;  %3213 = vmatpush.bf16.msra.mxu2 %v10773_v63  ;;  %v11589_v3 = vld [vmem:[%s11196_s12 + $0x28] sm:$0xf]  ;;  %v2004_v16 = vshrl.u32 %v9330_v19, 16 }
  0x90   : > { %v2659_v21 = vsel %vm11554_vm5, %v2657_v5, %v2658_v6  ;;  %v1982_v22 = vrot.slane %v1980_v7, 4  ;;  %v1985_v23 = vrot.slane %v1983_v8, 5  ;;  %v2782_v31 = vunpack.c.l.b16 %v2656_v20  ;;  %3895 = vmatpush.bf16.msra.mxu3 %v10781_v2  ;;  %v9422_v63 = vld [vmem:[%s11196_s12 + $0x24] sm:$0xe]  ;;  %v9333_v2 = vld [vmem:[%s11196_s12 + $0x30] sm:$0xf] }
  0x91   : > { %v2783_v32 = vunpack.c.l.b16 %v2659_v21  ;;  %v2388_v45 = vpack.c.b16 %v2357_v30, %v2356_v29  ;;  %v1237_v7 = vsel %vm11554_vm5, %v9117_v53, %v1236_v35  ;;  %v1240_v8 = vsel %vm11554_vm5, %v1238_v54, %v1239_v51  ;;  %v10789_v29 = vld [vmem:[%s14098_s2 + $0x230] sm:$0xff]  ;;  %v1178_v54 = vld [vmem:[%s11196_s12 + $0x18] sm:$0xe] }
  0x92   : > { %v1986_v38 = vor.u32 %v1985_v23, %v1982_v22  ;;  %v2007_v20 = vshll.u32 %v9330_v19, 16  ;;  %v2013_v21 = vshll.u32 %v11589_v3, 16  ;;  %v2017_v22 = vshrl.u32 %v11589_v3, 16  ;;  %4321 = vmatpush.bf16.msra.mxu0 %v10789_v29 }
  0x93   : > { %v2814_v46 = vpack.c.b16 %v2783_v32, %v2782_v31  ;;  %v2006_v35 = vrot.slane %v2004_v16, 4 }
  0x94   : > { %v1987_v58 = vrot.slane %v1986_v38, 4  ;;  %v2009_v37 = vrot.slane %v2007_v20, 5  ;;  %v2015_v38 = vrot.slane %v2013_v21, 5  ;;  %v2031_v21 = vshll.u32 %v9333_v2, 16 }
  0x96   : > { %v1992_v9 = vsel %vm11230_vm2, %v1987_v58, %v1991_v24  ;;  %v2010_v51 = vor.u32 %v2009_v37, %v2006_v35 }
  0x97   : > { %v2358_v30 = vunpack.c.l.b16 %v1992_v9 }
  0x9c   : > { %937 = vmatmul.bf16.gmra.mxu2 %v789_v39  ;;  %897 = vmatmul.bf16.gmra.mxu0 %v781_v43  ;;  %v1996_v39 = vor.u32 %v1995_v25, %v1991_v24  ;;  %v1999_v43 = vshll.u32 %v9329_v34, 16 }
  0x9d   : > { %1170 = vmatmul.bf16.gmra.mxu3 %v10686_v40  ;;  %v1388_v40 = vpack.c.b16 %v1357_v28, %v1356_v27  ;;  %v1358_v27 = vunpack.c.l.b16 %v1237_v7  ;;  %v1359_v28 = vunpack.c.l.b16 %v1240_v8  ;;  %v2011_v7 = vrot.slane %v2010_v51, 4 }
  0x9e   : > { %1130 = vmatmul.bf16.gmra.mxu1 %v10678_v44  ;;  %v2662_v44 = vrot.slane %v11550_v59, 5  ;;  %v1997_v60 = vrot.slane %v1996_v39, 4  ;;  %v2001_v13 = vrot.slane %v1999_v43, 5  ;;  %v2019_v39 = vrot.slane %v2017_v22, 4 }
  0xa0   : > { %v2664_v59 = vrot.slane %v2662_v44, 4  ;;  %v2002_v12 = vsel %vm11230_vm2, %v1997_v60, %v2001_v13  ;;  %v2663_v14 = vsel %vm11554_vm5, %v9437_v61, %v2662_v44  ;;  %v2020_v58 = vor.u32 %v2019_v39, %v2015_v38 }
  0xa1   : > { %v2359_v31 = vunpack.c.l.b16 %v2002_v12  ;;  %v2784_v32 = vunpack.c.l.b16 %v2663_v14  ;;  %v9438_v12 = vrot.slane %v9422_v63, 9  ;;  %v2033_v39 = vrot.slane %v2031_v21, 5  ;;  %v10713_v63 = vld [vmem:[%s11196_s12 + $0x24] sm:$0xff] }
  0xa2   : > { %v2666_v15 = vsel %vm11554_vm5, %v2664_v59, %v2665_v62  ;;  %v2669_v59 = vrot.slane %v11589_v3, 5  ;;  %v2021_v8 = vrot.slane %v2020_v58, 4  ;;  %v1179_v58 = vld [vmem:[%s11196_s12 + $0x24] sm:$0xe] }
  0xa3   : > { %v2785_v34 = vunpack.c.l.b16 %v2666_v15  ;;  %v2389_v47 = vpack.c.b16 %v2359_v31, %v2358_v30  ;;  %v2028_v15 = vshrl.u32 %v9333_v2, 16 }
  0xa4   : > { %v2671_v3 = vrot.slane %v2669_v59, 4 }
  0xa5   : > { %v2815_v53 = vpack.c.b16 %v2785_v34, %v2784_v32  ;;  %v2670_v32 = vsel %vm11554_vm5, %v9438_v12, %v2669_v59  ;;  %v2030_v35 = vrot.slane %v2028_v15, 4  ;;  %v9119_v12 = vrot.slane %v1179_v58, 9 }
  0xa9   : > { %v863_v48 = vpop.f32.mrf.mxu0 }
  0xab   : > { %v1096_v49 = vpop.f32.mrf.mxu1 }
  0xac   : > { %v11578_v55 = vadd.f32 %v1096_v49, %v863_v48  ;;  %1476 = vmatmul.bf16.vlgmr.msrb.gmra.mxu2 %v1388_v40  ;;  %2476 = vmatmul.bf16.vlgmr.msrb.gmra.mxu0 %v2388_v45  ;;  %v9332_v40 = vld [vmem:[%s11196_s12 + $0x2c] sm:$0x1]  ;;  %v1389_v45 = vpack.c.b16 %v1359_v28, %v1358_v27  ;;  %v1243_v48 = vrot.slane %v11306_v52, 5  ;;  %v10813_v49 = vld [vmem:[%s14099_s3 + $0x30] sm:$0xff]  ;;  %v9118_v52 = vrot.slane %v1178_v54, 9 }
  0xad   : > { %1794 = vmatmul.bf16.vlgmr.msrb.gmra.mxu3 %v10711_v41  ;;  %v2023_v60 = vshll.u32 %v9332_v40, 16  ;;  %4636 = vmatpush.bf16.msra.mxu1 %v10813_v49  ;;  %v2672_v14 = vrot.slane %v9332_v40, 5  ;;  %v2016_v28 = vsel %vm11230_vm2, %v2011_v7, %v2015_v38  ;;  %v9335_v49 = vld [vmem:[%s11196_s12 + $0x38] sm:$0x1]  ;;  %v9423_v7 = vld [vmem:[%s11196_s12 + $0x30] sm:$0xe] }
  0xae   : > { %2902 = vmatmul.bf16.vlgmr.msrb.gmra.mxu1 %v2814_v46  ;;  %v10712_v46 = vld [vmem:[%s11196_s12 + $0x18] sm:$0xff]  ;;  %v1245_v19 = vrot.slane %v1243_v48, 4  ;;  %v1244_v27 = vsel %vm11554_vm5, %v9118_v52, %v1243_v48  ;;  %v2047_v2 = vshll.u32 %v9335_v49, 16  ;;  %v9439_v21 = vrot.slane %v9423_v7, 9 }
  0xaf   : > { %v903_v5 = vpop.f32.mrf.mxu2  ;;  %v2025_v9 = vrot.slane %v2023_v60, 5  ;;  %v2673_v34 = vsel %vm11554_vm5, %v2671_v3, %v2672_v14  ;;  %v2034_v60 = vor.u32 %v2033_v39, %v2030_v35  ;;  %v1253_v14 = vrot.slane %v11370_v4, 5  ;;  %v9336_v4 = vld [vmem:[%s11196_s12 + $0x3c] sm:$0xf] }
  0xb0   : > { %v1136_v6 = vpop.f32.mrf.mxu3  ;;  %v2787_v48 = vunpack.c.l.b16 %v2673_v34 }
  0xb1   : > { %v11597_v11 = vadd.f32 %v1136_v6, %v903_v5  ;;  %v865_v23 = vpop.f32.mrf.mxu0  ;;  %v11627_v5 = vld [vmem:[%s11196_s12 + $0x34] sm:$0xf]  ;;  %v1246_v6 = vrot.slane %v11334_v17, 5  ;;  %v2026_v31 = vsel %vm11230_vm2, %v2021_v8, %v2025_v9  ;;  %v2035_v15 = vrot.slane %v2034_v60, 4 }
  0xb2   : > { %v2037_v22 = vshll.u32 %v11627_v5, 16  ;;  %v2676_v52 = vrot.slane %v11627_v5, 5 }
  0xb3   : > { %v1098_v24 = vpop.f32.mrf.mxu1  ;;  %v1247_v17 = vsel %vm11554_vm5, %v1245_v19, %v1246_v6 }
  0xb4   : > { %v11607_v25 = vadd.f32 %v1098_v24, %v865_v23  ;;  %v2041_v23 = vshrl.u32 %v11627_v5, 16  ;;  %v11648_v40 = vrot.slane %v2037_v22, 5  ;;  %v2678_v5 = vrot.slane %v2676_v52, 4 }
  0xb5   : > { %v2679_v22 = vrot.slane %v9335_v49, 5  ;;  %v2677_v39 = vsel %vm11554_vm5, %v9439_v21, %v2676_v52 }
  0xb6   : > { %v2043_v38 = vrot.slane %v2041_v23, 4  ;;  %v10772_v23 = vld [vmem:[%s14098_s2 + $0x1a8] sm:$0xff]  ;;  %v2788_v60 = vunpack.c.l.b16 %v2677_v39 }
  0xb7   : > { %v905_v41 = vpop.f32.mrf.mxu2  ;;  %3214 = vmatpush.bf16.msra.mxu2 %v10772_v23 }
  0xb8   : > { %v1138_v43 = vpop.f32.mrf.mxu3 }
  0xb9   : > { %v11613_v44 = vadd.f32 %v1138_v43, %v905_v41  ;;  %v868_v13 = vpop.f32.mrf.mxu0  ;;  %v1360_v41 = vunpack.c.l.b16 %v1244_v27  ;;  %v1361_v43 = vunpack.c.l.b16 %v1247_v17  ;;  %v10780_v27 = vld [vmem:[%s14098_s2 + $0x1e8] sm:$0xff]  ;;  %v11670_v17 = vld [vmem:[%s11196_s12 + $0x40] sm:$0xf] }
  0xba   : > { %3896 = vmatpush.bf16.msra.mxu3 %v10780_v27 }
  0xbb   : > { %v1101_v61 = vpop.f32.mrf.mxu1  ;;  %v1390_v59 = vpack.c.b16 %v1361_v43, %v1360_v41  ;;  %v2052_v41 = vshrl.u32 %v9336_v4, 16  ;;  %v2055_v43 = vshll.u32 %v9336_v4, 16  ;;  %v2683_v4 = vrot.slane %v11670_v17, 5 }
  0xbc   : > { %v11622_v62 = vadd.f32 %v1101_v61, %v868_v13  ;;  %1481 = vmatmul.bf16.gmra.mxu2 %v1389_v45  ;;  %2481 = vmatmul.bf16.gmra.mxu0 %v2389_v47  ;;  %v2360_v45 = vunpack.c.l.b16 %v2016_v28  ;;  %v2786_v47 = vunpack.c.l.b16 %v2670_v32  ;;  %v2044_v13 = vor.u32 %v2043_v38, %v11648_v40 }
  0xbd   : > { %1799 = vmatmul.bf16.gmra.mxu3 %v10712_v46  ;;  %v2361_v46 = vunpack.c.l.b16 %v2026_v31  ;;  %v2040_v32 = vsel %vm11230_vm2, %v2035_v15, %v11648_v40  ;;  %v2680_v38 = vsel %vm11554_vm5, %v2678_v5, %v2679_v22  ;;  %v10812_v15 = vld [vmem:[%s14099_s3 + $0x28] sm:$0xff] }
  0xbe   : > { %2907 = vmatmul.bf16.gmra.mxu1 %v2815_v53  ;;  %v1250_v53 = vrot.slane %v11346_v33, 5  ;;  %v2816_v6 = vpack.c.b16 %v2787_v48, %v2786_v47 }
  0xbf   : > { %v908_v16 = vpop.f32.mrf.mxu2  ;;  %v2390_v19 = vpack.c.b16 %v2361_v46, %v2360_v45  ;;  %v2061_v45 = vshll.u32 %v11670_v17, 16  ;;  %v2065_v46 = vshrl.u32 %v11670_v17, 16  ;;  %4637 = vmatpush.bf16.msra.mxu1 %v10812_v15  ;;  %v2685_v17 = vrot.slane %v2683_v4, 4 }
  0xc0   : > { %v1141_v20 = vpop.f32.mrf.mxu3  ;;  %v1252_v33 = vrot.slane %v1250_v53, 4 }
  0xc1   : > { %v11632_v24 = vadd.f32 %v1141_v20, %v908_v16  ;;  %v870_v29 = vpop.f32.mrf.mxu0  ;;  %v2045_v16 = vrot.slane %v2044_v13, 4  ;;  %v2049_v20 = vrot.slane %v2047_v2, 5  ;;  %v2789_v13 = vunpack.c.l.b16 %v2680_v38 }
  0xc2   : > { %v1254_v31 = vsel %vm11554_vm5, %v1252_v33, %v1253_v14  ;;  %v2063_v2 = vrot.slane %v2061_v45, 5  ;;  %v2067_v52 = vrot.slane %v2065_v46, 4  ;;  %v1257_v14 = vrot.slane %v11391_v36, 5 }
  0xc3   : > { %v1103_v30 = vpop.f32.mrf.mxu1  ;;  %v2050_v35 = vsel %vm11230_vm2, %v2045_v16, %v2049_v20  ;;  %v2817_v16 = vpack.c.b16 %v2789_v13, %v2788_v60  ;;  %v1180_v20 = vld [vmem:[%s11196_s12 + $0x30] sm:$0xe] }
  0xc4   : > { %v11646_v37 = vadd.f32 %v1103_v30, %v870_v29  ;;  %v1251_v30 = vsel %vm11554_vm5, %v9119_v12, %v1250_v53  ;;  %v1363_v53 = vunpack.c.l.b16 %v1254_v31  ;;  %v2363_v58 = vunpack.c.l.b16 %v2050_v35  ;;  %v10714_v12 = vld [vmem:[%s11196_s12 + $0x30] sm:$0xff] }
  0xc5   : > { %v1362_v49 = vunpack.c.l.b16 %v1251_v30  ;;  %v2068_v5 = vor.u32 %v2067_v52, %v2063_v2  ;;  %v9339_v30 = vld [vmem:[%s11196_s12 + $0x48] sm:$0xf]  ;;  %v9120_v36 = vrot.slane %v1180_v20, 9  ;;  %v1259_v31 = vrot.slane %v1257_v14, 4 }
  0xc6   : > { %v1260_v35 = vrot.slane %v11405_v0, 5  ;;  %v2076_v46 = vshrl.u32 %v9339_v30, 16 }
  0xc7   : > { %v910_v54 = vpop.f32.mrf.mxu2  ;;  %v2069_v38 = vrot.slane %v2068_v5, 4  ;;  %v9341_v5 = vld [vmem:[%s11196_s12 + $0x50] sm:$0x1] }
  0xc8   : > { %v1143_v51 = vpop.f32.mrf.mxu3  ;;  %v1261_v0 = vsel %vm11554_vm5, %v1259_v31, %v1260_v35  ;;  %v10715_v35 = vld [vmem:[%s11196_s12 + $0x3c] sm:$0xff] }
  0xc9   : > { %v11654_v61 = vadd.f32 %v1143_v51, %v910_v54  ;;  %v873_v8 = vpop.f32.mrf.mxu0  ;;  %v10788_v54 = vld [vmem:[%s14098_s2 + $0x228] sm:$0xff]  ;;  %v2362_v51 = vunpack.c.l.b16 %v2040_v32 }
  0xca   : > { %4322 = vmatpush.bf16.msra.mxu0 %v10788_v54  ;;  %v11709_v32 = vld [vmem:[%s11196_s12 + $0x4c] sm:$0xf] }
  0xcb   : > { %v1106_v9 = vpop.f32.mrf.mxu1  ;;  %v2391_v33 = vpack.c.b16 %v2363_v58, %v2362_v51  ;;  %v2089_v54 = vshrl.u32 %v11709_v32, 16  ;;  %v1258_v58 = vsel %vm11554_vm5, %v9120_v36, %v1257_v14  ;;  %v1365_v14 = vunpack.c.l.b16 %v1261_v0 }
  0xcc   : > { %v11659_v3 = vadd.f32 %v1106_v9, %v873_v8  ;;  %1486 = vmatmul.bf16.gmra.mxu2 %v1390_v59  ;;  %2486 = vmatmul.bf16.gmra.mxu0 %v2390_v19  ;;  %v2054_v59 = vrot.slane %v2052_v41, 4  ;;  %v9338_v19 = vld [vmem:[%s11196_s12 + $0x44] sm:$0x1]  ;;  %v1391_v9 = vpack.c.b16 %v1363_v53, %v1362_v49  ;;  %v2079_v49 = vshll.u32 %v9339_v30, 16 }
  0xcd   : > { %1804 = vmatmul.bf16.gmra.mxu3 %v10713_v63  ;;  %v2057_v63 = vrot.slane %v2055_v43, 5  ;;  %v2071_v22 = vshll.u32 %v9338_v19, 16  ;;  %v2686_v45 = vrot.slane %v9338_v19, 5  ;;  %v2085_v53 = vshll.u32 %v11709_v32, 16 }
  0xce   : > { %2912 = vmatmul.bf16.gmra.mxu1 %v2816_v6 }
  0xcf   : > { %v913_v28 = vpop.f32.mrf.mxu2  ;;  %v2058_v21 = vor.u32 %v2057_v63, %v2054_v59  ;;  %v2073_v41 = vrot.slane %v2071_v22, 5  ;;  %v2687_v19 = vsel %vm11554_vm5, %v2685_v17, %v2686_v45  ;;  %v1264_v22 = vrot.slane %v11417_v18, 5  ;;  %v9425_v17 = vld [vmem:[%s11196_s12 + $0x48] sm:$0xe] }
  0xd0   : > { %v1146_v29 = vpop.f32.mrf.mxu3  ;;  %v9441_v0 = vrot.slane %v9425_v17, 9 }
  0xd1   : > { %v11679_v34 = vadd.f32 %v1146_v29, %v913_v28  ;;  %v875_v40 = vpop.f32.mrf.mxu0  ;;  %v9424_v29 = vld [vmem:[%s11196_s12 + $0x3c] sm:$0xe]  ;;  %v2059_v39 = vrot.slane %v2058_v21, 4  ;;  %v2074_v63 = vsel %vm11230_vm2, %v2069_v38, %v2073_v41  ;;  %v2791_v21 = vunpack.c.l.b16 %v2687_v19 }
  0xd2   : > { %v9440_v43 = vrot.slane %v9424_v29, 9  ;;  %v2690_v38 = vrot.slane %v11709_v32, 5  ;;  %v1266_v18 = vrot.slane %v1264_v22, 4 }
  0xd3   : > { %v1108_v47 = vpop.f32.mrf.mxu1  ;;  %v2064_v60 = vsel %vm11230_vm2, %v2059_v39, %v2063_v2  ;;  %v2091_v2 = vrot.slane %v2089_v54, 4  ;;  %v2095_v39 = vshll.u32 %v9341_v5, 16 }
  0xd4   : > { %v11689_v48 = vadd.f32 %v1108_v47, %v875_v40  ;;  %v2684_v52 = vsel %vm11554_vm5, %v9440_v43, %v2683_v4  ;;  %v2364_v15 = vunpack.c.l.b16 %v2064_v60  ;;  %v1181_v4 = vld [vmem:[%s11196_s12 + $0x3c] sm:$0xe]  ;;  %v2692_v32 = vrot.slane %v2690_v38, 4 }
  0xd5   : > { %v2790_v20 = vunpack.c.l.b16 %v2684_v52  ;;  %v2693_v60 = vrot.slane %v9341_v5, 5 }
  0xd7   : > { %v915_v6 = vpop.f32.mrf.mxu2  ;;  %v2818_v43 = vpack.c.b16 %v2791_v21, %v2790_v20 }
  0xd8   : > { %v1148_v7 = vpop.f32.mrf.mxu3 }
  0xd9   : > { %v11695_v8 = vadd.f32 %v1148_v7, %v915_v6  ;;  %v878_v23 = vpop.f32.mrf.mxu0  ;;  %v2078_v6 = vrot.slane %v2076_v46, 4 }
  0xdb   : > { %v1111_v27 = vpop.f32.mrf.mxu1 }
  0xdc   : > { %v11704_v28 = vadd.f32 %v1111_v27, %v878_v23  ;;  %1491 = vmatmul.bf16.gmra.mxu2 %v1391_v9  ;;  %2491 = vmatmul.bf16.gmra.mxu0 %v2391_v33  ;;  %v2081_v9 = vrot.slane %v2079_v49, 5  ;;  %v1364_v33 = vunpack.c.l.b16 %v1258_v58  ;;  %v1267_v49 = vrot.slane %v11440_v56, 5  ;;  %v9342_v56 = vld [vmem:[%s11196_s12 + $0x54] sm:$0xf] }
  0xdd   : > { %1809 = vmatmul.bf16.gmra.mxu3 %v10714_v12  ;;  %v11730_v12 = vrot.slane %v2085_v53, 5  ;;  %v2097_v58 = vrot.slane %v2095_v39, 5  ;;  %v2100_v20 = vshrl.u32 %v9342_v56, 16  ;;  %v2103_v21 = vshll.u32 %v9342_v56, 16 }
  0xde   : > { %2917 = vmatmul.bf16.gmra.mxu1 %v2817_v16  ;;  %v2365_v16 = vunpack.c.l.b16 %v2074_v63  ;;  %v2082_v29 = vor.u32 %v2081_v9, %v2078_v6  ;;  %v1392_v31 = vpack.c.b16 %v1365_v14, %v1364_v33  ;;  %v11752_v63 = vld [vmem:[%s11196_s12 + $0x58] sm:$0xf]  ;;  %v1268_v9 = vsel %vm11554_vm5, %v1266_v18, %v1267_v49 }
  0xdf   : > { %v918_v40 = vpop.f32.mrf.mxu2  ;;  %v2092_v30 = vor.u32 %v2091_v2, %v11730_v12  ;;  %v2109_v5 = vshll.u32 %v11752_v63, 16 }
  0xe0   : > { %v1151_v47 = vpop.f32.mrf.mxu3  ;;  %v2392_v41 = vpack.c.b16 %v2365_v16, %v2364_v15  ;;  %v2083_v53 = vrot.slane %v2082_v29, 4  ;;  %v2691_v15 = vsel %vm11554_vm5, %v9441_v0, %v2690_v38  ;;  %v2694_v16 = vsel %vm11554_vm5, %v2692_v32, %v2693_v60  ;;  %v10811_v32 = vld [vmem:[%s14099_s3 + $0x20] sm:$0xff] }
  0xe1   : > { %v11714_v51 = vadd.f32 %v1151_v47, %v918_v40  ;;  %v880_v13 = vpop.f32.mrf.mxu0  ;;  %v9121_v40 = vrot.slane %v1181_v4, 9  ;;  %v2093_v54 = vrot.slane %v2092_v30, 4  ;;  %v1367_v29 = vunpack.c.l.b16 %v1268_v9  ;;  %v10787_v30 = vld [vmem:[%s14098_s2 + $0x220] sm:$0xff]  ;;  %4638 = vmatpush.bf16.msra.mxu1 %v10811_v32 }
  0xe2   : > { %v2088_v2 = vsel %vm11230_vm2, %v2083_v53, %v11730_v12  ;;  %v2792_v39 = vunpack.c.l.b16 %v2691_v15  ;;  %v2793_v38 = vunpack.c.l.b16 %v2694_v16  ;;  %v2111_v17 = vrot.slane %v2109_v5, 5  ;;  %4323 = vmatpush.bf16.msra.mxu0 %v10787_v30  ;;  %v9345_v15 = vld [vmem:[%s11196_s12 + $0x60] sm:$0xf] }
  0xe3   : > { %v1113_v59 = vpop.f32.mrf.mxu1  ;;  %v1265_v6 = vsel %vm11554_vm5, %v9121_v40, %v1264_v22  ;;  %v2098_v14 = vsel %vm11230_vm2, %v2093_v54, %v2097_v58  ;;  %v2113_v22 = vshrl.u32 %v11752_v63, 16  ;;  %v10716_v54 = vld [vmem:[%s11196_s12 + $0x48] sm:$0xff]  ;;  %v1271_v0 = vrot.slane %v11461_v26, 5 }
  0xe4   : > { %v11728_v7 = vadd.f32 %v1113_v59, %v880_v13  ;;  %v10771_v13 = vld [vmem:[%s14098_s2 + $0x1a0] sm:$0xff]  ;;  %v1366_v4 = vunpack.c.l.b16 %v1265_v6  ;;  %v2819_v60 = vpack.c.b16 %v2793_v38, %v2792_v39  ;;  %v2697_v9 = vrot.slane %v11752_v63, 5 }
  0xe5   : > { %v10779_v59 = vld [vmem:[%s14098_s2 + $0x1e0] sm:$0xff]  ;;  %3215 = vmatpush.bf16.msra.mxu2 %v10771_v13  ;;  %v1182_v13 = vld [vmem:[%s11196_s12 + $0x48] sm:$0xe]  ;;  %v1273_v16 = vrot.slane %v1271_v0, 4 }
  0xe6   : > { %3897 = vmatpush.bf16.msra.mxu3 %v10779_v59  ;;  %v1393_v53 = vpack.c.b16 %v1367_v29, %v1366_v4  ;;  %v9122_v26 = vrot.slane %v1182_v13, 9  ;;  %v2699_v63 = vrot.slane %v2697_v9, 4  ;;  %v2124_v29 = vshrl.u32 %v9345_v15, 16 }
  0xe7   : > { %v920_v23 = vpop.f32.mrf.mxu2 }
  0xe8   : > { %v1153_v27 = vpop.f32.mrf.mxu3 }
  0xe9   : > { %v11736_v36 = vadd.f32 %v1153_v27, %v920_v23  ;;  %v883_v45 = vpop.f32.mrf.mxu0 }
  0xeb   : > { %v1116_v46 = vpop.f32.mrf.mxu1 }
  0xec   : > { %v11741_v47 = vadd.f32 %v1116_v46, %v883_v45  ;;  %1496 = vmatmul.bf16.gmra.mxu2 %v1392_v31  ;;  %2496 = vmatmul.bf16.gmra.mxu0 %v2392_v41  ;;  %v2366_v31 = vunpack.c.l.b16 %v2088_v2  ;;  %v2102_v41 = vrot.slane %v2100_v20, 4  ;;  %v2115_v45 = vrot.slane %v2113_v22, 4  ;;  %v9344_v46 = vld [vmem:[%s11196_s12 + $0x5c] sm:$0x1]  ;;  %v11791_v20 = vld [vmem:[%s11196_s12 + $0x64] sm:$0xf] }
  0xed   : > { %1814 = vmatmul.bf16.gmra.mxu3 %v10715_v35  ;;  %v2367_v35 = vunpack.c.l.b16 %v2098_v14  ;;  %v9426_v14 = vld [vmem:[%s11196_s12 + $0x54] sm:$0xe]  ;;  %v2700_v4 = vrot.slane %v9344_v46, 5  ;;  %v2133_v39 = vshll.u32 %v11791_v20, 16  ;;  %v2137_v38 = vshrl.u32 %v11791_v20, 16 }
  0xee   : > { %2922 = vmatmul.bf16.gmra.mxu1 %v2818_v43  ;;  %v2105_v43 = vrot.slane %v2103_v21, 5  ;;  %v2116_v56 = vor.u32 %v2115_v45, %v2111_v17  ;;  %v1274_v21 = vrot.slane %v11475_v57, 5 }
  0xef   : > { %v923_v52 = vpop.f32.mrf.mxu2  ;;  %v2393_v58 = vpack.c.b16 %v2367_v35, %v2366_v31  ;;  %v2127_v35 = vshll.u32 %v9345_v15, 16 }
  0xf0   : > { %v1156_v19 = vpop.f32.mrf.mxu3  ;;  %v2106_v59 = vor.u32 %v2105_v43, %v2102_v41  ;;  %v2117_v22 = vrot.slane %v2116_v56, 4  ;;  %v1272_v43 = vsel %vm11554_vm5, %v9122_v26, %v1271_v0  ;;  %v1275_v57 = vsel %vm11554_vm5, %v1273_v16, %v1274_v21  ;;  %v1183_v16 = vld [vmem:[%s11196_s12 + $0x54] sm:$0xe] }
  0xf1   : > { %v11761_v33 = vadd.f32 %v1156_v19, %v923_v52  ;;  %v885_v12 = vpop.f32.mrf.mxu0  ;;  %v2119_v52 = vshll.u32 %v9344_v46, 16  ;;  %v2129_v32 = vrot.slane %v2127_v35, 5  ;;  %v1368_v13 = vunpack.c.l.b16 %v1272_v43 }
  0xf2   : > { %v2107_v5 = vrot.slane %v2106_v59, 4  ;;  %v1369_v59 = vunpack.c.l.b16 %v1275_v57  ;;  %v1281_v57 = vrot.slane %v11510_v50, 5  ;;  %v9348_v50 = vld [vmem:[%s11196_s12 + $0x6c] sm:$0xf] }
  0xf3   : > { %v1118_v23 = vpop.f32.mrf.mxu1 }
  0xf4   : > { %v11771_v27 = vadd.f32 %v1118_v23, %v885_v12  ;;  %v2121_v12 = vrot.slane %v2119_v52, 5  ;;  %v9442_v23 = vrot.slane %v9426_v14, 9  ;;  %v2112_v45 = vsel %vm11230_vm2, %v2107_v5, %v2111_v17 }
  0xf5   : > { %v2139_v17 = vrot.slane %v2137_v38, 4  ;;  %v2368_v56 = vunpack.c.l.b16 %v2112_v45  ;;  %v1278_v14 = vrot.slane %v11487_v10, 5  ;;  %v9123_v38 = vrot.slane %v1183_v16, 9 }
  0xf7   : > { %v925_v40 = vpop.f32.mrf.mxu2  ;;  %v1280_v10 = vrot.slane %v1278_v14, 4 }
  0xf8   : > { %v1158_v18 = vpop.f32.mrf.mxu3 }
  0xf9   : > { %v11777_v49 = vadd.f32 %v1158_v18, %v925_v40  ;;  %v888_v19 = vpop.f32.mrf.mxu0  ;;  %v2122_v18 = vsel %vm11230_vm2, %v2117_v22, %v2121_v12  ;;  %v1394_v12 = vpack.c.b16 %v1369_v59, %v1368_v13  ;;  %v1279_v59 = vsel %vm11554_vm5, %v9123_v38, %v1278_v14 }
  0xfa   : > { %v2369_v52 = vunpack.c.l.b16 %v2122_v18  ;;  %v2148_v14 = vshrl.u32 %v9348_v50, 16 }
  0xfb   : > { %v1121_v6 = vpop.f32.mrf.mxu1 }
  0xfc   : > { %v11786_v2 = vadd.f32 %v1121_v6, %v888_v19  ;;  %1501 = vmatmul.bf16.gmra.mxu2 %v1393_v53  ;;  %2501 = vmatmul.bf16.gmra.mxu0 %v2393_v58  ;;  %v2698_v53 = vsel %vm11554_vm5, %v9442_v23, %v2697_v9  ;;  %v2126_v58 = vrot.slane %v2124_v29, 4  ;;  %v9347_v9 = vld [vmem:[%s11196_s12 + $0x68] sm:$0x1]  ;;  %v10717_v23 = vld [vmem:[%s11196_s12 + $0x54] sm:$0xff]  ;;  %v2394_v29 = vpack.c.b16 %v2369_v52, %v2368_v56 }
  0xfd   : > { %1819 = vmatmul.bf16.gmra.mxu3 %v10716_v54  ;;  %v2701_v54 = vsel %vm11554_vm5, %v2699_v63, %v2700_v4  ;;  %v2794_v19 = vunpack.c.l.b16 %v2698_v53  ;;  %v2143_v63 = vshll.u32 %v9347_v9, 16  ;;  %v2704_v4 = vrot.slane %v11791_v20, 5 }
  0xfe   : > { %2927 = vmatmul.bf16.gmra.mxu1 %v2819_v60  ;;  %v11812_v60 = vrot.slane %v2133_v39, 5  ;;  %v2795_v6 = vunpack.c.l.b16 %v2701_v54  ;;  %v2130_v21 = vor.u32 %v2129_v32, %v2126_v58  ;;  %v2707_v53 = vrot.slane %v9347_v9, 5  ;;  %v10770_v54 = vld [vmem:[%s14098_s2 + $0x198] sm:$0xff]  ;;  %v11834_v32 = vld [vmem:[%s11196_s12 + $0x70] sm:$0xf] }
  0xff   : > { %v928_v30 = vpop.f32.mrf.mxu2  ;;  %v2706_v20 = vrot.slane %v2704_v4, 4  ;;  %v10778_v58 = vld [vmem:[%s14098_s2 + $0x1d8] sm:$0xff]  ;;  %3216 = vmatpush.bf16.msra.mxu2 %v10770_v54  ;;  %v1282_v56 = vsel %vm11554_vm5, %v1280_v10, %v1281_v57  ;;  %v2157_v16 = vshll.u32 %v11834_v32, 16 }
 0x100   : > { %v1161_v31 = vpop.f32.mrf.mxu3  ;;  %v2140_v5 = vor.u32 %v2139_v17, %v11812_v60  ;;  %v2131_v45 = vrot.slane %v2130_v21, 4  ;;  %3898 = vmatpush.bf16.msra.mxu3 %v10778_v58  ;;  %v2161_v21 = vshrl.u32 %v11834_v32, 16  ;;  %v11049_v58 = vld [vmem:[%s11196_s12 + $0x64] sm:$0xf] }
 0x101   : > { %v11796_v41 = vadd.f32 %v1161_v31, %v928_v30  ;;  %v890_v46 = vpop.f32.mrf.mxu0  ;;  %v2820_v30 = vpack.c.b16 %v2795_v6, %v2794_v19  ;;  %v9427_v31 = vld [vmem:[%s11196_s12 + $0x60] sm:$0xe]  ;;  %v2159_v10 = vrot.slane %v2157_v16, 5 }
 0x102   : > { %v9443_v18 = vrot.slane %v9427_v31, 9  ;;  %v2136_v52 = vsel %vm11230_vm2, %v2131_v45, %v11812_v60  ;;  %v2163_v57 = vrot.slane %v2161_v21, 4  ;;  %v9350_v45 = vld [vmem:[%s11196_s12 + $0x74] sm:$0x1] }
 0x103   : > { %v1123_v40 = vpop.f32.mrf.mxu1 }
 0x104   : > { %v11810_v0 = vadd.f32 %v1123_v40, %v890_v46  ;;  %v2141_v46 = vrot.slane %v2140_v5, 4  ;;  %v2145_v40 = vrot.slane %v2143_v63, 5  ;;  %v2705_v9 = vsel %vm11554_vm5, %v9443_v18, %v2704_v4 }
 0x105   : > { %v1371_v63 = vunpack.c.l.b16 %v1282_v56  ;;  %v2796_v4 = vunpack.c.l.b16 %v2705_v9  ;;  %v2164_v56 = vor.u32 %v2163_v57, %v2159_v10  ;;  %v11874_v57 = vld [vmem:[%s11196_s12 + $0x7c] sm:$0xf] }
 0x106   : > { %v2146_v6 = vsel %vm11230_vm2, %v2141_v46, %v2145_v40 }
 0x107   : > { %v930_v15 = vpop.f32.mrf.mxu2 }
 0x108   : > { %v1163_v26 = vpop.f32.mrf.mxu3 }
 0x109   : > { %v11818_v22 = vadd.f32 %v1163_v26, %v930_v15  ;;  %v893_v35 = vpop.f32.mrf.mxu0  ;;  %v2708_v15 = vsel %vm11554_vm5, %v2706_v20, %v2707_v53  ;;  %v2151_v26 = vshll.u32 %v9348_v50, 16  ;;  %v10718_v53 = vld [vmem:[%s11196_s12 + $0x60] sm:$0xff]  ;;  %v1285_v50 = vrot.slane %v11049_v58, 5 }
 0x10a   : > { %v2797_v31 = vunpack.c.l.b16 %v2708_v15  ;;  %v2711_v15 = vrot.slane %v11834_v32, 5  ;;  %v9351_v32 = vld [vmem:[%s11196_s12 + $0x78] sm:$0xf] }
 0x10b   : > { %v1126_v39 = vpop.f32.mrf.mxu1  ;;  %v2153_v38 = vrot.slane %v2151_v26, 5  ;;  %v9428_v26 = vld [vmem:[%s11196_s12 + $0x6c] sm:$0xe]  ;;  %v1287_v21 = vrot.slane %v1285_v50, 4 }
 0x10c   : > { %v11823_v43 = vadd.f32 %v1126_v39, %v893_v35  ;;  %1506 = vmatmul.bf16.gmra.mxu2 %v1394_v12  ;;  %2506 = vmatmul.bf16.gmra.mxu0 %v2394_v29  ;;  %v2370_v29 = vunpack.c.l.b16 %v2136_v52  ;;  %v10786_v35 = vld [vmem:[%s14098_s2 + $0x218] sm:$0xff]  ;;  %v2150_v39 = vrot.slane %v2148_v14, 4  ;;  %v2167_v52 = vshll.u32 %v9350_v45, 16 }
 0x10d   : > { %1824 = vmatmul.bf16.gmra.mxu3 %v10717_v23  ;;  %v1370_v23 = vunpack.c.l.b16 %v1279_v59  ;;  %4324 = vmatpush.bf16.msra.mxu0 %v10786_v35  ;;  %v2714_v35 = vrot.slane %v9350_v45, 5 }
 0x10e   : > { %2932 = vmatmul.bf16.gmra.mxu1 %v2820_v30  ;;  %v2371_v30 = vunpack.c.l.b16 %v2146_v6  ;;  %v2154_v59 = vor.u32 %v2153_v38, %v2150_v39 }
 0x10f   : > { %v933_v17 = vpop.f32.mrf.mxu2  ;;  %v1395_v20 = vpack.c.b16 %v1371_v63, %v1370_v23 }
 0x110   : > { %v1166_v13 = vpop.f32.mrf.mxu3  ;;  %v2395_v54 = vpack.c.b16 %v2371_v30, %v2370_v29  ;;  %v2155_v63 = vrot.slane %v2154_v59, 4  ;;  %v2165_v29 = vrot.slane %v2164_v56, 4  ;;  %v2169_v30 = vrot.slane %v2167_v52, 5 }
 0x111   : > { %v11843_v19 = vadd.f32 %v1166_v13, %v933_v17  ;;  %v895_v60 = vpop.f32.mrf.mxu0  ;;  %v2821_v17 = vpack.c.b16 %v2797_v31, %v2796_v4  ;;  %v1184_v13 = vld [vmem:[%s11196_s12 + $0x60] sm:$0xe]  ;;  %v9444_v4 = vrot.slane %v9428_v26, 9  ;;  %v2713_v31 = vrot.slane %v2711_v15, 4 }
 0x112   : > { %v9124_v16 = vrot.slane %v1184_v13, 9  ;;  %v2160_v58 = vsel %vm11230_vm2, %v2155_v63, %v2159_v10  ;;  %v2170_v45 = vsel %vm11230_vm2, %v2165_v29, %v2169_v30  ;;  %v2185_v52 = vshrl.u32 %v11874_v57, 16 }
 0x113   : > { %v1128_v5 = vpop.f32.mrf.mxu1  ;;  %v2712_v59 = vsel %vm11554_vm5, %v9444_v4, %v2711_v15  ;;  %v2715_v56 = vsel %vm11554_vm5, %v2713_v31, %v2714_v35  ;;  %v9353_v31 = vld [vmem:[%s11196_s12 + $0x80] sm:$0x1] }
 0x114   : > { %v11853_v12 = vadd.f32 %v1128_v5, %v895_v60  ;;  %v10810_v60 = vld [vmem:[%s14099_s3 + $0x18] sm:$0xff]  ;;  %v11050_v5 = vld [vmem:[%s11196_s12 + $0x68] sm:$0x1]  ;;  %v2798_v15 = vunpack.c.l.b16 %v2712_v59  ;;  %v2187_v63 = vrot.slane %v2185_v52, 4 }
 0x115   : > { %v1288_v23 = vrot.slane %v11050_v5, 5  ;;  %4639 = vmatpush.bf16.msra.mxu1 %v10810_v60  ;;  %v2373_v60 = vunpack.c.l.b16 %v2170_v45  ;;  %v2799_v5 = vunpack.c.l.b16 %v2715_v56  ;;  %v9429_v59 = vld [vmem:[%s11196_s12 + $0x78] sm:$0xe]  ;;  %v2718_v56 = vrot.slane %v11874_v57, 5 }
 0x117   : > { %v935_v46 = vpop.f32.mrf.mxu2 }
 0x118   : > { %v1168_v40 = vpop.f32.mrf.mxu3 }
 0x119   : > { %v11859_v18 = vadd.f32 %v1168_v40, %v935_v46  ;;  %v898_v6 = vpop.f32.mrf.mxu0  ;;  %v2172_v40 = vshrl.u32 %v9351_v32, 16 }
 0x11b   : > { %14106 = vst [vmem:[#allocation2_spill] sm:$0xff] %v11859_v18  ;;  %v1131_v9 = vpop.f32.mrf.mxu1  ;;  %v2174_v26 = vrot.slane %v2172_v40, 4  ;;  %v1185_v40 = vld [vmem:[%s11196_s12 + $0x6c] sm:$0xe] }
 0x11c   : > { %v11865_v14 = vadd.f32 %v1131_v9, %v898_v6  ;;  %1511 = vmatmul.bf16.gmra.mxu2 %v1395_v20  ;;  %2511 = vmatmul.bf16.gmra.mxu0 %v2395_v54  ;;  %v2175_v20 = vshll.u32 %v9351_v32, 16  ;;  %v1289_v54 = vsel %vm11554_vm5, %v1287_v21, %v1288_v23  ;;  %v2372_v21 = vunpack.c.l.b16 %v2160_v58  ;;  %v11051_v32 = vld [vmem:[%s11196_s12 + $0x70] sm:$0xf] }
 0x11d   : > { %1829 = vmatmul.bf16.gmra.mxu3 %v10718_v53  ;;  %v1286_v53 = vsel %vm11554_vm5, %v9124_v16, %v1285_v50  ;;  %v2181_v50 = vshll.u32 %v11874_v57, 16  ;;  %v1373_v9 = vunpack.c.l.b16 %v1289_v54  ;;  %v1292_v4 = vrot.slane %v11051_v32, 5  ;;  %v11052_v32 = vld [vmem:[%s11196_s12 + $0x74] sm:$0x1] }
 0x11e   : > { %2937 = vmatmul.bf16.gmra.mxu1 %v2821_v17  ;;  %v1372_v10 = vunpack.c.l.b16 %v1286_v53  ;;  %v2177_v16 = vrot.slane %v2175_v20, 5  ;;  %v2396_v20 = vpack.c.b16 %v2373_v60, %v2372_v21  ;;  %v2822_v54 = vpack.c.b16 %v2799_v5, %v2798_v15  ;;  %v10777_v57 = vld [vmem:[%s14098_s2 + $0x1d0] sm:$0xff] }
 0x11f   : > { %v938_v39 = vpop.f32.mrf.mxu2  ;;  %v2183_v23 = vrot.slane %v2181_v50, 5  ;;  %v9125_v50 = vrot.slane %v1185_v40, 9  ;;  %v1294_v52 = vrot.slane %v1292_v4, 4  ;;  %v2720_v15 = vrot.slane %v2718_v56, 4  ;;  %3899 = vmatpush.bf16.msra.mxu3 %v10777_v57  ;;  %v10785_v57 = vld [vmem:[%s14098_s2 + $0x210] sm:$0xff] }
 0x120   : > { %v1171_v38 = vpop.f32.mrf.mxu3  ;;  %v2178_v53 = vor.u32 %v2177_v16, %v2174_v26  ;;  %v9445_v26 = vrot.slane %v9429_v59, 9  ;;  %v9354_v16 = vld [vmem:[%s11196_s12 + $0x84] sm:$0xf]  ;;  %v2721_v5 = vrot.slane %v9353_v31, 5  ;;  %4325 = vmatpush.bf16.msra.mxu0 %v10785_v57 }
 0x121   : > { %v11876_v46 = vadd.f32 %v1171_v38, %v938_v39  ;;  %v900_v17 = vpop.f32.mrf.mxu0  ;;  %v1396_v39 = vpack.c.b16 %v1373_v9, %v1372_v10  ;;  %v10719_v38 = vld [vmem:[%s11196_s12 + $0x6c] sm:$0xff] }
 0x122   : > { %v2179_v10 = vrot.slane %v2178_v53, 4  ;;  %v10769_v9 = vld [vmem:[%s14098_s2 + $0x190] sm:$0xff] }
 0x123   : > { %14107 = vst [vmem:[#allocation3_spill] sm:$0xff] %v11876_v46  ;;  %v1133_v13 = vpop.f32.mrf.mxu1  ;;  %3217 = vmatpush.bf16.msra.mxu2 %v10769_v9  ;;  %v11054_v46 = vld [vmem:[%s11196_s12 + $0x80] sm:$0x1] }
 0x124   : > { %v11892_v6 = vadd.f32 %v1133_v13, %v900_v17  ;;  %v2188_v17 = vor.u32 %v2187_v63, %v2183_v23  ;;  %v2191_v13 = vshll.u32 %v9353_v31, 16  ;;  %v11911_v63 = vld [vmem:[%s11196_s12 + $0x88] sm:$0xf]  ;;  %v2719_v31 = vsel %vm11554_vm5, %v9445_v26, %v2718_v56 }
 0x125   : > { %v2209_v59 = vshrl.u32 %v11911_v63, 16  ;;  %v2800_v56 = vunpack.c.l.b16 %v2719_v31  ;;  %v1186_v31 = vld [vmem:[%s11196_s12 + $0x78] sm:$0xe]  ;;  %v1302_v18 = vrot.slane %v11054_v46, 5  ;;  %v11946_v46 = vld [vmem:[%s11196_s12 + $0x94] sm:$0xf] }
 0x126   : > { %v2189_v21 = vrot.slane %v2188_v17, 4  ;;  %v2193_v60 = vrot.slane %v2191_v13, 5  ;;  %v2199_v17 = vshll.u32 %v9354_v16, 16  ;;  %v2205_v13 = vshll.u32 %v11911_v63, 16 }
 0x127   : > { %v940_v29 = vpop.f32.mrf.mxu2 }
 0x128   : > { %v1173_v30 = vpop.f32.mrf.mxu3 }
 0x129   : > { %v11896_v35 = vadd.f32 %v1173_v30, %v940_v29  ;;  %v2477_v58 = vpop.f32.mrf.mxu0  ;;  %v1295_v29 = vrot.slane %v11052_v32, 5 }
 0x12b   : > { %14108 = vst [vmem:[#allocation4_spill] sm:$0xff] %v11896_v35  ;;  %v2903_v45 = vpop.f32.mrf.mxu1  ;;  %v1296_v40 = vsel %vm11554_vm5, %v1294_v52, %v1295_v29  ;;  %v2194_v52 = vsel %vm11230_vm2, %v2189_v21, %v2193_v60  ;;  %v2207_v21 = vrot.slane %v2205_v13, 5  ;;  %v2211_v60 = vrot.slane %v2209_v59, 4 }
 0x12c   : > { %1516 = vmatmul.bf16.gmra.mxu2 %v1396_v39  ;;  %2516 = vmatmul.bf16.gmra.mxu0 %v2396_v20  ;;  %v2184_v20 = vsel %vm11230_vm2, %v2179_v10, %v2183_v23  ;;  %v1375_v29 = vunpack.c.l.b16 %v1296_v40 }
 0x12d   : > { %1834 = vmatmul.bf16.gmra.mxu3 %v10719_v38  ;;  %v1293_v38 = vsel %vm11554_vm5, %v9125_v50, %v1292_v4  ;;  %v2374_v10 = vunpack.c.l.b16 %v2184_v20  ;;  %v2212_v13 = vor.u32 %v2211_v60, %v2207_v21 }
 0x12e   : > { %2942 = vmatmul.bf16.gmra.mxu1 %v2822_v54  ;;  %v2196_v54 = vshrl.u32 %v9354_v16, 16  ;;  %v1374_v23 = vunpack.c.l.b16 %v1293_v38  ;;  %v2201_v16 = vrot.slane %v2199_v17, 5  ;;  %v10720_v17 = vld [vmem:[%s11196_s12 + $0x78] sm:$0xff] }
 0x12f   : > { %v1477_v30 = vpop.f32.mrf.mxu2 }
 0x130   : > { %v1795_v39 = vpop.f32.mrf.mxu3  ;;  %v1557_v53 = vadd.f32 %v1477_v30, %v11578_v55  ;;  %v2722_v55 = vsel %vm11554_vm5, %v2720_v15, %v2721_v5  ;;  %v2198_v26 = vrot.slane %v2196_v54, 4  ;;  %v2375_v30 = vunpack.c.l.b16 %v2194_v52 }
 0x131   : > { %v2479_v4 = vpop.f32.mrf.mxu0  ;;  %v1397_v54 = vpack.c.b16 %v1375_v29, %v1374_v23 }
 0x132   : > { %v1875_v32 = vadd.f32 %v1795_v39, %v1557_v53  ;;  %v2801_v39 = vunpack.c.l.b16 %v2722_v55  ;;  %v9356_v53 = vld [vmem:[%s11196_s12 + $0x8c] sm:$0x1]  ;;  %v2397_v52 = vpack.c.b16 %v2375_v30, %v2374_v10  ;;  %v10809_v10 = vld [vmem:[%s14099_s3 + $0x10] sm:$0xff] }
 0x133   : > { %v2905_v50 = vpop.f32.mrf.mxu1  ;;  %v2215_v59 = vshll.u32 %v9356_v53, 16  ;;  %4640 = vmatpush.bf16.msra.mxu1 %v10809_v10 }
 0x134   : > { %v2557_v9 = vadd.f32 %v2477_v58, %v1875_v32  ;;  %v11053_v58 = vld [vmem:[%s11196_s12 + $0x7c] sm:$0xf]  ;;  %v2202_v32 = vor.u32 %v2201_v16, %v2198_v26  ;;  %v2823_v55 = vpack.c.b16 %v2801_v39, %v2800_v56  ;;  %v2213_v56 = vrot.slane %v2212_v13, 4  ;;  %v9357_v16 = vld [vmem:[%s11196_s12 + $0x90] sm:$0xf] }
 0x135   : > { %v1299_v40 = vrot.slane %v11053_v58, 5  ;;  %v2217_v26 = vrot.slane %v2215_v59, 5  ;;  %v2728_v39 = vrot.slane %v9356_v53, 5  ;;  %v2223_v53 = vshll.u32 %v9357_v16, 16 }
 0x136   : > { %v11932_v15 = vadd.f32 %v2903_v45, %v2557_v9  ;;  %v2725_v9 = vrot.slane %v11911_v63, 5  ;;  %v2203_v29 = vrot.slane %v2202_v32, 4  ;;  %v2233_v32 = vshrl.u32 %v11946_v46, 16 }
 0x137   : > { %v1479_v5 = vpop.f32.mrf.mxu2  ;;  %v1301_v58 = vrot.slane %v1299_v40, 4 }
 0x138   : > { %14109 = vst [vmem:[#allocation5_spill] sm:$0xff] %v11932_v15  ;;  %v1797_v38 = vpop.f32.mrf.mxu3  ;;  %v1558_v20 = vadd.f32 %v1479_v5, %v11607_v25  ;;  %v9126_v15 = vrot.slane %v1186_v31, 9  ;;  %v9430_v25 = vld [vmem:[%s11196_s12 + $0x84] sm:$0xe]  ;;  %v2727_v30 = vrot.slane %v2725_v9, 4  ;;  %v2218_v31 = vsel %vm11230_vm2, %v2213_v56, %v2217_v26 }
 0x139   : > { %v2482_v57 = vpop.f32.mrf.mxu0  ;;  %v9446_v63 = vrot.slane %v9430_v25, 9  ;;  %v2235_v26 = vrot.slane %v2233_v32, 4 }
 0x13a   : > { %v1876_v35 = vadd.f32 %v1797_v38, %v1558_v20  ;;  %v1300_v5 = vsel %vm11554_vm5, %v9126_v15, %v1299_v40  ;;  %v1303_v38 = vsel %vm11554_vm5, %v1301_v58, %v1302_v18  ;;  %v2377_v58 = vunpack.c.l.b16 %v2218_v31 }
 0x13b   : > { %v2908_v45 = vpop.f32.mrf.mxu1  ;;  %v2726_v18 = vsel %vm11554_vm5, %v9446_v63, %v2725_v9 }
 0x13c   : > { %v2558_v23 = vadd.f32 %v2479_v4, %v1876_v35  ;;  %1521 = vmatmul.bf16.gmra.mxu2 %v1397_v54  ;;  %2521 = vmatmul.bf16.gmra.mxu0 %v2397_v52  ;;  %v2208_v54 = vsel %vm11230_vm2, %v2203_v29, %v2207_v21  ;;  %v1376_v21 = vunpack.c.l.b16 %v1300_v5  ;;  %v2802_v29 = vunpack.c.l.b16 %v2726_v18  ;;  %v10721_v5 = vld [vmem:[%s11196_s12 + $0x84] sm:$0xff] }
 0x13d   : > { %1839 = vmatmul.bf16.gmra.mxu3 %v10720_v17  ;;  %v2220_v17 = vshrl.u32 %v9357_v16, 16  ;;  %v2376_v13 = vunpack.c.l.b16 %v2208_v54  ;;  %v9359_v16 = vld [vmem:[%s11196_s12 + $0x98] sm:$0x1] }
 0x13e   : > { %2947 = vmatmul.bf16.gmra.mxu1 %v2823_v55  ;;  %v11948_v60 = vadd.f32 %v2905_v50, %v2558_v23  ;;  %v2229_v50 = vshll.u32 %v11946_v46, 16  ;;  %v1377_v55 = vunpack.c.l.b16 %v1303_v38  ;;  %v2225_v23 = vrot.slane %v2223_v53, 5  ;;  %v1187_v38 = vld [vmem:[%s11196_s12 + $0x84] sm:$0xe] }
 0x13f   : > { %v1482_v35 = vpop.f32.mrf.mxu2  ;;  %v2222_v25 = vrot.slane %v2220_v17, 4  ;;  %v2398_v54 = vpack.c.b16 %v2377_v58, %v2376_v13  ;;  %v2239_v31 = vshll.u32 %v9359_v16, 16  ;;  %v9127_v18 = vrot.slane %v1187_v38, 9  ;;  %v10768_v13 = vld [vmem:[%s14098_s2 + $0x188] sm:$0xff] }
 0x140   : > { %v1800_v4 = vpop.f32.mrf.mxu3  ;;  %v1559_v20 = vadd.f32 %v1482_v35, %v11622_v62  ;;  %v2729_v62 = vsel %vm11554_vm5, %v2727_v30, %v2728_v39  ;;  %v2231_v56 = vrot.slane %v2229_v50, 5  ;;  %v11055_v30 = vld [vmem:[%s11196_s12 + $0x88] sm:$0xf]  ;;  %3218 = vmatpush.bf16.msra.mxu2 %v10768_v13 }
 0x141   : > { %v2484_v15 = vpop.f32.mrf.mxu0  ;;  %v2803_v10 = vunpack.c.l.b16 %v2729_v62  ;;  %v1306_v39 = vrot.slane %v11055_v30, 5  ;;  %v10784_v13 = vld [vmem:[%s14098_s2 + $0x208] sm:$0xff] }
 0x142   : > { %v1877_v52 = vadd.f32 %v1800_v4, %v1559_v20  ;;  %v2226_v20 = vor.u32 %v2225_v23, %v2222_v25  ;;  %v2236_v53 = vor.u32 %v2235_v26, %v2231_v56  ;;  %v2241_v25 = vrot.slane %v2239_v31, 5  ;;  %v9360_v23 = vld [vmem:[%s11196_s12 + $0x9c] sm:$0xf]  ;;  %4326 = vmatpush.bf16.msra.mxu0 %v10784_v13  ;;  %v11058_v13 = vld [vmem:[%s11196_s12 + $0x98] sm:$0x1] }
 0x143   : > { %v2910_v40 = vpop.f32.mrf.mxu1  ;;  %v2824_v17 = vpack.c.b16 %v2803_v10, %v2802_v29  ;;  %v1308_v62 = vrot.slane %v1306_v39, 4  ;;  %v2735_v26 = vrot.slane %v9359_v16, 5  ;;  %v2244_v16 = vshrl.u32 %v9360_v23, 16 }
 0x144   : > { %v2559_v59 = vadd.f32 %v2482_v57, %v1877_v52  ;;  %v1398_v57 = vpack.c.b16 %v1377_v55, %v1376_v21  ;;  %v2732_v52 = vrot.slane %v11946_v46, 5  ;;  %v2227_v55 = vrot.slane %v2226_v20, 4  ;;  %v10776_v46 = vld [vmem:[%s14098_s2 + $0x1c8] sm:$0xff] }
 0x145   : > { %v2237_v58 = vrot.slane %v2236_v53, 4  ;;  %3900 = vmatpush.bf16.msra.mxu3 %v10776_v46  ;;  %v9362_v46 = vld [vmem:[%s11196_s12 + $0xa4] sm:$0x1] }
 0x146   : > { %v11966_v35 = vadd.f32 %v2908_v45, %v2559_v59  ;;  %v11056_v59 = vld [vmem:[%s11196_s12 + $0x8c] sm:$0x1]  ;;  %v2734_v10 = vrot.slane %v2732_v52, 4  ;;  %v2232_v20 = vsel %vm11230_vm2, %v2227_v55, %v2231_v56 }
 0x147   : > { %v1484_v9 = vpop.f32.mrf.mxu2  ;;  %v1309_v30 = vrot.slane %v11056_v59, 5  ;;  %v2378_v59 = vunpack.c.l.b16 %v2232_v20 }
 0x148   : > { %v1802_v63 = vpop.f32.mrf.mxu3  ;;  %v1560_v4 = vadd.f32 %v1484_v9, %v11646_v37  ;;  %v9431_v37 = vld [vmem:[%s11196_s12 + $0x90] sm:$0xe] }
 0x149   : > { %v2487_v32 = vpop.f32.mrf.mxu0  ;;  %v9447_v29 = vrot.slane %v9431_v37, 9 }
 0x14a   : > { %v1878_v50 = vadd.f32 %v1802_v63, %v1560_v4 }
 0x14b   : > { %v2913_v45 = vpop.f32.mrf.mxu1 }
 0x14c   : > { %v2560_v21 = vadd.f32 %v2484_v15, %v1878_v50  ;;  %1526 = vmatmul.bf16.gmra.mxu2 %v1398_v57  ;;  %2526 = vmatmul.bf16.gmra.mxu0 %v2398_v54  ;;  %v11983_v15 = vld [vmem:[%s11196_s12 + $0xa0] sm:$0xf]  ;;  %v1307_v57 = vsel %vm11554_vm5, %v9127_v18, %v1306_v39  ;;  %v2247_v54 = vshll.u32 %v9360_v23, 16  ;;  %v2733_v18 = vsel %vm11554_vm5, %v9447_v29, %v2732_v52 }
 0x14d   : > { %1844 = vmatmul.bf16.gmra.mxu3 %v10721_v5  ;;  %v1310_v5 = vsel %vm11554_vm5, %v1308_v62, %v1309_v30  ;;  %v2257_v53 = vshrl.u32 %v11983_v15, 16  ;;  %v1378_v56 = vunpack.c.l.b16 %v1307_v57 }
 0x14e   : > { %2952 = vmatmul.bf16.gmra.mxu1 %v2824_v17  ;;  %v11985_v9 = vadd.f32 %v2910_v40, %v2560_v21  ;;  %v2242_v40 = vsel %vm11230_vm2, %v2237_v58, %v2241_v25  ;;  %v2253_v17 = vshll.u32 %v11983_v15, 16  ;;  %v1379_v62 = vunpack.c.l.b16 %v1310_v5  ;;  %v10722_v5 = vld [vmem:[%s11196_s12 + $0x90] sm:$0xff] }
 0x14f   : > { %v1487_v63 = vpop.f32.mrf.mxu2  ;;  %v2379_v37 = vunpack.c.l.b16 %v2242_v40  ;;  %v2246_v21 = vrot.slane %v2244_v16, 4  ;;  %v2249_v55 = vrot.slane %v2247_v54, 5  ;;  %v2804_v58 = vunpack.c.l.b16 %v2733_v18 }
 0x150   : > { %v1805_v4 = vpop.f32.mrf.mxu3  ;;  %v1561_v38 = vadd.f32 %v1487_v63, %v11659_v3  ;;  %v2736_v3 = vsel %vm11554_vm5, %v2734_v10, %v2735_v26  ;;  %v2255_v52 = vrot.slane %v2253_v17, 5  ;;  %v2259_v23 = vrot.slane %v2257_v53, 4 }
 0x151   : > { %v2489_v39 = vpop.f32.mrf.mxu0  ;;  %v2805_v25 = vunpack.c.l.b16 %v2736_v3  ;;  %v1399_v57 = vpack.c.b16 %v1379_v62, %v1378_v56  ;;  %v2250_v20 = vor.u32 %v2249_v55, %v2246_v21  ;;  %v2399_v16 = vpack.c.b16 %v2379_v37, %v2378_v59  ;;  %v10808_v59 = vld [vmem:[%s14099_s3 + $0x8] sm:$0xff] }
 0x152   : > { %v1879_v31 = vadd.f32 %v1805_v4, %v1561_v38  ;;  %v1188_v38 = vld [vmem:[%s11196_s12 + $0x90] sm:$0xe]  ;;  %v2260_v40 = vor.u32 %v2259_v23, %v2255_v52  ;;  %v2263_v17 = vshll.u32 %v9362_v46, 16  ;;  %v2739_v18 = vrot.slane %v11983_v15, 5  ;;  %v9363_v55 = vld [vmem:[%s11196_s12 + $0xa8] sm:$0xf]  ;;  %4641 = vmatpush.bf16.msra.mxu1 %v10808_v59 }
 0x153   : > { %v2915_v50 = vpop.f32.mrf.mxu1  ;;  %v2825_v54 = vpack.c.b16 %v2805_v25, %v2804_v58  ;;  %v9128_v3 = vrot.slane %v1188_v38, 9  ;;  %v2251_v62 = vrot.slane %v2250_v20, 4  ;;  %v2742_v25 = vrot.slane %v9362_v46, 5  ;;  %v12020_v23 = vld [vmem:[%s11196_s12 + $0xac] sm:$0xf] }
 0x154   : > { %v2561_v30 = vadd.f32 %v2487_v32, %v1879_v31  ;;  %v11057_v32 = vld [vmem:[%s11196_s12 + $0x94] sm:$0xf]  ;;  %v2261_v37 = vrot.slane %v2260_v40, 4  ;;  %v2265_v21 = vrot.slane %v2263_v17, 5  ;;  %v2741_v58 = vrot.slane %v2739_v18, 4 }
 0x155   : > { %v1313_v63 = vrot.slane %v11057_v32, 5  ;;  %v1316_v32 = vrot.slane %v11058_v13, 5  ;;  %v2256_v38 = vsel %vm11230_vm2, %v2251_v62, %v2255_v52  ;;  %v2268_v20 = vshrl.u32 %v9363_v55, 16 }
 0x156   : > { %v12006_v29 = vadd.f32 %v2913_v45, %v2561_v30  ;;  %v2271_v46 = vshll.u32 %v9363_v55, 16  ;;  %v9365_v55 = vld [vmem:[%s11196_s12 + $0xb0] sm:$0x1] }
 0x157   : > { %v1489_v10 = vpop.f32.mrf.mxu2  ;;  %v1315_v30 = vrot.slane %v1313_v63, 4 }
 0x158   : > { %v1807_v26 = vpop.f32.mrf.mxu3  ;;  %v1562_v4 = vadd.f32 %v1489_v10, %v11689_v48  ;;  %v9432_v48 = vld [vmem:[%s11196_s12 + $0x9c] sm:$0xe] }
 0x159   : > { %v2492_v31 = vpop.f32.mrf.mxu0  ;;  %v9448_v15 = vrot.slane %v9432_v48, 9  ;;  %v2270_v48 = vrot.slane %v2268_v20, 4 }
 0x15a   : > { %v1880_v53 = vadd.f32 %v1807_v26, %v1562_v4  ;;  %v1314_v4 = vsel %vm11554_vm5, %v9128_v3, %v1313_v63 }
 0x15b   : > { %v2918_v45 = vpop.f32.mrf.mxu1  ;;  %v1380_v52 = vunpack.c.l.b16 %v1314_v4  ;;  %v10723_v4 = vld [vmem:[%s11196_s12 + $0x9c] sm:$0xff] }
 0x15c   : > { %v2562_v56 = vadd.f32 %v2489_v39, %v1880_v53  ;;  %1531 = vmatmul.bf16.gmra.mxu2 %v1399_v57  ;;  %2531 = vmatmul.bf16.gmra.mxu0 %v2399_v16  ;;  %v1317_v57 = vsel %vm11554_vm5, %v1315_v30, %v1316_v32  ;;  %v2266_v16 = vsel %vm11230_vm2, %v2261_v37, %v2265_v21  ;;  %v2380_v30 = vunpack.c.l.b16 %v2256_v38 }
 0x15d   : > { %1849 = vmatmul.bf16.gmra.mxu3 %v10722_v5  ;;  %v2740_v53 = vsel %vm11554_vm5, %v9448_v15, %v2739_v18  ;;  %v1381_v3 = vunpack.c.l.b16 %v1317_v57  ;;  %v2381_v32 = vunpack.c.l.b16 %v2266_v16  ;;  %v1189_v57 = vld [vmem:[%s11196_s12 + $0x9c] sm:$0xe]  ;;  %v2287_v16 = vshll.u32 %v9365_v55, 16 }
 0x15e   : > { %2957 = vmatmul.bf16.gmra.mxu1 %v2825_v54  ;;  %v12022_v10 = vadd.f32 %v2915_v50, %v2562_v56  ;;  %v2277_v50 = vshll.u32 %v12020_v23, 16  ;;  %v2281_v54 = vshrl.u32 %v12020_v23, 16  ;;  %v2273_v56 = vrot.slane %v2271_v46, 5 }
 0x15f   : > { %v1492_v39 = vpop.f32.mrf.mxu2  ;;  %v2806_v62 = vunpack.c.l.b16 %v2740_v53  ;;  %v2400_v38 = vpack.c.b16 %v2381_v32, %v2380_v30  ;;  %v9129_v53 = vrot.slane %v1189_v57, 9  ;;  %v10767_v30 = vld [vmem:[%s14098_s2 + $0x180] sm:$0xff] }
 0x160   : > { %v1810_v26 = vpop.f32.mrf.mxu3  ;;  %v1563_v5 = vadd.f32 %v1492_v39, %v11704_v28  ;;  %v2743_v28 = vsel %vm11554_vm5, %v2741_v58, %v2742_v25  ;;  %v2279_v37 = vrot.slane %v2277_v50, 5  ;;  %v2283_v21 = vrot.slane %v2281_v54, 4  ;;  %v11059_v58 = vld [vmem:[%s11196_s12 + $0xa0] sm:$0xf]  ;;  %3219 = vmatpush.bf16.msra.mxu2 %v10767_v30 }
 0x161   : > { %v2494_v63 = vpop.f32.mrf.mxu0  ;;  %v2807_v59 = vunpack.c.l.b16 %v2743_v28  ;;  %v1320_v25 = vrot.slane %v11059_v58, 5  ;;  %v10783_v30 = vld [vmem:[%s14098_s2 + $0x200] sm:$0xff] }
 0x162   : > { %v1881_v40 = vadd.f32 %v1810_v26, %v1563_v5  ;;  %v2274_v5 = vor.u32 %v2273_v56, %v2270_v48  ;;  %v2284_v46 = vor.u32 %v2283_v21, %v2279_v37  ;;  %v2289_v48 = vrot.slane %v2287_v16, 5  ;;  %v9366_v56 = vld [vmem:[%s11196_s12 + $0xb4] sm:$0xf]  ;;  %4327 = vmatpush.bf16.msra.mxu0 %v10783_v30  ;;  %v11062_v30 = vld [vmem:[%s11196_s12 + $0xb0] sm:$0x1] }
 0x163   : > { %v2920_v17 = vpop.f32.mrf.mxu1  ;;  %v2826_v20 = vpack.c.b16 %v2807_v59, %v2806_v62  ;;  %v1322_v28 = vrot.slane %v1320_v25, 4  ;;  %v2749_v21 = vrot.slane %v9365_v55, 5  ;;  %v2292_v55 = vshrl.u32 %v9366_v56, 16 }
 0x164   : > { %v2563_v13 = vadd.f32 %v2492_v31, %v1881_v40  ;;  %v1400_v31 = vpack.c.b16 %v1381_v3, %v1380_v52  ;;  %v2746_v40 = vrot.slane %v12020_v23, 5  ;;  %v2275_v3 = vrot.slane %v2274_v5, 4  ;;  %v10775_v23 = vld [vmem:[%s14098_s2 + $0x1c0] sm:$0xff] }
 0x165   : > { %v2285_v32 = vrot.slane %v2284_v46, 4  ;;  %3901 = vmatpush.bf16.msra.mxu3 %v10775_v23  ;;  %v9368_v23 = vld [vmem:[%s11196_s12 + $0xbc] sm:$0x1] }
 0x166   : > { %v12040_v39 = vadd.f32 %v2918_v45, %v2563_v13  ;;  %v11060_v13 = vld [vmem:[%s11196_s12 + $0xa4] sm:$0x1]  ;;  %v2748_v59 = vrot.slane %v2746_v40, 4  ;;  %v2280_v5 = vsel %vm11230_vm2, %v2275_v3, %v2279_v37 }
 0x167   : > { %v1494_v18 = vpop.f32.mrf.mxu2  ;;  %v1323_v58 = vrot.slane %v11060_v13, 5  ;;  %v2382_v13 = vunpack.c.l.b16 %v2280_v5 }
 0x168   : > { %v1812_v15 = vpop.f32.mrf.mxu3  ;;  %v1564_v26 = vadd.f32 %v1494_v18, %v11728_v7  ;;  %v9433_v7 = vld [vmem:[%s11196_s12 + $0xa8] sm:$0xe] }
 0x169   : > { %v2497_v54 = vpop.f32.mrf.mxu0  ;;  %v9449_v62 = vrot.slane %v9433_v7, 9 }
 0x16a   : > { %v1882_v50 = vadd.f32 %v1812_v15, %v1564_v26 }
 0x16b   : > { %v2923_v45 = vpop.f32.mrf.mxu1 }
 0x16c   : > { %v2564_v52 = vadd.f32 %v2494_v63, %v1882_v50  ;;  %1536 = vmatmul.bf16.gmra.mxu2 %v1400_v31  ;;  %2536 = vmatmul.bf16.gmra.mxu0 %v2400_v38  ;;  %v12057_v63 = vld [vmem:[%s11196_s12 + $0xb8] sm:$0xf]  ;;  %v1321_v31 = vsel %vm11554_vm5, %v9129_v53, %v1320_v25  ;;  %v2295_v38 = vshll.u32 %v9366_v56, 16  ;;  %v2747_v53 = vsel %vm11554_vm5, %v9449_v62, %v2746_v40 }
 0x16d   : > { %1854 = vmatmul.bf16.gmra.mxu3 %v10723_v4  ;;  %v1324_v4 = vsel %vm11554_vm5, %v1322_v28, %v1323_v58  ;;  %v2305_v46 = vshrl.u32 %v12057_v63, 16  ;;  %v1382_v37 = vunpack.c.l.b16 %v1321_v31 }
 0x16e   : > { %2962 = vmatmul.bf16.gmra.mxu1 %v2826_v20  ;;  %v12059_v18 = vadd.f32 %v2920_v17, %v2564_v52  ;;  %v2290_v17 = vsel %vm11230_vm2, %v2285_v32, %v2289_v48  ;;  %v2301_v20 = vshll.u32 %v12057_v63, 16  ;;  %v1383_v28 = vunpack.c.l.b16 %v1324_v4  ;;  %v10724_v4 = vld [vmem:[%s11196_s12 + $0xa8] sm:$0xff] }
 0x16f   : > { %v1497_v15 = vpop.f32.mrf.mxu2  ;;  %v2383_v7 = vunpack.c.l.b16 %v2290_v17  ;;  %v2294_v52 = vrot.slane %v2292_v55, 4  ;;  %v2297_v3 = vrot.slane %v2295_v38, 5  ;;  %v2808_v32 = vunpack.c.l.b16 %v2747_v53 }
 0x170   : > { %v1815_v26 = vpop.f32.mrf.mxu3  ;;  %v1565_v57 = vadd.f32 %v1497_v15, %v11741_v47  ;;  %v2750_v47 = vsel %vm11554_vm5, %v2748_v59, %v2749_v21  ;;  %v2303_v40 = vrot.slane %v2301_v20, 5  ;;  %v2307_v56 = vrot.slane %v2305_v46, 4 }
 0x171   : > { %v2499_v25 = vpop.f32.mrf.mxu0  ;;  %v2809_v48 = vunpack.c.l.b16 %v2750_v47  ;;  %v1401_v31 = vpack.c.b16 %v1383_v28, %v1382_v37  ;;  %v2298_v5 = vor.u32 %v2297_v3, %v2294_v52  ;;  %v2401_v55 = vpack.c.b16 %v2383_v7, %v2382_v13  ;;  %v10807_v13 = vld [vmem:[%s14099_s3] sm:$0xff] }
 0x172   : > { %v1883_v16 = vadd.f32 %v1815_v26, %v1565_v57  ;;  %v1190_v57 = vld [vmem:[%s11196_s12 + $0xa8] sm:$0xe]  ;;  %v2308_v17 = vor.u32 %v2307_v56, %v2303_v40  ;;  %v2311_v20 = vshll.u32 %v9368_v23, 16  ;;  %v2753_v53 = vrot.slane %v12057_v63, 5  ;;  %v9369_v3 = vld [vmem:[%s11196_s12 + $0xc0] sm:$0xf]  ;;  %4642 = vmatpush.bf16.msra.mxu1 %v10807_v13 }
 0x173   : > { %v2925_v50 = vpop.f32.mrf.mxu1  ;;  %v2827_v38 = vpack.c.b16 %v2809_v48, %v2808_v32  ;;  %v9130_v47 = vrot.slane %v1190_v57, 9  ;;  %v2299_v28 = vrot.slane %v2298_v5, 4  ;;  %v2756_v48 = vrot.slane %v9368_v23, 5  ;;  %v12094_v56 = vld [vmem:[%s11196_s12 + $0xc4] sm:$0xf] }
 0x174   : > { %v2565_v58 = vadd.f32 %v2497_v54, %v1883_v16  ;;  %v11061_v54 = vld [vmem:[%s11196_s12 + $0xac] sm:$0xf]  ;;  %v2309_v7 = vrot.slane %v2308_v17, 4  ;;  %v2313_v52 = vrot.slane %v2311_v20, 5  ;;  %v2755_v32 = vrot.slane %v2753_v53, 4 }
 0x175   : > { %v1327_v15 = vrot.slane %v11061_v54, 5  ;;  %v1330_v54 = vrot.slane %v11062_v30, 5  ;;  %v2304_v57 = vsel %vm11230_vm2, %v2299_v28, %v2303_v40  ;;  %v2316_v5 = vshrl.u32 %v9369_v3, 16 }
 0x176   : > { %v12080_v62 = vadd.f32 %v2923_v45, %v2565_v58  ;;  %v2319_v23 = vshll.u32 %v9369_v3, 16  ;;  %v9371_v3 = vld [vmem:[%s11196_s12 + $0xc8] sm:$0x1] }
 0x177   : > { %v1499_v59 = vpop.f32.mrf.mxu2  ;;  %v1329_v58 = vrot.slane %v1327_v15, 4 }
 0x178   : > { %v1817_v21 = vpop.f32.mrf.mxu3  ;;  %v1566_v26 = vadd.f32 %v1499_v59, %v11771_v27  ;;  %v9434_v27 = vld [vmem:[%s11196_s12 + $0xb4] sm:$0xe] }
 0x179   : > { %v2502_v16 = vpop.f32.mrf.mxu0  ;;  %v9450_v63 = vrot.slane %v9434_v27, 9  ;;  %v2318_v27 = vrot.slane %v2316_v5, 4 }
 0x17a   : > { %v1884_v46 = vadd.f32 %v1817_v21, %v1566_v26  ;;  %v1328_v26 = vsel %vm11554_vm5, %v9130_v47, %v1327_v15 }
 0x17b   : > { %v2928_v45 = vpop.f32.mrf.mxu1  ;;  %v1384_v40 = vunpack.c.l.b16 %v1328_v26  ;;  %v10725_v26 = vld [vmem:[%s11196_s12 + $0xb4] sm:$0xff] }
 0x17c   : > { %v2566_v37 = vadd.f32 %v2499_v25, %v1884_v46  ;;  %1541 = vmatmul.bf16.gmra.mxu2 %v1401_v31  ;;  %2541 = vmatmul.bf16.gmra.mxu0 %v2401_v55  ;;  %v1331_v31 = vsel %vm11554_vm5, %v1329_v58, %v1330_v54  ;;  %v2314_v55 = vsel %vm11230_vm2, %v2309_v7, %v2313_v52  ;;  %v2384_v58 = vunpack.c.l.b16 %v2304_v57 }
 0x17d   : > { %1859 = vmatmul.bf16.gmra.mxu3 %v10724_v4  ;;  %v2754_v46 = vsel %vm11554_vm5, %v9450_v63, %v2753_v53  ;;  %v1385_v47 = vunpack.c.l.b16 %v1331_v31  ;;  %v2385_v54 = vunpack.c.l.b16 %v2314_v55  ;;  %v1191_v31 = vld [vmem:[%s11196_s12 + $0xb4] sm:$0xe]  ;;  %v2335_v55 = vshll.u32 %v9371_v3, 16 }
 0x17e   : > { %2967 = vmatmul.bf16.gmra.mxu1 %v2827_v38  ;;  %v12096_v59 = vadd.f32 %v2925_v50, %v2566_v37  ;;  %v2325_v50 = vshll.u32 %v12094_v56, 16  ;;  %v2329_v38 = vshrl.u32 %v12094_v56, 16  ;;  %v2321_v37 = vrot.slane %v2319_v23, 5 }
 0x17f   : > { %v1502_v25 = vpop.f32.mrf.mxu2  ;;  %v2810_v28 = vunpack.c.l.b16 %v2754_v46  ;;  %v2402_v57 = vpack.c.b16 %v2385_v54, %v2384_v58  ;;  %v9131_v46 = vrot.slane %v1191_v31, 9  ;;  %v10822_v58 = vld [vmem:[%s14099_s3 + $0x78] sm:$0xff] }
 0x180   : > { %v1820_v21 = vpop.f32.mrf.mxu3  ;;  %v1567_v4 = vadd.f32 %v1502_v25, %v11786_v2  ;;  %v2757_v2 = vsel %vm11554_vm5, %v2755_v32, %v2756_v48  ;;  %v2327_v7 = vrot.slane %v2325_v50, 5  ;;  %v2331_v52 = vrot.slane %v2329_v38, 4  ;;  %v11063_v32 = vld [vmem:[%s11196_s12 + $0xb8] sm:$0xf]  ;;  %5317 = vmatpush.bf16.msrb.mxu2 %v10822_v58 }
 0x181   : > { %v2504_v15 = vpop.f32.mrf.mxu0  ;;  %v2811_v13 = vunpack.c.l.b16 %v2757_v2  ;;  %v1334_v48 = vrot.slane %v11063_v32, 5  ;;  %v10854_v58 = vld [vmem:[%s14099_s3 + $0xf8] sm:$0xff] }
 0x182   : > { %v1885_v17 = vadd.f32 %v1820_v21, %v1567_v4  ;;  %v2322_v4 = vor.u32 %v2321_v37, %v2318_v27  ;;  %v2332_v23 = vor.u32 %v2331_v52, %v2327_v7  ;;  %v2337_v27 = vrot.slane %v2335_v55, 5  ;;  %v9644_v37 = vld [vmem:[%s11196_s12 + $0x18] sm:$0xf]  ;;  %6059 = vmatpush.bf16.msrb.mxu0 %v10854_v58 }
 0x183   : > { %v2930_v20 = vpop.f32.mrf.mxu1  ;;  %v2828_v5 = vpack.c.b16 %v2811_v13, %v2810_v28  ;;  %v1336_v2 = vrot.slane %v1334_v48, 4  ;;  %v2763_v52 = vrot.slane %v9371_v3, 5  ;;  %v3382_v3 = vshrl.u32 %v9644_v37, 16 }
 0x184   : > { %v2567_v30 = vadd.f32 %v2502_v16, %v1885_v17  ;;  %v1402_v16 = vpack.c.b16 %v1385_v47, %v1384_v40  ;;  %v2760_v17 = vrot.slane %v12094_v56, 5  ;;  %v2323_v47 = vrot.slane %v2322_v4, 4  ;;  %v10830_v56 = vld [vmem:[%s14099_s3 + $0xb8] sm:$0xff] }
 0x185   : > { %v2333_v54 = vrot.slane %v2332_v23, 4  ;;  %5743 = vmatpush.bf16.msrb.mxu3 %v10830_v56 }
 0x186   : > { %v12114_v25 = vadd.f32 %v2928_v45, %v2567_v30  ;;  %v11064_v30 = vld [vmem:[%s11196_s12 + $0xbc] sm:$0x1]  ;;  %v2762_v13 = vrot.slane %v2760_v17, 4  ;;  %v2328_v4 = vsel %vm11230_vm2, %v2323_v47, %v2327_v7 }
 0x187   : > { %v1504_v53 = vpop.f32.mrf.mxu2  ;;  %v1337_v32 = vrot.slane %v11064_v30, 5  ;;  %v2386_v30 = vunpack.c.l.b16 %v2328_v4 }
 0x188   : > { %v1822_v63 = vpop.f32.mrf.mxu3  ;;  %v1568_v21 = vadd.f32 %v1504_v53, %v11810_v0  ;;  %v9435_v0 = vld [vmem:[%s11196_s12 + $0xc0] sm:$0xe] }
 0x189   : > { %v2507_v38 = vpop.f32.mrf.mxu0  ;;  %v9451_v28 = vrot.slane %v9435_v0, 9 }
 0x18a   : > { %v1886_v50 = vadd.f32 %v1822_v63, %v1568_v21 }
 0x18b   : > { %v2933_v45 = vpop.f32.mrf.mxu1 }
 0x18c   : > { %v2568_v40 = vadd.f32 %v2504_v15, %v1886_v50  ;;  %1546 = vmatmul.bf16.gmra.mxu2 %v1402_v16  ;;  %2546 = vmatmul.bf16.gmra.mxu0 %v2402_v57  ;;  %v12131_v15 = vld [vmem:[%s11196_s12 + $0x1c] sm:$0xf]  ;;  %v1335_v16 = vsel %vm11554_vm5, %v9131_v46, %v1334_v48  ;;  %v3385_v57 = vshll.u32 %v9644_v37, 16  ;;  %v2761_v46 = vsel %vm11554_vm5, %v9451_v28, %v2760_v17  ;;  %v9646_v17 = vld [vmem:[%s11196_s12 + $0x20] sm:$0x1] }
 0x18d   : > { %1864 = vmatmul.bf16.gmra.mxu3 %v10725_v26  ;;  %v1338_v26 = vsel %vm11554_vm5, %v1336_v2, %v1337_v32  ;;  %v3395_v23 = vshrl.u32 %v12131_v15, 16  ;;  %v1386_v7 = vunpack.c.l.b16 %v1335_v16 }
 0x18e   : > { %2972 = vmatmul.bf16.gmra.mxu1 %v2828_v5  ;;  %v12133_v53 = vadd.f32 %v2930_v20, %v2568_v40  ;;  %v2338_v20 = vsel %vm11230_vm2, %v2333_v54, %v2337_v27  ;;  %v3391_v5 = vshll.u32 %v12131_v15, 16  ;;  %v1387_v2 = vunpack.c.l.b16 %v1338_v26 }
 0x18f   : > { %v1507_v63 = vpop.f32.mrf.mxu2  ;;  %v2387_v0 = vunpack.c.l.b16 %v2338_v20  ;;  %v3384_v40 = vrot.slane %v3382_v3, 4  ;;  %v3387_v47 = vrot.slane %v3385_v57, 5  ;;  %v2812_v54 = vunpack.c.l.b16 %v2761_v46 }
 0x190   : > { %v1825_v21 = vpop.f32.mrf.mxu3  ;;  %v1569_v31 = vadd.f32 %v1507_v63, %v11823_v43  ;;  %v2764_v43 = vsel %vm11554_vm5, %v2762_v13, %v2763_v52  ;;  %v3393_v37 = vrot.slane %v3391_v5, 5  ;;  %v3397_v56 = vrot.slane %v3395_v23, 4 }
 0x191   : > { %v2509_v48 = vpop.f32.mrf.mxu0  ;;  %v2813_v27 = vunpack.c.l.b16 %v2764_v43  ;;  %v1403_v63 = vpack.c.b16 %v1387_v2, %v1386_v7  ;;  %v3388_v16 = vor.u32 %v3387_v47, %v3384_v40  ;;  %v2403_v26 = vpack.c.b16 %v2387_v0, %v2386_v30  ;;  %v9647_v2 = vld [vmem:[%s11196_s12 + $0x24] sm:$0xf] }
 0x192   : > { %v1887_v55 = vadd.f32 %v1825_v21, %v1569_v31  ;;  %v10726_v21 = vld [vmem:[%s11196_s12 + $0xc0] sm:$0xff]  ;;  %v3398_v4 = vor.u32 %v3397_v56, %v3393_v37  ;;  %v3401_v3 = vshll.u32 %v9646_v17, 16  ;;  %v4081_v23 = vrot.slane %v12131_v15, 5  ;;  %v12165_v15 = vld [vmem:[%s11196_s12 + $0x28] sm:$0xf] }
 0x193   : > { %v2935_v50 = vpop.f32.mrf.mxu1  ;;  %v2829_v31 = vpack.c.b16 %v2813_v27, %v2812_v54  ;;  %v3389_v46 = vrot.slane %v3388_v16, 4  ;;  %v4084_v0 = vrot.slane %v9646_v17, 5  ;;  %v3406_v27 = vshrl.u32 %v9647_v2, 16 }
 0x194   : > { %v2569_v32 = vadd.f32 %v2507_v38, %v1887_v55  ;;  %v3399_v43 = vrot.slane %v3398_v4, 4  ;;  %v3403_v7 = vrot.slane %v3401_v3, 5  ;;  %v3409_v56 = vshll.u32 %v9647_v2, 16 }
 0x195   : > { %v3394_v54 = vsel %vm11230_vm2, %v3389_v46, %v3393_v37  ;;  %v3419_v17 = vshrl.u32 %v12165_v15, 16 }
 0x196   : > { %v12154_v28 = vadd.f32 %v2933_v45, %v2569_v32  ;;  %v9740_v45 = vld [vmem:[%s11196_s12 + $0x18] sm:$0xe]  ;;  %v4083_v32 = vrot.slane %v4081_v23, 4  ;;  %v3411_v4 = vrot.slane %v3409_v56, 5  ;;  %v4088_v56 = vrot.slane %v12165_v15, 5 }
 0x197   : > { %v1509_v13 = vpop.f32.mrf.mxu2  ;;  %v9756_v30 = vrot.slane %v9740_v45, 9 }
 0x198   : > { %v1827_v52 = vpop.f32.mrf.mxu3  ;;  %v1570_v38 = vadd.f32 %v1509_v13, %v11853_v12  ;;  %v10862_v12 = vld [vmem:[%s14099_s3 + $0x138] sm:$0xff]  ;;  %v3404_v13 = vsel %vm11230_vm2, %v3399_v43, %v3403_v7  ;;  %v4085_v37 = vsel %vm11554_vm5, %v4083_v32, %v4084_v0  ;;  %v10791_v0 = vld [vmem:[%s12185_s23] sm:$0xff] }
 0x199   : > { %v2512_v20 = vpop.f32.mrf.mxu0  ;;  %6741 = vmatpush.bf16.msrb.mxu1 %v10862_v12  ;;  %v10751_v7 = vld [vmem:[%s11196_s12 + $0x18] sm:$0xff] }
 0x19a   : > { %v1888_v57 = vadd.f32 %v1827_v52, %v1570_v38  ;;  %v3415_v52 = vshll.u32 %v12165_v15, 16 }
 0x19b   : > { %v2938_v5 = vpop.f32.mrf.mxu1 }
 0x19c   : > { %v2570_v55 = vadd.f32 %v2509_v48, %v1888_v57  ;;  %1551 = vmatmul.bf16.gmra.mxu2 %v1403_v63  ;;  %2551 = vmatmul.bf16.gmra.mxu0 %v2403_v26  ;;  %v3783_v26 = vunpack.c.l.b16 %v3404_v13  ;;  %v4209_v57 = vunpack.c.l.b16 %v4085_v37  ;;  %v3417_v45 = vrot.slane %v3415_v52, 5  ;;  %v10829_v37 = vld [vmem:[%s14099_s3 + $0xb0] sm:$0xff] }
 0x19d   : > { %1869 = vmatmul.bf16.gmra.mxu3 %v10726_v21  ;;  %v3782_v21 = vunpack.c.l.b16 %v3394_v54 }
 0x19e   : > { %2977 = vmatmul.bf16.gmra.mxu1 %v2829_v31  ;;  %v12167_v40 = vadd.f32 %v2935_v50, %v2570_v55  ;;  %v3408_v31 = vrot.slane %v3406_v27, 4  ;;  %v3421_v55 = vrot.slane %v3419_v17, 4  ;;  %5744 = vmatpush.bf16.msrb.mxu3 %v10829_v37  ;;  %v10752_v37 = vld [vmem:[%s11196_s12 + $0x24] sm:$0xff] }
 0x19f   : > { %v1512_v48 = vpop.f32.mrf.mxu2  ;;  %v3814_v2 = vpack.c.b16 %v3783_v26, %v3782_v21  ;;  %v4090_v21 = vrot.slane %v4088_v56, 4 }
 0x1a0   : > { %v1830_v47 = vpop.f32.mrf.mxu3  ;;  %v1571_v58 = vadd.f32 %v1512_v48, %v11865_v14  ;;  %v4082_v14 = vsel %vm11554_vm5, %v9756_v30, %v4081_v23  ;;  %v9649_v23 = vld [vmem:[%s11196_s12 + $0x2c] sm:$0x1]  ;;  %v3412_v30 = vor.u32 %v3411_v4, %v3408_v31  ;;  %v3422_v48 = vor.u32 %v3421_v55, %v3417_v45 }
 0x1a1   : > { %v2514_v38 = vpop.f32.mrf.mxu0  ;;  %v4208_v3 = vunpack.c.l.b16 %v4082_v14  ;;  %v9650_v14 = vld [vmem:[%s11196_s12 + $0x30] sm:$0xf] }
 0x1a2   : > { %v1889_v50 = vadd.f32 %v1830_v47, %v1571_v58  ;;  %v3425_v47 = vshll.u32 %v9649_v23, 16  ;;  %v3413_v52 = vrot.slane %v3412_v30, 4  ;;  %v3423_v17 = vrot.slane %v3422_v48, 4 }
 0x1a3   : > { %v2940_v63 = vpop.f32.mrf.mxu1  ;;  %v4240_v32 = vpack.c.b16 %v4209_v57, %v4208_v3  ;;  %v3430_v55 = vshrl.u32 %v9650_v14, 16 }
 0x1a4   : > { %v2571_v16 = vadd.f32 %v2512_v20, %v1889_v50  ;;  %v3427_v50 = vrot.slane %v3425_v47, 5  ;;  %v3418_v57 = vsel %vm11230_vm2, %v3413_v52, %v3417_v45 }
 0x1a5   : > { %v3784_v45 = vunpack.c.l.b16 %v3418_v57  ;;  %v3432_v48 = vrot.slane %v3430_v55, 4 }
 0x1a6   : > { %v12188_v46 = vadd.f32 %v2938_v5, %v2571_v16  ;;  %v9741_v5 = vld [vmem:[%s11196_s12 + $0x24] sm:$0xe]  ;;  %v4091_v16 = vrot.slane %v9649_v23, 5 }
 0x1a7   : > { %v1514_v12 = vpop.f32.mrf.mxu2  ;;  %v9757_v15 = vrot.slane %v9741_v5, 9 }
 0x1a8   : > { %v1832_v20 = vpop.f32.mrf.mxu3  ;;  %v1572_v43 = vadd.f32 %v1514_v12, %v11892_v6  ;;  %v10821_v6 = vld [vmem:[%s14099_s3 + $0x70] sm:$0xff]  ;;  %v3433_v12 = vshll.u32 %v9650_v14, 16 }
 0x1a9   : > { %v2517_v54 = vpop.f32.mrf.mxu0  ;;  %5318 = vmatpush.bf16.msrb.mxu2 %v10821_v6  ;;  %v4089_v30 = vsel %vm11554_vm5, %v9757_v15, %v4088_v56 }
 0x1aa   : > { %v1890_v58 = vadd.f32 %v1832_v20, %v1572_v43  ;;  %v3428_v20 = vsel %vm11230_vm2, %v3423_v17, %v3427_v50  ;;  %v3435_v47 = vrot.slane %v3433_v12, 5  ;;  %v4210_v5 = vunpack.c.l.b16 %v4089_v30  ;;  %v9652_v17 = vld [vmem:[%s11196_s12 + $0x38] sm:$0x1] }
 0x1ab   : > { %v2943_v27 = vpop.f32.mrf.mxu1 }
 0x1ac   : > { %v2572_v13 = vadd.f32 %v2514_v38, %v1890_v58  ;;  %3220 = vmatmul.bf16.vlgmr.msra.gmra.mxu2 %v10751_v7  ;;  %4328 = vmatmul.bf16.vlgmr.msra.gmra.mxu0 %v4240_v32  ;;  %v12203_v38 = vld [vmem:[%s11196_s12 + $0x34] sm:$0xf] }
 0x1ad   : > { %3902 = vmatmul.bf16.vlgmr.msra.gmra.mxu3 %v3814_v2  ;;  %v3439_v23 = vshll.u32 %v12203_v38, 16  ;;  %v3443_v43 = vshrl.u32 %v12203_v38, 16  ;;  %v10853_v58 = vld [vmem:[%s14099_s3 + $0xf0] sm:$0xff] }
 0x1ae   : > { %4643 = vmatmul.bf16.vlgmr.msra.gmra.mxu1 %v10791_v0  ;;  %v12205_v26 = vadd.f32 %v2940_v63, %v2572_v13  ;;  %v3785_v0 = vunpack.c.l.b16 %v3428_v20  ;;  %6060 = vmatpush.bf16.msrb.mxu0 %v10853_v58  ;;  %v4095_v20 = vrot.slane %v12203_v38, 5  ;;  %v12234_v38 = vld [vmem:[%s11196_s12 + $0x40] sm:$0xf] }
 0x1af   : > { %v1517_v31 = vpop.f32.mrf.mxu2  ;;  %v3441_v52 = vrot.slane %v3439_v23, 5  ;;  %v3445_v6 = vrot.slane %v3443_v43, 4 }
 0x1b0   : > { %v1835_v4 = vpop.f32.mrf.mxu3  ;;  %v1573_v3 = vadd.f32 %v1517_v31, %v11597_v11  ;;  %v4092_v11 = vsel %vm11554_vm5, %v4090_v21, %v4091_v16  ;;  %v3815_v15 = vpack.c.b16 %v3785_v0, %v3784_v45  ;;  %v3436_v21 = vor.u32 %v3435_v47, %v3432_v48  ;;  %v10792_v31 = vld [vmem:[%s12185_s23 + $0xc] sm:$0xff] }
 0x1b1   : > { %v2519_v7 = vpop.f32.mrf.mxu0  ;;  %v4211_v13 = vunpack.c.l.b16 %v4092_v11  ;;  %v9653_v11 = vld [vmem:[%s11196_s12 + $0x3c] sm:$0xf]  ;;  %v4098_v0 = vrot.slane %v9652_v17, 5 }
 0x1b2   : > { %v1891_v63 = vadd.f32 %v1835_v4, %v1573_v3  ;;  %v3446_v4 = vor.u32 %v3445_v6, %v3441_v52  ;;  %v3449_v3 = vshll.u32 %v9652_v17, 16  ;;  %v3437_v43 = vrot.slane %v3436_v21, 4 }
 0x1b3   : > { %v2945_v2 = vpop.f32.mrf.mxu1  ;;  %v4241_v16 = vpack.c.b16 %v4211_v13, %v4210_v5  ;;  %v3454_v13 = vshrl.u32 %v9653_v11, 16  ;;  %v3457_v6 = vshll.u32 %v9653_v11, 16  ;;  %v3467_v17 = vshrl.u32 %v12234_v38, 16  ;;  %v10753_v11 = vld [vmem:[%s11196_s12 + $0x30] sm:$0xff] }
 0x1b4   : > { %v2573_v32 = vadd.f32 %v2517_v54, %v1891_v63  ;;  %v3447_v63 = vrot.slane %v3446_v4, 4  ;;  %v3451_v30 = vrot.slane %v3449_v3, 5  ;;  %v3442_v5 = vsel %vm11230_vm2, %v3437_v43, %v3441_v52  ;;  %v9655_v43 = vld [vmem:[%s11196_s12 + $0x44] sm:$0x1] }
 0x1b5   : > { %v3786_v52 = vunpack.c.l.b16 %v3442_v5  ;;  %v3459_v4 = vrot.slane %v3457_v6, 5  ;;  %v4102_v6 = vrot.slane %v12234_v38, 5 }
 0x1b6   : > { %v12222_v56 = vadd.f32 %v2943_v27, %v2573_v32  ;;  %v9742_v27 = vld [vmem:[%s11196_s12 + $0x30] sm:$0xe]  ;;  %v4097_v32 = vrot.slane %v4095_v20, 4 }
 0x1b7   : > { %v1519_v50 = vpop.f32.mrf.mxu2  ;;  %v9758_v45 = vrot.slane %v9742_v27, 9 }
 0x1b8   : > { %v1837_v14 = vpop.f32.mrf.mxu3  ;;  %v1574_v54 = vadd.f32 %v1519_v50, %v11613_v44  ;;  %v10861_v44 = vld [vmem:[%s14099_s3 + $0x130] sm:$0xff]  ;;  %v3452_v50 = vsel %vm11230_vm2, %v3447_v63, %v3451_v30 }
 0x1b9   : > { %v2522_v55 = vpop.f32.mrf.mxu0  ;;  %6742 = vmatpush.bf16.msrb.mxu1 %v10861_v44 }
 0x1ba   : > { %v1892_v57 = vadd.f32 %v1837_v14, %v1574_v54  ;;  %v3463_v14 = vshll.u32 %v12234_v38, 16 }
 0x1bb   : > { %v2948_v12 = vpop.f32.mrf.mxu1 }
 0x1bc   : > { %v2574_v23 = vadd.f32 %v2519_v7, %v1892_v57  ;;  %3225 = vmatmul.bf16.gmra.mxu2 %v10752_v37  ;;  %4333 = vmatmul.bf16.gmra.mxu0 %v4241_v16  ;;  %v3787_v16 = vunpack.c.l.b16 %v3452_v50  ;;  %v3465_v27 = vrot.slane %v3463_v14, 5 }
 0x1bd   : > { %3907 = vmatmul.bf16.gmra.mxu3 %v3815_v15  ;;  %v4096_v15 = vsel %vm11554_vm5, %v9758_v45, %v4095_v20 }
 0x1be   : > { %4648 = vmatmul.bf16.gmra.mxu1 %v10792_v31  ;;  %v12236_v48 = vadd.f32 %v2945_v2, %v2574_v23  ;;  %v3456_v31 = vrot.slane %v3454_v13, 4  ;;  %v4212_v3 = vunpack.c.l.b16 %v4096_v15  ;;  %v3469_v23 = vrot.slane %v3467_v17, 4  ;;  %v9656_v15 = vld [vmem:[%s11196_s12 + $0x48] sm:$0xf] }
 0x1bf   : > { %v1522_v7 = vpop.f32.mrf.mxu2  ;;  %v3816_v45 = vpack.c.b16 %v3787_v16, %v3786_v52  ;;  %v4104_v52 = vrot.slane %v4102_v6, 4 }
 0x1c0   : > { %v1840_v47 = vpop.f32.mrf.mxu3  ;;  %v1575_v58 = vadd.f32 %v1522_v7, %v11632_v24  ;;  %v4099_v24 = vsel %vm11554_vm5, %v4097_v32, %v4098_v0  ;;  %v3460_v32 = vor.u32 %v3459_v4, %v3456_v31  ;;  %v10793_v0 = vld [vmem:[%s12185_s23 + $0x18] sm:$0xff]  ;;  %v3470_v7 = vor.u32 %v3469_v23, %v3465_v27 }
 0x1c1   : > { %v2524_v2 = vpop.f32.mrf.mxu0  ;;  %v4213_v57 = vunpack.c.l.b16 %v4099_v24  ;;  %v10828_v24 = vld [vmem:[%s14099_s3 + $0xa8] sm:$0xff]  ;;  %v3478_v23 = vshrl.u32 %v9656_v15, 16 }
 0x1c2   : > { %v1893_v54 = vadd.f32 %v1840_v47, %v1575_v58  ;;  %v3473_v47 = vshll.u32 %v9655_v43, 16  ;;  %v3461_v14 = vrot.slane %v3460_v32, 4  ;;  %v3471_v17 = vrot.slane %v3470_v7, 4  ;;  %5745 = vmatpush.bf16.msrb.mxu3 %v10828_v24  ;;  %v10754_v24 = vld [vmem:[%s11196_s12 + $0x3c] sm:$0xff] }
 0x1c3   : > { %v2950_v37 = vpop.f32.mrf.mxu1  ;;  %v3480_v7 = vrot.slane %v3478_v23, 4 }
 0x1c4   : > { %v2575_v21 = vadd.f32 %v2522_v55, %v1893_v54  ;;  %v4242_v55 = vpack.c.b16 %v4213_v57, %v4212_v3  ;;  %v3475_v54 = vrot.slane %v3473_v47, 5  ;;  %v3466_v57 = vsel %vm11230_vm2, %v3461_v14, %v3465_v27 }
 0x1c5   : > { %v3788_v27 = vunpack.c.l.b16 %v3466_v57 }
 0x1c6   : > { %v12250_v44 = vadd.f32 %v2948_v12, %v2575_v21  ;;  %v9743_v12 = vld [vmem:[%s11196_s12 + $0x3c] sm:$0xe]  ;;  %v4105_v21 = vrot.slane %v9655_v43, 5 }
 0x1c7   : > { %v1524_v63 = vpop.f32.mrf.mxu2  ;;  %v9759_v38 = vrot.slane %v9743_v12, 9 }
 0x1c8   : > { %v1842_v20 = vpop.f32.mrf.mxu3  ;;  %v1576_v30 = vadd.f32 %v1524_v63, %v11654_v61  ;;  %v10820_v61 = vld [vmem:[%s14099_s3 + $0x68] sm:$0xff]  ;;  %v3481_v63 = vshll.u32 %v9656_v15, 16 }
 0x1c9   : > { %v2527_v5 = vpop.f32.mrf.mxu0  ;;  %5319 = vmatpush.bf16.msrb.mxu2 %v10820_v61  ;;  %v4103_v32 = vsel %vm11554_vm5, %v9759_v38, %v4102_v6 }
 0x1ca   : > { %v1894_v58 = vadd.f32 %v1842_v20, %v1576_v30  ;;  %v3476_v20 = vsel %vm11230_vm2, %v3471_v17, %v3475_v54  ;;  %v3483_v47 = vrot.slane %v3481_v63, 5  ;;  %v4214_v12 = vunpack.c.l.b16 %v4103_v32  ;;  %v9658_v17 = vld [vmem:[%s11196_s12 + $0x50] sm:$0x1] }
 0x1cb   : > { %v2953_v13 = vpop.f32.mrf.mxu1 }
 0x1cc   : > { %v2576_v50 = vadd.f32 %v2524_v2, %v1894_v58  ;;  %3230 = vmatmul.bf16.gmra.mxu2 %v10753_v11  ;;  %4338 = vmatmul.bf16.gmra.mxu0 %v4242_v55  ;;  %v12265_v2 = vld [vmem:[%s11196_s12 + $0x4c] sm:$0xf] }
 0x1cd   : > { %3912 = vmatmul.bf16.gmra.mxu3 %v3816_v45  ;;  %v3487_v43 = vshll.u32 %v12265_v2, 16  ;;  %v3491_v30 = vshrl.u32 %v12265_v2, 16  ;;  %v10852_v58 = vld [vmem:[%s14099_s3 + $0xe8] sm:$0xff] }
 0x1ce   : > { %4653 = vmatmul.bf16.gmra.mxu1 %v10793_v0  ;;  %v12267_v16 = vadd.f32 %v2950_v37, %v2576_v50  ;;  %v3789_v0 = vunpack.c.l.b16 %v3476_v20  ;;  %6061 = vmatpush.bf16.msrb.mxu0 %v10852_v58  ;;  %v4109_v20 = vrot.slane %v12265_v2, 5  ;;  %v12296_v2 = vld [vmem:[%s11196_s12 + $0x58] sm:$0xf] }
 0x1cf   : > { %v1527_v31 = vpop.f32.mrf.mxu2  ;;  %v3489_v14 = vrot.slane %v3487_v43, 5  ;;  %v3493_v61 = vrot.slane %v3491_v30, 4 }
 0x1d0   : > { %v1845_v4 = vpop.f32.mrf.mxu3  ;;  %v1577_v3 = vadd.f32 %v1527_v31, %v11679_v34  ;;  %v4106_v34 = vsel %vm11554_vm5, %v4104_v52, %v4105_v21  ;;  %v3817_v38 = vpack.c.b16 %v3789_v0, %v3788_v27  ;;  %v3484_v52 = vor.u32 %v3483_v47, %v3480_v7  ;;  %v10794_v31 = vld [vmem:[%s12185_s23 + $0x24] sm:$0xff] }
 0x1d1   : > { %v2529_v11 = vpop.f32.mrf.mxu0  ;;  %v4215_v50 = vunpack.c.l.b16 %v4106_v34  ;;  %v9659_v34 = vld [vmem:[%s11196_s12 + $0x54] sm:$0xf]  ;;  %v4112_v0 = vrot.slane %v9658_v17, 5 }
 0x1d2   : > { %v1895_v37 = vadd.f32 %v1845_v4, %v1577_v3  ;;  %v3494_v4 = vor.u32 %v3493_v61, %v3489_v14  ;;  %v3497_v3 = vshll.u32 %v9658_v17, 16  ;;  %v3485_v30 = vrot.slane %v3484_v52, 4 }
 0x1d3   : > { %v2955_v45 = vpop.f32.mrf.mxu1  ;;  %v4243_v21 = vpack.c.b16 %v4215_v50, %v4214_v12  ;;  %v3502_v50 = vshrl.u32 %v9659_v34, 16  ;;  %v3505_v61 = vshll.u32 %v9659_v34, 16  ;;  %v3515_v17 = vshrl.u32 %v12296_v2, 16  ;;  %v10755_v34 = vld [vmem:[%s11196_s12 + $0x48] sm:$0xff] }
 0x1d4   : > { %v2577_v55 = vadd.f32 %v2527_v5, %v1895_v37  ;;  %v3495_v37 = vrot.slane %v3494_v4, 4  ;;  %v3499_v32 = vrot.slane %v3497_v3, 5  ;;  %v3490_v12 = vsel %vm11230_vm2, %v3485_v30, %v3489_v14  ;;  %v9661_v30 = vld [vmem:[%s11196_s12 + $0x5c] sm:$0x1] }
 0x1d5   : > { %v3790_v14 = vunpack.c.l.b16 %v3490_v12  ;;  %v3507_v4 = vrot.slane %v3505_v61, 5  ;;  %v4116_v61 = vrot.slane %v12296_v2, 5 }
 0x1d6   : > { %v12284_v6 = vadd.f32 %v2953_v13, %v2577_v55  ;;  %v9744_v13 = vld [vmem:[%s11196_s12 + $0x48] sm:$0xe]  ;;  %v4111_v55 = vrot.slane %v4109_v20, 4 }
 0x1d7   : > { %v1529_v54 = vpop.f32.mrf.mxu2  ;;  %v9760_v27 = vrot.slane %v9744_v13, 9 }
 0x1d8   : > { %v1847_v15 = vpop.f32.mrf.mxu3  ;;  %v1578_v5 = vadd.f32 %v1529_v54, %v11695_v8  ;;  %v10860_v8 = vld [vmem:[%s14099_s3 + $0x128] sm:$0xff]  ;;  %v3500_v54 = vsel %vm11230_vm2, %v3495_v37, %v3499_v32 }
 0x1d9   : > { %v2532_v23 = vpop.f32.mrf.mxu0  ;;  %6743 = vmatpush.bf16.msrb.mxu1 %v10860_v8 }
 0x1da   : > { %v1896_v57 = vadd.f32 %v1847_v15, %v1578_v5  ;;  %v3511_v15 = vshll.u32 %v12296_v2, 16 }
 0x1db   : > { %v2958_v63 = vpop.f32.mrf.mxu1 }
 0x1dc   : > { %v2578_v43 = vadd.f32 %v2529_v11, %v1896_v57  ;;  %3235 = vmatmul.bf16.gmra.mxu2 %v10754_v24  ;;  %4343 = vmatmul.bf16.gmra.mxu0 %v4243_v21  ;;  %v3791_v21 = vunpack.c.l.b16 %v3500_v54  ;;  %v3513_v13 = vrot.slane %v3511_v15, 5 }
 0x1dd   : > { %3917 = vmatmul.bf16.gmra.mxu3 %v3817_v38  ;;  %v4110_v38 = vsel %vm11554_vm5, %v9760_v27, %v4109_v20 }
 0x1de   : > { %4658 = vmatmul.bf16.gmra.mxu1 %v10794_v31  ;;  %v12298_v7 = vadd.f32 %v2955_v45, %v2578_v43  ;;  %v3504_v31 = vrot.slane %v3502_v50, 4  ;;  %v4216_v3 = vunpack.c.l.b16 %v4110_v38  ;;  %v3517_v43 = vrot.slane %v3515_v17, 4  ;;  %v9662_v38 = vld [vmem:[%s11196_s12 + $0x60] sm:$0xf] }
 0x1df   : > { %v1532_v11 = vpop.f32.mrf.mxu2  ;;  %v3818_v27 = vpack.c.b16 %v3791_v21, %v3790_v14  ;;  %v4118_v14 = vrot.slane %v4116_v61, 4 }
 0x1e0   : > { %v1850_v47 = vpop.f32.mrf.mxu3  ;;  %v1579_v58 = vadd.f32 %v1532_v11, %v11714_v51  ;;  %v4113_v51 = vsel %vm11554_vm5, %v4111_v55, %v4112_v0  ;;  %v3508_v55 = vor.u32 %v3507_v4, %v3504_v31  ;;  %v10795_v0 = vld [vmem:[%s12185_s23 + $0x30] sm:$0xff]  ;;  %v3518_v11 = vor.u32 %v3517_v43, %v3513_v13 }
 0x1e1   : > { %v2534_v45 = vpop.f32.mrf.mxu0  ;;  %v4217_v57 = vunpack.c.l.b16 %v4113_v51  ;;  %v10827_v51 = vld [vmem:[%s14099_s3 + $0xa0] sm:$0xff]  ;;  %v3526_v43 = vshrl.u32 %v9662_v38, 16 }
 0x1e2   : > { %v1897_v5 = vadd.f32 %v1850_v47, %v1579_v58  ;;  %v3521_v47 = vshll.u32 %v9661_v30, 16  ;;  %v3509_v15 = vrot.slane %v3508_v55, 4  ;;  %v3519_v17 = vrot.slane %v3518_v11, 4  ;;  %5746 = vmatpush.bf16.msrb.mxu3 %v10827_v51  ;;  %v10756_v51 = vld [vmem:[%s11196_s12 + $0x54] sm:$0xff] }
 0x1e3   : > { %v2960_v24 = vpop.f32.mrf.mxu1  ;;  %v3528_v11 = vrot.slane %v3526_v43, 4 }
 0x1e4   : > { %v2579_v52 = vadd.f32 %v2532_v23, %v1897_v5  ;;  %v4244_v23 = vpack.c.b16 %v4217_v57, %v4216_v3  ;;  %v3523_v5 = vrot.slane %v3521_v47, 5  ;;  %v3514_v57 = vsel %vm11230_vm2, %v3509_v15, %v3513_v13 }
 0x1e5   : > { %v3792_v13 = vunpack.c.l.b16 %v3514_v57 }
 0x1e6   : > { %v12312_v8 = vadd.f32 %v2958_v63, %v2579_v52  ;;  %v9745_v63 = vld [vmem:[%s11196_s12 + $0x54] sm:$0xe]  ;;  %v4119_v52 = vrot.slane %v9661_v30, 5 }
 0x1e7   : > { %v1534_v37 = vpop.f32.mrf.mxu2  ;;  %v9761_v2 = vrot.slane %v9745_v63, 9 }
 0x1e8   : > { %v1852_v20 = vpop.f32.mrf.mxu3  ;;  %v1580_v32 = vadd.f32 %v1534_v37, %v11736_v36  ;;  %v10819_v36 = vld [vmem:[%s14099_s3 + $0x60] sm:$0xff]  ;;  %v3529_v37 = vshll.u32 %v9662_v38, 16 }
 0x1e9   : > { %v2537_v12 = vpop.f32.mrf.mxu0  ;;  %5320 = vmatpush.bf16.msrb.mxu2 %v10819_v36  ;;  %v4117_v55 = vsel %vm11554_vm5, %v9761_v2, %v4116_v61 }
 0x1ea   : > { %v1898_v58 = vadd.f32 %v1852_v20, %v1580_v32  ;;  %v3524_v20 = vsel %vm11230_vm2, %v3519_v17, %v3523_v5  ;;  %v3531_v47 = vrot.slane %v3529_v37, 5  ;;  %v4218_v63 = vunpack.c.l.b16 %v4117_v55  ;;  %v9664_v17 = vld [vmem:[%s11196_s12 + $0x68] sm:$0x1] }
 0x1eb   : > { %v2963_v50 = vpop.f32.mrf.mxu1 }
 0x1ec   : > { %v2580_v54 = vadd.f32 %v2534_v45, %v1898_v58  ;;  %3240 = vmatmul.bf16.gmra.mxu2 %v10755_v34  ;;  %4348 = vmatmul.bf16.gmra.mxu0 %v4244_v23  ;;  %v12327_v45 = vld [vmem:[%s11196_s12 + $0x64] sm:$0xf] }
 0x1ed   : > { %3922 = vmatmul.bf16.gmra.mxu3 %v3818_v27  ;;  %v3535_v30 = vshll.u32 %v12327_v45, 16  ;;  %v3539_v32 = vshrl.u32 %v12327_v45, 16  ;;  %v10851_v58 = vld [vmem:[%s14099_s3 + $0xe0] sm:$0xff] }
 0x1ee   : > { %4663 = vmatmul.bf16.gmra.mxu1 %v10795_v0  ;;  %v12329_v21 = vadd.f32 %v2960_v24, %v2580_v54  ;;  %v3793_v0 = vunpack.c.l.b16 %v3524_v20  ;;  %6062 = vmatpush.bf16.msrb.mxu0 %v10851_v58  ;;  %v4123_v20 = vrot.slane %v12327_v45, 5  ;;  %v12358_v45 = vld [vmem:[%s11196_s12 + $0x70] sm:$0xf] }
 0x1ef   : > { %v1537_v31 = vpop.f32.mrf.mxu2  ;;  %v3537_v15 = vrot.slane %v3535_v30, 5  ;;  %v3541_v36 = vrot.slane %v3539_v32, 4 }
 0x1f0   : > { %v1855_v4 = vpop.f32.mrf.mxu3  ;;  %v1581_v3 = vadd.f32 %v1537_v31, %v11761_v33  ;;  %v4120_v33 = vsel %vm11554_vm5, %v4118_v14, %v4119_v52  ;;  %v3819_v2 = vpack.c.b16 %v3793_v0, %v3792_v13  ;;  %v3532_v14 = vor.u32 %v3531_v47, %v3528_v11  ;;  %v10796_v31 = vld [vmem:[%s12185_s23 + $0x3c] sm:$0xff] }
 0x1f1   : > { %v2539_v34 = vpop.f32.mrf.mxu0  ;;  %v4219_v54 = vunpack.c.l.b16 %v4120_v33  ;;  %v9665_v33 = vld [vmem:[%s11196_s12 + $0x6c] sm:$0xf]  ;;  %v4126_v0 = vrot.slane %v9664_v17, 5 }
 0x1f2   : > { %v1899_v24 = vadd.f32 %v1855_v4, %v1581_v3  ;;  %v3542_v4 = vor.u32 %v3541_v36, %v3537_v15  ;;  %v3545_v3 = vshll.u32 %v9664_v17, 16  ;;  %v3533_v32 = vrot.slane %v3532_v14, 4 }
 0x1f3   : > { %v2965_v27 = vpop.f32.mrf.mxu1  ;;  %v4245_v52 = vpack.c.b16 %v4219_v54, %v4218_v63  ;;  %v3550_v54 = vshrl.u32 %v9665_v33, 16  ;;  %v3553_v36 = vshll.u32 %v9665_v33, 16  ;;  %v3563_v17 = vshrl.u32 %v12358_v45, 16  ;;  %v10757_v33 = vld [vmem:[%s11196_s12 + $0x60] sm:$0xff] }
 0x1f4   : > { %v2581_v23 = vadd.f32 %v2537_v12, %v1899_v24  ;;  %v3543_v24 = vrot.slane %v3542_v4, 4  ;;  %v3547_v55 = vrot.slane %v3545_v3, 5  ;;  %v3538_v63 = vsel %vm11230_vm2, %v3533_v32, %v3537_v15  ;;  %v9667_v32 = vld [vmem:[%s11196_s12 + $0x74] sm:$0x1] }
 0x1f5   : > { %v3794_v15 = vunpack.c.l.b16 %v3538_v63  ;;  %v3555_v4 = vrot.slane %v3553_v36, 5  ;;  %v4130_v36 = vrot.slane %v12358_v45, 5 }
 0x1f6   : > { %v12346_v61 = vadd.f32 %v2963_v50, %v2581_v23  ;;  %v9746_v50 = vld [vmem:[%s11196_s12 + $0x60] sm:$0xe]  ;;  %v4125_v23 = vrot.slane %v4123_v20, 4 }
 0x1f7   : > { %v1539_v5 = vpop.f32.mrf.mxu2  ;;  %v9762_v13 = vrot.slane %v9746_v50, 9 }
 0x1f8   : > { %v1857_v38 = vpop.f32.mrf.mxu3  ;;  %v1582_v12 = vadd.f32 %v1539_v5, %v11777_v49  ;;  %v10859_v49 = vld [vmem:[%s14099_s3 + $0x120] sm:$0xff]  ;;  %v3548_v5 = vsel %vm11230_vm2, %v3543_v24, %v3547_v55 }
 0x1f9   : > { %v2542_v43 = vpop.f32.mrf.mxu0  ;;  %6744 = vmatpush.bf16.msrb.mxu1 %v10859_v49 }
 0x1fa   : > { %v1900_v57 = vadd.f32 %v1857_v38, %v1582_v12  ;;  %v3559_v38 = vshll.u32 %v12358_v45, 16 }
 0x1fb   : > { %v2968_v37 = vpop.f32.mrf.mxu1 }
 0x1fc   : > { %v2582_v30 = vadd.f32 %v2539_v34, %v1900_v57  ;;  %3245 = vmatmul.bf16.gmra.mxu2 %v10756_v51  ;;  %4353 = vmatmul.bf16.gmra.mxu0 %v4245_v52  ;;  %v3795_v52 = vunpack.c.l.b16 %v3548_v5  ;;  %v3561_v50 = vrot.slane %v3559_v38, 5 }
 0x1fd   : > { %3927 = vmatmul.bf16.gmra.mxu3 %v3819_v2  ;;  %v4124_v2 = vsel %vm11554_vm5, %v9762_v13, %v4123_v20 }
 0x1fe   : > { %4668 = vmatmul.bf16.gmra.mxu1 %v10796_v31  ;;  %v12360_v11 = vadd.f32 %v2965_v27, %v2582_v30  ;;  %v3552_v31 = vrot.slane %v3550_v54, 4  ;;  %v4220_v3 = vunpack.c.l.b16 %v4124_v2  ;;  %v3565_v30 = vrot.slane %v3563_v17, 4  ;;  %v9668_v2 = vld [vmem:[%s11196_s12 + $0x78] sm:$0xf] }
 0x1ff   : > { %v1542_v34 = vpop.f32.mrf.mxu2  ;;  %v3820_v13 = vpack.c.b16 %v3795_v52, %v3794_v15  ;;  %v4132_v15 = vrot.slane %v4130_v36, 4 }
 0x200   : > { %v1860_v47 = vpop.f32.mrf.mxu3  ;;  %v1583_v58 = vadd.f32 %v1542_v34, %v11796_v41  ;;  %v4127_v41 = vsel %vm11554_vm5, %v4125_v23, %v4126_v0  ;;  %v3556_v23 = vor.u32 %v3555_v4, %v3552_v31  ;;  %v10797_v0 = vld [vmem:[%s12185_s23 + $0x48] sm:$0xff]  ;;  %v3566_v34 = vor.u32 %v3565_v30, %v3561_v50 }
 0x201   : > { %v2544_v27 = vpop.f32.mrf.mxu0  ;;  %v4221_v57 = vunpack.c.l.b16 %v4127_v41  ;;  %v10826_v41 = vld [vmem:[%s14099_s3 + $0x98] sm:$0xff]  ;;  %v3574_v30 = vshrl.u32 %v9668_v2, 16 }
 0x202   : > { %v1901_v12 = vadd.f32 %v1860_v47, %v1583_v58  ;;  %v3569_v47 = vshll.u32 %v9667_v32, 16  ;;  %v3557_v38 = vrot.slane %v3556_v23, 4  ;;  %v3567_v17 = vrot.slane %v3566_v34, 4  ;;  %5747 = vmatpush.bf16.msrb.mxu3 %v10826_v41 }
 0x203   : > { %v2970_v51 = vpop.f32.mrf.mxu1  ;;  %v3576_v34 = vrot.slane %v3574_v30, 4 }
 0x204   : > { %v2583_v14 = vadd.f32 %v2542_v43, %v1901_v12  ;;  %v4246_v43 = vpack.c.b16 %v4221_v57, %v4220_v3  ;;  %v3571_v12 = vrot.slane %v3569_v47, 5  ;;  %v3562_v57 = vsel %vm11230_vm2, %v3557_v38, %v3561_v50 }
 0x205   : > { %v3796_v50 = vunpack.c.l.b16 %v3562_v57 }
 0x206   : > { %v12374_v49 = vadd.f32 %v2968_v37, %v2583_v14  ;;  %v9747_v37 = vld [vmem:[%s11196_s12 + $0x6c] sm:$0xe]  ;;  %v4133_v14 = vrot.slane %v9667_v32, 5 }
 0x207   : > { %v1544_v24 = vpop.f32.mrf.mxu2  ;;  %v9763_v45 = vrot.slane %v9747_v37, 9 }
 0x208   : > { %v1862_v20 = vpop.f32.mrf.mxu3  ;;  %v1584_v55 = vadd.f32 %v1544_v24, %v11818_v22  ;;  %v10818_v22 = vld [vmem:[%s14099_s3 + $0x58] sm:$0xff]  ;;  %v3577_v24 = vshll.u32 %v9668_v2, 16 }
 0x209   : > { %v2547_v63 = vpop.f32.mrf.mxu0  ;;  %5321 = vmatpush.bf16.msrb.mxu2 %v10818_v22  ;;  %v4131_v23 = vsel %vm11554_vm5, %v9763_v45, %v4130_v36  ;;  %v10758_v45 = vld [vmem:[%s11196_s12 + $0x6c] sm:$0xff] }
 0x20a   : > { %v1902_v58 = vadd.f32 %v1862_v20, %v1584_v55  ;;  %v3572_v20 = vsel %vm11230_vm2, %v3567_v17, %v3571_v12  ;;  %v3579_v47 = vrot.slane %v3577_v24, 5  ;;  %v4222_v37 = vunpack.c.l.b16 %v4131_v23  ;;  %v9670_v17 = vld [vmem:[%s11196_s12 + $0x80] sm:$0x1]  ;;  %v10858_v23 = vld [vmem:[%s14099_s3 + $0x118] sm:$0xff] }
 0x20b   : > { %v2973_v54 = vpop.f32.mrf.mxu1  ;;  %v3593_v57 = vshll.u32 %v9670_v17, 16  ;;  %6745 = vmatpush.bf16.msrb.mxu1 %v10858_v23 }
 0x20c   : > { %v2584_v5 = vadd.f32 %v2544_v27, %v1902_v58  ;;  %3250 = vmatmul.bf16.gmra.mxu2 %v10757_v33  ;;  %4358 = vmatmul.bf16.gmra.mxu0 %v4246_v43  ;;  %v12389_v27 = vld [vmem:[%s11196_s12 + $0x7c] sm:$0xf] }
 0x20d   : > { %3932 = vmatmul.bf16.gmra.mxu3 %v3820_v13  ;;  %v3583_v32 = vshll.u32 %v12389_v27, 16  ;;  %v3587_v55 = vshrl.u32 %v12389_v27, 16  ;;  %v10850_v58 = vld [vmem:[%s14099_s3 + $0xd8] sm:$0xff] }
 0x20e   : > { %4673 = vmatmul.bf16.gmra.mxu1 %v10797_v0  ;;  %v12391_v52 = vadd.f32 %v2970_v51, %v2584_v5  ;;  %v3797_v0 = vunpack.c.l.b16 %v3572_v20  ;;  %6063 = vmatpush.bf16.msrb.mxu0 %v10850_v58 }
 0x20f   : > { %v1547_v31 = vpop.f32.mrf.mxu2  ;;  %v3585_v38 = vrot.slane %v3583_v32, 5  ;;  %v3589_v22 = vrot.slane %v3587_v55, 4  ;;  %v4137_v32 = vrot.slane %v12389_v27, 5  ;;  %v12420_v27 = vld [vmem:[%s11196_s12 + $0x88] sm:$0xf] }
 0x210   : > { %v1865_v4 = vpop.f32.mrf.mxu3  ;;  %v1585_v3 = vadd.f32 %v1547_v31, %v11843_v19  ;;  %v4134_v19 = vsel %vm11554_vm5, %v4132_v15, %v4133_v14  ;;  %v3821_v15 = vpack.c.b16 %v3797_v0, %v3796_v50  ;;  %v3580_v14 = vor.u32 %v3579_v47, %v3576_v34 }
 0x211   : > { %v2549_v33 = vpop.f32.mrf.mxu0  ;;  %v4223_v5 = vunpack.c.l.b16 %v4134_v19  ;;  %v3595_v50 = vrot.slane %v3593_v57, 5  ;;  %v4139_v34 = vrot.slane %v4137_v32, 4  ;;  %v4140_v47 = vrot.slane %v9670_v17, 5 }
 0x212   : > { %v1903_v51 = vadd.f32 %v1865_v4, %v1585_v3  ;;  %v10798_v4 = vld [vmem:[%s12185_s23 + $0x54] sm:$0xff]  ;;  %v3590_v3 = vor.u32 %v3589_v22, %v3585_v38  ;;  %v3611_v17 = vshrl.u32 %v12420_v27, 16 }
 0x213   : > { %v2975_v13 = vpop.f32.mrf.mxu1  ;;  %v4247_v31 = vpack.c.b16 %v4223_v5, %v4222_v37  ;;  %v14111_v5 = vld [vmem:[#allocation3_spill] sm:$0xff] }
 0x214   : > { %v2585_v43 = vadd.f32 %v2547_v63, %v1903_v51  ;;  %v14110_v63 = vld [vmem:[#allocation2_spill] sm:$0xff]  ;;  %v3581_v51 = vrot.slane %v3580_v14, 4  ;;  %v3591_v19 = vrot.slane %v3590_v3, 4 }
 0x216   : > { %v12408_v36 = vadd.f32 %v2973_v54, %v2585_v43  ;;  %v9748_v54 = vld [vmem:[%s11196_s12 + $0x78] sm:$0xe]  ;;  %v9671_v43 = vld [vmem:[%s11196_s12 + $0x84] sm:$0xf] }
 0x217   : > { %v1549_v12 = vpop.f32.mrf.mxu2  ;;  %v9764_v0 = vrot.slane %v9748_v54, 9 }
 0x218   : > { %v1867_v2 = vpop.f32.mrf.mxu3  ;;  %v1586_v41 = vadd.f32 %v1549_v12, %v14110_v63  ;;  %v3586_v12 = vsel %vm11230_vm2, %v3581_v51, %v3585_v38  ;;  %v3601_v63 = vshll.u32 %v9671_v43, 16  ;;  %v4141_v38 = vsel %vm11554_vm5, %v4139_v34, %v4140_v47 }
 0x219   : > { %v2552_v24 = vpop.f32.mrf.mxu0  ;;  %v4225_v51 = vunpack.c.l.b16 %v4141_v38  ;;  %v10817_v38 = vld [vmem:[%s14099_s3 + $0x50] sm:$0xff] }
 0x21a   : > { %v1904_v30 = vadd.f32 %v1867_v2, %v1586_v41  ;;  %v3598_v2 = vshrl.u32 %v9671_v43, 16  ;;  %v3596_v41 = vsel %vm11230_vm2, %v3591_v19, %v3595_v50  ;;  %v3603_v54 = vrot.slane %v3601_v63, 5  ;;  %v9673_v50 = vld [vmem:[%s11196_s12 + $0x8c] sm:$0x1]  ;;  %5322 = vmatpush.bf16.msrb.mxu2 %v10817_v38 }
 0x21b   : > { %v2978_v20 = vpop.f32.mrf.mxu1  ;;  %v3799_v57 = vunpack.c.l.b16 %v3596_v41  ;;  %v3613_v19 = vrot.slane %v3611_v17, 4  ;;  %v4144_v17 = vrot.slane %v12420_v27, 5 }
 0x21c   : > { %v2586_v55 = vadd.f32 %v2549_v33, %v1904_v30  ;;  %3255 = vmatmul.bf16.gmra.mxu2 %v10758_v45  ;;  %4363 = vmatmul.bf16.gmra.mxu0 %v4247_v31  ;;  %v3607_v45 = vshll.u32 %v12420_v27, 16  ;;  %v4138_v31 = vsel %vm11554_vm5, %v9764_v0, %v4137_v32  ;;  %v3600_v30 = vrot.slane %v3598_v2, 4  ;;  %v14112_v0 = vld [vmem:[#allocation4_spill] sm:$0xff] }
 0x21d   : > { %3937 = vmatmul.bf16.gmra.mxu3 %v3821_v15  ;;  %v3617_v2 = vshll.u32 %v9673_v50, 16 }
 0x21e   : > { %4678 = vmatmul.bf16.gmra.mxu1 %v10798_v4  ;;  %v12422_v58 = vadd.f32 %v2975_v13, %v2586_v55  ;;  %v3798_v4 = vunpack.c.l.b16 %v3586_v12  ;;  %v4224_v55 = vunpack.c.l.b16 %v4138_v31  ;;  %v3609_v23 = vrot.slane %v3607_v45, 5 }
 0x21f   : > { %v1552_v33 = vpop.f32.mrf.mxu2  ;;  %v3604_v47 = vor.u32 %v3603_v54, %v3600_v30  ;;  %v10825_v30 = vld [vmem:[%s14099_s3 + $0x90] sm:$0xff]  ;;  %v4146_v54 = vrot.slane %v4144_v17, 4 }
 0x220   : > { %v1870_v37 = vpop.f32.mrf.mxu3  ;;  %v1587_v22 = vadd.f32 %v1552_v33, %v14111_v5  ;;  %v10759_v5 = vld [vmem:[%s11196_s12 + $0x78] sm:$0xff]  ;;  %v3822_v34 = vpack.c.b16 %v3799_v57, %v3798_v4  ;;  %v3614_v12 = vor.u32 %v3613_v19, %v3609_v23  ;;  %v9674_v57 = vld [vmem:[%s11196_s12 + $0x90] sm:$0xf]  ;;  %5748 = vmatpush.bf16.msrb.mxu3 %v10825_v30 }
 0x221   : > { %v2554_v13 = vpop.f32.mrf.mxu0  ;;  %v3605_v31 = vrot.slane %v3604_v47, 4 }
 0x222   : > { %v1905_v15 = vadd.f32 %v1870_v37, %v1587_v22  ;;  %v10799_v22 = vld [vmem:[%s12185_s23 + $0x60] sm:$0xff]  ;;  %v3615_v4 = vrot.slane %v3614_v12, 4 }
 0x223   : > { %v2980_v14 = vpop.f32.mrf.mxu1 }
 0x224   : > { %v2587_v3 = vadd.f32 %v2552_v24, %v1905_v15  ;;  %v4248_v24 = vpack.c.b16 %v4225_v51, %v4224_v55  ;;  %v4147_v55 = vrot.slane %v9673_v50, 5 }
 0x226   : > { %v12436_v43 = vadd.f32 %v2978_v20, %v2587_v3  ;;  %v9749_v20 = vld [vmem:[%s11196_s12 + $0x84] sm:$0xe]  ;;  %v3619_v3 = vrot.slane %v3617_v2, 5 }
 0x227   : > { %v1554_v33 = vpop.f32.mrf.mxu2  ;;  %v9765_v27 = vrot.slane %v9749_v20, 9 }
 0x228   : > { %v1872_v32 = vpop.f32.mrf.mxu3  ;;  %v1588_v37 = vadd.f32 %v1554_v33, %v14112_v0  ;;  %v3620_v47 = vsel %vm11230_vm2, %v3615_v4, %v3619_v3  ;;  %v10849_v4 = vld [vmem:[%s14099_s3 + $0xd0] sm:$0xff] }
 0x229   : > { %v4329_v41 = vpop.f32.mrf.mxu0  ;;  %v4145_v2 = vsel %vm11554_vm5, %v9765_v27, %v4144_v17  ;;  %6064 = vmatpush.bf16.msrb.mxu0 %v10849_v4 }
 0x22a   : > { %v1906_v63 = vadd.f32 %v1872_v32, %v1588_v37  ;;  %v14113_v32 = vld [vmem:[#allocation5_spill] sm:$0xff]  ;;  %v3610_v37 = vsel %vm11230_vm2, %v3605_v31, %v3609_v23  ;;  %v4226_v3 = vunpack.c.l.b16 %v4145_v2 }
 0x22b   : > { %v4644_v45 = vpop.f32.mrf.mxu1  ;;  %v3800_v23 = vunpack.c.l.b16 %v3610_v37 }
 0x22c   : > { %v2588_v15 = vadd.f32 %v2554_v13, %v1906_v63  ;;  %3260 = vmatmul.bf16.gmra.mxu2 %v10759_v5  ;;  %4368 = vmatmul.bf16.gmra.mxu0 %v4248_v24  ;;  %v12451_v13 = vld [vmem:[%s11196_s12 + $0x94] sm:$0xf]  ;;  %v3622_v5 = vshrl.u32 %v9674_v57, 16  ;;  %v4148_v63 = vsel %vm11554_vm5, %v4146_v54, %v4147_v55  ;;  %v10760_v55 = vld [vmem:[%s11196_s12 + $0x84] sm:$0xff] }
 0x22d   : > { %3942 = vmatmul.bf16.gmra.mxu3 %v3822_v34  ;;  %v3625_v34 = vshll.u32 %v9674_v57, 16  ;;  %v3631_v50 = vshll.u32 %v12451_v13, 16  ;;  %v3635_v24 = vshrl.u32 %v12451_v13, 16  ;;  %v4227_v57 = vunpack.c.l.b16 %v4148_v63 }
 0x22e   : > { %4683 = vmatmul.bf16.gmra.mxu1 %v10799_v22  ;;  %v12453_v51 = vadd.f32 %v2980_v14, %v2588_v15  ;;  %v3801_v15 = vunpack.c.l.b16 %v3620_v47  ;;  %v3624_v31 = vrot.slane %v3622_v5, 4  ;;  %v10800_v5 = vld [vmem:[%s12185_s23 + $0x6c] sm:$0xff]  ;;  %v4151_v2 = vrot.slane %v12451_v13, 5  ;;  %v12482_v13 = vld [vmem:[%s11196_s12 + $0xa0] sm:$0xf] }
 0x22f   : > { %v3221_v19 = vpop.f32.mrf.mxu2  ;;  %v3627_v38 = vrot.slane %v3625_v34, 5  ;;  %v3633_v30 = vrot.slane %v3631_v50, 5  ;;  %v4249_v37 = vpack.c.b16 %v4227_v57, %v4226_v3 }
 0x230   : > { %v3903_v33 = vpop.f32.mrf.mxu3  ;;  %v3301_v0 = vadd.f32 %v3221_v19, %v14113_v32  ;;  %v3637_v19 = vrot.slane %v3635_v24, 4  ;;  %v3823_v32 = vpack.c.b16 %v3801_v15, %v3800_v23  ;;  %v4153_v4 = vrot.slane %v4151_v2, 4 }
 0x231   : > { %v4331_v22 = vpop.f32.mrf.mxu0 }
 0x232   : > { %v3983_v14 = vadd.f32 %v3903_v33, %v3301_v0  ;;  %v9676_v33 = vld [vmem:[%s11196_s12 + $0x98] sm:$0x1]  ;;  %v3628_v0 = vor.u32 %v3627_v38, %v3624_v31  ;;  %v3638_v34 = vor.u32 %v3637_v19, %v3633_v30  ;;  %v9677_v31 = vld [vmem:[%s11196_s12 + $0x9c] sm:$0xf] }
 0x233   : > { %v4646_v12 = vpop.f32.mrf.mxu1  ;;  %v3641_v47 = vshll.u32 %v9676_v33, 16  ;;  %v4154_v3 = vrot.slane %v9676_v33, 5  ;;  %v3659_v33 = vshrl.u32 %v12482_v13, 16 }
 0x234   : > { %v4409_v20 = vadd.f32 %v4329_v41, %v3983_v14  ;;  %v3639_v23 = vrot.slane %v3638_v34, 4 }
 0x235   : > { %v3643_v15 = vrot.slane %v3641_v47, 5 }
 0x236   : > { %v12470_v17 = vadd.f32 %v4644_v45, %v4409_v20  ;;  %v9750_v45 = vld [vmem:[%s11196_s12 + $0x90] sm:$0xe]  ;;  %v3629_v20 = vrot.slane %v3628_v0, 4  ;;  %v3655_v0 = vshll.u32 %v12482_v13, 16 }
 0x237   : > { %v3223_v27 = vpop.f32.mrf.mxu2  ;;  %v9766_v38 = vrot.slane %v9750_v45, 9 }
 0x238   : > { %v3905_v54 = vpop.f32.mrf.mxu3  ;;  %v3302_v41 = vadd.f32 %v3223_v27, %v11948_v60  ;;  %v10857_v60 = vld [vmem:[%s14099_s3 + $0x110] sm:$0xff] }
 0x239   : > { %v4334_v50 = vpop.f32.mrf.mxu0  ;;  %6746 = vmatpush.bf16.msrb.mxu1 %v10857_v60  ;;  %v4152_v34 = vsel %vm11554_vm5, %v9766_v38, %v4151_v2 }
 0x23a   : > { %v3984_v14 = vadd.f32 %v3905_v54, %v3302_v41  ;;  %v3634_v54 = vsel %vm11230_vm2, %v3629_v20, %v3633_v30  ;;  %v3646_v41 = vshrl.u32 %v9677_v31, 16  ;;  %v4228_v20 = vunpack.c.l.b16 %v4152_v34 }
 0x23b   : > { %v4649_v24 = vpop.f32.mrf.mxu1  ;;  %v3802_v30 = vunpack.c.l.b16 %v3634_v54  ;;  %v10801_v54 = vld [vmem:[%s12185_s23 + $0x78] sm:$0xff] }
 0x23c   : > { %v4410_v63 = vadd.f32 %v4331_v22, %v3984_v14  ;;  %3265 = vmatmul.bf16.gmra.mxu2 %v10760_v55  ;;  %4373 = vmatmul.bf16.gmra.mxu0 %v4249_v37  ;;  %v3649_v55 = vshll.u32 %v9677_v31, 16  ;;  %v3648_v45 = vrot.slane %v3646_v41, 4  ;;  %v9679_v31 = vld [vmem:[%s11196_s12 + $0xa4] sm:$0x1] }
 0x23d   : > { %3947 = vmatmul.bf16.gmra.mxu3 %v3823_v32  ;;  %v3644_v32 = vsel %vm11230_vm2, %v3639_v23, %v3643_v15  ;;  %v3657_v23 = vrot.slane %v3655_v0, 5  ;;  %v3661_v15 = vrot.slane %v3659_v33, 4  ;;  %v3665_v41 = vshll.u32 %v9679_v31, 16 }
 0x23e   : > { %4688 = vmatmul.bf16.gmra.mxu1 %v10800_v5  ;;  %v12484_v57 = vadd.f32 %v4646_v12, %v4410_v63  ;;  %v3803_v14 = vunpack.c.l.b16 %v3644_v32  ;;  %v3651_v63 = vrot.slane %v3649_v55, 5  ;;  %v4158_v33 = vrot.slane %v12482_v13, 5 }
 0x23f   : > { %v3226_v22 = vpop.f32.mrf.mxu2  ;;  %v3662_v32 = vor.u32 %v3661_v15, %v3657_v23 }
 0x240   : > { %v3908_v19 = vpop.f32.mrf.mxu3  ;;  %v3303_v27 = vadd.f32 %v3226_v22, %v11966_v35  ;;  %v4155_v35 = vsel %vm11554_vm5, %v4153_v4, %v4154_v3  ;;  %v3824_v4 = vpack.c.b16 %v3803_v14, %v3802_v30  ;;  %v3652_v3 = vor.u32 %v3651_v63, %v3648_v45  ;;  %v9680_v14 = vld [vmem:[%s11196_s12 + $0xa8] sm:$0xf] }
 0x241   : > { %v4336_v12 = vpop.f32.mrf.mxu0  ;;  %v4229_v60 = vunpack.c.l.b16 %v4155_v35  ;;  %v3663_v30 = vrot.slane %v3662_v32, 4  ;;  %v10824_v45 = vld [vmem:[%s14099_s3 + $0x88] sm:$0xff]  ;;  %v4160_v63 = vrot.slane %v4158_v33, 4 }
 0x242   : > { %v3985_v37 = vadd.f32 %v3908_v19, %v3303_v27  ;;  %v10761_v27 = vld [vmem:[%s11196_s12 + $0x90] sm:$0xff]  ;;  %v3653_v35 = vrot.slane %v3652_v3, 4  ;;  %5749 = vmatpush.bf16.msrb.mxu3 %v10824_v45 }
 0x243   : > { %v4651_v5 = vpop.f32.mrf.mxu1 }
 0x244   : > { %v4411_v47 = vadd.f32 %v4334_v50, %v3985_v37  ;;  %v4250_v50 = vpack.c.b16 %v4229_v60, %v4228_v20  ;;  %v4161_v20 = vrot.slane %v9679_v31, 5 }
 0x246   : > { %v12498_v22 = vadd.f32 %v4649_v24, %v4411_v47  ;;  %v9751_v24 = vld [vmem:[%s11196_s12 + $0x9c] sm:$0xe]  ;;  %v3667_v47 = vrot.slane %v3665_v41, 5 }
 0x247   : > { %v3228_v19 = vpop.f32.mrf.mxu2  ;;  %v9767_v13 = vrot.slane %v9751_v24, 9 }
 0x248   : > { %v3910_v2 = vpop.f32.mrf.mxu3  ;;  %v3304_v38 = vadd.f32 %v3228_v19, %v11985_v9  ;;  %v10816_v9 = vld [vmem:[%s14099_s3 + $0x48] sm:$0xff]  ;;  %v3668_v3 = vsel %vm11230_vm2, %v3663_v30, %v3667_v47 }
 0x249   : > { %v4339_v37 = vpop.f32.mrf.mxu0  ;;  %5323 = vmatpush.bf16.msrb.mxu2 %v10816_v9  ;;  %v4159_v41 = vsel %vm11554_vm5, %v9767_v13, %v4158_v33  ;;  %v3805_v24 = vunpack.c.l.b16 %v3668_v3  ;;  %v10848_v9 = vld [vmem:[%s14099_s3 + $0xc8] sm:$0xff] }
 0x24a   : > { %v3986_v55 = vadd.f32 %v3910_v2, %v3304_v38  ;;  %v3658_v38 = vsel %vm11230_vm2, %v3653_v35, %v3657_v23  ;;  %v4230_v30 = vunpack.c.l.b16 %v4159_v41  ;;  %6065 = vmatpush.bf16.msrb.mxu0 %v10848_v9 }
 0x24b   : > { %v4654_v0 = vpop.f32.mrf.mxu1  ;;  %v3804_v23 = vunpack.c.l.b16 %v3658_v38 }
 0x24c   : > { %v4412_v34 = vadd.f32 %v4336_v12, %v3986_v55  ;;  %3270 = vmatmul.bf16.gmra.mxu2 %v10761_v27  ;;  %4378 = vmatmul.bf16.gmra.mxu0 %v4250_v50  ;;  %v12513_v12 = vld [vmem:[%s11196_s12 + $0xac] sm:$0xf]  ;;  %v3670_v27 = vshrl.u32 %v9680_v14, 16 }
 0x24d   : > { %3952 = vmatmul.bf16.gmra.mxu3 %v3824_v4  ;;  %v3673_v4 = vshll.u32 %v9680_v14, 16  ;;  %v3679_v31 = vshll.u32 %v12513_v12, 16  ;;  %v3683_v50 = vshrl.u32 %v12513_v12, 16  ;;  %v4165_v41 = vrot.slane %v12513_v12, 5  ;;  %v12544_v12 = vld [vmem:[%s11196_s12 + $0xb8] sm:$0xf] }
 0x24e   : > { %4693 = vmatmul.bf16.gmra.mxu1 %v10801_v54  ;;  %v12515_v60 = vadd.f32 %v4651_v5, %v4412_v34  ;;  %v3672_v34 = vrot.slane %v3670_v27, 4  ;;  %v10802_v27 = vld [vmem:[%s12185_s23 + $0x84] sm:$0xff] }
 0x24f   : > { %v3231_v15 = vpop.f32.mrf.mxu2  ;;  %v3675_v35 = vrot.slane %v3673_v4, 5  ;;  %v3681_v14 = vrot.slane %v3679_v31, 5  ;;  %v3685_v45 = vrot.slane %v3683_v50, 4  ;;  %v4167_v9 = vrot.slane %v4165_v41, 4 }
 0x250   : > { %v3913_v19 = vpop.f32.mrf.mxu3  ;;  %v3305_v2 = vadd.f32 %v3231_v15, %v12006_v29  ;;  %v4162_v29 = vsel %vm11554_vm5, %v4160_v63, %v4161_v20  ;;  %v9682_v15 = vld [vmem:[%s11196_s12 + $0xb0] sm:$0x1]  ;;  %v10762_v20 = vld [vmem:[%s11196_s12 + $0x9c] sm:$0xff] }
 0x251   : > { %v4341_v54 = vpop.f32.mrf.mxu0  ;;  %v4231_v47 = vunpack.c.l.b16 %v4162_v29  ;;  %v3686_v4 = vor.u32 %v3685_v45, %v3681_v14  ;;  %v3689_v3 = vshll.u32 %v9682_v15, 16 }
 0x252   : > { %v3987_v5 = vadd.f32 %v3913_v19, %v3305_v2  ;;  %v3825_v19 = vpack.c.b16 %v3805_v24, %v3804_v23  ;;  %v3676_v2 = vor.u32 %v3675_v35, %v3672_v34  ;;  %v9683_v34 = vld [vmem:[%s11196_s12 + $0xb4] sm:$0xf] }
 0x253   : > { %v4656_v32 = vpop.f32.mrf.mxu1  ;;  %v4251_v38 = vpack.c.b16 %v4231_v47, %v4230_v30  ;;  %v3687_v23 = vrot.slane %v3686_v4, 4  ;;  %v3691_v24 = vrot.slane %v3689_v3, 5  ;;  %v4168_v30 = vrot.slane %v9682_v15, 5 }
 0x254   : > { %v4413_v55 = vadd.f32 %v4339_v37, %v3987_v5  ;;  %v3707_v15 = vshrl.u32 %v12544_v12, 16 }
 0x256   : > { %v12532_v33 = vadd.f32 %v4654_v0, %v4413_v55  ;;  %v9752_v0 = vld [vmem:[%s11196_s12 + $0xa8] sm:$0xe]  ;;  %v3677_v55 = vrot.slane %v3676_v2, 4  ;;  %v3703_v2 = vshll.u32 %v12544_v12, 16 }
 0x257   : > { %v3233_v13 = vpop.f32.mrf.mxu2  ;;  %v9768_v35 = vrot.slane %v9752_v0, 9 }
 0x258   : > { %v3915_v63 = vpop.f32.mrf.mxu3  ;;  %v3306_v37 = vadd.f32 %v3233_v13, %v12022_v10  ;;  %v10856_v10 = vld [vmem:[%s14099_s3 + $0x108] sm:$0xff] }
 0x259   : > { %v4344_v31 = vpop.f32.mrf.mxu0  ;;  %6747 = vmatpush.bf16.msrb.mxu1 %v10856_v10  ;;  %v4166_v4 = vsel %vm11554_vm5, %v9768_v35, %v4165_v41 }
 0x25a   : > { %v3988_v5 = vadd.f32 %v3915_v63, %v3306_v37  ;;  %v3682_v63 = vsel %vm11230_vm2, %v3677_v55, %v3681_v14  ;;  %v3694_v37 = vshrl.u32 %v9683_v34, 16  ;;  %v4232_v55 = vunpack.c.l.b16 %v4166_v4 }
 0x25b   : > { %v4659_v50 = vpop.f32.mrf.mxu1  ;;  %v3806_v14 = vunpack.c.l.b16 %v3682_v63  ;;  %v10803_v63 = vld [vmem:[%s12185_s23 + $0x90] sm:$0xff] }
 0x25c   : > { %v4414_v29 = vadd.f32 %v4341_v54, %v3988_v5  ;;  %3275 = vmatmul.bf16.gmra.mxu2 %v10762_v20  ;;  %4383 = vmatmul.bf16.gmra.mxu0 %v4251_v38  ;;  %v3697_v20 = vshll.u32 %v9683_v34, 16  ;;  %v3696_v0 = vrot.slane %v3694_v37, 4  ;;  %v9685_v34 = vld [vmem:[%s11196_s12 + $0xbc] sm:$0x1] }
 0x25d   : > { %3957 = vmatmul.bf16.gmra.mxu3 %v3825_v19  ;;  %v3692_v19 = vsel %vm11230_vm2, %v3687_v23, %v3691_v24  ;;  %v3705_v23 = vrot.slane %v3703_v2, 5  ;;  %v3709_v24 = vrot.slane %v3707_v15, 4  ;;  %v3713_v37 = vshll.u32 %v9685_v34, 16 }
 0x25e   : > { %4698 = vmatmul.bf16.gmra.mxu1 %v10802_v27  ;;  %v12546_v47 = vadd.f32 %v4656_v32, %v4414_v29  ;;  %v3807_v5 = vunpack.c.l.b16 %v3692_v19  ;;  %v3699_v29 = vrot.slane %v3697_v20, 5  ;;  %v4172_v15 = vrot.slane %v12544_v12, 5 }
 0x25f   : > { %v3236_v54 = vpop.f32.mrf.mxu2  ;;  %v3710_v19 = vor.u32 %v3709_v24, %v3705_v23 }
 0x260   : > { %v3918_v45 = vpop.f32.mrf.mxu3  ;;  %v3307_v13 = vadd.f32 %v3236_v54, %v12040_v39  ;;  %v4169_v39 = vsel %vm11554_vm5, %v4167_v9, %v4168_v30  ;;  %v3826_v9 = vpack.c.b16 %v3807_v5, %v3806_v14  ;;  %v3700_v30 = vor.u32 %v3699_v29, %v3696_v0  ;;  %v9686_v5 = vld [vmem:[%s11196_s12 + $0xc0] sm:$0xf] }
 0x261   : > { %v4346_v32 = vpop.f32.mrf.mxu0  ;;  %v4233_v10 = vunpack.c.l.b16 %v4169_v39  ;;  %v3711_v14 = vrot.slane %v3710_v19, 4  ;;  %v10823_v0 = vld [vmem:[%s14099_s3 + $0x80] sm:$0xff]  ;;  %v4174_v29 = vrot.slane %v4172_v15, 4 }
 0x262   : > { %v3989_v38 = vadd.f32 %v3918_v45, %v3307_v13  ;;  %v10763_v13 = vld [vmem:[%s11196_s12 + $0xa8] sm:$0xff]  ;;  %v3701_v39 = vrot.slane %v3700_v30, 4  ;;  %5750 = vmatpush.bf16.msrb.mxu3 %v10823_v0 }
 0x263   : > { %v4661_v27 = vpop.f32.mrf.mxu1 }
 0x264   : > { %v4415_v3 = vadd.f32 %v4344_v31, %v3989_v38  ;;  %v4252_v31 = vpack.c.b16 %v4233_v10, %v4232_v55  ;;  %v4175_v55 = vrot.slane %v9685_v34, 5 }
 0x266   : > { %v12560_v54 = vadd.f32 %v4659_v50, %v4415_v3  ;;  %v9753_v50 = vld [vmem:[%s11196_s12 + $0xb4] sm:$0xe]  ;;  %v3715_v3 = vrot.slane %v3713_v37, 5 }
 0x267   : > { %v3238_v45 = vpop.f32.mrf.mxu2  ;;  %v9769_v12 = vrot.slane %v9753_v50, 9 }
 0x268   : > { %14114 = vst [vmem:[#allocation2_spill] sm:$0xff] %v12560_v54  ;;  %v3920_v41 = vpop.f32.mrf.mxu3  ;;  %v3308_v35 = vadd.f32 %v3238_v45, %v12059_v18  ;;  %v10815_v18 = vld [vmem:[%s14099_s3 + $0x40] sm:$0xff]  ;;  %v3716_v30 = vsel %vm11230_vm2, %v3711_v14, %v3715_v3 }
 0x269   : > { %v4349_v38 = vpop.f32.mrf.mxu0  ;;  %5324 = vmatpush.bf16.msrb.mxu2 %v10815_v18  ;;  %v4173_v37 = vsel %vm11554_vm5, %v9769_v12, %v4172_v15  ;;  %v3809_v50 = vunpack.c.l.b16 %v3716_v30  ;;  %v10847_v18 = vld [vmem:[%s14099_s3 + $0xc0] sm:$0xff] }
 0x26a   : > { %v3990_v20 = vadd.f32 %v3920_v41, %v3308_v35  ;;  %v3706_v35 = vsel %vm11230_vm2, %v3701_v39, %v3705_v23  ;;  %v4234_v14 = vunpack.c.l.b16 %v4173_v37  ;;  %6066 = vmatpush.bf16.msrb.mxu0 %v10847_v18 }
 0x26b   : > { %v4664_v2 = vpop.f32.mrf.mxu1  ;;  %v3808_v23 = vunpack.c.l.b16 %v3706_v35 }
 0x26c   : > { %v4416_v4 = vadd.f32 %v4346_v32, %v3990_v20  ;;  %3280 = vmatmul.bf16.gmra.mxu2 %v10763_v13  ;;  %4388 = vmatmul.bf16.gmra.mxu0 %v4252_v31  ;;  %v12575_v32 = vld [vmem:[%s11196_s12 + $0xc4] sm:$0xf]  ;;  %v3718_v13 = vshrl.u32 %v9686_v5, 16 }
 0x26d   : > { %3962 = vmatmul.bf16.gmra.mxu3 %v3826_v9  ;;  %v3721_v9 = vshll.u32 %v9686_v5, 16  ;;  %v3727_v34 = vshll.u32 %v12575_v32, 16  ;;  %v3731_v31 = vshrl.u32 %v12575_v32, 16 }
 0x26e   : > { %4703 = vmatmul.bf16.gmra.mxu1 %v10803_v63  ;;  %v12577_v10 = vadd.f32 %v4661_v27, %v4416_v4  ;;  %v3720_v4 = vrot.slane %v3718_v13, 4  ;;  %v10804_v13 = vld [vmem:[%s12185_s23 + $0x9c] sm:$0xff] }
 0x26f   : > { %v3241_v24 = vpop.f32.mrf.mxu2  ;;  %v3723_v39 = vrot.slane %v3721_v9, 5  ;;  %v3729_v5 = vrot.slane %v3727_v34, 5  ;;  %v3733_v0 = vrot.slane %v3731_v31, 4  ;;  %v4179_v34 = vrot.slane %v12575_v32, 5 }
 0x270   : > { %14115 = vst [vmem:[#allocation3_spill] sm:$0xff] %v12577_v10  ;;  %v3923_v45 = vpop.f32.mrf.mxu3  ;;  %v3309_v41 = vadd.f32 %v3241_v24, %v12080_v62  ;;  %v4176_v62 = vsel %vm11554_vm5, %v4174_v29, %v4175_v55  ;;  %v9688_v24 = vld [vmem:[%s11196_s12 + $0xc8] sm:$0x1]  ;;  %v10764_v55 = vld [vmem:[%s11196_s12 + $0xb4] sm:$0xff] }
 0x271   : > { %v4351_v63 = vpop.f32.mrf.mxu0  ;;  %v4235_v3 = vunpack.c.l.b16 %v4176_v62  ;;  %v3734_v9 = vor.u32 %v3733_v0, %v3729_v5  ;;  %v3737_v30 = vshll.u32 %v9688_v24, 16  ;;  %v9689_v62 = vld [vmem:[%s11196_s12 + $0xcc] sm:$0xf] }
 0x272   : > { %v3991_v27 = vadd.f32 %v3923_v45, %v3309_v41  ;;  %v3827_v45 = vpack.c.b16 %v3809_v50, %v3808_v23  ;;  %v3724_v41 = vor.u32 %v3723_v39, %v3720_v4  ;;  %v12606_v23 = vld [vmem:[%s11196_s12 + $0xd0] sm:$0xf]  ;;  %v4181_v39 = vrot.slane %v4179_v34, 4 }
 0x273   : > { %v4666_v19 = vpop.f32.mrf.mxu1  ;;  %v4253_v35 = vpack.c.b16 %v4235_v3, %v4234_v14  ;;  %v3735_v50 = vrot.slane %v3734_v9, 4  ;;  %v3739_v4 = vrot.slane %v3737_v30, 5  ;;  %v4182_v14 = vrot.slane %v9688_v24, 5 }
 0x274   : > { %v4417_v20 = vadd.f32 %v4349_v38, %v3991_v27  ;;  %v3725_v18 = vrot.slane %v3724_v41, 4  ;;  %v3742_v3 = vshrl.u32 %v9689_v62, 16  ;;  %v3745_v0 = vshll.u32 %v9689_v62, 16 }
 0x275   : > { %v3740_v24 = vsel %vm11230_vm2, %v3735_v50, %v3739_v4  ;;  %v4183_v30 = vsel %vm11554_vm5, %v4181_v39, %v4182_v14 }
 0x276   : > { %v12594_v15 = vadd.f32 %v4664_v2, %v4417_v20  ;;  %v9754_v2 = vld [vmem:[%s11196_s12 + $0xc0] sm:$0xe]  ;;  %v3730_v41 = vsel %vm11230_vm2, %v3725_v18, %v3729_v5  ;;  %v3811_v18 = vunpack.c.l.b16 %v3740_v24  ;;  %v4237_v50 = vunpack.c.l.b16 %v4183_v30  ;;  %v12632_v24 = vld [vmem:[%s12185_s23 + $0x4] sm:$0xf] }
 0x277   : > { %v3243_v12 = vpop.f32.mrf.mxu2  ;;  %v9770_v32 = vrot.slane %v9754_v2, 9  ;;  %v3747_v2 = vrot.slane %v3745_v0, 5  ;;  %v10765_v0 = vld [vmem:[%s11196_s12 + $0xc0] sm:$0xff] }
 0x278   : > { %14116 = vst [vmem:[#allocation4_spill] sm:$0xff] %v12594_v15  ;;  %v3925_v38 = vpop.f32.mrf.mxu3  ;;  %v3310_v29 = vadd.f32 %v3243_v12, %v12096_v59  ;;  %v10855_v59 = vld [vmem:[%s14099_s3 + $0x100] sm:$0xff] }
 0x279   : > { %v4354_v27 = vpop.f32.mrf.mxu0  ;;  %6748 = vmatpush.bf16.msrb.mxu1 %v10855_v59  ;;  %v9691_v59 = vld [vmem:[%s11196_s12 + $0xd4] sm:$0x1] }
 0x27a   : > { %v3992_v31 = vadd.f32 %v3925_v38, %v3310_v29  ;;  %v3751_v29 = vshll.u32 %v12606_v23, 16  ;;  %v3761_v14 = vshll.u32 %v9691_v59, 16 }
 0x27b   : > { %v4669_v37 = vpop.f32.mrf.mxu1 }
 0x27c   : > { %v4418_v20 = vadd.f32 %v4351_v63, %v3992_v31  ;;  %3285 = vmatmul.bf16.gmra.mxu2 %v10764_v55  ;;  %4393 = vmatmul.bf16.gmra.mxu0 %v4253_v35  ;;  %v3755_v55 = vshrl.u32 %v12606_v23, 16  ;;  %v4180_v35 = vsel %vm11554_vm5, %v9770_v32, %v4179_v34  ;;  %v3744_v31 = vrot.slane %v3742_v3, 4 }
 0x27d   : > { %3967 = vmatmul.bf16.gmra.mxu3 %v3827_v45  ;;  %v12621_v62 = vrot.slane %v3751_v29, 5  ;;  %v4236_v34 = vunpack.c.l.b16 %v4180_v35  ;;  %v9755_v29 = vld [vmem:[%s11196_s12 + $0xcc] sm:$0xe] }
 0x27e   : > { %4708 = vmatmul.bf16.gmra.mxu1 %v10804_v13  ;;  %v12608_v63 = vadd.f32 %v4666_v19, %v4418_v20  ;;  %v3810_v20 = vunpack.c.l.b16 %v3730_v41  ;;  %v3748_v4 = vor.u32 %v3747_v2, %v3744_v31  ;;  %v4186_v41 = vrot.slane %v12606_v23, 5 }
 0x27f   : > { %v3246_v12 = vpop.f32.mrf.mxu2  ;;  %v4814_v23 = vshll.u32 %v12632_v24, 16 }
 0x280   : > { %14117 = vst [vmem:[#allocation5_spill] sm:$0xff] %v12608_v63  ;;  %v3928_v38 = vpop.f32.mrf.mxu3  ;;  %v3311_v45 = vadd.f32 %v3246_v12, %v12114_v25  ;;  %v3757_v25 = vrot.slane %v3755_v55, 4  ;;  %v4756_v55 = vld [vmem:[%s12185_s23] sm:$0xf]  ;;  %v3749_v31 = vrot.slane %v3748_v4, 4  ;;  %v3763_v63 = vrot.slane %v3761_v14, 5 }
 0x281   : > { %v4356_v13 = vpop.f32.mrf.mxu0  ;;  %v10172_v4 = vld [vmem:[%s12185_s23 + $0xc] sm:$0xf] }
 0x282   : > { %v3993_v19 = vadd.f32 %v3928_v38, %v3311_v45  ;;  %v3758_v39 = vor.u32 %v3757_v25, %v12621_v62  ;;  %v3828_v38 = vpack.c.b16 %v3811_v18, %v3810_v20  ;;  %v10805_v45 = vld [vmem:[%s12185_s23 + $0xa8] sm:$0xff]  ;;  %v4805_v20 = vshrl.u32 %v4756_v55, 16 }
 0x283   : > { %v4671_v9 = vpop.f32.mrf.mxu1 }
 0x284   : > { %v4419_v5 = vadd.f32 %v4354_v27, %v3993_v19  ;;  %v4254_v27 = vpack.c.b16 %v4237_v50, %v4236_v34  ;;  %v3759_v25 = vrot.slane %v3758_v39, 4  ;;  %v4808_v34 = vshll.u32 %v4756_v55, 16 }
 0x285   : > { %v4818_v50 = vshrl.u32 %v12632_v24, 16 }
 0x286   : > { %v12636_v2 = vadd.f32 %v4669_v37, %v4419_v5  ;;  %v4188_v37 = vrot.slane %v4186_v41, 4  ;;  %v4189_v5 = vrot.slane %v9691_v59, 5 }
 0x287   : > { %v3248_v32 = vpop.f32.mrf.mxu2 }
 0x288   : > { %v3930_v12 = vpop.f32.mrf.mxu3  ;;  %v3312_v3 = vadd.f32 %v3248_v32, %v12133_v53  ;;  %14118 = vst [vmem:[#allocation6_spill] sm:$0xff] %v12636_v2  ;;  %v9771_v53 = vrot.slane %v9755_v29, 9  ;;  %v10870_v32 = vld [vmem:[%s14099_s3 + $0x178] sm:$0xff]  ;;  %v10173_v29 = vld [vmem:[%s12185_s23 + $0x10] sm:$0xf] }
 0x289   : > { %v4359_v19 = vpop.f32.mrf.mxu0  ;;  %7167 = vmatpush.bf16.msra.mxu2 %v10870_v32  ;;  %v10806_v2 = vld [vmem:[%s12185_s23 + $0xb4] sm:$0xff] }
 0x28a   : > { %v3994_v35 = vadd.f32 %v3930_v12, %v3312_v3  ;;  %v3754_v3 = vsel %vm11230_vm2, %v3749_v31, %v12621_v62  ;;  %v4187_v59 = vsel %vm11554_vm5, %v9771_v53, %v4186_v41  ;;  %v6229_v62 = vshrl.u32 %v10172_v4, 16  ;;  %v12663_v41 = vld [vmem:[%s12185_s23 + $0x8] sm:$0x1] }
 0x28b   : > { %v12634_v30 = vpop.f32.mrf.mxu1  ;;  %v6232_v31 = vshll.u32 %v10172_v4, 16  ;;  %v6242_v53 = vshrl.u32 %v10173_v29, 16  ;;  %v4824_v4 = vshll.u32 %v12663_v41, 16 }
 0x28c   : > { %v4420_v18 = vadd.f32 %v4356_v13, %v3994_v35  ;;  %3290 = vmatmul.bf16.gmra.mxu2 %v10765_v0  ;;  %4398 = vmatmul.bf16.gmra.mxu0 %v4254_v27  ;;  %v10894_v13 = vld [vmem:[%s14099_s3 + $0x1b8] sm:$0xff]  ;;  %v3764_v0 = vsel %vm11230_vm2, %v3759_v25, %v3763_v63  ;;  %v12658_v27 = vrot.slane %v4814_v23, 5  ;;  %v4190_v35 = vsel %vm11554_vm5, %v4188_v37, %v4189_v5 }
 0x28d   : > { %3972 = vmatmul.bf16.gmra.mxu3 %v3828_v38  ;;  %v4807_v38 = vrot.slane %v4805_v20, 4  ;;  %v6238_v25 = vshll.u32 %v10173_v29, 16  ;;  %v3812_v20 = vunpack.c.l.b16 %v3754_v3  ;;  %v10902_v5 = vld [vmem:[%s14099_s3 + $0x1f8] sm:$0xff]  ;;  %v10174_v29 = vld [vmem:[%s12185_s23 + $0x14] sm:$0x1] }
 0x28e   : > { %4713 = vmatmul.bf16.gmra.mxu1 %v10805_v45  ;;  %v12647_v12 = vadd.f32 %v4671_v9, %v4420_v18  ;;  %7483 = vmatpush.bf16.msra.mxu3 %v10894_v13  ;;  %v4810_v9 = vrot.slane %v4808_v34, 5  ;;  %v4820_v45 = vrot.slane %v4818_v50, 4  ;;  %v4238_v34 = vunpack.c.l.b16 %v4187_v59 }
 0x28f   : > { %v3251_v39 = vpop.f32.mrf.mxu2  ;;  %v4239_v13 = vunpack.c.l.b16 %v4190_v35  ;;  %v12672_v3 = vrot.slane %v6238_v25, 5  ;;  %8165 = vmatpush.bf16.msra.mxu0 %v10902_v5  ;;  %v10766_v35 = vld [vmem:[%s11196_s12 + $0xcc] sm:$0xff]  ;;  %s10670_s12 = sshll.u32 %s14149_s18, 7 }
 0x290   : > { %14119 = vst [vmem:[#allocation7_spill] sm:$0xff] %v12647_v12  ;;  %v3933_v14 = vpop.f32.mrf.mxu3  ;;  %v3313_v55 = vadd.f32 %v3251_v39, %v12154_v28  ;;  %v3813_v28 = vunpack.c.l.b16 %v3764_v0  ;;  %v4811_v50 = vor.u32 %v4810_v9, %v4807_v38  ;;  %v4821_v37 = vor.u32 %v4820_v45, %v12658_v27  ;;  %s13856_s29 = scalar_lea.vmem %s14101_s5, %s10670_s12 }
 0x291   : > { %v4361_v32 = vpop.f32.mrf.mxu0  ;;  %v6231_v39 = vrot.slane %v6229_v62, 4  ;;  %v6244_v0 = vrot.slane %v6242_v53, 4  ;;  %v5504_v9 = vrot.slane %v12632_v24, 5  ;;  %v6248_v53 = vshll.u32 %v10174_v29, 16 }
 0x292   : > { %v3995_v18 = vadd.f32 %v3933_v14, %v3313_v55  ;;  %v6234_v14 = vrot.slane %v6232_v31, 5  ;;  %v5438_v55 = vld [vmem:[%s12185_s23] sm:$0xe]  ;;  %v3829_v38 = vpack.c.b16 %v3813_v28, %v3812_v20  ;;  %v4812_v12 = vrot.slane %v4811_v50, 4  ;;  %v4759_v28 = vld [vmem:[%s12185_s23 + $0xc] sm:$0xf] }
 0x293   : > { %v4676_v63 = vpop.f32.mrf.mxu1  ;;  %v4822_v62 = vrot.slane %v4821_v37, 4  ;;  %v4826_v31 = vrot.slane %v4824_v4, 5  ;;  %v9964_v15 = vrot.slane %v5438_v55, 9  ;;  %v6245_v24 = vor.u32 %v6244_v0, %v12672_v3  ;;  %v10910_v37 = vld [vmem:[%s14099_s3 + $0x238] sm:$0xff]  ;;  %v12693_v4 = vld [vmem:[%s12185_s23 + $0x10] sm:$0xf] }
 0x294   : > { %v4421_v23 = vadd.f32 %v4359_v19, %v3995_v18  ;;  %v4255_v18 = vpack.c.b16 %v4239_v13, %v4238_v34  ;;  %v6235_v25 = vor.u32 %v6234_v14, %v6231_v39  ;;  %v5506_v20 = vrot.slane %v5504_v9, 4  ;;  %v10175_v39 = vld [vmem:[%s12185_s23 + $0x18] sm:$0xf]  ;;  %v10176_v14 = vld [vmem:[%s12185_s23 + $0x1c] sm:$0xf]  ;;  %8591 = vmatpush.bf16.msra.mxu1 %v10910_v37 }
 0x295   : > { %v4817_v50 = vsel %vm11230_vm2, %v4812_v12, %v12658_v27  ;;  %v6246_v55 = vrot.slane %v6245_v24, 4  ;;  %v4829_v12 = vshrl.u32 %v4759_v28, 16  ;;  %v4832_v27 = vshll.u32 %v4759_v28, 16 }
 0x296   : > { %v12684_v34 = vadd.f32 %v12634_v30, %v4421_v23  ;;  %v4827_v30 = vsel %vm11230_vm2, %v4822_v62, %v4826_v31  ;;  %v6250_v23 = vrot.slane %v6248_v53, 5  ;;  %v5205_v62 = vunpack.c.l.b16 %v4817_v50 }
 0x297   : > { %v3253_v19 = vpop.f32.mrf.mxu2  ;;  %v5206_v31 = vunpack.c.l.b16 %v4827_v30  ;;  %v4834_v28 = vrot.slane %v4832_v27, 5 }
 0x298   : > { %v3935_v59 = vpop.f32.mrf.mxu3  ;;  %v3314_v45 = vadd.f32 %v3253_v19, %v12167_v40  ;;  %v5507_v40 = vrot.slane %v12663_v41, 5  ;;  %v6236_v41 = vrot.slane %v6235_v25, 4 }
 0x299   : > { %v4364_v10 = vpop.f32.mrf.mxu0 }
 0x29a   : > { %v3996_v5 = vadd.f32 %v3935_v59, %v3314_v45  ;;  %v4838_v59 = vshll.u32 %v12693_v4, 16  ;;  %v6253_v45 = vshrl.u32 %v10175_v39, 16  ;;  %v6241_v25 = vsel %vm11230_vm2, %v6236_v41, %v12672_v3 }
 0x29b   : > { %v12678_v54 = vpop.f32.mrf.mxu1 }
 0x29c   : > { %v4422_v13 = vadd.f32 %v4361_v32, %v3996_v5  ;;  %3295 = vmatmul.bf16.gmra.mxu2 %v10766_v35  ;;  %4403 = vmatmul.bf16.gmra.mxu0 %v4255_v18  ;;  %v5505_v32 = vsel %vm11554_vm5, %v9964_v15, %v5504_v9  ;;  %v6256_v9 = vshll.u32 %v10175_v39, 16  ;;  %v6262_v35 = vshll.u32 %v10176_v14, 16 }
 0x29d   : > { %3977 = vmatmul.bf16.gmra.mxu3 %v3829_v38  ;;  %v4842_v38 = vshrl.u32 %v12693_v4, 16  ;;  %v6266_v18 = vshrl.u32 %v10176_v14, 16  ;;  %v12716_v37 = vrot.slane %v4838_v59, 5  ;;  %v6255_v39 = vrot.slane %v6253_v45, 4 }
 0x29e   : > { %4718 = vmatmul.bf16.gmra.mxu1 %v10806_v2  ;;  %v12701_v29 = vadd.f32 %v4676_v63, %v4422_v13  ;;  %v5508_v2 = vsel %vm11554_vm5, %v5506_v20, %v5507_v40  ;;  %v5631_v63 = vunpack.c.l.b16 %v5505_v32  ;;  %v6251_v20 = vsel %vm11230_vm2, %v6246_v55, %v6250_v23  ;;  %v12714_v13 = vld [vmem:[%s12185_s23 + $0x14] sm:$0x1] }
 0x29f   : > { %v3256_v0 = vpop.f32.mrf.mxu2  ;;  %v4831_v40 = vrot.slane %v4829_v12, 4  ;;  %v4844_v50 = vrot.slane %v4842_v38, 4  ;;  %v6258_v32 = vrot.slane %v6256_v9, 5  ;;  %v12718_v3 = vrot.slane %v6262_v35, 5 }
 0x2a0   : > { %14120 = vst [vmem:[#allocation8_spill] sm:$0xff] %v12701_v29  ;;  %v3938_v19 = vpop.f32.mrf.mxu3  ;;  %v3315_v15 = vadd.f32 %v3256_v0, %v12188_v46  ;;  %v5632_v46 = vunpack.c.l.b16 %v5508_v2  ;;  %v6268_v41 = vrot.slane %v6266_v18, 4  ;;  %v6629_v14 = vunpack.c.l.b16 %v6241_v25  ;;  %v10831_v25 = vld [vmem:[%s12185_s23 + $0xc] sm:$0xff]  ;;  %v4762_v29 = vld [vmem:[%s12185_s23 + $0x18] sm:$0xf] }
 0x2a1   : > { %v4366_v5 = vpop.f32.mrf.mxu0  ;;  %v6630_v0 = vunpack.c.l.b16 %v6251_v20  ;;  %v4835_v23 = vor.u32 %v4834_v28, %v4831_v40  ;;  %v4848_v55 = vshll.u32 %v12714_v13, 16  ;;  %v5237_v2 = vpack.c.b16 %v5206_v31, %v5205_v62 }
 0x2a2   : > { %v3997_v53 = vadd.f32 %v3938_v19, %v3315_v15  ;;  %v10177_v19 = vld [vmem:[%s12185_s23 + $0x20] sm:$0x1]  ;;  %v5663_v59 = vpack.c.b16 %v5632_v46, %v5631_v63  ;;  %v4845_v38 = vor.u32 %v4844_v50, %v12716_v37  ;;  %v5439_v15 = vld [vmem:[%s12185_s23 + $0xc] sm:$0xe]  ;;  %v6259_v9 = vor.u32 %v6258_v32, %v6255_v39 }
 0x2a3   : > { %v4681_v24 = vpop.f32.mrf.mxu1  ;;  %v6269_v35 = vor.u32 %v6268_v41, %v12718_v3  ;;  %v6272_v18 = vshll.u32 %v10177_v19, 16  ;;  %v4836_v62 = vrot.slane %v4835_v23, 4  ;;  %v4850_v31 = vrot.slane %v4848_v55, 5  ;;  %v10869_v19 = vld [vmem:[%s14099_s3 + $0x170] sm:$0xff]  ;;  %v10178_v23 = vld [vmem:[%s12185_s23 + $0x24] sm:$0xf] }
 0x2a4   : > { %v4423_v30 = vadd.f32 %v4364_v10, %v3997_v53  ;;  %v5511_v10 = vrot.slane %v12693_v4, 5  ;;  %v6661_v53 = vpack.c.b16 %v6630_v0, %v6629_v14  ;;  %v9965_v63 = vrot.slane %v5439_v15, 9  ;;  %v12736_v0 = vld [vmem:[%s12185_s23 + $0x1c] sm:$0xf]  ;;  %7168 = vmatpush.bf16.msra.mxu2 %v10869_v19  ;;  %v10179_v55 = vld [vmem:[%s12185_s23 + $0x28] sm:$0xf] }
 0x2a5   : > { %v4846_v46 = vrot.slane %v4845_v38, 4  ;;  %v5514_v4 = vrot.slane %v12714_v13, 5  ;;  %v6260_v32 = vrot.slane %v6259_v9, 4  ;;  %v6270_v41 = vrot.slane %v6269_v35, 4 }
 0x2a6   : > { %v5513_v50 = vrot.slane %v5511_v10, 4  ;;  %v6274_v14 = vrot.slane %v6272_v18, 5  ;;  %v4853_v13 = vshrl.u32 %v4762_v29, 16  ;;  %v5512_v38 = vsel %vm11554_vm5, %v9965_v63, %v5511_v10 }
 0x2a7   : > { %v3258_v12 = vpop.f32.mrf.mxu2  ;;  %v4862_v15 = vshll.u32 %v12736_v0, 16  ;;  %v6277_v35 = vshrl.u32 %v10178_v23, 16  ;;  %v6280_v10 = vshll.u32 %v10178_v23, 16  ;;  %v6286_v18 = vshll.u32 %v10179_v55, 16 }
 0x2a8   : > { %v3940_v27 = vpop.f32.mrf.mxu3  ;;  %v3316_v45 = vadd.f32 %v3258_v12, %v12205_v26  ;;  %v12733_v26 = vadd.f32 %v12678_v54, %v4423_v30  ;;  %v10893_v54 = vld [vmem:[%s14099_s3 + $0x1b0] sm:$0xff]  ;;  %v4856_v30 = vshll.u32 %v4762_v29, 16  ;;  %v6275_v9 = vsel %vm11230_vm2, %v6270_v41, %v6274_v14 }
 0x2a9   : > { %v4369_v40 = vpop.f32.mrf.mxu0  ;;  %7484 = vmatpush.bf16.msra.mxu3 %v10893_v54  ;;  %v6632_v19 = vunpack.c.l.b16 %v6275_v9  ;;  %v10901_v54 = vld [vmem:[%s14099_s3 + $0x1f0] sm:$0xff]  ;;  %v6279_v23 = vrot.slane %v6277_v35, 4  ;;  %v10832_v9 = vld [vmem:[%s12185_s23 + $0x18] sm:$0xff] }
 0x2aa   : > { %v3998_v20 = vadd.f32 %v3940_v27, %v3316_v45  ;;  %14121 = vst [vmem:[#allocation9_spill] sm:$0xff] %v12733_v26  ;;  %v4866_v45 = vshrl.u32 %v12736_v0, 16  ;;  %v4858_v63 = vrot.slane %v4856_v30, 5  ;;  %8166 = vmatpush.bf16.msra.mxu0 %v10901_v54  ;;  %v4765_v26 = vld [vmem:[%s12185_s23 + $0x24] sm:$0xf] }
 0x2ab   : > { %v12728_v28 = vpop.f32.mrf.mxu1 }
 0x2ac   : > { %v4424_v39 = vadd.f32 %v4366_v5, %v3998_v20  ;;  %5325 = vmatmul.bf16.vlgmr.msrb.gmra.mxu2 %v5237_v2  ;;  %6067 = vmatmul.bf16.vlgmr.msrb.gmra.mxu0 %v10831_v25  ;;  %v4841_v5 = vsel %vm11230_vm2, %v4836_v62, %v12716_v37  ;;  %v6265_v37 = vsel %vm11230_vm2, %v6260_v32, %v12718_v3  ;;  %v6290_v25 = vshrl.u32 %v10179_v55, 16 }
 0x2ad   : > { %5751 = vmatmul.bf16.vlgmr.msrb.gmra.mxu3 %v5663_v59  ;;  %v4851_v59 = vsel %vm11230_vm2, %v4846_v46, %v4850_v31  ;;  %v5207_v31 = vunpack.c.l.b16 %v4841_v5  ;;  %v4868_v3 = vrot.slane %v4866_v45, 4  ;;  %v6631_v14 = vunpack.c.l.b16 %v6265_v37 }
 0x2ae   : > { %6749 = vmatmul.bf16.vlgmr.msrb.gmra.mxu1 %v6661_v53  ;;  %v12749_v12 = vadd.f32 %v4681_v24, %v4424_v39  ;;  %v5515_v24 = vsel %vm11554_vm5, %v5513_v50, %v5514_v4  ;;  %v5208_v46 = vunpack.c.l.b16 %v4851_v59  ;;  %v5633_v50 = vunpack.c.l.b16 %v5512_v38  ;;  %v4764_v4 = vld [vmem:[%s12185_s23 + $0x20] sm:$0x1] }
 0x2af   : > { %v3261_v27 = vpop.f32.mrf.mxu2  ;;  %v12766_v39 = vrot.slane %v4862_v15, 5  ;;  %v5634_v41 = vunpack.c.l.b16 %v5515_v24  ;;  %v6282_v5 = vrot.slane %v6280_v10, 5  ;;  %v6292_v30 = vrot.slane %v6290_v25, 4  ;;  %v5440_v15 = vld [vmem:[%s12185_s23 + $0x18] sm:$0xe] }
 0x2b0   : > { %14122 = vst [vmem:[#allocation10_spill] sm:$0xff] %v12749_v12  ;;  %v3943_v2 = vpop.f32.mrf.mxu3  ;;  %v3317_v29 = vadd.f32 %v3261_v27, %v12222_v56  ;;  %v4855_v56 = vrot.slane %v4853_v13, 4  ;;  %v12771_v13 = vrot.slane %v6286_v18, 5  ;;  %v4872_v27 = vshll.u32 %v4764_v4, 16 }
 0x2b1   : > { %v4371_v20 = vpop.f32.mrf.mxu0  ;;  %v4869_v38 = vor.u32 %v4868_v3, %v12766_v39  ;;  %v5518_v45 = vrot.slane %v12736_v0, 5  ;;  %v5238_v24 = vpack.c.b16 %v5208_v46, %v5207_v31  ;;  %v5664_v37 = vpack.c.b16 %v5634_v41, %v5633_v50  ;;  %v10909_v41 = vld [vmem:[%s14099_s3 + $0x230] sm:$0xff] }
 0x2b2   : > { %v3999_v53 = vadd.f32 %v3943_v2, %v3317_v29  ;;  %v4859_v55 = vor.u32 %v4858_v63, %v4855_v56  ;;  %v10180_v2 = vld [vmem:[%s12185_s23 + $0x2c] sm:$0x1]  ;;  %v6662_v35 = vpack.c.b16 %v6632_v19, %v6631_v14  ;;  %v6283_v10 = vor.u32 %v6282_v5, %v6279_v23  ;;  %v12790_v14 = vld [vmem:[%s12185_s23 + $0x28] sm:$0xf]  ;;  %8592 = vmatpush.bf16.msra.mxu1 %v10909_v41 }
 0x2b3   : > { %v4686_v62 = vpop.f32.mrf.mxu1  ;;  %v6293_v18 = vor.u32 %v6292_v30, %v12771_v13  ;;  %v6296_v25 = vshll.u32 %v10180_v2, 16  ;;  %v4874_v54 = vrot.slane %v4872_v27, 5  ;;  %v9966_v12 = vrot.slane %v5440_v15, 9  ;;  %v10182_v15 = vld [vmem:[%s12185_s23 + $0x34] sm:$0xf] }
 0x2b4   : > { %v4425_v32 = vadd.f32 %v4369_v40, %v3999_v53  ;;  %v4860_v3 = vrot.slane %v4859_v55, 4  ;;  %v4870_v0 = vrot.slane %v4869_v38, 4  ;;  %v5521_v31 = vrot.slane %v4764_v4, 5  ;;  %v10181_v4 = vld [vmem:[%s12185_s23 + $0x30] sm:$0xf] }
 0x2b5   : > { %v6284_v19 = vrot.slane %v6283_v10, 4  ;;  %v6294_v23 = vrot.slane %v6293_v18, 4  ;;  %v6298_v5 = vrot.slane %v6296_v25, 5  ;;  %v4877_v30 = vshrl.u32 %v4765_v26, 16 }
 0x2b6   : > { %v12784_v46 = vadd.f32 %v12728_v28, %v4425_v32  ;;  %v4865_v28 = vsel %vm11230_vm2, %v4860_v3, %v12766_v39  ;;  %v4875_v2 = vsel %vm11230_vm2, %v4870_v0, %v4874_v54  ;;  %v4886_v38 = vshll.u32 %v12790_v14, 16 }
 0x2b7   : > { %v3263_v59 = vpop.f32.mrf.mxu2  ;;  %v6310_v25 = vshll.u32 %v10182_v15, 16 }
 0x2b8   : > { %v3945_v40 = vpop.f32.mrf.mxu3  ;;  %v3318_v29 = vadd.f32 %v3263_v59, %v12236_v48  ;;  %v5520_v48 = vrot.slane %v5518_v45, 4  ;;  %v5519_v59 = vsel %vm11554_vm5, %v9966_v12, %v5518_v45  ;;  %v6299_v12 = vsel %vm11230_vm2, %v6294_v23, %v6298_v5 }
 0x2b9   : > { %v4374_v56 = vpop.f32.mrf.mxu0  ;;  %v4879_v45 = vrot.slane %v4877_v30, 4  ;;  %v5635_v3 = vunpack.c.l.b16 %v5519_v59  ;;  %v12813_v0 = vrot.slane %v4886_v38, 5  ;;  %v6634_v23 = vunpack.c.l.b16 %v6299_v12 }
 0x2ba   : > { %v4000_v53 = vadd.f32 %v3945_v40, %v3318_v29  ;;  %v5522_v40 = vsel %vm11554_vm5, %v5520_v48, %v5521_v31  ;;  %v6304_v29 = vshll.u32 %v10181_v4, 16  ;;  %v12816_v31 = vld [vmem:[%s12185_s23 + $0x2c] sm:$0x1]  ;;  %v12818_v30 = vrot.slane %v6310_v25, 5 }
 0x2bb   : > { %v12780_v63 = vpop.f32.mrf.mxu1  ;;  %v5636_v54 = vunpack.c.l.b16 %v5522_v40 }
 0x2bc   : > { %v4426_v50 = vadd.f32 %v4371_v20, %v4000_v53  ;;  %5330 = vmatmul.bf16.gmra.mxu2 %v5238_v24  ;;  %6072 = vmatmul.bf16.gmra.mxu0 %v10832_v9  ;;  %v4880_v20 = vshll.u32 %v4765_v26, 16  ;;  %v4890_v26 = vshrl.u32 %v12790_v14, 16  ;;  %v5209_v24 = vunpack.c.l.b16 %v4865_v28 }
 0x2bd   : > { %5756 = vmatmul.bf16.gmra.mxu3 %v5664_v37  ;;  %v6289_v37 = vsel %vm11230_vm2, %v6284_v19, %v12771_v13  ;;  %v5210_v53 = vunpack.c.l.b16 %v4875_v2  ;;  %v6306_v41 = vrot.slane %v6304_v29, 5  ;;  %v10183_v2 = vld [vmem:[%s12185_s23 + $0x38] sm:$0x1]  ;;  %v5665_v40 = vpack.c.b16 %v5636_v54, %v5635_v3 }
 0x2be   : > { %6754 = vmatmul.bf16.gmra.mxu1 %v6662_v35  ;;  %v12796_v32 = vadd.f32 %v4686_v62, %v4426_v50  ;;  %v6301_v62 = vshrl.u32 %v10181_v4, 16  ;;  %v4882_v18 = vrot.slane %v4880_v20, 5  ;;  %v4892_v13 = vrot.slane %v4890_v26, 4  ;;  %v10833_v26 = vld [vmem:[%s12185_s23 + $0x24] sm:$0xff] }
 0x2bf   : > { %v3266_v55 = vpop.f32.mrf.mxu2  ;;  %v6633_v19 = vunpack.c.l.b16 %v6289_v37  ;;  %v5528_v54 = vrot.slane %v12816_v31, 5 }
 0x2c0   : > { %v3948_v27 = vpop.f32.mrf.mxu3  ;;  %v3319_v39 = vadd.f32 %v3266_v55, %v12250_v44  ;;  %v6314_v44 = vshrl.u32 %v10182_v15, 16  ;;  %v6303_v50 = vrot.slane %v6301_v62, 4  ;;  %v4883_v5 = vor.u32 %v4882_v18, %v4879_v45  ;;  %v5441_v15 = vld [vmem:[%s12185_s23 + $0x24] sm:$0xe] }
 0x2c1   : > { %v4376_v35 = vpop.f32.mrf.mxu0  ;;  %v5239_v55 = vpack.c.b16 %v5210_v53, %v5209_v24  ;;  %v4893_v38 = vor.u32 %v4892_v13, %v12813_v0  ;;  %v6663_v62 = vpack.c.b16 %v6634_v23, %v6633_v19  ;;  %v9967_v25 = vrot.slane %v5441_v15, 9 }
 0x2c2   : > { %v4001_v9 = vadd.f32 %v3948_v27, %v3319_v39  ;;  %v6316_v4 = vrot.slane %v6314_v44, 4  ;;  %v4896_v27 = vshll.u32 %v12816_v31, 16  ;;  %v6307_v39 = vor.u32 %v6306_v41, %v6303_v50  ;;  %v12836_v50 = vld [vmem:[%s12185_s23 + $0x34] sm:$0xf]  ;;  %v10868_v41 = vld [vmem:[%s14099_s3 + $0x168] sm:$0xff] }
 0x2c3   : > { %v4691_v10 = vpop.f32.mrf.mxu1  ;;  %v4884_v24 = vrot.slane %v4883_v5, 4  ;;  %v4894_v3 = vrot.slane %v4893_v38, 4  ;;  %7169 = vmatpush.bf16.msra.mxu2 %v10868_v41  ;;  %v10184_v31 = vld [vmem:[%s12185_s23 + $0x3c] sm:$0xf]  ;;  %v10900_v41 = vld [vmem:[%s14099_s3 + $0x1e8] sm:$0xff] }
 0x2c4   : > { %v4427_v48 = vadd.f32 %v4374_v56, %v4001_v9  ;;  %v5525_v56 = vrot.slane %v12790_v14, 5  ;;  %v6317_v45 = vor.u32 %v6316_v4, %v12818_v30  ;;  %v6320_v9 = vshll.u32 %v10183_v2, 16  ;;  %v4768_v14 = vld [vmem:[%s12185_s23 + $0x30] sm:$0xf]  ;;  %8167 = vmatpush.bf16.msra.mxu0 %v10900_v41 }
 0x2c5   : > { %v4898_v18 = vrot.slane %v4896_v27, 5  ;;  %v6308_v13 = vrot.slane %v6307_v39, 4  ;;  %v4901_v19 = vshrl.u32 %v4768_v14, 16  ;;  %v4910_v27 = vshll.u32 %v12836_v50, 16 }
 0x2c6   : > { %v12832_v44 = vadd.f32 %v12780_v63, %v4427_v48  ;;  %v4904_v63 = vshll.u32 %v4768_v14, 16  ;;  %v6318_v48 = vrot.slane %v6317_v45, 4  ;;  %v6322_v23 = vrot.slane %v6320_v9, 5 }
 0x2c7   : > { %v3268_v28 = vpop.f32.mrf.mxu2  ;;  %v4914_v2 = vshrl.u32 %v12836_v50, 16  ;;  %v4903_v15 = vrot.slane %v4901_v19, 4  ;;  %v6325_v39 = vshrl.u32 %v10184_v31, 16 }
 0x2c8   : > { %v3950_v20 = vpop.f32.mrf.mxu3  ;;  %v3320_v59 = vadd.f32 %v3268_v28, %v12267_v16  ;;  %v5527_v16 = vrot.slane %v5525_v56, 4 }
 0x2c9   : > { %v4379_v37 = vpop.f32.mrf.mxu0 }
 0x2ca   : > { %v4002_v29 = vadd.f32 %v3950_v20, %v3320_v59  ;;  %v4889_v20 = vsel %vm11230_vm2, %v4884_v24, %v12813_v0  ;;  %v10185_v59 = vld [vmem:[%s12185_s23 + $0x40] sm:$0xf]  ;;  %v5529_v38 = vsel %vm11554_vm5, %v5527_v16, %v5528_v54  ;;  %v6313_v0 = vsel %vm11230_vm2, %v6308_v13, %v12818_v30  ;;  %v12870_v13 = vld [vmem:[%s12185_s23 + $0x38] sm:$0x1] }
 0x2cb   : > { %v12827_v12 = vpop.f32.mrf.mxu1  ;;  %v6334_v45 = vshll.u32 %v10185_v59, 16  ;;  %v6338_v9 = vshrl.u32 %v10185_v59, 16  ;;  %v5211_v14 = vunpack.c.l.b16 %v4889_v20  ;;  %v4916_v30 = vrot.slane %v4914_v2, 4 }
 0x2cc   : > { %v4428_v53 = vadd.f32 %v4376_v35, %v4002_v29  ;;  %5335 = vmatmul.bf16.gmra.mxu2 %v5239_v55  ;;  %6077 = vmatmul.bf16.gmra.mxu0 %v10833_v26  ;;  %v10892_v35 = vld [vmem:[%s14099_s3 + $0x1a8] sm:$0xff]  ;;  %v5526_v55 = vsel %vm11554_vm5, %v9967_v25, %v5525_v56  ;;  %v4906_v56 = vrot.slane %v4904_v63, 5  ;;  %v6328_v26 = vshll.u32 %v10184_v31, 16 }
 0x2cd   : > { %5761 = vmatmul.bf16.gmra.mxu3 %v5665_v40  ;;  %v12867_v25 = vrot.slane %v4910_v27, 5  ;;  %v6635_v54 = vunpack.c.l.b16 %v6313_v0  ;;  %v12876_v31 = vrot.slane %v6334_v45, 5 }
 0x2ce   : > { %6759 = vmatmul.bf16.gmra.mxu1 %v6663_v62  ;;  %v12845_v5 = vadd.f32 %v4691_v10, %v4428_v53  ;;  %7485 = vmatpush.bf16.msra.mxu3 %v10892_v35  ;;  %v4899_v10 = vsel %vm11230_vm2, %v4894_v3, %v4898_v18  ;;  %v5637_v53 = vunpack.c.l.b16 %v5526_v55  ;;  %v5638_v3 = vunpack.c.l.b16 %v5529_v38  ;;  %v10834_v38 = vld [vmem:[%s12185_s23 + $0x30] sm:$0xff] }
 0x2cf   : > { %v3271_v4 = vpop.f32.mrf.mxu2  ;;  %v5212_v18 = vunpack.c.l.b16 %v4899_v10  ;;  %v4907_v63 = vor.u32 %v4906_v56, %v4903_v15  ;;  %v6327_v35 = vrot.slane %v6325_v39, 4  ;;  %v4917_v20 = vor.u32 %v4916_v30, %v12867_v25 }
 0x2d0   : > { %v3953_v28 = vpop.f32.mrf.mxu3  ;;  %v3321_v40 = vadd.f32 %v3271_v4, %v12284_v6  ;;  %v6323_v6 = vsel %vm11230_vm2, %v6318_v48, %v6322_v23  ;;  %v6330_v48 = vrot.slane %v6328_v26, 5  ;;  %v10186_v23 = vld [vmem:[%s12185_s23 + $0x44] sm:$0x1]  ;;  %v6340_v4 = vrot.slane %v6338_v9, 4 }
 0x2d1   : > { %v4381_v29 = vpop.f32.mrf.mxu0  ;;  %v6636_v19 = vunpack.c.l.b16 %v6323_v6  ;;  %v4920_v55 = vshll.u32 %v12870_v13, 16  ;;  %v5240_v2 = vpack.c.b16 %v5212_v18, %v5211_v14  ;;  %v5666_v59 = vpack.c.b16 %v5638_v3, %v5637_v53  ;;  %v4771_v18 = vld [vmem:[%s12185_s23 + $0x3c] sm:$0xf]  ;;  %v10908_v3 = vld [vmem:[%s14099_s3 + $0x228] sm:$0xff] }
 0x2d2   : > { %v4003_v62 = vadd.f32 %v3953_v28, %v3321_v40  ;;  %v5442_v40 = vld [vmem:[%s12185_s23 + $0x30] sm:$0xe]  ;;  %v5532_v10 = vrot.slane %v12836_v50, 5  ;;  %v4908_v15 = vrot.slane %v4907_v63, 4  ;;  %v6331_v56 = vor.u32 %v6330_v48, %v6327_v35  ;;  %8593 = vmatpush.bf16.msra.mxu1 %v10908_v3 }
 0x2d3   : > { %v12863_v24 = vpop.f32.mrf.mxu1  ;;  %v6664_v0 = vpack.c.b16 %v6636_v19, %v6635_v54  ;;  %v6344_v39 = vshll.u32 %v10186_v23, 16  ;;  %v6341_v45 = vor.u32 %v6340_v4, %v12876_v31  ;;  %v4918_v9 = vrot.slane %v4917_v20, 4  ;;  %v12895_v54 = vld [vmem:[%s12185_s23 + $0x40] sm:$0xf]  ;;  %v10187_v19 = vld [vmem:[%s12185_s23 + $0x48] sm:$0xf] }
 0x2d4   : > { %v4429_v16 = vadd.f32 %v4379_v37, %v4003_v62  ;;  %v9968_v14 = vrot.slane %v5442_v40, 9  ;;  %v5534_v53 = vrot.slane %v5532_v10, 4  ;;  %v4913_v41 = vsel %vm11230_vm2, %v4908_v15, %v12867_v25  ;;  %v10188_v23 = vld [vmem:[%s12185_s23 + $0x4c] sm:$0xf] }
 0x2d5   : > { %v6342_v63 = vrot.slane %v6341_v45, 4  ;;  %v4925_v35 = vshrl.u32 %v4771_v18, 16  ;;  %v4928_v48 = vshll.u32 %v4771_v18, 16  ;;  %v6352_v40 = vshll.u32 %v10187_v19, 16 }
 0x2d6   : > { %v12889_v30 = vadd.f32 %v12827_v12, %v4429_v16  ;;  %v5535_v12 = vrot.slane %v12870_v13, 5  ;;  %v6332_v16 = vrot.slane %v6331_v56, 4  ;;  %v5533_v25 = vsel %vm11554_vm5, %v9968_v14, %v5532_v10  ;;  %v4773_v14 = vld [vmem:[%s12185_s23 + $0x44] sm:$0x1] }
 0x2d7   : > { %v3273_v37 = vpop.f32.mrf.mxu2  ;;  %v4934_v13 = vshll.u32 %v12895_v54, 16  ;;  %v6362_v15 = vshrl.u32 %v10188_v23, 16  ;;  %v4930_v45 = vrot.slane %v4928_v48, 5  ;;  %v10189_v48 = vld [vmem:[%s12185_s23 + $0x50] sm:$0x1] }
 0x2d8   : > { %v3955_v28 = vpop.f32.mrf.mxu3  ;;  %v3322_v27 = vadd.f32 %v3273_v37, %v12298_v7  ;;  %v4922_v7 = vrot.slane %v4920_v55, 5  ;;  %v4938_v55 = vshrl.u32 %v12895_v54, 16 }
 0x2d9   : > { %v4384_v62 = vpop.f32.mrf.mxu0  ;;  %v12921_v18 = vrot.slane %v4934_v13, 5 }
 0x2da   : > { %v4004_v26 = vadd.f32 %v3955_v28, %v3322_v27  ;;  %v4923_v20 = vsel %vm11230_vm2, %v4918_v9, %v4922_v7  ;;  %v5639_v7 = vunpack.c.l.b16 %v5533_v25 }
 0x2db   : > { %v12884_v6 = vpop.f32.mrf.mxu1  ;;  %v5214_v9 = vunpack.c.l.b16 %v4923_v20  ;;  %v5443_v20 = vld [vmem:[%s12185_s23 + $0x3c] sm:$0xe] }
 0x2dc   : > { %v4430_v50 = vadd.f32 %v4381_v29, %v4004_v26  ;;  %5340 = vmatmul.bf16.gmra.mxu2 %v5240_v2  ;;  %6082 = vmatmul.bf16.gmra.mxu0 %v10834_v38  ;;  %v6346_v29 = vrot.slane %v6344_v39, 5  ;;  %v5213_v2 = vunpack.c.l.b16 %v4913_v41  ;;  %v6337_v38 = vsel %vm11230_vm2, %v6332_v16, %v12876_v31 }
 0x2dd   : > { %5766 = vmatmul.bf16.gmra.mxu3 %v5666_v59  ;;  %v6349_v59 = vshrl.u32 %v10187_v19, 16  ;;  %v6354_v41 = vrot.slane %v6352_v40, 5 }
 0x2de   : > { %6764 = vmatmul.bf16.gmra.mxu1 %v6664_v0  ;;  %v12904_v4 = vadd.f32 %v12863_v24, %v4430_v50  ;;  %v5536_v24 = vsel %vm11554_vm5, %v5534_v53, %v5535_v12  ;;  %v6358_v0 = vshll.u32 %v10188_v23, 16  ;;  %v6347_v26 = vsel %vm11230_vm2, %v6342_v63, %v6346_v29 }
 0x2df   : > { %v3276_v37 = vpop.f32.mrf.mxu2  ;;  %v4940_v50 = vrot.slane %v4938_v55, 4  ;;  %v5640_v31 = vunpack.c.l.b16 %v5536_v24  ;;  %v6351_v3 = vrot.slane %v6349_v59, 4  ;;  %v6637_v12 = vunpack.c.l.b16 %v6337_v38  ;;  %v10835_v59 = vld [vmem:[%s12185_s23 + $0x3c] sm:$0xff] }
 0x2e0   : > { %v3958_v28 = vpop.f32.mrf.mxu3  ;;  %v3323_v27 = vadd.f32 %v3276_v37, %v12312_v8  ;;  %v4927_v8 = vrot.slane %v4925_v35, 4  ;;  %v6638_v16 = vunpack.c.l.b16 %v6347_v26  ;;  %v12923_v19 = vrot.slane %v6358_v0, 5 }
 0x2e1   : > { %v4386_v56 = vpop.f32.mrf.mxu0  ;;  %v6364_v29 = vrot.slane %v6362_v15, 4  ;;  %v4944_v35 = vshll.u32 %v4773_v14, 16  ;;  %v5241_v13 = vpack.c.b16 %v5214_v9, %v5213_v2  ;;  %v5667_v55 = vpack.c.b16 %v5640_v31, %v5639_v7 }
 0x2e2   : > { %v4005_v10 = vadd.f32 %v3958_v28, %v3323_v27  ;;  %v4931_v63 = vor.u32 %v4930_v45, %v4927_v8  ;;  %v4941_v28 = vor.u32 %v4940_v50, %v12921_v18  ;;  %v6355_v27 = vor.u32 %v6354_v41, %v6351_v3  ;;  %v4774_v50 = vld [vmem:[%s12185_s23 + $0x48] sm:$0xf]  ;;  %v12939_v3 = vld [vmem:[%s12185_s23 + $0x4c] sm:$0xf]  ;;  %v10867_v41 = vld [vmem:[%s14099_s3 + $0x160] sm:$0xff] }
 0x2e3   : > { %v4701_v39 = vpop.f32.mrf.mxu1  ;;  %v6665_v40 = vpack.c.b16 %v6638_v16, %v6637_v12  ;;  %v6365_v24 = vor.u32 %v6364_v29, %v12923_v19  ;;  %v6368_v38 = vshll.u32 %v10189_v48, 16  ;;  %v4946_v8 = vrot.slane %v4944_v35, 5  ;;  %7170 = vmatpush.bf16.msra.mxu2 %v10867_v41 }
 0x2e4   : > { %v4431_v53 = vadd.f32 %v4384_v62, %v4005_v10  ;;  %v5539_v62 = vrot.slane %v12895_v54, 5  ;;  %v4932_v26 = vrot.slane %v4931_v63, 4  ;;  %v9969_v45 = vrot.slane %v5443_v20, 9 }
 0x2e5   : > { %v4942_v54 = vrot.slane %v4941_v28, 4  ;;  %v5542_v2 = vrot.slane %v4773_v14, 5  ;;  %v6356_v31 = vrot.slane %v6355_v27, 4  ;;  %v6366_v12 = vrot.slane %v6365_v24, 4 }
 0x2e6   : > { %v12936_v9 = vadd.f32 %v12884_v6, %v4431_v53  ;;  %v6370_v16 = vrot.slane %v6368_v38, 5  ;;  %v4949_v29 = vshrl.u32 %v4774_v50, 16  ;;  %v10891_v6 = vld [vmem:[%s14099_s3 + $0x1a0] sm:$0xff]  ;;  %v4937_v14 = vsel %vm11230_vm2, %v4932_v26, %v12921_v18 }
 0x2e7   : > { %v3278_v23 = vpop.f32.mrf.mxu2  ;;  %v4952_v53 = vshll.u32 %v4774_v50, 16  ;;  %v4958_v20 = vshll.u32 %v12939_v3, 16  ;;  %7486 = vmatpush.bf16.msra.mxu3 %v10891_v6  ;;  %v5215_v27 = vunpack.c.l.b16 %v4937_v14 }
 0x2e8   : > { %v3960_v37 = vpop.f32.mrf.mxu3  ;;  %v3324_v25 = vadd.f32 %v3278_v23, %v12329_v21  ;;  %v5541_v21 = vrot.slane %v5539_v62, 4  ;;  %v4947_v23 = vsel %vm11230_vm2, %v4942_v54, %v4946_v8 }
 0x2e9   : > { %v4389_v15 = vpop.f32.mrf.mxu0  ;;  %v4954_v26 = vrot.slane %v4952_v53, 5 }
 0x2ea   : > { %v4006_v0 = vadd.f32 %v3960_v37, %v3324_v25  ;;  %v5540_v37 = vsel %vm11554_vm5, %v9969_v45, %v5539_v62  ;;  %v5543_v28 = vsel %vm11554_vm5, %v5541_v21, %v5542_v2  ;;  %v10191_v25 = vld [vmem:[%s12185_s23 + $0x58] sm:$0xf]  ;;  %v6371_v62 = vsel %vm11230_vm2, %v6366_v12, %v6370_v16  ;;  %v10899_v12 = vld [vmem:[%s14099_s3 + $0x1e0] sm:$0xff] }
 0x2eb   : > { %v12932_v10 = vpop.f32.mrf.mxu1  ;;  %v6382_v8 = vshll.u32 %v10191_v25, 16  ;;  %v5216_v45 = vunpack.c.l.b16 %v4947_v23  ;;  %v5641_v50 = vunpack.c.l.b16 %v5540_v37  ;;  %v5642_v54 = vunpack.c.l.b16 %v5543_v28  ;;  %8168 = vmatpush.bf16.msra.mxu0 %v10899_v12  ;;  %v10192_v37 = vld [vmem:[%s12185_s23 + $0x5c] sm:$0x1]  ;;  %v12997_v12 = vld [vmem:[%s12185_s23 + $0x58] sm:$0xf] }
 0x2ec   : > { %v4432_v7 = vadd.f32 %v4386_v56, %v4006_v0  ;;  %5345 = vmatmul.bf16.gmra.mxu2 %v5241_v13  ;;  %6087 = vmatmul.bf16.gmra.mxu0 %v10835_v59  ;;  %v10190_v56 = vld [vmem:[%s12185_s23 + $0x54] sm:$0xf]  ;;  %v6361_v59 = vsel %vm11230_vm2, %v6356_v31, %v12923_v19  ;;  %v12968_v21 = vrot.slane %v4958_v20, 5  ;;  %v5546_v23 = vrot.slane %v12939_v3, 5 }
 0x2ed   : > { %5771 = vmatmul.bf16.gmra.mxu3 %v5667_v55  ;;  %v6373_v13 = vshrl.u32 %v10190_v56, 16  ;;  %v6376_v55 = vshll.u32 %v10190_v56, 16  ;;  %v6639_v16 = vunpack.c.l.b16 %v6361_v59  ;;  %v12976_v56 = vrot.slane %v6382_v8, 5 }
 0x2ee   : > { %6769 = vmatmul.bf16.gmra.mxu1 %v6665_v40  ;;  %v12951_v63 = vadd.f32 %v4701_v39, %v4432_v7  ;;  %v4962_v39 = vshrl.u32 %v12939_v3, 16  ;;  %v4951_v40 = vrot.slane %v4949_v29, 4  ;;  %v12971_v7 = vld [vmem:[%s12185_s23 + $0x50] sm:$0x1]  ;;  %v6640_v29 = vunpack.c.l.b16 %v6371_v62  ;;  %v4777_v3 = vld [vmem:[%s12185_s23 + $0x54] sm:$0xf] }
 0x2ef   : > { %v3281_v35 = vpop.f32.mrf.mxu2  ;;  %v6375_v31 = vrot.slane %v6373_v13, 4  ;;  %v6378_v41 = vrot.slane %v6376_v55, 5  ;;  %v5668_v20 = vpack.c.b16 %v5642_v54, %v5641_v50  ;;  %v10836_v13 = vld [vmem:[%s12185_s23 + $0x48] sm:$0xff] }
 0x2f0   : > { %v3963_v48 = vpop.f32.mrf.mxu3  ;;  %v3325_v18 = vadd.f32 %v3281_v35, %v12346_v61  ;;  %v6386_v61 = vshrl.u32 %v10191_v25, 16  ;;  %v4964_v19 = vrot.slane %v4962_v39, 4  ;;  %v4955_v6 = vor.u32 %v4954_v26, %v4951_v40 }
 0x2f1   : > { %v4391_v38 = vpop.f32.mrf.mxu0  ;;  %v5242_v35 = vpack.c.b16 %v5216_v45, %v5215_v27  ;;  %v6379_v39 = vor.u32 %v6378_v41, %v6375_v31  ;;  %v6666_v55 = vpack.c.b16 %v6640_v29, %v6639_v16  ;;  %v6392_v26 = vshll.u32 %v10192_v37, 16  ;;  %v10907_v41 = vld [vmem:[%s14099_s3 + $0x220] sm:$0xff] }
 0x2f2   : > { %v4007_v24 = vadd.f32 %v3963_v48, %v3325_v18  ;;  %v6388_v14 = vrot.slane %v6386_v61, 4  ;;  %v4968_v48 = vshll.u32 %v12971_v7, 16  ;;  %v4965_v25 = vor.u32 %v4964_v19, %v12968_v21  ;;  %v5444_v18 = vld [vmem:[%s12185_s23 + $0x48] sm:$0xe]  ;;  %8594 = vmatpush.bf16.msra.mxu1 %v10907_v41  ;;  %v10194_v37 = vld [vmem:[%s12185_s23 + $0x64] sm:$0xf] }
 0x2f3   : > { %v4706_v0 = vpop.f32.mrf.mxu1  ;;  %v4956_v27 = vrot.slane %v4955_v6, 4  ;;  %v9970_v61 = vrot.slane %v5444_v18, 9  ;;  %v5549_v19 = vrot.slane %v12971_v7, 5  ;;  %v6380_v31 = vrot.slane %v6379_v39, 4 }
 0x2f4   : > { %v4433_v2 = vadd.f32 %v4389_v15, %v4007_v24  ;;  %v6389_v24 = vor.u32 %v6388_v14, %v12976_v56  ;;  %v4970_v8 = vrot.slane %v4968_v48, 5  ;;  %v4966_v54 = vrot.slane %v4965_v25, 4 }
 0x2f5   : > { %v4973_v16 = vshrl.u32 %v4777_v3, 16  ;;  %v6394_v29 = vrot.slane %v6392_v26, 5  ;;  %v4986_v48 = vshrl.u32 %v12997_v12, 16 }
 0x2f6   : > { %v12990_v45 = vadd.f32 %v12932_v10, %v4433_v2  ;;  %v4976_v10 = vshll.u32 %v4777_v3, 16  ;;  %v6390_v2 = vrot.slane %v6389_v24, 4  ;;  %v6410_v24 = vshrl.u32 %v10194_v37, 16 }
 0x2f7   : > { %v3283_v15 = vpop.f32.mrf.mxu2  ;;  %v4975_v25 = vrot.slane %v4973_v16, 4 }
 0x2f8   : > { %v3965_v53 = vpop.f32.mrf.mxu3  ;;  %v3326_v28 = vadd.f32 %v3283_v15, %v12360_v11  ;;  %v5548_v11 = vrot.slane %v5546_v23, 4  ;;  %v4961_v15 = vsel %vm11230_vm2, %v4956_v27, %v12968_v21  ;;  %v6385_v21 = vsel %vm11230_vm2, %v6380_v31, %v12976_v56 }
 0x2f9   : > { %v4394_v62 = vpop.f32.mrf.mxu0  ;;  %v4978_v18 = vrot.slane %v4976_v10, 5  ;;  %v6406_v27 = vshll.u32 %v10194_v37, 16  ;;  %v5217_v26 = vunpack.c.l.b16 %v4961_v15  ;;  %v5445_v37 = vld [vmem:[%s12185_s23 + $0x54] sm:$0xe] }
 0x2fa   : > { %v4008_v59 = vadd.f32 %v3965_v53, %v3326_v28  ;;  %v5547_v53 = vsel %vm11554_vm5, %v9970_v61, %v5546_v23  ;;  %v4988_v61 = vrot.slane %v4986_v48, 4 }
 0x2fb   : > { %v12985_v40 = vpop.f32.mrf.mxu1  ;;  %v4979_v41 = vor.u32 %v4978_v18, %v4975_v25 }
 0x2fc   : > { %v4434_v50 = vadd.f32 %v4391_v38, %v4008_v59  ;;  %5350 = vmatmul.bf16.gmra.mxu2 %v5242_v35  ;;  %6092 = vmatmul.bf16.gmra.mxu0 %v10836_v13  ;;  %v10193_v38 = vld [vmem:[%s12185_s23 + $0x60] sm:$0xf]  ;;  %v4982_v35 = vshll.u32 %v12997_v12, 16 }
 0x2fd   : > { %5776 = vmatmul.bf16.gmra.mxu3 %v5668_v20  ;;  %v5550_v20 = vsel %vm11554_vm5, %v5548_v11, %v5549_v19  ;;  %v6397_v23 = vshrl.u32 %v10193_v38, 16  ;;  %v6400_v39 = vshll.u32 %v10193_v38, 16  ;;  %v5643_v11 = vunpack.c.l.b16 %v5547_v53  ;;  %v13023_v19 = vld [vmem:[%s12185_s23 + $0x5c] sm:$0x1] }
 0x2fe   : > { %6774 = vmatmul.bf16.gmra.mxu1 %v6666_v55  ;;  %v13000_v6 = vadd.f32 %v4706_v0, %v4434_v50  ;;  %v4971_v0 = vsel %vm11230_vm2, %v4966_v54, %v4970_v8  ;;  %v13020_v8 = vrot.slane %v4982_v35, 5  ;;  %v5644_v50 = vunpack.c.l.b16 %v5550_v20 }
 0x2ff   : > { %v3286_v14 = vpop.f32.mrf.mxu2  ;;  %v5218_v3 = vunpack.c.l.b16 %v4971_v0  ;;  %v6641_v54 = vunpack.c.l.b16 %v6385_v21  ;;  %v6399_v16 = vrot.slane %v6397_v23, 4  ;;  %v6402_v10 = vrot.slane %v6400_v39, 5  ;;  %v10837_v0 = vld [vmem:[%s12185_s23 + $0x54] sm:$0xff] }
 0x300   : > { %v3968_v7 = vpop.f32.mrf.mxu3  ;;  %v3327_v28 = vadd.f32 %v3286_v14, %v12374_v49  ;;  %v6395_v49 = vsel %vm11230_vm2, %v6390_v2, %v6394_v29  ;;  %v10195_v2 = vld [vmem:[%s12185_s23 + $0x68] sm:$0x1]  ;;  %v13026_v29 = vrot.slane %v6406_v27, 5  ;;  %v6412_v38 = vrot.slane %v6410_v24, 4 }
 0x301   : > { %v4396_v55 = vpop.f32.mrf.mxu0  ;;  %v6642_v31 = vunpack.c.l.b16 %v6395_v49  ;;  %v4989_v15 = vor.u32 %v4988_v61, %v13020_v8  ;;  %v5243_v35 = vpack.c.b16 %v5218_v3, %v5217_v26  ;;  %v5669_v48 = vpack.c.b16 %v5644_v50, %v5643_v11  ;;  %v4780_v26 = vld [vmem:[%s12185_s23 + $0x60] sm:$0xf]  ;;  %v13042_v11 = vld [vmem:[%s12185_s23 + $0x64] sm:$0xf]  ;;  %v10866_v50 = vld [vmem:[%s14099_s3 + $0x158] sm:$0xff] }
 0x302   : > { %v4009_v13 = vadd.f32 %v3968_v7, %v3327_v28  ;;  %v5553_v28 = vrot.slane %v12997_v12, 5  ;;  %v4980_v21 = vrot.slane %v4979_v41, 4  ;;  %v6403_v25 = vor.u32 %v6402_v10, %v6399_v16  ;;  %v10196_v41 = vld [vmem:[%s12185_s23 + $0x6c] sm:$0xf]  ;;  %7171 = vmatpush.bf16.msra.mxu2 %v10866_v50 }
 0x303   : > { %v4711_v59 = vpop.f32.mrf.mxu1  ;;  %v6667_v20 = vpack.c.b16 %v6642_v31, %v6641_v54  ;;  %v6416_v18 = vshll.u32 %v10195_v2, 16  ;;  %v6413_v49 = vor.u32 %v6412_v38, %v13026_v29  ;;  %v4990_v27 = vrot.slane %v4989_v15, 4  ;;  %v10890_v31 = vld [vmem:[%s14099_s3 + $0x198] sm:$0xff]  ;;  %v10197_v38 = vld [vmem:[%s12185_s23 + $0x70] sm:$0xf] }
 0x304   : > { %v4435_v56 = vadd.f32 %v4394_v62, %v4009_v13  ;;  %v4992_v62 = vshll.u32 %v13023_v19, 16  ;;  %v9971_v24 = vrot.slane %v5445_v37, 9  ;;  %v5555_v61 = vrot.slane %v5553_v28, 4  ;;  %7487 = vmatpush.bf16.msra.mxu3 %v10890_v31 }
 0x305   : > { %v4985_v54 = vsel %vm11230_vm2, %v4980_v21, %v13020_v8  ;;  %v6414_v16 = vrot.slane %v6413_v49, 4  ;;  %v4997_v10 = vshrl.u32 %v4780_v26, 16  ;;  %v5000_v2 = vshll.u32 %v4780_v26, 16  ;;  %v13073_v26 = vld [vmem:[%s12185_s23 + $0x68] sm:$0x1] }
 0x306   : > { %v13039_v3 = vadd.f32 %v12985_v40, %v4435_v56  ;;  %v5556_v40 = vrot.slane %v13023_v19, 5  ;;  %v6404_v56 = vrot.slane %v6403_v25, 4  ;;  %v5554_v19 = vsel %vm11554_vm5, %v9971_v24, %v5553_v28 }
 0x307   : > { %v3288_v14 = vpop.f32.mrf.mxu2  ;;  %v6421_v37 = vshrl.u32 %v10196_v41, 16  ;;  %v6430_v21 = vshll.u32 %v10197_v38, 16  ;;  %v6434_v28 = vshrl.u32 %v10197_v38, 16  ;;  %v5645_v24 = vunpack.c.l.b16 %v5554_v19  ;;  %v10198_v38 = vld [vmem:[%s12185_s23 + $0x74] sm:$0x1] }
 0x308   : > { %v3970_v7 = vpop.f32.mrf.mxu3  ;;  %v3328_v53 = vadd.f32 %v3288_v14, %v12391_v52  ;;  %v4994_v52 = vrot.slane %v4992_v62, 5  ;;  %v5006_v62 = vshll.u32 %v13042_v11, 16  ;;  %v5560_v19 = vrot.slane %v13042_v11, 5 }
 0x309   : > { %v4399_v39 = vpop.f32.mrf.mxu0 }
 0x30a   : > { %v4010_v23 = vadd.f32 %v3970_v7, %v3328_v53  ;;  %v4995_v8 = vsel %vm11230_vm2, %v4990_v27, %v4994_v52  ;;  %v5010_v53 = vshrl.u32 %v13042_v11, 16  ;;  %v5002_v27 = vrot.slane %v5000_v2, 5  ;;  %v13094_v11 = vld [vmem:[%s12185_s23 + $0x70] sm:$0xf] }
 0x30b   : > { %v13034_v13 = vpop.f32.mrf.mxu1  ;;  %v5220_v52 = vunpack.c.l.b16 %v4995_v8  ;;  %v5016_v2 = vshll.u32 %v13073_v26, 16  ;;  %v5446_v8 = vld [vmem:[%s12185_s23 + $0x60] sm:$0xe] }
 0x30c   : > { %v4436_v12 = vadd.f32 %v4396_v55, %v4010_v23  ;;  %5355 = vmatmul.bf16.gmra.mxu2 %v5243_v35  ;;  %6097 = vmatmul.bf16.gmra.mxu0 %v10837_v0  ;;  %v6418_v55 = vrot.slane %v6416_v18, 5  ;;  %v5557_v0 = vsel %vm11554_vm5, %v5555_v61, %v5556_v40  ;;  %v5012_v61 = vrot.slane %v5010_v53, 4 }
 0x30d   : > { %5781 = vmatmul.bf16.gmra.mxu3 %v5669_v48  ;;  %v5219_v48 = vunpack.c.l.b16 %v4985_v54  ;;  %v6423_v54 = vrot.slane %v6421_v37, 4 }
 0x30e   : > { %6779 = vmatmul.bf16.gmra.mxu1 %v6667_v20  ;;  %v13056_v14 = vadd.f32 %v4711_v59, %v4436_v12  ;;  %v6424_v59 = vshll.u32 %v10196_v41, 16  ;;  %v6409_v20 = vsel %vm11230_vm2, %v6404_v56, %v13026_v29  ;;  %v6419_v49 = vsel %vm11230_vm2, %v6414_v16, %v6418_v55  ;;  %v10898_v56 = vld [vmem:[%s14099_s3 + $0x1d8] sm:$0xff] }
 0x30f   : > { %v3291_v7 = vpop.f32.mrf.mxu2  ;;  %v13075_v12 = vrot.slane %v5006_v62, 5  ;;  %v5646_v29 = vunpack.c.l.b16 %v5557_v0  ;;  %v6643_v55 = vunpack.c.l.b16 %v6409_v20  ;;  %v6644_v31 = vunpack.c.l.b16 %v6419_v49  ;;  %8169 = vmatpush.bf16.msra.mxu0 %v10898_v56 }
 0x310   : > { %14123 = vst [vmem:[#allocation11_spill] sm:$0xff] %v13056_v14  ;;  %v3973_v15 = vpop.f32.mrf.mxu3  ;;  %v3329_v35 = vadd.f32 %v3291_v7, %v12408_v36  ;;  %v4999_v36 = vrot.slane %v4997_v10, 4  ;;  %v6426_v40 = vrot.slane %v6424_v59, 5  ;;  %v13080_v41 = vrot.slane %v6430_v21, 5  ;;  %v10838_v59 = vld [vmem:[%s12185_s23 + $0x60] sm:$0xff] }
 0x311   : > { %v4401_v18 = vpop.f32.mrf.mxu0  ;;  %v6436_v16 = vrot.slane %v6434_v28, 4  ;;  %v5244_v53 = vpack.c.b16 %v5220_v52, %v5219_v48  ;;  %v6668_v0 = vpack.c.b16 %v6644_v31, %v6643_v55  ;;  %v6440_v21 = vshll.u32 %v10198_v38, 16  ;;  %v4783_v28 = vld [vmem:[%s12185_s23 + $0x6c] sm:$0xf] }
 0x312   : > { %v4011_v25 = vadd.f32 %v3973_v15, %v3329_v35  ;;  %v5003_v10 = vor.u32 %v5002_v27, %v4999_v36  ;;  %v5013_v15 = vor.u32 %v5012_v61, %v13075_v12  ;;  %v5670_v35 = vpack.c.b16 %v5646_v29, %v5645_v24 }
 0x313   : > { %v4716_v23 = vpop.f32.mrf.mxu1  ;;  %v6427_v37 = vor.u32 %v6426_v40, %v6423_v54  ;;  %v6437_v20 = vor.u32 %v6436_v16, %v13080_v41  ;;  %v5018_v61 = vrot.slane %v5016_v2, 5  ;;  %v9972_v56 = vrot.slane %v5446_v8, 9  ;;  %v10906_v54 = vld [vmem:[%s14099_s3 + $0x218] sm:$0xff] }
 0x314   : > { %v4437_v50 = vadd.f32 %v4399_v39, %v4011_v25  ;;  %v5004_v27 = vrot.slane %v5003_v10, 4  ;;  %v5014_v14 = vrot.slane %v5013_v15, 4  ;;  %v5563_v48 = vrot.slane %v13073_v26, 5  ;;  %8595 = vmatpush.bf16.msra.mxu1 %v10906_v54  ;;  %v10200_v8 = vld [vmem:[%s12185_s23 + $0x7c] sm:$0xf] }
 0x315   : > { %v6428_v29 = vrot.slane %v6427_v37, 4  ;;  %v5021_v40 = vshrl.u32 %v4783_v28, 16  ;;  %v5024_v55 = vshll.u32 %v4783_v28, 16  ;;  %v6438_v31 = vrot.slane %v6437_v20, 4 }
 0x316   : > { %v13098_v52 = vadd.f32 %v13034_v13, %v4437_v50  ;;  %v6442_v16 = vrot.slane %v6440_v21, 5  ;;  %v5030_v26 = vshll.u32 %v13094_v11, 16  ;;  %v5034_v13 = vshrl.u32 %v13094_v11, 16  ;;  %v13127_v21 = vld [vmem:[%s12185_s23 + $0x74] sm:$0x1] }
 0x317   : > { %v3293_v39 = vpop.f32.mrf.mxu2  ;;  %v5009_v38 = vsel %vm11230_vm2, %v5004_v27, %v13075_v12  ;;  %v6454_v28 = vshll.u32 %v10200_v8, 16 }
 0x318   : > { %v3975_v7 = vpop.f32.mrf.mxu3  ;;  %v3330_v62 = vadd.f32 %v3293_v39, %v12422_v58  ;;  %v5562_v58 = vrot.slane %v5560_v19, 4  ;;  %v5019_v39 = vsel %vm11230_vm2, %v5014_v14, %v5018_v61  ;;  %v6443_v12 = vsel %vm11230_vm2, %v6438_v31, %v6442_v16 }
 0x319   : > { %v4404_v49 = vpop.f32.mrf.mxu0  ;;  %v13124_v37 = vrot.slane %v5030_v26, 5  ;;  %v5036_v14 = vrot.slane %v5034_v13, 4  ;;  %v5221_v27 = vunpack.c.l.b16 %v5009_v38  ;;  %v13132_v26 = vrot.slane %v6454_v28, 5  ;;  %v4786_v28 = vld [vmem:[%s12185_s23 + $0x78] sm:$0xf] }
 0x31a   : > { %v4012_v25 = vadd.f32 %v3975_v7, %v3330_v62  ;;  %v5561_v7 = vsel %vm11554_vm5, %v9972_v56, %v5560_v19  ;;  %v5564_v15 = vsel %vm11554_vm5, %v5562_v58, %v5563_v48  ;;  %v6433_v62 = vsel %vm11230_vm2, %v6428_v29, %v13080_v41 }
 0x31b   : > { %v13091_v36 = vpop.f32.mrf.mxu1  ;;  %v5222_v41 = vunpack.c.l.b16 %v5019_v39  ;;  %v5647_v56 = vunpack.c.l.b16 %v5561_v7  ;;  %v5648_v58 = vunpack.c.l.b16 %v5564_v15  ;;  %v6646_v29 = vunpack.c.l.b16 %v6443_v12 }
 0x31c   : > { %v4438_v24 = vadd.f32 %v4401_v18, %v4012_v25  ;;  %5360 = vmatmul.bf16.gmra.mxu2 %v5244_v53  ;;  %6102 = vmatmul.bf16.gmra.mxu0 %v10838_v59  ;;  %v10199_v18 = vld [vmem:[%s12185_s23 + $0x78] sm:$0xf]  ;;  %v5023_v53 = vrot.slane %v5021_v40, 4  ;;  %v6458_v25 = vshrl.u32 %v10200_v8, 16  ;;  %v5037_v54 = vor.u32 %v5036_v14, %v13124_v37  ;;  %v10839_v8 = vld [vmem:[%s12185_s23 + $0x6c] sm:$0xff] }
 0x31d   : > { %5786 = vmatmul.bf16.gmra.mxu3 %v5670_v35  ;;  %v5026_v35 = vrot.slane %v5024_v55, 5  ;;  %v6445_v59 = vshrl.u32 %v10199_v18, 16  ;;  %v5040_v40 = vshll.u32 %v13127_v21, 16  ;;  %v5447_v55 = vld [vmem:[%s12185_s23 + $0x6c] sm:$0xe]  ;;  %v5245_v39 = vpack.c.b16 %v5222_v41, %v5221_v27 }
 0x31e   : > { %6784 = vmatmul.bf16.gmra.mxu1 %v6668_v0  ;;  %v13106_v50 = vadd.f32 %v4716_v23, %v4438_v24  ;;  %v6645_v24 = vunpack.c.l.b16 %v6433_v62  ;;  %v6460_v13 = vrot.slane %v6458_v25, 4  ;;  %v5671_v7 = vpack.c.b16 %v5648_v58, %v5647_v56  ;;  %v13150_v58 = vld [vmem:[%s12185_s23 + $0x7c] sm:$0xf] }
 0x31f   : > { %v3296_v10 = vpop.f32.mrf.mxu2  ;;  %v5027_v48 = vor.u32 %v5026_v35, %v5023_v53  ;;  %v6447_v31 = vrot.slane %v6445_v59, 4  ;;  %v5038_v62 = vrot.slane %v5037_v54, 4  ;;  %v5042_v53 = vrot.slane %v5040_v40, 5 }
 0x320   : > { %v3978_v2 = vpop.f32.mrf.mxu3  ;;  %v3331_v23 = vadd.f32 %v3296_v10, %v12436_v43  ;;  %v6448_v43 = vshll.u32 %v10199_v18, 16  ;;  %v9973_v35 = vrot.slane %v5447_v55, 9  ;;  %v5570_v56 = vrot.slane %v13127_v21, 5  ;;  %v10203_v21 = vld [vmem:[%s12185_s23 + $0x88] sm:$0xf] }
 0x321   : > { %v4406_v0 = vpop.f32.mrf.mxu0  ;;  %v5028_v15 = vrot.slane %v5027_v48, 4  ;;  %v10865_v48 = vld [vmem:[%s14099_s3 + $0x150] sm:$0xff] }
 0x322   : > { %v4013_v19 = vadd.f32 %v3978_v2, %v3331_v23  ;;  %v6450_v16 = vrot.slane %v6448_v43, 5  ;;  %v10201_v2 = vld [vmem:[%s12185_s23 + $0x80] sm:$0x1]  ;;  %v6669_v23 = vpack.c.b16 %v6646_v29, %v6645_v24  ;;  %v10202_v24 = vld [vmem:[%s12185_s23 + $0x84] sm:$0xf]  ;;  %v5048_v29 = vshll.u32 %v4786_v28, 16  ;;  %7172 = vmatpush.bf16.msra.mxu2 %v10865_v48 }
 0x323   : > { %v4721_v20 = vpop.f32.mrf.mxu1  ;;  %v6464_v43 = vshll.u32 %v10201_v2, 16  ;;  %v5033_v41 = vsel %vm11230_vm2, %v5028_v15, %v13124_v37  ;;  %v10889_v37 = vld [vmem:[%s14099_s3 + $0x190] sm:$0xff]  ;;  %v6472_v2 = vshll.u32 %v10202_v24, 16  ;;  %v6482_v15 = vshrl.u32 %v10203_v21, 16 }
 0x324   : > { %v4439_v61 = vadd.f32 %v4404_v49, %v4013_v19  ;;  %v5567_v49 = vrot.slane %v13094_v11, 5  ;;  %v6451_v19 = vor.u32 %v6450_v16, %v6447_v31  ;;  %v6461_v11 = vor.u32 %v6460_v13, %v13132_v26  ;;  %7488 = vmatpush.bf16.msra.mxu3 %v10889_v37  ;;  %v10204_v37 = vld [vmem:[%s12185_s23 + $0x8c] sm:$0x1] }
 0x325   : > { %v6466_v55 = vrot.slane %v6464_v43, 5  ;;  %v13177_v43 = vld [vmem:[%s12185_s23 + $0x80] sm:$0x1] }
 0x326   : > { %v13143_v25 = vadd.f32 %v13091_v36, %v4439_v61  ;;  %v5043_v36 = vsel %vm11230_vm2, %v5038_v62, %v5042_v53  ;;  %v5045_v61 = vshrl.u32 %v4786_v28, 16  ;;  %v6452_v54 = vrot.slane %v6451_v19, 4 }
 0x327   : > { %v3298_v18 = vpop.f32.mrf.mxu2  ;;  %v6462_v40 = vrot.slane %v6461_v11, 4  ;;  %v5050_v62 = vrot.slane %v5048_v29, 5 }
 0x328   : > { %v3980_v10 = vpop.f32.mrf.mxu3  ;;  %v3332_v38 = vadd.f32 %v3298_v18, %v12453_v51  ;;  %v5569_v51 = vrot.slane %v5567_v49, 4  ;;  %v5054_v18 = vshll.u32 %v13150_v58, 16  ;;  %v6457_v11 = vsel %vm11230_vm2, %v6452_v54, %v13132_v26  ;;  %v10897_v26 = vld [vmem:[%s14099_s3 + $0x1d0] sm:$0xff] }
 0x329   : > { %v6068_v14 = vpop.f32.mrf.mxu0  ;;  %v5574_v54 = vrot.slane %v13150_v58, 5  ;;  %8170 = vmatpush.bf16.msra.mxu0 %v10897_v26  ;;  %v10905_v26 = vld [vmem:[%s14099_s3 + $0x210] sm:$0xff] }
 0x32a   : > { %v4014_v12 = vadd.f32 %v3980_v10, %v3332_v38  ;;  %v5058_v10 = vshrl.u32 %v13150_v58, 16  ;;  %v13179_v28 = vrot.slane %v5054_v18, 5  ;;  %8596 = vmatpush.bf16.msra.mxu1 %v10905_v26 }
 0x32b   : > { %v13138_v59 = vpop.f32.mrf.mxu1 }
 0x32c   : > { %v4440_v27 = vadd.f32 %v4406_v0, %v4014_v12  ;;  %5365 = vmatmul.bf16.gmra.mxu2 %v5245_v39  ;;  %6107 = vmatmul.bf16.gmra.mxu0 %v10839_v8  ;;  %v5568_v0 = vsel %vm11554_vm5, %v9973_v35, %v5567_v49  ;;  %v6469_v49 = vshrl.u32 %v10202_v24, 16  ;;  %v5223_v39 = vunpack.c.l.b16 %v5033_v41 }
 0x32d   : > { %5791 = vmatmul.bf16.gmra.mxu3 %v5671_v7  ;;  %v6478_v7 = vshll.u32 %v10203_v21, 16  ;;  %v5224_v8 = vunpack.c.l.b16 %v5043_v36  ;;  %v5649_v19 = vunpack.c.l.b16 %v5568_v0  ;;  %v6474_v41 = vrot.slane %v6472_v2, 5 }
 0x32e   : > { %6789 = vmatmul.bf16.gmra.mxu1 %v6669_v23  ;;  %v13164_v31 = vadd.f32 %v4721_v20, %v4440_v27  ;;  %v5571_v20 = vsel %vm11554_vm5, %v5569_v51, %v5570_v56  ;;  %v5047_v23 = vrot.slane %v5045_v61, 4  ;;  %v5060_v27 = vrot.slane %v5058_v10, 4 }
 0x32f   : > { %v5326_v16 = vpop.f32.mrf.mxu2  ;;  %v6471_v51 = vrot.slane %v6469_v49, 4  ;;  %v5650_v48 = vunpack.c.l.b16 %v5571_v20  ;;  %v13181_v24 = vrot.slane %v6478_v7, 5  ;;  %v6484_v36 = vrot.slane %v6482_v15, 4  ;;  %v10840_v7 = vld [vmem:[%s12185_s23 + $0x78] sm:$0xff] }
 0x330   : > { %v5752_v13 = vpop.f32.mrf.mxu3  ;;  %v5406_v38 = vadd.f32 %v5326_v16, %v12470_v17  ;;  %v6467_v17 = vsel %vm11230_vm2, %v6462_v40, %v6466_v55  ;;  %v6647_v0 = vunpack.c.l.b16 %v6457_v11  ;;  %v5051_v29 = vor.u32 %v5050_v62, %v5047_v23  ;;  %v4789_v23 = vld [vmem:[%s12185_s23 + $0x84] sm:$0xf] }
 0x331   : > { %v6070_v35 = vpop.f32.mrf.mxu0  ;;  %v6648_v61 = vunpack.c.l.b16 %v6467_v17  ;;  %v5064_v21 = vshll.u32 %v13177_v43, 16  ;;  %v5246_v55 = vpack.c.b16 %v5224_v8, %v5223_v39  ;;  %v5061_v16 = vor.u32 %v5060_v27, %v13179_v28  ;;  %v13198_v17 = vld [vmem:[%s12185_s23 + $0x88] sm:$0xf] }
 0x332   : > { %v5832_v53 = vadd.f32 %v5752_v13, %v5406_v38  ;;  %v5448_v13 = vld [vmem:[%s12185_s23 + $0x78] sm:$0xe]  ;;  %v6475_v18 = vor.u32 %v6474_v41, %v6471_v51  ;;  %v5672_v49 = vpack.c.b16 %v5650_v48, %v5649_v19  ;;  %v6485_v2 = vor.u32 %v6484_v36, %v13181_v24 }
 0x333   : > { %v6752_v12 = vpop.f32.mrf.mxu1  ;;  %v6488_v38 = vshll.u32 %v10204_v37, 16  ;;  %v6670_v15 = vpack.c.b16 %v6648_v61, %v6647_v0  ;;  %v5052_v20 = vrot.slane %v5051_v29, 4  ;;  %v5066_v39 = vrot.slane %v5064_v21, 5 }
 0x334   : > { %v6148_v56 = vadd.f32 %v6068_v14, %v5832_v53  ;;  %v9974_v8 = vrot.slane %v5448_v13, 9  ;;  %v5576_v11 = vrot.slane %v5574_v54, 4  ;;  %v5062_v27 = vrot.slane %v5061_v16, 4  ;;  %v10206_v16 = vld [vmem:[%s12185_s23 + $0x94] sm:$0xf] }
 0x335   : > { %v6476_v19 = vrot.slane %v6475_v18, 4  ;;  %v6486_v48 = vrot.slane %v6485_v2, 4  ;;  %v6490_v36 = vrot.slane %v6488_v38, 5  ;;  %v5069_v0 = vshrl.u32 %v4789_v23, 16 }
 0x336   : > { %v13202_v51 = vadd.f32 %v13138_v59, %v6148_v56  ;;  %v5072_v61 = vshll.u32 %v4789_v23, 16  ;;  %v5082_v59 = vshrl.u32 %v13198_v17, 16  ;;  %v10205_v56 = vld [vmem:[%s12185_s23 + $0x90] sm:$0xf]  ;;  %v5057_v21 = vsel %vm11230_vm2, %v5052_v20, %v13179_v28  ;;  %v13231_v20 = vld [vmem:[%s12185_s23 + $0x8c] sm:$0x1] }
 0x337   : > { %v5328_v14 = vpop.f32.mrf.mxu2  ;;  %v6481_v13 = vsel %vm11230_vm2, %v6476_v19, %v13181_v24  ;;  %v6491_v28 = vsel %vm11230_vm2, %v6486_v48, %v6490_v36  ;;  %v5071_v18 = vrot.slane %v5069_v0, 4  ;;  %v6493_v2 = vshrl.u32 %v10205_v56, 16 }
 0x338   : > { %v5754_v40 = vpop.f32.mrf.mxu3  ;;  %v5407_v10 = vadd.f32 %v5328_v14, %v12484_v57  ;;  %v5577_v57 = vrot.slane %v13177_v43, 5  ;;  %v5078_v43 = vshll.u32 %v13198_v17, 16  ;;  %v5067_v14 = vsel %vm11230_vm2, %v5062_v27, %v5066_v39 }
 0x339   : > { %v6073_v62 = vpop.f32.mrf.mxu0  ;;  %v6496_v38 = vshll.u32 %v10205_v56, 16  ;;  %v6502_v23 = vshll.u32 %v10206_v16, 16  ;;  %v5225_v39 = vunpack.c.l.b16 %v5057_v21  ;;  %v5226_v24 = vunpack.c.l.b16 %v5067_v14 }
 0x33a   : > { %v5833_v58 = vadd.f32 %v5754_v40, %v5407_v10  ;;  %v5575_v40 = vsel %vm11554_vm5, %v9974_v8, %v5574_v54  ;;  %v5074_v10 = vrot.slane %v5072_v61, 5  ;;  %v6650_v19 = vunpack.c.l.b16 %v6491_v28  ;;  %v5449_v61 = vld [vmem:[%s12185_s23 + $0x84] sm:$0xe] }
 0x33b   : > { %v13195_v53 = vpop.f32.mrf.mxu1  ;;  %v5651_v8 = vunpack.c.l.b16 %v5575_v40  ;;  %v5088_v48 = vshll.u32 %v13231_v20, 16  ;;  %v6495_v36 = vrot.slane %v6493_v2, 4  ;;  %v6498_v26 = vrot.slane %v6496_v38, 5 }
 0x33c   : > { %v6149_v41 = vadd.f32 %v6070_v35, %v5833_v58  ;;  %5370 = vmatmul.bf16.gmra.mxu2 %v5246_v55  ;;  %6112 = vmatmul.bf16.gmra.mxu0 %v10840_v7  ;;  %v5578_v55 = vsel %vm11554_vm5, %v5576_v11, %v5577_v57  ;;  %v6506_v58 = vshrl.u32 %v10206_v16, 16  ;;  %v6649_v57 = vunpack.c.l.b16 %v6481_v13  ;;  %v10841_v16 = vld [vmem:[%s12185_s23 + $0x84] sm:$0xff] }
 0x33d   : > { %5796 = vmatmul.bf16.gmra.mxu3 %v5672_v49  ;;  %v13228_v49 = vrot.slane %v5078_v43, 5  ;;  %v5652_v27 = vunpack.c.l.b16 %v5578_v55  ;;  %v13236_v43 = vrot.slane %v6502_v23, 5  ;;  %v5247_v14 = vpack.c.b16 %v5226_v24, %v5225_v39  ;;  %v4792_v24 = vld [vmem:[%s12185_s23 + $0x90] sm:$0xf] }
 0x33e   : > { %6794 = vmatmul.bf16.gmra.mxu1 %v6670_v15  ;;  %v13210_v35 = vadd.f32 %v6752_v12, %v6149_v41  ;;  %v5075_v41 = vor.u32 %v5074_v10, %v5071_v18  ;;  %v6671_v55 = vpack.c.b16 %v6650_v19, %v6649_v57  ;;  %v5090_v13 = vrot.slane %v5088_v48, 5 }
 0x33f   : > { %v5331_v29 = vpop.f32.mrf.mxu2  ;;  %v5673_v40 = vpack.c.b16 %v5652_v27, %v5651_v8  ;;  %v9975_v28 = vrot.slane %v5449_v61, 9  ;;  %v6499_v18 = vor.u32 %v6498_v26, %v6495_v36  ;;  %v13249_v8 = vld [vmem:[%s12185_s23 + $0x94] sm:$0xf]  ;;  %v10864_v27 = vld [vmem:[%s14099_s3 + $0x148] sm:$0xff]  ;;  %v5093_v61 = vshrl.u32 %v4792_v24, 16 }
 0x340   : > { %v5757_v37 = vpop.f32.mrf.mxu3  ;;  %v5408_v12 = vadd.f32 %v5331_v29, %v12498_v22  ;;  %v5084_v22 = vrot.slane %v5082_v59, 4  ;;  %v6508_v59 = vrot.slane %v6506_v58, 4  ;;  %7173 = vmatpush.bf16.msra.mxu2 %v10864_v27 }
 0x341   : > { %v6075_v7 = vpop.f32.mrf.mxu0 }
 0x342   : > { %v5834_v54 = vadd.f32 %v5757_v37, %v5408_v12  ;;  %v5085_v0 = vor.u32 %v5084_v22, %v13228_v49  ;;  %v5581_v37 = vrot.slane %v13198_v17, 5  ;;  %v5076_v12 = vrot.slane %v5075_v41, 4 }
 0x343   : > { %v6757_v15 = vpop.f32.mrf.mxu1  ;;  %v6509_v22 = vor.u32 %v6508_v59, %v13236_v43  ;;  %v5096_v59 = vshll.u32 %v4792_v24, 16 }
 0x344   : > { %v6150_v11 = vadd.f32 %v6073_v62, %v5834_v54  ;;  %v10207_v62 = vld [vmem:[%s12185_s23 + $0x98] sm:$0x1]  ;;  %v5086_v54 = vrot.slane %v5085_v0, 4  ;;  %v5583_v23 = vrot.slane %v5581_v37, 4  ;;  %v5081_v57 = vsel %vm11230_vm2, %v5076_v12, %v13228_v49 }
 0x345   : > { %v6512_v17 = vshll.u32 %v10207_v62, 16  ;;  %v6510_v41 = vrot.slane %v6509_v22, 4  ;;  %v5106_v62 = vshrl.u32 %v13249_v8, 16  ;;  %v5095_v22 = vrot.slane %v5093_v61, 4  ;;  %v10210_v61 = vld [vmem:[%s12185_s23 + $0xa4] sm:$0x1] }
 0x346   : > { %v13245_v58 = vadd.f32 %v13195_v53, %v6150_v11  ;;  %v5582_v53 = vsel %vm11554_vm5, %v9975_v28, %v5581_v37  ;;  %v10208_v11 = vld [vmem:[%s12185_s23 + $0x9c] sm:$0xf]  ;;  %v5091_v19 = vsel %vm11230_vm2, %v5086_v54, %v5090_v13 }
 0x347   : > { %v5333_v56 = vpop.f32.mrf.mxu2  ;;  %v6514_v48 = vrot.slane %v6512_v17, 5  ;;  %v5098_v17 = vrot.slane %v5096_v59, 5  ;;  %v5108_v24 = vrot.slane %v5106_v62, 4 }
 0x348   : > { %v5759_v29 = vpop.f32.mrf.mxu3  ;;  %v5409_v21 = vadd.f32 %v5333_v56, %v12515_v60  ;;  %v5584_v60 = vrot.slane %v13231_v20, 5  ;;  %v10888_v20 = vld [vmem:[%s14099_s3 + $0x188] sm:$0xff]  ;;  %v5102_v56 = vshll.u32 %v13249_v8, 16 }
 0x349   : > { %v6078_v2 = vpop.f32.mrf.mxu0  ;;  %7489 = vmatpush.bf16.msra.mxu3 %v10888_v20 }
 0x34a   : > { %v5835_v10 = vadd.f32 %v5759_v29, %v5409_v21  ;;  %v5585_v0 = vsel %vm11554_vm5, %v5583_v23, %v5584_v60  ;;  %v10209_v29 = vld [vmem:[%s12185_s23 + $0xa0] sm:$0xf]  ;;  %v6517_v21 = vshrl.u32 %v10208_v11, 16  ;;  %v13278_v23 = vrot.slane %v5102_v56, 5 }
 0x34b   : > { %v6760_v38 = vpop.f32.mrf.mxu1  ;;  %v5654_v54 = vunpack.c.l.b16 %v5585_v0  ;;  %v5588_v0 = vrot.slane %v13249_v8, 5 }
 0x34c   : > { %v6151_v39 = vadd.f32 %v6075_v7, %v5835_v10  ;;  %5375 = vmatmul.bf16.gmra.mxu2 %v5247_v14  ;;  %6117 = vmatmul.bf16.gmra.mxu0 %v10841_v16  ;;  %v6500_v7 = vrot.slane %v6499_v18, 4  ;;  %v6520_v14 = vshll.u32 %v10208_v11, 16  ;;  %v6515_v18 = vsel %vm11230_vm2, %v6510_v41, %v6514_v48 }
 0x34d   : > { %5801 = vmatmul.bf16.gmra.mxu3 %v5673_v40  ;;  %v5228_v40 = vunpack.c.l.b16 %v5091_v19  ;;  %v6526_v10 = vshll.u32 %v10209_v29, 16  ;;  %v6519_v27 = vrot.slane %v6517_v21, 4  ;;  %v10842_v21 = vld [vmem:[%s12185_s23 + $0x90] sm:$0xff] }
 0x34e   : > { %6799 = vmatmul.bf16.gmra.mxu1 %v6671_v55  ;;  %v13265_v36 = vadd.f32 %v6757_v15, %v6151_v39  ;;  %v5227_v15 = vunpack.c.l.b16 %v5081_v57  ;;  %v5653_v55 = vunpack.c.l.b16 %v5582_v53  ;;  %v6505_v16 = vsel %vm11230_vm2, %v6500_v7, %v13236_v43  ;;  %v13281_v39 = vld [vmem:[%s12185_s23 + $0x98] sm:$0x1]  ;;  %v10896_v57 = vld [vmem:[%s14099_s3 + $0x1c8] sm:$0xff] }
 0x34f   : > { %v5336_v26 = vpop.f32.mrf.mxu2  ;;  %v6522_v43 = vrot.slane %v6520_v14, 5  ;;  %v6651_v53 = vunpack.c.l.b16 %v6505_v16  ;;  %v6652_v7 = vunpack.c.l.b16 %v6515_v18  ;;  %v13286_v20 = vrot.slane %v6526_v10, 5  ;;  %8171 = vmatpush.bf16.msra.mxu0 %v10896_v57  ;;  %v4795_v18 = vld [vmem:[%s12185_s23 + $0x9c] sm:$0xf] }
 0x350   : > { %v5762_v49 = vpop.f32.mrf.mxu3  ;;  %v5410_v37 = vadd.f32 %v5336_v26, %v12532_v33  ;;  %v6530_v33 = vshrl.u32 %v10209_v29, 16  ;;  %v5248_v48 = vpack.c.b16 %v5228_v40, %v5227_v15  ;;  %v5099_v26 = vor.u32 %v5098_v17, %v5095_v22 }
 0x351   : > { %v6080_v13 = vpop.f32.mrf.mxu0  ;;  %v5674_v56 = vpack.c.b16 %v5654_v54, %v5653_v55  ;;  %v5109_v29 = vor.u32 %v5108_v24, %v13278_v23  ;;  %v6523_v62 = vor.u32 %v6522_v43, %v6519_v27  ;;  %v5590_v22 = vrot.slane %v5588_v0, 4  ;;  %v13304_v24 = vld [vmem:[%s12185_s23 + $0xa0] sm:$0xf] }
 0x352   : > { %v5836_v12 = vadd.f32 %v5762_v49, %v5410_v37  ;;  %v6532_v11 = vrot.slane %v6530_v33, 4  ;;  %v5112_v49 = vshll.u32 %v13281_v39, 16  ;;  %v5450_v37 = vld [vmem:[%s12185_s23 + $0x90] sm:$0xe]  ;;  %v5100_v10 = vrot.slane %v5099_v26, 4 }
 0x353   : > { %v6762_v28 = vpop.f32.mrf.mxu1  ;;  %v9976_v33 = vrot.slane %v5450_v37, 9  ;;  %v5110_v55 = vrot.slane %v5109_v29, 4  ;;  %v5591_v54 = vrot.slane %v13281_v39, 5  ;;  %v6524_v17 = vrot.slane %v6523_v62, 4 }
 0x354   : > { %v6152_v60 = vadd.f32 %v6078_v2, %v5836_v12  ;;  %v6533_v40 = vor.u32 %v6532_v11, %v13286_v20  ;;  %v6536_v12 = vshll.u32 %v10210_v61, 16  ;;  %v5114_v8 = vrot.slane %v5112_v49, 5  ;;  %v10212_v49 = vld [vmem:[%s12185_s23 + $0xac] sm:$0xf]  ;;  %v14124_v61 = vld [vmem:[#allocation2_spill] sm:$0xff] }
 0x355   : > { %v5117_v27 = vshrl.u32 %v4795_v18, 16  ;;  %v5120_v43 = vshll.u32 %v4795_v18, 16  ;;  %v5130_v26 = vshrl.u32 %v13304_v24, 16  ;;  %v6554_v18 = vshrl.u32 %v10212_v49, 16 }
 0x356   : > { %v13288_v19 = vadd.f32 %v6760_v38, %v6152_v60  ;;  %v6672_v38 = vpack.c.b16 %v6652_v7, %v6651_v53  ;;  %v10904_v60 = vld [vmem:[%s14099_s3 + $0x208] sm:$0xff]  ;;  %v6534_v57 = vrot.slane %v6533_v40, 4  ;;  %v6538_v53 = vrot.slane %v6536_v12, 5 }
 0x357   : > { %v5338_v2 = vpop.f32.mrf.mxu2  ;;  %8597 = vmatpush.bf16.msra.mxu1 %v10904_v60  ;;  %v5119_v29 = vrot.slane %v5117_v27, 4  ;;  %v5122_v37 = vrot.slane %v5120_v43, 5  ;;  %v6550_v12 = vshll.u32 %v10212_v49, 16 }
 0x358   : > { %v5764_v41 = vpop.f32.mrf.mxu3  ;;  %v5411_v59 = vadd.f32 %v5338_v2, %v12546_v47  ;;  %v5105_v2 = vsel %vm11230_vm2, %v5100_v10, %v13278_v23  ;;  %v6529_v23 = vsel %vm11230_vm2, %v6524_v17, %v13286_v20  ;;  %v6539_v40 = vsel %vm11230_vm2, %v6534_v57, %v6538_v53  ;;  %v13330_v17 = vld [vmem:[%s12185_s23 + $0xa4] sm:$0x1]  ;;  %v10213_v53 = vld [vmem:[%s12185_s23 + $0xb0] sm:$0x1] }
 0x359   : > { %v6083_v16 = vpop.f32.mrf.mxu0  ;;  %v5229_v10 = vunpack.c.l.b16 %v5105_v2  ;;  %v6654_v60 = vunpack.c.l.b16 %v6539_v40  ;;  %v5123_v27 = vor.u32 %v5122_v37, %v5119_v29 }
 0x35a   : > { %v5837_v14 = vadd.f32 %v5764_v41, %v5411_v59  ;;  %v5589_v41 = vsel %vm11554_vm5, %v9976_v33, %v5588_v0 }
 0x35b   : > { %v6765_v15 = vpop.f32.mrf.mxu1  ;;  %v5124_v37 = vrot.slane %v5123_v27, 4 }
 0x35c   : > { %v6153_v47 = vadd.f32 %v6080_v13, %v5837_v14  ;;  %5380 = vmatmul.bf16.gmra.mxu2 %v5248_v48  ;;  %6122 = vmatmul.bf16.gmra.mxu0 %v10842_v21  ;;  %v10211_v13 = vld [vmem:[%s12185_s23 + $0xa8] sm:$0xf]  ;;  %v5126_v48 = vshll.u32 %v13304_v24, 16 }
 0x35d   : > { %5806 = vmatmul.bf16.gmra.mxu3 %v5674_v56  ;;  %v5592_v56 = vsel %vm11554_vm5, %v5590_v22, %v5591_v54  ;;  %v6541_v0 = vshrl.u32 %v10211_v13, 16  ;;  %v6544_v62 = vshll.u32 %v10211_v13, 16  ;;  %v5132_v22 = vrot.slane %v5130_v26, 4  ;;  %v14125_v26 = vld [vmem:[#allocation3_spill] sm:$0xff] }
 0x35e   : > { %6804 = vmatmul.bf16.gmra.mxu1 %v6672_v38  ;;  %v13307_v7 = vadd.f32 %v6762_v28, %v6153_v47  ;;  %v5115_v28 = vsel %vm11230_vm2, %v5110_v55, %v5114_v8  ;;  %v13327_v33 = vrot.slane %v5126_v48, 5  ;;  %v5655_v47 = vunpack.c.l.b16 %v5589_v41 }
 0x35f   : > { %v5341_v11 = vpop.f32.mrf.mxu2  ;;  %v5230_v8 = vunpack.c.l.b16 %v5115_v28  ;;  %v5656_v55 = vunpack.c.l.b16 %v5592_v56  ;;  %v6653_v54 = vunpack.c.l.b16 %v6529_v23  ;;  %v6543_v43 = vrot.slane %v6541_v0, 4  ;;  %v5451_v28 = vld [vmem:[%s12185_s23 + $0x9c] sm:$0xe] }
 0x360   : > { %v5767_v39 = vpop.f32.mrf.mxu3  ;;  %v5412_v59 = vadd.f32 %v5341_v11, %v14124_v61  ;;  %v6546_v57 = vrot.slane %v6544_v62, 5  ;;  %v13333_v13 = vrot.slane %v6550_v12, 5  ;;  %v6556_v11 = vrot.slane %v6554_v18, 4  ;;  %v10843_v23 = vld [vmem:[%s12185_s23 + $0x9c] sm:$0xff] }
 0x361   : > { %v6085_v38 = vpop.f32.mrf.mxu0  ;;  %v5136_v41 = vshll.u32 %v13330_v17, 16  ;;  %v5249_v61 = vpack.c.b16 %v5230_v8, %v5229_v10  ;;  %v5595_v56 = vrot.slane %v13304_v24, 5  ;;  %v6673_v29 = vpack.c.b16 %v6654_v60, %v6653_v54  ;;  %v4798_v8 = vld [vmem:[%s12185_s23 + $0xa8] sm:$0xf] }
 0x362   : > { %v5838_v21 = vadd.f32 %v5767_v39, %v5412_v59  ;;  %v5675_v59 = vpack.c.b16 %v5656_v55, %v5655_v47  ;;  %v6560_v0 = vshll.u32 %v10213_v53, 16  ;;  %v6557_v12 = vor.u32 %v6556_v11, %v13333_v13  ;;  %v13348_v47 = vld [vmem:[%s12185_s23 + $0xac] sm:$0xf]  ;;  %v10863_v55 = vld [vmem:[%s14099_s3 + $0x140] sm:$0xff] }
 0x363   : > { %v6767_v14 = vpop.f32.mrf.mxu1  ;;  %v9977_v10 = vrot.slane %v5451_v28, 9  ;;  %v5597_v24 = vrot.slane %v5595_v56, 4  ;;  %v5129_v54 = vsel %vm11230_vm2, %v5124_v37, %v13327_v33  ;;  %v5598_v60 = vrot.slane %v13330_v17, 5  ;;  %7174 = vmatpush.bf16.msra.mxu2 %v10863_v55 }
 0x364   : > { %v6154_v20 = vadd.f32 %v6083_v16, %v5838_v21  ;;  %v5133_v16 = vor.u32 %v5132_v22, %v13327_v33  ;;  %v5138_v22 = vrot.slane %v5136_v41, 5  ;;  %v6558_v53 = vrot.slane %v6557_v12, 4 }
 0x365   : > { %v5141_v11 = vshrl.u32 %v4798_v8, 16  ;;  %v5596_v17 = vsel %vm11554_vm5, %v9977_v10, %v5595_v56  ;;  %v5599_v37 = vsel %vm11554_vm5, %v5597_v24, %v5598_v60 }
 0x366   : > { %v13335_v39 = vadd.f32 %v6765_v15, %v6154_v20  ;;  %v6547_v15 = vor.u32 %v6546_v57, %v6543_v43  ;;  %v5134_v18 = vrot.slane %v5133_v16, 4  ;;  %v10887_v43 = vld [vmem:[%s14099_s3 + $0x180] sm:$0xff]  ;;  %v10214_v57 = vld [vmem:[%s12185_s23 + $0xb4] sm:$0xf]  ;;  %v5657_v55 = vunpack.c.l.b16 %v5596_v17 }
 0x367   : > { %v5343_v2 = vpop.f32.mrf.mxu2  ;;  %7490 = vmatpush.bf16.msra.mxu3 %v10887_v43  ;;  %v5143_v10 = vrot.slane %v5141_v11, 4 }
 0x368   : > { %v5769_v48 = vpop.f32.mrf.mxu3  ;;  %v5413_v49 = vadd.f32 %v5343_v2, %v14125_v26  ;;  %v6548_v27 = vrot.slane %v6547_v15, 4  ;;  %v5144_v2 = vshll.u32 %v4798_v8, 16  ;;  %v5139_v33 = vsel %vm11230_vm2, %v5134_v18, %v5138_v22 }
 0x369   : > { %v6088_v21 = vpop.f32.mrf.mxu0 }
 0x36a   : > { %v5839_v62 = vadd.f32 %v5769_v48, %v5413_v49  ;;  %v10215_v48 = vld [vmem:[%s12185_s23 + $0xb8] sm:$0xf]  ;;  %v5150_v49 = vshll.u32 %v13348_v47, 16  ;;  %v6553_v15 = vsel %vm11230_vm2, %v6548_v27, %v13333_v13  ;;  %v5146_v8 = vrot.slane %v5144_v2, 5 }
 0x36b   : > { %v13343_v40 = vpop.f32.mrf.mxu1  ;;  %v6578_v56 = vshrl.u32 %v10215_v48, 16  ;;  %v5658_v13 = vunpack.c.l.b16 %v5599_v37 }
 0x36c   : > { %v6155_v20 = vadd.f32 %v6085_v38, %v5839_v62  ;;  %5385 = vmatmul.bf16.gmra.mxu2 %v5249_v61  ;;  %6127 = vmatmul.bf16.gmra.mxu0 %v10843_v23  ;;  %v6562_v38 = vrot.slane %v6560_v0, 5  ;;  %v5154_v61 = vshrl.u32 %v13348_v47, 16  ;;  %v5231_v23 = vunpack.c.l.b16 %v5129_v54  ;;  %v4800_v54 = vld [vmem:[%s12185_s23 + $0xb0] sm:$0x1] }
 0x36d   : > { %5811 = vmatmul.bf16.gmra.mxu3 %v5675_v59  ;;  %v14127_v59 = vld [vmem:[#allocation4_spill] sm:$0xff]  ;;  %v6574_v0 = vshll.u32 %v10215_v48, 16  ;;  %v13381_v24 = vrot.slane %v5150_v49, 5  ;;  %v10895_v48 = vld [vmem:[%s14099_s3 + $0x1c0] sm:$0xff]  ;;  %v6580_v11 = vrot.slane %v6578_v56, 4  ;;  %v5147_v2 = vor.u32 %v5146_v8, %v5143_v10  ;;  %v10844_v56 = vld [vmem:[%s12185_s23 + $0xa8] sm:$0xff] }
 0x36e   : > { %6809 = vmatmul.bf16.gmra.mxu1 %v6673_v29  ;;  %v13362_v16 = vadd.f32 %v6767_v14, %v6155_v20  ;;  %v6565_v29 = vshrl.u32 %v10214_v57, 16  ;;  %v6568_v14 = vshll.u32 %v10214_v57, 16  ;;  %v6563_v22 = vsel %vm11230_vm2, %v6558_v53, %v6562_v38  ;;  %8172 = vmatpush.bf16.msra.mxu0 %v10895_v48 }
 0x36f   : > { %v5346_v41 = vpop.f32.mrf.mxu2  ;;  %v5232_v20 = vunpack.c.l.b16 %v5139_v33  ;;  %v5156_v60 = vrot.slane %v5154_v61, 4  ;;  %v6656_v38 = vunpack.c.l.b16 %v6563_v22  ;;  %v13386_v53 = vrot.slane %v6574_v0, 5  ;;  %v10216_v33 = vld [vmem:[%s12185_s23 + $0xbc] sm:$0x1] }
 0x370   : > { %14126 = vst [vmem:[#allocation2_spill] sm:$0xff] %v13362_v16  ;;  %v5772_v26 = vpop.f32.mrf.mxu3  ;;  %v5414_v28 = vadd.f32 %v5346_v41, %v14127_v59  ;;  %v6567_v27 = vrot.slane %v6565_v29, 4  ;;  %v6570_v57 = vrot.slane %v6568_v14, 5  ;;  %v6655_v41 = vunpack.c.l.b16 %v6553_v15  ;;  %v5452_v15 = vld [vmem:[%s12185_s23 + $0xa8] sm:$0xe] }
 0x371   : > { %v6090_v12 = vpop.f32.mrf.mxu0  ;;  %v5157_v61 = vor.u32 %v5156_v60, %v13381_v24  ;;  %v5602_v59 = vrot.slane %v13348_v47, 5  ;;  %v5250_v14 = vpack.c.b16 %v5232_v20, %v5231_v23  ;;  %v5676_v37 = vpack.c.b16 %v5658_v13, %v5657_v55  ;;  %v10903_v13 = vld [vmem:[%s14099_s3 + $0x200] sm:$0xff] }
 0x372   : > { %v5840_v62 = vadd.f32 %v5772_v26, %v5414_v28  ;;  %v5160_v26 = vshll.u32 %v4800_v54, 16  ;;  %v14129_v28 = vld [vmem:[#allocation5_spill] sm:$0xff]  ;;  %v6571_v0 = vor.u32 %v6570_v57, %v6567_v27  ;;  %v6581_v22 = vor.u32 %v6580_v11, %v13386_v53  ;;  %8598 = vmatpush.bf16.msra.mxu1 %v10903_v13 }
 0x373   : > { %v13376_v18 = vpop.f32.mrf.mxu1  ;;  %v6584_v10 = vshll.u32 %v10216_v33, 16  ;;  %v5148_v48 = vrot.slane %v5147_v2, 4  ;;  %v5158_v47 = vrot.slane %v5157_v61, 4  ;;  %v9978_v16 = vrot.slane %v5452_v15, 9 }
 0x374   : > { %v6156_v43 = vadd.f32 %v6088_v21, %v5840_v62  ;;  %v6674_v62 = vpack.c.b16 %v6656_v38, %v6655_v41  ;;  %v5162_v60 = vrot.slane %v5160_v26, 5  ;;  %v5605_v23 = vrot.slane %v4800_v54, 5  ;;  %v13405_v41 = vld [vmem:[%s12185_s23 + $0xb8] sm:$0xf]  ;;  %v10217_v54 = vld [vmem:[%s12185_s23 + $0xc0] sm:$0xf] }
 0x375   : > { %v6572_v55 = vrot.slane %v6571_v0, 4  ;;  %v6582_v27 = vrot.slane %v6581_v22, 4  ;;  %v6586_v57 = vrot.slane %v6584_v10, 5  ;;  %v5178_v15 = vshrl.u32 %v13405_v41, 16 }
 0x376   : > { %v13390_v21 = vadd.f32 %v13343_v40, %v6156_v43  ;;  %v5163_v33 = vsel %vm11230_vm2, %v5158_v47, %v5162_v60  ;;  %v6592_v10 = vshll.u32 %v10217_v54, 16 }
 0x377   : > { %v5348_v17 = vpop.f32.mrf.mxu2  ;;  %v5234_v47 = vunpack.c.l.b16 %v5163_v33 }
 0x378   : > { %14128 = vst [vmem:[#allocation3_spill] sm:$0xff] %v13390_v21  ;;  %v5774_v49 = vpop.f32.mrf.mxu3  ;;  %v5415_v29 = vadd.f32 %v5348_v17, %v14129_v28  ;;  %v4801_v21 = vld [vmem:[%s12185_s23 + $0xb4] sm:$0xf]  ;;  %v5604_v17 = vrot.slane %v5602_v59, 4  ;;  %v10218_v28 = vld [vmem:[%s12185_s23 + $0xc4] sm:$0xf] }
 0x379   : > { %v6093_v8 = vpop.f32.mrf.mxu0  ;;  %v5165_v38 = vshrl.u32 %v4801_v21, 16  ;;  %v5168_v11 = vshll.u32 %v4801_v21, 16 }
 0x37a   : > { %v5841_v40 = vadd.f32 %v5774_v49, %v5415_v29  ;;  %v5603_v49 = vsel %vm11554_vm5, %v9978_v16, %v5602_v59  ;;  %v5606_v61 = vsel %vm11554_vm5, %v5604_v17, %v5605_v23  ;;  %v14130_v29 = vld [vmem:[#allocation6_spill] sm:$0xff]  ;;  %v6587_v16 = vsel %vm11230_vm2, %v6582_v27, %v6586_v57  ;;  %v4803_v57 = vld [vmem:[%s12185_s23 + $0xbc] sm:$0x1] }
 0x37b   : > { %v13398_v43 = vpop.f32.mrf.mxu1  ;;  %v5167_v59 = vrot.slane %v5165_v38, 4  ;;  %v5170_v0 = vrot.slane %v5168_v11, 5  ;;  %v5660_v23 = vunpack.c.l.b16 %v5606_v61  ;;  %v6658_v27 = vunpack.c.l.b16 %v6587_v16  ;;  %v14131_v61 = vld [vmem:[#allocation7_spill] sm:$0xff]  ;;  %v10845_v16 = vld [vmem:[%s12185_s23 + $0xb4] sm:$0xff] }
 0x37c   : > { %v6157_v20 = vadd.f32 %v6090_v12, %v5841_v40  ;;  %5390 = vmatmul.bf16.gmra.mxu2 %v5250_v14  ;;  %6132 = vmatmul.bf16.gmra.mxu0 %v10844_v56  ;;  %v5153_v12 = vsel %vm11230_vm2, %v5148_v48, %v13381_v24  ;;  %v6577_v24 = vsel %vm11230_vm2, %v6572_v55, %v13386_v53  ;;  %v6589_v56 = vshrl.u32 %v10217_v54, 16 }
 0x37d   : > { %5816 = vmatmul.bf16.gmra.mxu3 %v5676_v37  ;;  %v5174_v37 = vshll.u32 %v13405_v41, 16  ;;  %v6598_v40 = vshll.u32 %v10218_v28, 16  ;;  %v6602_v48 = vshrl.u32 %v10218_v28, 16  ;;  %v5233_v60 = vunpack.c.l.b16 %v5153_v12 }
 0x37e   : > { %6814 = vmatmul.bf16.gmra.mxu1 %v6674_v62  ;;  %v13419_v21 = vadd.f32 %v13376_v18, %v6157_v20  ;;  %v5659_v53 = vunpack.c.l.b16 %v5603_v49  ;;  %v5180_v55 = vrot.slane %v5178_v15, 4  ;;  %v6657_v13 = vunpack.c.l.b16 %v6577_v24  ;;  %v10219_v49 = vld [vmem:[%s12185_s23 + $0xc8] sm:$0x1]  ;;  %v5453_v15 = vld [vmem:[%s12185_s23 + $0xb4] sm:$0xe] }
 0x37f   : > { %v5351_v2 = vpop.f32.mrf.mxu2  ;;  %v5176_v20 = vrot.slane %v5174_v37, 5  ;;  %v5171_v38 = vor.u32 %v5170_v0, %v5167_v59  ;;  %v6591_v11 = vrot.slane %v6589_v56, 4  ;;  %v6604_v54 = vrot.slane %v6602_v48, 4 }
 0x380   : > { %v5777_v26 = vpop.f32.mrf.mxu3  ;;  %v5416_v14 = vadd.f32 %v5351_v2, %v14130_v29  ;;  %v6594_v2 = vrot.slane %v6592_v10, 5  ;;  %v5251_v33 = vpack.c.b16 %v5234_v47, %v5233_v60  ;;  %v5184_v37 = vshll.u32 %v4803_v57, 16 }
 0x381   : > { %v6095_v18 = vpop.f32.mrf.mxu0  ;;  %v5181_v24 = vor.u32 %v5180_v55, %v5176_v20  ;;  %v6675_v59 = vpack.c.b16 %v6658_v27, %v6657_v13  ;;  %v5172_v0 = vrot.slane %v5171_v38, 4  ;;  %v5609_v56 = vrot.slane %v13405_v41, 5  ;;  %v10492_v55 = vld [vmem:[%s12185_s23 + $0x18] sm:$0xf]  ;;  %v13443_v41 = vld [vmem:[%s12185_s23 + $0x1c] sm:$0xf] }
 0x382   : > { %v5842_v62 = vadd.f32 %v5777_v26, %v5416_v14  ;;  %v13430_v26 = vrot.slane %v6598_v40, 5  ;;  %v5677_v14 = vpack.c.b16 %v5660_v23, %v5659_v53  ;;  %v6595_v48 = vor.u32 %v6594_v2, %v6591_v11 }
 0x383   : > { %v6777_v22 = vpop.f32.mrf.mxu1  ;;  %v6608_v60 = vshll.u32 %v10219_v49, 16  ;;  %v9979_v47 = vrot.slane %v5453_v15, 9  ;;  %v5182_v53 = vrot.slane %v5181_v24, 4  ;;  %v5186_v23 = vrot.slane %v5184_v37, 5 }
 0x384   : > { %v6158_v17 = vadd.f32 %v6093_v8, %v5842_v62  ;;  %v5611_v13 = vrot.slane %v5609_v56, 4  ;;  %v5612_v27 = vrot.slane %v4803_v57, 5  ;;  %v5177_v38 = vsel %vm11230_vm2, %v5172_v0, %v5176_v20 }
 0x385   : > { %v6596_v11 = vrot.slane %v6595_v48, 4  ;;  %v7656_v49 = vshll.u32 %v10492_v55, 16  ;;  %v5187_v57 = vsel %vm11230_vm2, %v5182_v53, %v5186_v23  ;;  %v7662_v20 = vshll.u32 %v13443_v41, 16 }
 0x386   : > { %v13434_v8 = vadd.f32 %v13398_v43, %v6158_v17  ;;  %v6605_v43 = vor.u32 %v6604_v54, %v13430_v26  ;;  %v6610_v54 = vrot.slane %v6608_v60, 5  ;;  %v5613_v24 = vsel %vm11554_vm5, %v5611_v13, %v5612_v27  ;;  %v11065_v13 = vld [vmem:[%s12185_s23 + $0x10] sm:$0xf] }
 0x387   : > { %v5353_v28 = vpop.f32.mrf.mxu2  ;;  %v5236_v0 = vunpack.c.l.b16 %v5187_v57  ;;  %v7658_v48 = vrot.slane %v7656_v49, 5  ;;  %v5662_v60 = vunpack.c.l.b16 %v5613_v24  ;;  %v6928_v27 = vrot.slane %v11065_v13, 5 }
 0x388   : > { %v5779_v12 = vpop.f32.mrf.mxu3  ;;  %v5417_v29 = vadd.f32 %v5353_v28, %v14131_v61  ;;  %v6606_v2 = vrot.slane %v6605_v43, 4  ;;  %v8352_v57 = vrot.slane %v13443_v41, 5 }
 0x389   : > { %v6098_v10 = vpop.f32.mrf.mxu0 }
 0x38a   : > { %v5843_v62 = vadd.f32 %v5779_v12, %v5417_v29 }
 0x38b   : > { %v6780_v40 = vpop.f32.mrf.mxu1 }
 0x38c   : > { %v6159_v17 = vadd.f32 %v6095_v18, %v5843_v62  ;;  %5395 = vmatmul.bf16.gmra.mxu2 %v5251_v33  ;;  %6137 = vmatmul.bf16.gmra.mxu0 %v10845_v16  ;;  %v5610_v18 = vsel %vm11554_vm5, %v9979_v47, %v5609_v56  ;;  %v7653_v33 = vshrl.u32 %v10492_v55, 16  ;;  %v10494_v47 = vld [vmem:[%s12185_s23 + $0x20] sm:$0x1] }
 0x38d   : > { %5821 = vmatmul.bf16.gmra.mxu3 %v5677_v14  ;;  %v7666_v14 = vshrl.u32 %v13443_v41, 16  ;;  %v5661_v56 = vunpack.c.l.b16 %v5610_v18  ;;  %v8355_v41 = vrot.slane %v10494_v47, 5 }
 0x38e   : > { %6819 = vmatmul.bf16.gmra.mxu1 %v6675_v59  ;;  %v13449_v61 = vadd.f32 %v6777_v22, %v6159_v17  ;;  %v5235_v59 = vunpack.c.l.b16 %v5177_v38  ;;  %v6611_v22 = vsel %vm11230_vm2, %v6606_v2, %v6610_v54  ;;  %v7655_v62 = vrot.slane %v7653_v33, 4  ;;  %v10268_v2 = vld [vmem:[%s12185_s23 + $0xc] sm:$0xe] }
 0x38f   : > { %v5356_v28 = vpop.f32.mrf.mxu2  ;;  %v7664_v17 = vrot.slane %v7662_v20, 5  ;;  %v7668_v53 = vrot.slane %v7666_v14, 4  ;;  %v6660_v55 = vunpack.c.l.b16 %v6611_v22  ;;  %v5678_v33 = vpack.c.b16 %v5662_v60, %v5661_v56  ;;  %v10846_v20 = vld [vmem:[%s12185_s23 + $0xc0] sm:$0xff] }
 0x390   : > { %v5782_v12 = vpop.f32.mrf.mxu3  ;;  %v5418_v29 = vadd.f32 %v5356_v28, %v12684_v34  ;;  %v6601_v34 = vsel %vm11230_vm2, %v6596_v11, %v13430_v26  ;;  %v5252_v11 = vpack.c.b16 %v5236_v0, %v5235_v59  ;;  %v7659_v54 = vor.u32 %v7658_v48, %v7655_v62  ;;  %v11066_v0 = vld [vmem:[%s12185_s23 + $0x14] sm:$0x1] }
 0x391   : > { %v6100_v15 = vpop.f32.mrf.mxu0  ;;  %v6659_v23 = vunpack.c.l.b16 %v6601_v34  ;;  %v7672_v28 = vshll.u32 %v10494_v47, 16  ;;  %v7669_v49 = vor.u32 %v7668_v53, %v7664_v17  ;;  %v10284_v59 = vrot.slane %v10268_v2, 9  ;;  %v10495_v53 = vld [vmem:[%s12185_s23 + $0x24] sm:$0xf] }
 0x392   : > { %v5844_v37 = vadd.f32 %v5782_v12, %v5418_v29  ;;  %v10588_v29 = vld [vmem:[%s12185_s23 + $0x18] sm:$0xe]  ;;  %v6930_v22 = vrot.slane %v6928_v27, 4  ;;  %v6931_v62 = vrot.slane %v11066_v0, 5  ;;  %v8354_v60 = vrot.slane %v8352_v57, 4 }
 0x393   : > { %v6782_v16 = vpop.f32.mrf.mxu1  ;;  %v6676_v14 = vpack.c.b16 %v6660_v55, %v6659_v23  ;;  %v7674_v48 = vrot.slane %v7672_v28, 5  ;;  %v7670_v56 = vrot.slane %v7669_v49, 4  ;;  %v13475_v23 = vld [vmem:[%s12185_s23 + $0x28] sm:$0xf] }
 0x394   : > { %v6160_v43 = vadd.f32 %v6098_v10, %v5844_v37  ;;  %v14132_v10 = vld [vmem:[#allocation8_spill] sm:$0xff]  ;;  %v6932_v2 = vsel %vm11554_vm5, %v6930_v22, %v6931_v62  ;;  %v7686_v49 = vshll.u32 %v13475_v23, 16 }
 0x395   : > { %v7675_v28 = vsel %vm11230_vm2, %v7670_v56, %v7674_v48  ;;  %v10497_v56 = vld [vmem:[%s12185_s23 + $0x2c] sm:$0x1] }
 0x396   : > { %v13466_v12 = vadd.f32 %v6780_v40, %v6160_v43  ;;  %v7660_v40 = vrot.slane %v7659_v54, 4  ;;  %v10604_v43 = vrot.slane %v10588_v29, 9  ;;  %v14133_v54 = vld [vmem:[#allocation9_spill] sm:$0xff] }
 0x397   : > { %v5358_v26 = vpop.f32.mrf.mxu2 }
 0x398   : > { %v5784_v38 = vpop.f32.mrf.mxu3  ;;  %v5419_v18 = vadd.f32 %v5358_v26, %v14132_v10  ;;  %v8353_v10 = vsel %vm11554_vm5, %v10604_v43, %v8352_v57  ;;  %v8054_v57 = vunpack.c.l.b16 %v7675_v28  ;;  %v13494_v43 = vrot.slane %v7686_v49, 5  ;;  %v10269_v28 = vld [vmem:[%s12185_s23 + $0x18] sm:$0xe] }
 0x399   : > { %v6103_v37 = vpop.f32.mrf.mxu0  ;;  %v8479_v0 = vunpack.c.l.b16 %v8353_v10 }
 0x39a   : > { %v5845_v24 = vadd.f32 %v5784_v38, %v5419_v18  ;;  %v6929_v38 = vsel %vm11554_vm5, %v10284_v59, %v6928_v27  ;;  %v8356_v18 = vsel %vm11554_vm5, %v8354_v60, %v8355_v41  ;;  %v7677_v27 = vshrl.u32 %v10495_v53, 16 }
 0x39b   : > { %v6785_v34 = vpop.f32.mrf.mxu1  ;;  %v8480_v62 = vunpack.c.l.b16 %v8356_v18 }
 0x39c   : > { %v6161_v13 = vadd.f32 %v6100_v15, %v5845_v24  ;;  %5400 = vmatmul.bf16.gmra.mxu2 %v5252_v11  ;;  %6142 = vmatmul.bf16.gmra.mxu0 %v10846_v20  ;;  %v7665_v15 = vsel %vm11230_vm2, %v7660_v40, %v7664_v17  ;;  %v7690_v17 = vshrl.u32 %v13475_v23, 16  ;;  %v7056_v24 = vunpack.c.l.b16 %v6932_v2 }
 0x39d   : > { %5826 = vmatmul.bf16.gmra.mxu3 %v5678_v33  ;;  %v7680_v33 = vshll.u32 %v10495_v53, 16  ;;  %v8053_v59 = vunpack.c.l.b16 %v7665_v15  ;;  %v7679_v40 = vrot.slane %v7677_v27, 4  ;;  %v11067_v15 = vld [vmem:[%s12185_s23 + $0x1c] sm:$0xf]  ;;  %v7696_v27 = vshll.u32 %v10497_v56, 16 }
 0x39e   : > { %6824 = vmatmul.bf16.gmra.mxu1 %v6676_v14  ;;  %v13483_v11 = vadd.f32 %v6782_v16, %v6161_v13  ;;  %v7055_v14 = vunpack.c.l.b16 %v6929_v38  ;;  %v7692_v13 = vrot.slane %v7690_v17, 4  ;;  %v10871_v38 = vld [vmem:[%s12185_s23 + $0x18] sm:$0xff]  ;;  %v8359_v17 = vrot.slane %v13475_v23, 5 }
 0x39f   : > { %v5361_v55 = vpop.f32.mrf.mxu2  ;;  %v7682_v48 = vrot.slane %v7680_v33, 5  ;;  %v8085_v2 = vpack.c.b16 %v8054_v57, %v8053_v59  ;;  %v13508_v57 = vld [vmem:[%s12185_s23 + $0x34] sm:$0xf] }
 0x3a0   : > { %v5787_v26 = vpop.f32.mrf.mxu3  ;;  %v5420_v47 = vadd.f32 %v5361_v55, %v14133_v54  ;;  %v14134_v55 = vld [vmem:[#allocation10_spill] sm:$0xff]  ;;  %v6935_v54 = vrot.slane %v11067_v15, 5  ;;  %v7693_v18 = vor.u32 %v7692_v13, %v13494_v43  ;;  %v7698_v13 = vrot.slane %v7696_v27, 5 }
 0x3a1   : > { %v6105_v29 = vpop.f32.mrf.mxu0  ;;  %v7683_v10 = vor.u32 %v7682_v48, %v7679_v40 }
 0x3a2   : > { %v5846_v16 = vadd.f32 %v5787_v26, %v5420_v47  ;;  %v8511_v47 = vpack.c.b16 %v8480_v62, %v8479_v0  ;;  %v6937_v59 = vrot.slane %v6935_v54, 4  ;;  %v11068_v0 = vld [vmem:[%s12185_s23 + $0x20] sm:$0x1]  ;;  %v7694_v48 = vrot.slane %v7693_v18, 4 }
 0x3a3   : > { %v6787_v20 = vpop.f32.mrf.mxu1  ;;  %v6938_v62 = vrot.slane %v11068_v0, 5  ;;  %v7684_v40 = vrot.slane %v7683_v10, 4 }
 0x3a4   : > { %v6162_v22 = vadd.f32 %v6103_v37, %v5846_v16  ;;  %v7087_v37 = vpack.c.b16 %v7056_v24, %v7055_v14  ;;  %v10589_v16 = vld [vmem:[%s12185_s23 + $0x24] sm:$0xe]  ;;  %v10285_v24 = vrot.slane %v10269_v28, 9 }
 0x3a5   : > { %v6939_v10 = vsel %vm11554_vm5, %v6937_v59, %v6938_v62  ;;  %v10500_v62 = vld [vmem:[%s12185_s23 + $0x38] sm:$0x1] }
 0x3a6   : > { %v13497_v53 = vadd.f32 %v6785_v34, %v6162_v22  ;;  %v10498_v22 = vld [vmem:[%s12185_s23 + $0x30] sm:$0xf]  ;;  %v7058_v0 = vunpack.c.l.b16 %v6939_v10  ;;  %v8366_v10 = vrot.slane %v13508_v57, 5 }
 0x3a7   : > { %v5363_v60 = vpop.f32.mrf.mxu2  ;;  %v7701_v23 = vshrl.u32 %v10498_v22, 16 }
 0x3a8   : > { %v5789_v41 = vpop.f32.mrf.mxu3  ;;  %v5421_v26 = vadd.f32 %v5363_v60, %v14134_v55  ;;  %v10605_v60 = vrot.slane %v10589_v16, 9  ;;  %v8362_v55 = vrot.slane %v10497_v56, 5  ;;  %v7689_v56 = vsel %vm11230_vm2, %v7684_v40, %v13494_v43 }
 0x3a9   : > { %v6108_v34 = vpop.f32.mrf.mxu0  ;;  %v7703_v16 = vrot.slane %v7701_v23, 4  ;;  %v8055_v40 = vunpack.c.l.b16 %v7689_v56 }
 0x3aa   : > { %v5847_v33 = vadd.f32 %v5789_v41, %v5421_v26  ;;  %v8361_v41 = vrot.slane %v8359_v17, 4 }
 0x3ab   : > { %v6790_v49 = vpop.f32.mrf.mxu1 }
 0x3ac   : > { %v6163_v14 = vadd.f32 %v6105_v29, %v5847_v33  ;;  %7175 = vmatmul.bf16.vlgmr.msra.gmra.mxu2 %v7087_v37  ;;  %8173 = vmatmul.bf16.vlgmr.msra.gmra.mxu0 %v8085_v2  ;;  %v7704_v29 = vshll.u32 %v10498_v22, 16  ;;  %v7710_v37 = vshll.u32 %v13508_v57, 16 }
 0x3ad   : > { %7491 = vmatmul.bf16.vlgmr.msra.gmra.mxu3 %v10871_v38  ;;  %v7714_v38 = vshrl.u32 %v13508_v57, 16  ;;  %v8368_v57 = vrot.slane %v8366_v10, 4 }
 0x3ae   : > { %8599 = vmatmul.bf16.vlgmr.msra.gmra.mxu1 %v8511_v47  ;;  %v13513_v28 = vadd.f32 %v6787_v20, %v6163_v14  ;;  %v6936_v47 = vsel %vm11554_vm5, %v10285_v24, %v6935_v54  ;;  %v7699_v20 = vsel %vm11230_vm2, %v7694_v48, %v7698_v13  ;;  %v8363_v54 = vsel %vm11554_vm5, %v8361_v41, %v8362_v55  ;;  %v10270_v55 = vld [vmem:[%s12185_s23 + $0x24] sm:$0xe] }
 0x3af   : > { %v5366_v26 = vpop.f32.mrf.mxu2  ;;  %v7706_v22 = vrot.slane %v7704_v29, 5  ;;  %v13529_v14 = vrot.slane %v7710_v37, 5  ;;  %v7716_v24 = vrot.slane %v7714_v38, 4  ;;  %v7057_v59 = vunpack.c.l.b16 %v6936_v47  ;;  %v10872_v47 = vld [vmem:[%s12185_s23 + $0x24] sm:$0xff] }
 0x3b0   : > { %v5792_v15 = vpop.f32.mrf.mxu3  ;;  %14135 = vst [vmem:[#allocation4_spill] sm:$0xff] %v13513_v28  ;;  %v5422_v2 = vadd.f32 %v5366_v26, %v12784_v46  ;;  %v8360_v46 = vsel %vm11554_vm5, %v10605_v60, %v8359_v17  ;;  %v8056_v26 = vunpack.c.l.b16 %v7699_v20  ;;  %v8482_v13 = vunpack.c.l.b16 %v8363_v54  ;;  %v11069_v17 = vld [vmem:[%s12185_s23 + $0x28] sm:$0xf]  ;;  %v10590_v20 = vld [vmem:[%s12185_s23 + $0x30] sm:$0xe] }
 0x3b1   : > { %v6110_v27 = vpop.f32.mrf.mxu0  ;;  %v8481_v48 = vunpack.c.l.b16 %v8360_v46  ;;  %v6942_v60 = vrot.slane %v11069_v17, 5  ;;  %v7707_v23 = vor.u32 %v7706_v22, %v7703_v16  ;;  %v7717_v29 = vor.u32 %v7716_v24, %v13529_v14  ;;  %v11070_v24 = vld [vmem:[%s12185_s23 + $0x2c] sm:$0x1] }
 0x3b2   : > { %v5848_v18 = vadd.f32 %v5792_v15, %v5422_v2  ;;  %v7720_v37 = vshll.u32 %v10500_v62, 16  ;;  %v7088_v2 = vpack.c.b16 %v7058_v0, %v7057_v59  ;;  %v8086_v56 = vpack.c.b16 %v8056_v26, %v8055_v40  ;;  %v10501_v40 = vld [vmem:[%s12185_s23 + $0x3c] sm:$0xf]  ;;  %v13544_v26 = vld [vmem:[%s12185_s23 + $0x40] sm:$0xf] }
 0x3b3   : > { %v6792_v33 = vpop.f32.mrf.mxu1  ;;  %v10286_v16 = vrot.slane %v10270_v55, 9  ;;  %v6944_v22 = vrot.slane %v6942_v60, 4  ;;  %v6945_v28 = vrot.slane %v11070_v24, 5  ;;  %v10606_v59 = vrot.slane %v10590_v20, 9 }
 0x3b4   : > { %v6164_v43 = vadd.f32 %v6108_v34, %v5848_v18  ;;  %v8512_v18 = vpack.c.b16 %v8482_v13, %v8481_v48  ;;  %v8369_v0 = vrot.slane %v10500_v62, 5 }
 0x3b6   : > { %v13535_v34 = vadd.f32 %v6790_v49, %v6164_v43  ;;  %v7708_v49 = vrot.slane %v7707_v23, 4  ;;  %v7718_v43 = vrot.slane %v7717_v29, 4  ;;  %v8367_v29 = vsel %vm11554_vm5, %v10606_v59, %v8366_v10 }
 0x3b7   : > { %v5368_v15 = vpop.f32.mrf.mxu2  ;;  %v8483_v20 = vunpack.c.l.b16 %v8367_v29 }
 0x3b8   : > { %v5794_v41 = vpop.f32.mrf.mxu3  ;;  %14136 = vst [vmem:[#allocation5_spill] sm:$0xff] %v13535_v34  ;;  %v5423_v38 = vadd.f32 %v5368_v15, %v12796_v32  ;;  %v7722_v34 = vrot.slane %v7720_v37, 5  ;;  %v6943_v15 = vsel %vm11554_vm5, %v10286_v16, %v6942_v60  ;;  %v8370_v60 = vsel %vm11554_vm5, %v8368_v57, %v8369_v0 }
 0x3b9   : > { %v6113_v54 = vpop.f32.mrf.mxu0  ;;  %v7725_v37 = vshrl.u32 %v10501_v40, 16 }
 0x3ba   : > { %v5849_v46 = vadd.f32 %v5794_v41, %v5423_v38  ;;  %v6946_v41 = vsel %vm11554_vm5, %v6944_v22, %v6945_v28  ;;  %v7723_v23 = vsel %vm11230_vm2, %v7718_v43, %v7722_v34  ;;  %v7728_v38 = vshll.u32 %v10501_v40, 16  ;;  %v10503_v43 = vld [vmem:[%s12185_s23 + $0x44] sm:$0x1]  ;;  %v10873_v40 = vld [vmem:[%s12185_s23 + $0x30] sm:$0xff] }
 0x3bb   : > { %v6795_v17 = vpop.f32.mrf.mxu1  ;;  %v7734_v28 = vshll.u32 %v13544_v26, 16  ;;  %v8058_v10 = vunpack.c.l.b16 %v7723_v23  ;;  %v7727_v16 = vrot.slane %v7725_v37, 4  ;;  %v7744_v29 = vshll.u32 %v10503_v43, 16 }
 0x3bc   : > { %v6165_v32 = vadd.f32 %v6110_v27, %v5849_v46  ;;  %7180 = vmatmul.bf16.gmra.mxu2 %v7088_v2  ;;  %8178 = vmatmul.bf16.gmra.mxu0 %v8086_v56  ;;  %v7713_v27 = vsel %vm11230_vm2, %v7708_v49, %v13529_v14  ;;  %v7738_v14 = vshrl.u32 %v13544_v26, 16  ;;  %v7060_v56 = vunpack.c.l.b16 %v6946_v41 }
 0x3bd   : > { %7496 = vmatmul.bf16.gmra.mxu3 %v10872_v47  ;;  %v8057_v34 = vunpack.c.l.b16 %v7713_v27  ;;  %v8484_v46 = vunpack.c.l.b16 %v8370_v60  ;;  %v7730_v22 = vrot.slane %v7728_v38, 5  ;;  %v13564_v24 = vrot.slane %v7734_v28, 5  ;;  %v10271_v27 = vld [vmem:[%s12185_s23 + $0x30] sm:$0xe]  ;;  %v10504_v28 = vld [vmem:[%s12185_s23 + $0x48] sm:$0xf] }
 0x3be   : > { %8604 = vmatmul.bf16.gmra.mxu1 %v8512_v18  ;;  %v13553_v55 = vadd.f32 %v6792_v33, %v6165_v32  ;;  %v7740_v49 = vrot.slane %v7738_v14, 4  ;;  %v8373_v38 = vrot.slane %v13544_v26, 5  ;;  %v7749_v26 = vshrl.u32 %v10504_v28, 16 }
 0x3bf   : > { %v5371_v48 = vpop.f32.mrf.mxu2  ;;  %v8513_v41 = vpack.c.b16 %v8484_v46, %v8483_v20  ;;  %v7746_v46 = vrot.slane %v7744_v29, 5 }
 0x3c0   : > { %v5797_v13 = vpop.f32.mrf.mxu3  ;;  %v5424_v62 = vadd.f32 %v5371_v48, %v12832_v44  ;;  %v7059_v44 = vunpack.c.l.b16 %v6943_v15  ;;  %v8087_v48 = vpack.c.b16 %v8058_v10, %v8057_v34  ;;  %v7741_v23 = vor.u32 %v7740_v49, %v13564_v24  ;;  %v11072_v34 = vld [vmem:[%s12185_s23 + $0x38] sm:$0x1] }
 0x3c1   : > { %v6115_v2 = vpop.f32.mrf.mxu0  ;;  %v8376_v49 = vrot.slane %v10503_v43, 5  ;;  %v7751_v29 = vrot.slane %v7749_v26, 4 }
 0x3c2   : > { %v5850_v33 = vadd.f32 %v5797_v13, %v5424_v62  ;;  %v11071_v13 = vld [vmem:[%s12185_s23 + $0x34] sm:$0xf]  ;;  %v7731_v62 = vor.u32 %v7730_v22, %v7727_v16  ;;  %v7742_v20 = vrot.slane %v7741_v23, 4  ;;  %v8375_v22 = vrot.slane %v8373_v38, 4 }
 0x3c3   : > { %v6797_v47 = vpop.f32.mrf.mxu1  ;;  %v6949_v15 = vrot.slane %v11071_v13, 5 }
 0x3c4   : > { %v6166_v18 = vadd.f32 %v6113_v54, %v5850_v33  ;;  %v7089_v54 = vpack.c.b16 %v7060_v56, %v7059_v44  ;;  %v10287_v33 = vrot.slane %v10271_v27, 9  ;;  %v13578_v56 = vld [vmem:[%s12185_s23 + $0x4c] sm:$0xf]  ;;  %v7732_v10 = vrot.slane %v7731_v62, 4 }
 0x3c5   : > { %v6951_v44 = vrot.slane %v6949_v15, 4 }
 0x3c6   : > { %v13567_v57 = vadd.f32 %v6795_v17, %v6166_v18  ;;  %v6952_v18 = vrot.slane %v11072_v34, 5  ;;  %v6950_v13 = vsel %vm11554_vm5, %v10287_v33, %v6949_v15  ;;  %v7737_v43 = vsel %vm11230_vm2, %v7732_v10, %v13564_v24 }
 0x3c7   : > { %v5373_v32 = vpop.f32.mrf.mxu2  ;;  %v8377_v15 = vsel %vm11554_vm5, %v8375_v22, %v8376_v49  ;;  %v8059_v34 = vunpack.c.l.b16 %v7737_v43  ;;  %v10272_v49 = vld [vmem:[%s12185_s23 + $0x3c] sm:$0xe]  ;;  %v10592_v43 = vld [vmem:[%s12185_s23 + $0x48] sm:$0xe] }
 0x3c8   : > { %v5799_v59 = vpop.f32.mrf.mxu3  ;;  %v5425_v0 = vadd.f32 %v5373_v32, %v12845_v5  ;;  %v10591_v5 = vld [vmem:[%s12185_s23 + $0x3c] sm:$0xe] }
 0x3c9   : > { %v6118_v17 = vpop.f32.mrf.mxu0  ;;  %v10607_v16 = vrot.slane %v10591_v5, 9 }
 0x3ca   : > { %v5851_v60 = vadd.f32 %v5799_v59, %v5425_v0  ;;  %v7758_v0 = vshll.u32 %v13578_v56, 16 }
 0x3cb   : > { %v6800_v37 = vpop.f32.mrf.mxu1 }
 0x3cc   : > { %v6167_v14 = vadd.f32 %v6115_v2, %v5851_v60  ;;  %7185 = vmatmul.bf16.gmra.mxu2 %v7089_v54  ;;  %8183 = vmatmul.bf16.gmra.mxu0 %v8087_v48  ;;  %v7752_v2 = vshll.u32 %v10504_v28, 16  ;;  %v7762_v54 = vshrl.u32 %v13578_v56, 16  ;;  %v13599_v5 = vrot.slane %v7758_v0, 5 }
 0x3cd   : > { %7501 = vmatmul.bf16.gmra.mxu3 %v10873_v40 }
 0x3ce   : > { %8609 = vmatmul.bf16.gmra.mxu1 %v8513_v41  ;;  %v13583_v40 = vadd.f32 %v6797_v47, %v6167_v14  ;;  %v6953_v41 = vsel %vm11554_vm5, %v6951_v44, %v6952_v18  ;;  %v7747_v47 = vsel %vm11230_vm2, %v7742_v20, %v7746_v46  ;;  %v7754_v60 = vrot.slane %v7752_v2, 5  ;;  %v10506_v44 = vld [vmem:[%s12185_s23 + $0x50] sm:$0x1] }
 0x3cf   : > { %v5376_v32 = vpop.f32.mrf.mxu2  ;;  %v7764_v28 = vrot.slane %v7762_v54, 4  ;;  %v7061_v14 = vunpack.c.l.b16 %v6950_v13  ;;  %v7062_v33 = vunpack.c.l.b16 %v6953_v41  ;;  %v8060_v18 = vunpack.c.l.b16 %v7747_v47  ;;  %v10874_v54 = vld [vmem:[%s12185_s23 + $0x3c] sm:$0xff] }
 0x3d0   : > { %v5802_v59 = vpop.f32.mrf.mxu3  ;;  %v5426_v48 = vadd.f32 %v5376_v32, %v12889_v30  ;;  %v8374_v30 = vsel %vm11554_vm5, %v10607_v16, %v8373_v38  ;;  %v8486_v20 = vunpack.c.l.b16 %v8377_v15  ;;  %v11073_v38 = vld [vmem:[%s12185_s23 + $0x40] sm:$0xf]  ;;  %v7755_v26 = vor.u32 %v7754_v60, %v7751_v29  ;;  %v11074_v60 = vld [vmem:[%s12185_s23 + $0x44] sm:$0x1] }
 0x3d1   : > { %v6120_v62 = vpop.f32.mrf.mxu0  ;;  %v8485_v10 = vunpack.c.l.b16 %v8374_v30  ;;  %v6956_v46 = vrot.slane %v11073_v38, 5  ;;  %v7765_v32 = vor.u32 %v7764_v28, %v13599_v5  ;;  %v7090_v0 = vpack.c.b16 %v7062_v33, %v7061_v14 }
 0x3d2   : > { %v5852_v27 = vadd.f32 %v5802_v59, %v5426_v48  ;;  %v7768_v59 = vshll.u32 %v10506_v44, 16  ;;  %v8380_v48 = vrot.slane %v13578_v56, 5  ;;  %v8088_v13 = vpack.c.b16 %v8060_v18, %v8059_v34  ;;  %v10507_v34 = vld [vmem:[%s12185_s23 + $0x54] sm:$0xf]  ;;  %v13614_v18 = vld [vmem:[%s12185_s23 + $0x58] sm:$0xf] }
 0x3d3   : > { %v6802_v23 = vpop.f32.mrf.mxu1  ;;  %v8514_v41 = vpack.c.b16 %v8486_v20, %v8485_v10  ;;  %v10288_v15 = vrot.slane %v10272_v49, 9  ;;  %v6958_v29 = vrot.slane %v6956_v46, 4  ;;  %v6959_v28 = vrot.slane %v11074_v60, 5 }
 0x3d4   : > { %v6168_v24 = vadd.f32 %v6118_v17, %v5852_v27  ;;  %v7770_v38 = vrot.slane %v7768_v59, 5  ;;  %v10608_v14 = vrot.slane %v10592_v43, 9  ;;  %v8382_v56 = vrot.slane %v8380_v48, 4 }
 0x3d5   : > { %v8383_v33 = vrot.slane %v10506_v44, 5  ;;  %v7773_v59 = vshrl.u32 %v10507_v34, 16 }
 0x3d6   : > { %v13605_v17 = vadd.f32 %v6800_v37, %v6168_v24  ;;  %v7756_v37 = vrot.slane %v7755_v26, 4  ;;  %v7766_v24 = vrot.slane %v7765_v32, 4  ;;  %v8381_v32 = vsel %vm11554_vm5, %v10608_v14, %v8380_v48 }
 0x3d7   : > { %v5378_v16 = vpop.f32.mrf.mxu2  ;;  %v7775_v60 = vrot.slane %v7773_v59, 4 }
 0x3d8   : > { %v5804_v22 = vpop.f32.mrf.mxu3  ;;  %v5427_v2 = vadd.f32 %v5378_v16, %v12904_v4  ;;  %v6957_v16 = vsel %vm11554_vm5, %v10288_v15, %v6956_v46  ;;  %v7771_v26 = vsel %vm11230_vm2, %v7766_v24, %v7770_v38  ;;  %v8384_v46 = vsel %vm11554_vm5, %v8382_v56, %v8383_v33  ;;  %v10509_v38 = vld [vmem:[%s12185_s23 + $0x5c] sm:$0x1] }
 0x3d9   : > { %v6123_v47 = vpop.f32.mrf.mxu0  ;;  %v8062_v48 = vunpack.c.l.b16 %v7771_v26  ;;  %v8487_v15 = vunpack.c.l.b16 %v8381_v32  ;;  %v7792_v32 = vshll.u32 %v10509_v38, 16 }
 0x3da   : > { %v5853_v27 = vadd.f32 %v5804_v22, %v5427_v2  ;;  %v6960_v22 = vsel %vm11554_vm5, %v6958_v29, %v6959_v28  ;;  %v7776_v2 = vshll.u32 %v10507_v34, 16  ;;  %v8488_v29 = vunpack.c.l.b16 %v8384_v46  ;;  %v10875_v34 = vld [vmem:[%s12185_s23 + $0x48] sm:$0xff] }
 0x3db   : > { %v6805_v30 = vpop.f32.mrf.mxu1 }
 0x3dc   : > { %v6169_v4 = vadd.f32 %v6120_v62, %v5853_v27  ;;  %7190 = vmatmul.bf16.gmra.mxu2 %v7090_v0  ;;  %8188 = vmatmul.bf16.gmra.mxu0 %v8088_v13  ;;  %v7761_v62 = vsel %vm11230_vm2, %v7756_v37, %v13599_v5  ;;  %v7782_v0 = vshll.u32 %v13614_v18, 16  ;;  %v7786_v5 = vshrl.u32 %v13614_v18, 16 }
 0x3dd   : > { %7506 = vmatmul.bf16.gmra.mxu3 %v10874_v54  ;;  %v8061_v43 = vunpack.c.l.b16 %v7761_v62  ;;  %v7778_v28 = vrot.slane %v7776_v2, 5  ;;  %v10273_v62 = vld [vmem:[%s12185_s23 + $0x48] sm:$0xe]  ;;  %v8387_v2 = vrot.slane %v13614_v18, 5 }
 0x3de   : > { %8614 = vmatmul.bf16.gmra.mxu1 %v8514_v41  ;;  %v13623_v49 = vadd.f32 %v6802_v23, %v6169_v4  ;;  %v7064_v41 = vunpack.c.l.b16 %v6960_v22  ;;  %v13634_v37 = vrot.slane %v7782_v0, 5  ;;  %v7788_v24 = vrot.slane %v7786_v5, 4  ;;  %v10510_v0 = vld [vmem:[%s12185_s23 + $0x60] sm:$0xf] }
 0x3df   : > { %v5381_v10 = vpop.f32.mrf.mxu2  ;;  %v8515_v22 = vpack.c.b16 %v8488_v29, %v8487_v15  ;;  %v7794_v29 = vrot.slane %v7792_v32, 5  ;;  %v7797_v18 = vshrl.u32 %v10510_v0, 16 }
 0x3e0   : > { %v5807_v20 = vpop.f32.mrf.mxu3  ;;  %v5428_v44 = vadd.f32 %v5381_v10, %v12936_v9  ;;  %v7063_v9 = vunpack.c.l.b16 %v6957_v16  ;;  %v8089_v10 = vpack.c.b16 %v8062_v48, %v8061_v43  ;;  %v7789_v26 = vor.u32 %v7788_v24, %v13634_v37  ;;  %v11076_v43 = vld [vmem:[%s12185_s23 + $0x50] sm:$0x1] }
 0x3e1   : > { %v6125_v54 = vpop.f32.mrf.mxu0  ;;  %v8390_v24 = vrot.slane %v10509_v38, 5  ;;  %v7799_v32 = vrot.slane %v7797_v18, 4 }
 0x3e2   : > { %v5854_v23 = vadd.f32 %v5807_v20, %v5428_v44  ;;  %v11075_v20 = vld [vmem:[%s12185_s23 + $0x4c] sm:$0xf]  ;;  %v7779_v44 = vor.u32 %v7778_v28, %v7775_v60  ;;  %v7790_v15 = vrot.slane %v7789_v26, 4  ;;  %v8389_v28 = vrot.slane %v8387_v2, 4 }
 0x3e3   : > { %v6807_v13 = vpop.f32.mrf.mxu1  ;;  %v6963_v16 = vrot.slane %v11075_v20, 5 }
 0x3e4   : > { %v6170_v27 = vadd.f32 %v6123_v47, %v5854_v23  ;;  %v7091_v47 = vpack.c.b16 %v7064_v41, %v7063_v9  ;;  %v10289_v23 = vrot.slane %v10273_v62, 9  ;;  %v13648_v41 = vld [vmem:[%s12185_s23 + $0x64] sm:$0xf]  ;;  %v7780_v48 = vrot.slane %v7779_v44, 4 }
 0x3e5   : > { %v6965_v9 = vrot.slane %v6963_v16, 4 }
 0x3e6   : > { %v13637_v56 = vadd.f32 %v6805_v30, %v6170_v27  ;;  %v6966_v27 = vrot.slane %v11076_v43, 5  ;;  %v6964_v20 = vsel %vm11554_vm5, %v10289_v23, %v6963_v16  ;;  %v7785_v38 = vsel %vm11230_vm2, %v7780_v48, %v13634_v37 }
 0x3e7   : > { %v5383_v4 = vpop.f32.mrf.mxu2  ;;  %v8391_v16 = vsel %vm11554_vm5, %v8389_v28, %v8390_v24  ;;  %v8063_v43 = vunpack.c.l.b16 %v7785_v38  ;;  %v10274_v24 = vld [vmem:[%s12185_s23 + $0x54] sm:$0xe]  ;;  %v10594_v38 = vld [vmem:[%s12185_s23 + $0x60] sm:$0xe] }
 0x3e8   : > { %v5809_v14 = vpop.f32.mrf.mxu3  ;;  %v5429_v33 = vadd.f32 %v5383_v4, %v12951_v63  ;;  %v10593_v63 = vld [vmem:[%s12185_s23 + $0x54] sm:$0xe] }
 0x3e9   : > { %v6128_v30 = vpop.f32.mrf.mxu0  ;;  %v10609_v60 = vrot.slane %v10593_v63, 9 }
 0x3ea   : > { %v5855_v46 = vadd.f32 %v5809_v14, %v5429_v33  ;;  %v7806_v33 = vshll.u32 %v13648_v41, 16 }
 0x3eb   : > { %v6810_v59 = vpop.f32.mrf.mxu1 }
 0x3ec   : > { %v6171_v5 = vadd.f32 %v6125_v54, %v5855_v46  ;;  %7195 = vmatmul.bf16.gmra.mxu2 %v7091_v47  ;;  %8193 = vmatmul.bf16.gmra.mxu0 %v8089_v10  ;;  %v7800_v54 = vshll.u32 %v10510_v0, 16  ;;  %v7810_v47 = vshrl.u32 %v13648_v41, 16  ;;  %v13669_v63 = vrot.slane %v7806_v33, 5 }
 0x3ed   : > { %7511 = vmatmul.bf16.gmra.mxu3 %v10875_v34 }
 0x3ee   : > { %8619 = vmatmul.bf16.gmra.mxu1 %v8515_v22  ;;  %v13653_v34 = vadd.f32 %v6807_v13, %v6171_v5  ;;  %v6967_v22 = vsel %vm11554_vm5, %v6965_v9, %v6966_v27  ;;  %v7795_v13 = vsel %vm11230_vm2, %v7790_v15, %v7794_v29  ;;  %v7802_v46 = vrot.slane %v7800_v54, 5  ;;  %v10512_v9 = vld [vmem:[%s12185_s23 + $0x68] sm:$0x1] }
 0x3ef   : > { %v5386_v4 = vpop.f32.mrf.mxu2  ;;  %v7812_v0 = vrot.slane %v7810_v47, 4  ;;  %v7065_v5 = vunpack.c.l.b16 %v6964_v20  ;;  %v7066_v23 = vunpack.c.l.b16 %v6967_v22  ;;  %v8064_v27 = vunpack.c.l.b16 %v7795_v13  ;;  %v10876_v47 = vld [vmem:[%s12185_s23 + $0x54] sm:$0xff] }
 0x3f0   : > { %v5812_v14 = vpop.f32.mrf.mxu3  ;;  %v5430_v10 = vadd.f32 %v5386_v4, %v12990_v45  ;;  %v8388_v45 = vsel %vm11554_vm5, %v10609_v60, %v8387_v2  ;;  %v8490_v15 = vunpack.c.l.b16 %v8391_v16  ;;  %v11077_v2 = vld [vmem:[%s12185_s23 + $0x58] sm:$0xf]  ;;  %v7803_v18 = vor.u32 %v7802_v46, %v7799_v32  ;;  %v11078_v46 = vld [vmem:[%s12185_s23 + $0x5c] sm:$0x1] }
 0x3f1   : > { %v6130_v44 = vpop.f32.mrf.mxu0  ;;  %v8489_v48 = vunpack.c.l.b16 %v8388_v45  ;;  %v6970_v29 = vrot.slane %v11077_v2, 5  ;;  %v7813_v4 = vor.u32 %v7812_v0, %v13669_v63  ;;  %v7092_v33 = vpack.c.b16 %v7066_v23, %v7065_v5 }
 0x3f2   : > { %v5856_v62 = vadd.f32 %v5812_v14, %v5430_v10  ;;  %v7816_v14 = vshll.u32 %v10512_v9, 16  ;;  %v8394_v10 = vrot.slane %v13648_v41, 5  ;;  %v8090_v20 = vpack.c.b16 %v8064_v27, %v8063_v43  ;;  %v10513_v43 = vld [vmem:[%s12185_s23 + $0x6c] sm:$0xf]  ;;  %v13684_v27 = vld [vmem:[%s12185_s23 + $0x70] sm:$0xf] }
 0x3f3   : > { %v6812_v26 = vpop.f32.mrf.mxu1  ;;  %v8516_v22 = vpack.c.b16 %v8490_v15, %v8489_v48  ;;  %v10290_v16 = vrot.slane %v10274_v24, 9  ;;  %v6972_v32 = vrot.slane %v6970_v29, 4  ;;  %v6973_v0 = vrot.slane %v11078_v46, 5 }
 0x3f4   : > { %v6172_v37 = vadd.f32 %v6128_v30, %v5856_v62  ;;  %v7818_v2 = vrot.slane %v7816_v14, 5  ;;  %v10610_v5 = vrot.slane %v10594_v38, 9  ;;  %v8396_v41 = vrot.slane %v8394_v10, 4 }
 0x3f5   : > { %v8397_v23 = vrot.slane %v10512_v9, 5  ;;  %v7821_v14 = vshrl.u32 %v10513_v43, 16 }
 0x3f6   : > { %v13675_v30 = vadd.f32 %v6810_v59, %v6172_v37  ;;  %v7804_v59 = vrot.slane %v7803_v18, 4  ;;  %v7814_v37 = vrot.slane %v7813_v4, 4  ;;  %v8395_v4 = vsel %vm11554_vm5, %v10610_v5, %v8394_v10 }
 0x3f7   : > { %v5388_v60 = vpop.f32.mrf.mxu2  ;;  %v7823_v46 = vrot.slane %v7821_v14, 4 }
 0x3f8   : > { %v5814_v28 = vpop.f32.mrf.mxu3  ;;  %v5431_v54 = vadd.f32 %v5388_v60, %v13000_v6  ;;  %v6971_v60 = vsel %vm11554_vm5, %v10290_v16, %v6970_v29  ;;  %v7819_v18 = vsel %vm11230_vm2, %v7814_v37, %v7818_v2  ;;  %v8398_v29 = vsel %vm11554_vm5, %v8396_v41, %v8397_v23  ;;  %v10515_v2 = vld [vmem:[%s12185_s23 + $0x74] sm:$0x1]  ;;  %v14137_v23 = vld [vmem:[#allocation11_spill] sm:$0xff] }
 0x3f9   : > { %v6133_v13 = vpop.f32.mrf.mxu0  ;;  %v8066_v10 = vunpack.c.l.b16 %v7819_v18  ;;  %v8491_v16 = vunpack.c.l.b16 %v8395_v4 }
 0x3fa   : > { %v5857_v62 = vadd.f32 %v5814_v28, %v5431_v54  ;;  %v6974_v28 = vsel %vm11554_vm5, %v6972_v32, %v6973_v0  ;;  %v7824_v54 = vshll.u32 %v10513_v43, 16  ;;  %v8492_v32 = vunpack.c.l.b16 %v8398_v29 }
 0x3fb   : > { %v6815_v45 = vpop.f32.mrf.mxu1  ;;  %v7840_v29 = vshll.u32 %v10515_v2, 16 }
 0x3fc   : > { %v6173_v6 = vadd.f32 %v6130_v44, %v5857_v62  ;;  %7200 = vmatmul.bf16.gmra.mxu2 %v7092_v33  ;;  %8198 = vmatmul.bf16.gmra.mxu0 %v8090_v20  ;;  %v7809_v44 = vsel %vm11230_vm2, %v7804_v59, %v13669_v63  ;;  %v7830_v33 = vshll.u32 %v13684_v27, 16  ;;  %v7834_v63 = vshrl.u32 %v13684_v27, 16 }
 0x3fd   : > { %7516 = vmatmul.bf16.gmra.mxu3 %v10876_v47  ;;  %v8065_v38 = vunpack.c.l.b16 %v7809_v44  ;;  %v7826_v0 = vrot.slane %v7824_v54, 5  ;;  %v8517_v44 = vpack.c.b16 %v8492_v32, %v8491_v16 }
 0x3fe   : > { %8624 = vmatmul.bf16.gmra.mxu1 %v8516_v22  ;;  %v13693_v24 = vadd.f32 %v6812_v26, %v6173_v6  ;;  %v7068_v22 = vunpack.c.l.b16 %v6974_v28  ;;  %v13704_v59 = vrot.slane %v7830_v33, 5  ;;  %v7836_v37 = vrot.slane %v7834_v63, 4  ;;  %v10595_v63 = vld [vmem:[%s12185_s23 + $0x6c] sm:$0xe] }
 0x3ff   : > { %v5391_v48 = vpop.f32.mrf.mxu2  ;;  %v7827_v18 = vor.u32 %v7826_v0, %v7823_v46  ;;  %v8401_v33 = vrot.slane %v13684_v27, 5  ;;  %v7842_v0 = vrot.slane %v7840_v29, 5 }
 0x400   : > { %v5817_v15 = vpop.f32.mrf.mxu3  ;;  %v5432_v9 = vadd.f32 %v5391_v48, %v13039_v3  ;;  %v7067_v3 = vunpack.c.l.b16 %v6971_v60  ;;  %v10877_v48 = vld [vmem:[%s12185_s23 + $0x60] sm:$0xff]  ;;  %v7837_v4 = vor.u32 %v7836_v37, %v13704_v59  ;;  %v10611_v37 = vrot.slane %v10595_v63, 9 }
 0x401   : > { %v6135_v47 = vpop.f32.mrf.mxu0  ;;  %v11079_v60 = vld [vmem:[%s12185_s23 + $0x64] sm:$0xf]  ;;  %v7828_v32 = vrot.slane %v7827_v18, 4 }
 0x402   : > { %v5858_v26 = vadd.f32 %v5817_v15, %v5432_v9  ;;  %v8091_v15 = vpack.c.b16 %v8066_v10, %v8065_v38  ;;  %v6977_v28 = vrot.slane %v11079_v60, 5  ;;  %v10275_v9 = vld [vmem:[%s12185_s23 + $0x60] sm:$0xe]  ;;  %v11080_v10 = vld [vmem:[%s12185_s23 + $0x68] sm:$0x1]  ;;  %v7838_v46 = vrot.slane %v7837_v4, 4 }
 0x403   : > { %v6817_v20 = vpop.f32.mrf.mxu1  ;;  %v6980_v16 = vrot.slane %v11080_v10, 5  ;;  %v10518_v10 = vld [vmem:[%s12185_s23 + $0x80] sm:$0x1] }
 0x404   : > { %v6174_v62 = vadd.f32 %v6133_v13, %v5858_v26  ;;  %v7093_v13 = vpack.c.b16 %v7068_v22, %v7067_v3  ;;  %v10516_v26 = vld [vmem:[%s12185_s23 + $0x78] sm:$0xf]  ;;  %v10291_v22 = vrot.slane %v10275_v9, 9  ;;  %v6979_v38 = vrot.slane %v6977_v28, 4 }
 0x405   : > { %v7845_v27 = vshrl.u32 %v10516_v26, 16 }
 0x406   : > { %v13707_v41 = vadd.f32 %v6815_v45, %v6174_v62  ;;  %v13718_v62 = vld [vmem:[%s12185_s23 + $0x7c] sm:$0xf]  ;;  %v6981_v9 = vsel %vm11554_vm5, %v6979_v38, %v6980_v16 }
 0x407   : > { %v5393_v6 = vpop.f32.mrf.mxu2  ;;  %v7070_v38 = vunpack.c.l.b16 %v6981_v9 }
 0x408   : > { %v5819_v5 = vpop.f32.mrf.mxu3  ;;  %v5433_v43 = vadd.f32 %v5393_v6, %v14137_v23  ;;  %v8403_v6 = vrot.slane %v8401_v33, 4 }
 0x409   : > { %v6138_v45 = vpop.f32.mrf.mxu0 }
 0x40a   : > { %v5859_v14 = vadd.f32 %v5819_v5, %v5433_v43  ;;  %v8404_v5 = vrot.slane %v10515_v2, 5  ;;  %v7833_v2 = vsel %vm11230_vm2, %v7828_v32, %v13704_v59 }
 0x40b   : > { %v6820_v54 = vpop.f32.mrf.mxu1  ;;  %v8067_v16 = vunpack.c.l.b16 %v7833_v2 }
 0x40c   : > { %v6175_v3 = vadd.f32 %v6135_v47, %v5859_v14  ;;  %7205 = vmatmul.bf16.gmra.mxu2 %v7093_v13  ;;  %8203 = vmatmul.bf16.gmra.mxu0 %v8091_v15  ;;  %v7848_v47 = vshll.u32 %v10516_v26, 16  ;;  %v7854_v13 = vshll.u32 %v13718_v62, 16  ;;  %v7847_v14 = vrot.slane %v7845_v27, 4 }
 0x40d   : > { %7521 = vmatmul.bf16.gmra.mxu3 %v10877_v48  ;;  %v7858_v48 = vshrl.u32 %v13718_v62, 16 }
 0x40e   : > { %8629 = vmatmul.bf16.gmra.mxu1 %v8517_v44  ;;  %v13723_v60 = vadd.f32 %v6817_v20, %v6175_v3  ;;  %v6978_v44 = vsel %vm11554_vm5, %v10291_v22, %v6977_v28  ;;  %v7843_v20 = vsel %vm11230_vm2, %v7838_v46, %v7842_v0  ;;  %v8405_v28 = vsel %vm11554_vm5, %v8403_v6, %v8404_v5  ;;  %v10276_v5 = vld [vmem:[%s12185_s23 + $0x6c] sm:$0xe] }
 0x40f   : > { %v5396_v23 = vpop.f32.mrf.mxu2  ;;  %v7850_v63 = vrot.slane %v7848_v47, 5  ;;  %v13739_v26 = vrot.slane %v7854_v13, 5  ;;  %v7860_v3 = vrot.slane %v7858_v48, 4  ;;  %v7069_v22 = vunpack.c.l.b16 %v6978_v44 }
 0x410   : > { %v5822_v43 = vpop.f32.mrf.mxu3  ;;  %v5434_v15 = vadd.f32 %v5396_v23, %v13098_v52  ;;  %v8402_v52 = vsel %vm11554_vm5, %v10611_v37, %v8401_v33  ;;  %v8068_v32 = vunpack.c.l.b16 %v7843_v20  ;;  %v8494_v0 = vunpack.c.l.b16 %v8405_v28  ;;  %v11081_v33 = vld [vmem:[%s12185_s23 + $0x70] sm:$0xf] }
 0x411   : > { %v6140_v4 = vpop.f32.mrf.mxu0  ;;  %v8493_v46 = vunpack.c.l.b16 %v8402_v52  ;;  %v6984_v37 = vrot.slane %v11081_v33, 5  ;;  %v7851_v27 = vor.u32 %v7850_v63, %v7847_v14  ;;  %v7864_v47 = vshll.u32 %v10518_v10, 16 }
 0x412   : > { %v5860_v18 = vadd.f32 %v5822_v43, %v5434_v15  ;;  %v7861_v43 = vor.u32 %v7860_v3, %v13739_v26  ;;  %v7094_v48 = vpack.c.b16 %v7070_v38, %v7069_v22  ;;  %v10878_v15 = vld [vmem:[%s12185_s23 + $0x6c] sm:$0xff]  ;;  %v8408_v44 = vrot.slane %v13718_v62, 5  ;;  %v11082_v3 = vld [vmem:[%s12185_s23 + $0x74] sm:$0x1] }
 0x413   : > { %v6822_v29 = vpop.f32.mrf.mxu1  ;;  %v8092_v9 = vpack.c.b16 %v8068_v32, %v8067_v16  ;;  %v8518_v2 = vpack.c.b16 %v8494_v0, %v8493_v46  ;;  %v10292_v14 = vrot.slane %v10276_v5, 9  ;;  %v6986_v63 = vrot.slane %v6984_v37, 4  ;;  %v10519_v16 = vld [vmem:[%s12185_s23 + $0x84] sm:$0xf]  ;;  %v13754_v32 = vld [vmem:[%s12185_s23 + $0x88] sm:$0xf] }
 0x414   : > { %v6176_v59 = vadd.f32 %v6138_v45, %v5860_v18  ;;  %v10596_v18 = vld [vmem:[%s12185_s23 + $0x78] sm:$0xe]  ;;  %v6987_v33 = vrot.slane %v11082_v3, 5  ;;  %v8410_v62 = vrot.slane %v8408_v44, 4  ;;  %v8411_v38 = vrot.slane %v10518_v10, 5 }
 0x415   : > { %v10612_v22 = vrot.slane %v10596_v18, 9 }
 0x416   : > { %v13745_v45 = vadd.f32 %v6820_v54, %v6176_v59  ;;  %v7852_v54 = vrot.slane %v7851_v27, 4  ;;  %v7862_v59 = vrot.slane %v7861_v43, 4 }
 0x417   : > { %v5398_v23 = vpop.f32.mrf.mxu2  ;;  %v8409_v43 = vsel %vm11554_vm5, %v10612_v22, %v8408_v44 }
 0x418   : > { %v5824_v6 = vpop.f32.mrf.mxu3  ;;  %14138 = vst [vmem:[#allocation6_spill] sm:$0xff] %v13745_v45  ;;  %v5435_v13 = vadd.f32 %v5398_v23, %v13106_v50  ;;  %v7866_v45 = vrot.slane %v7864_v47, 5  ;;  %v6985_v23 = vsel %vm11554_vm5, %v10292_v14, %v6984_v37  ;;  %v8412_v37 = vsel %vm11554_vm5, %v8410_v62, %v8411_v38 }
 0x419   : > { %v6143_v52 = vpop.f32.mrf.mxu0  ;;  %v7869_v47 = vshrl.u32 %v10519_v16, 16  ;;  %v8496_v14 = vunpack.c.l.b16 %v8412_v37 }
 0x41a   : > { %v5861_v20 = vadd.f32 %v5824_v6, %v5435_v13  ;;  %v6988_v6 = vsel %vm11554_vm5, %v6986_v63, %v6987_v33  ;;  %v7867_v27 = vsel %vm11230_vm2, %v7862_v59, %v7866_v45  ;;  %v7872_v13 = vshll.u32 %v10519_v16, 16  ;;  %v10521_v59 = vld [vmem:[%s12185_s23 + $0x8c] sm:$0x1]  ;;  %v10879_v16 = vld [vmem:[%s12185_s23 + $0x78] sm:$0xff] }
 0x41b   : > { %v6825_v28 = vpop.f32.mrf.mxu1  ;;  %v8070_v44 = vunpack.c.l.b16 %v7867_v27  ;;  %v7871_v63 = vrot.slane %v7869_v47, 4 }
 0x41c   : > { %v6177_v50 = vadd.f32 %v6140_v4, %v5861_v20  ;;  %7210 = vmatmul.bf16.gmra.mxu2 %v7094_v48  ;;  %8208 = vmatmul.bf16.gmra.mxu0 %v8092_v9  ;;  %v7857_v4 = vsel %vm11230_vm2, %v7852_v54, %v13739_v26  ;;  %v7878_v48 = vshll.u32 %v13754_v32, 16  ;;  %v7882_v26 = vshrl.u32 %v13754_v32, 16 }
 0x41d   : > { %7526 = vmatmul.bf16.gmra.mxu3 %v10878_v15  ;;  %v8069_v45 = vunpack.c.l.b16 %v7857_v4  ;;  %v8495_v20 = vunpack.c.l.b16 %v8409_v43  ;;  %v7874_v3 = vrot.slane %v7872_v13, 5  ;;  %v10277_v4 = vld [vmem:[%s12185_s23 + $0x78] sm:$0xe]  ;;  %v7888_v43 = vshll.u32 %v10521_v59, 16  ;;  %v10597_v13 = vld [vmem:[%s12185_s23 + $0x84] sm:$0xe] }
 0x41e   : > { %8634 = vmatmul.bf16.gmra.mxu1 %v8518_v2  ;;  %v13763_v5 = vadd.f32 %v6822_v29, %v6177_v50  ;;  %v7072_v2 = vunpack.c.l.b16 %v6988_v6  ;;  %v13774_v33 = vrot.slane %v7878_v48, 5  ;;  %v7884_v54 = vrot.slane %v7882_v26, 4  ;;  %v10522_v48 = vld [vmem:[%s12185_s23 + $0x90] sm:$0xf] }
 0x41f   : > { %v5401_v46 = vpop.f32.mrf.mxu2  ;;  %v8519_v6 = vpack.c.b16 %v8496_v14, %v8495_v20  ;;  %v7890_v14 = vrot.slane %v7888_v43, 5 }
 0x420   : > { %v5827_v0 = vpop.f32.mrf.mxu3  ;;  %v5436_v10 = vadd.f32 %v5401_v46, %v13143_v25  ;;  %v7071_v25 = vunpack.c.l.b16 %v6985_v23  ;;  %v8093_v46 = vpack.c.b16 %v8070_v44, %v8069_v45  ;;  %v7885_v27 = vor.u32 %v7884_v54, %v13774_v33  ;;  %v11084_v45 = vld [vmem:[%s12185_s23 + $0x80] sm:$0x1] }
 0x421   : > { %v6145_v15 = vpop.f32.mrf.mxu0  ;;  %v8418_v54 = vrot.slane %v10521_v59, 5 }
 0x422   : > { %v5862_v29 = vadd.f32 %v5827_v0, %v5436_v10  ;;  %v11083_v0 = vld [vmem:[%s12185_s23 + $0x7c] sm:$0xf]  ;;  %v7875_v10 = vor.u32 %v7874_v3, %v7871_v63  ;;  %v7886_v20 = vrot.slane %v7885_v27, 4  ;;  %v10613_v63 = vrot.slane %v10597_v13, 9 }
 0x423   : > { %v6827_v9 = vpop.f32.mrf.mxu1  ;;  %v6991_v23 = vrot.slane %v11083_v0, 5 }
 0x424   : > { %v6178_v18 = vadd.f32 %v6143_v52, %v5862_v29  ;;  %v7095_v52 = vpack.c.b16 %v7072_v2, %v7071_v25  ;;  %v10293_v29 = vrot.slane %v10277_v4, 9  ;;  %v13790_v2 = vld [vmem:[%s12185_s23 + $0x94] sm:$0xf]  ;;  %v7876_v44 = vrot.slane %v7875_v10, 4 }
 0x425   : > { %v6993_v25 = vrot.slane %v6991_v23, 4 }
 0x426   : > { %v13777_v62 = vadd.f32 %v6825_v28, %v6178_v18  ;;  %v6994_v18 = vrot.slane %v11084_v45, 5  ;;  %v6992_v0 = vsel %vm11554_vm5, %v10293_v29, %v6991_v23  ;;  %v7881_v59 = vsel %vm11230_vm2, %v7876_v44, %v13774_v33  ;;  %v10524_v29 = vld [vmem:[%s12185_s23 + $0x98] sm:$0x1] }
 0x427   : > { %v5403_v50 = vpop.f32.mrf.mxu2  ;;  %v7073_v33 = vunpack.c.l.b16 %v6992_v0 }
 0x428   : > { %v5829_v22 = vpop.f32.mrf.mxu3  ;;  %v5437_v38 = vadd.f32 %v5403_v50, %v13164_v31  ;;  %v8415_v31 = vrot.slane %v13754_v32, 5  ;;  %v7893_v32 = vshrl.u32 %v10522_v48, 16 }
 0x429   : > { %v8174_v28 = vpop.f32.mrf.mxu0 }
 0x42a   : > { %v5863_v37 = vadd.f32 %v5829_v22, %v5437_v38  ;;  %v8417_v3 = vrot.slane %v8415_v31, 4  ;;  %v7902_v38 = vshll.u32 %v13790_v2, 16  ;;  %v7895_v43 = vrot.slane %v7893_v32, 4 }
 0x42b   : > { %v13784_v47 = vpop.f32.mrf.mxu1 }
 0x42c   : > { %v6179_v26 = vadd.f32 %v6145_v15, %v5863_v37  ;;  %7215 = vmatmul.bf16.gmra.mxu2 %v7095_v52  ;;  %8213 = vmatmul.bf16.gmra.mxu0 %v8093_v46  ;;  %v7896_v15 = vshll.u32 %v10522_v48, 16  ;;  %v7906_v52 = vshrl.u32 %v13790_v2, 16  ;;  %v8419_v23 = vsel %vm11554_vm5, %v8417_v3, %v8418_v54  ;;  %v10278_v54 = vld [vmem:[%s12185_s23 + $0x84] sm:$0xe] }
 0x42d   : > { %7531 = vmatmul.bf16.gmra.mxu3 %v10879_v16  ;;  %v13811_v13 = vrot.slane %v7902_v38, 5  ;;  %v8498_v44 = vunpack.c.l.b16 %v8419_v23 }
 0x42e   : > { %8639 = vmatmul.bf16.gmra.mxu1 %v8519_v6  ;;  %v13795_v16 = vadd.f32 %v6827_v9, %v6179_v26  ;;  %v6995_v6 = vsel %vm11554_vm5, %v6993_v25, %v6994_v18  ;;  %v7891_v9 = vsel %vm11230_vm2, %v7886_v20, %v7890_v14  ;;  %v7898_v37 = vrot.slane %v7896_v15, 5 }
 0x42f   : > { %v7176_v50 = vpop.f32.mrf.mxu2  ;;  %v7908_v48 = vrot.slane %v7906_v52, 4  ;;  %v7074_v26 = vunpack.c.l.b16 %v6995_v6  ;;  %v8071_v25 = vunpack.c.l.b16 %v7881_v59  ;;  %v8072_v45 = vunpack.c.l.b16 %v7891_v9  ;;  %v10880_v52 = vld [vmem:[%s12185_s23 + $0x84] sm:$0xff]  ;;  %v10598_v59 = vld [vmem:[%s12185_s23 + $0x90] sm:$0xe] }
 0x430   : > { %v7492_v22 = vpop.f32.mrf.mxu3  ;;  %v7256_v46 = vadd.f32 %v7176_v50, %v13202_v51  ;;  %v8416_v51 = vsel %vm11554_vm5, %v10613_v63, %v8415_v31  ;;  %v11085_v31 = vld [vmem:[%s12185_s23 + $0x88] sm:$0xf]  ;;  %v7899_v32 = vor.u32 %v7898_v37, %v7895_v43  ;;  %v10294_v43 = vrot.slane %v10278_v54, 9  ;;  %v11086_v37 = vld [vmem:[%s12185_s23 + $0x8c] sm:$0x1] }
 0x431   : > { %v8176_v10 = vpop.f32.mrf.mxu0  ;;  %v8497_v18 = vunpack.c.l.b16 %v8416_v51  ;;  %v6998_v14 = vrot.slane %v11085_v31, 5  ;;  %v7909_v50 = vor.u32 %v7908_v48, %v13811_v13  ;;  %v7096_v38 = vpack.c.b16 %v7074_v26, %v7073_v33  ;;  %v10525_v31 = vld [vmem:[%s12185_s23 + $0x9c] sm:$0xf] }
 0x432   : > { %v7572_v4 = vadd.f32 %v7492_v22, %v7256_v46  ;;  %v7912_v22 = vshll.u32 %v10524_v29, 16  ;;  %v8422_v46 = vrot.slane %v13790_v2, 5  ;;  %v8094_v0 = vpack.c.b16 %v8072_v45, %v8071_v25 }
 0x433   : > { %v8602_v27 = vpop.f32.mrf.mxu1  ;;  %v8520_v6 = vpack.c.b16 %v8498_v44, %v8497_v18  ;;  %v7001_v2 = vrot.slane %v11086_v37, 5  ;;  %v7900_v48 = vrot.slane %v7899_v32, 4  ;;  %v7910_v33 = vrot.slane %v7909_v50, 4 }
 0x434   : > { %v8254_v20 = vadd.f32 %v8174_v28, %v7572_v4  ;;  %v13825_v4 = vld [vmem:[%s14100_s4] ss:$0 sm:$0xff]  ;;  %v7914_v26 = vrot.slane %v7912_v22, 5  ;;  %v8424_v45 = vrot.slane %v8422_v46, 4  ;;  %v8425_v18 = vrot.slane %v10524_v29, 5 }
 0x435   : > { %v6999_v32 = vsel %vm11554_vm5, %v10294_v43, %v6998_v14  ;;  %v7905_v29 = vsel %vm11230_vm2, %v7900_v48, %v13811_v13 }
 0x436   : > { %v8680_v28 = vadd.f32 %v13784_v47, %v8254_v20  ;;  %v10614_v47 = vrot.slane %v10598_v59, 9  ;;  %v7915_v50 = vsel %vm11230_vm2, %v7910_v33, %v7914_v26 }
 0x437   : > { %v7178_v63 = vpop.f32.mrf.mxu2 }
 0x438   : > { %v7494_v3 = vpop.f32.mrf.mxu3  ;;  %v7257_v15 = vadd.f32 %v7178_v63, %v13210_v35  ;;  %v7000_v35 = vrot.slane %v6998_v14, 4  ;;  %v8716_v44 = vadd.f32 %v13825_v4, %v8680_v28  ;;  %v13833_v63 = vld [vmem:[%s12185_s23 + $0xa0] sm:$0xf]  ;;  %v8426_v14 = vsel %vm11554_vm5, %v8424_v45, %v8425_v18 }
 0x439   : > { %v8179_v51 = vpop.f32.mrf.mxu0  ;;  %v7930_v13 = vshrl.u32 %v13833_v63, 16  ;;  %v8500_v33 = vunpack.c.l.b16 %v8426_v14 }
 0x43a   : > { %v7573_v9 = vadd.f32 %v7494_v3, %v7257_v15  ;;  %v8423_v15 = vsel %vm11554_vm5, %v10614_v47, %v8422_v46 }
 0x43b   : > { %v13827_v23 = vpop.f32.mrf.mxu1  ;;  %v8499_v48 = vunpack.c.l.b16 %v8423_v15  ;;  %v7932_v45 = vrot.slane %v7930_v13, 4 }
 0x43c   : > { %v8255_v25 = vadd.f32 %v8176_v10, %v7573_v9  ;;  %7220 = vmatmul.bf16.gmra.mxu2 %v7096_v38  ;;  %8218 = vmatmul.bf16.gmra.mxu0 %v8094_v0  ;;  %v7002_v10 = vsel %vm11554_vm5, %v7000_v35, %v7001_v2  ;;  %v7917_v38 = vshrl.u32 %v10525_v31, 16  ;;  %v7926_v0 = vshll.u32 %v13833_v63, 16 }
 0x43d   : > { %7536 = vmatmul.bf16.gmra.mxu3 %v10880_v52  ;;  %v7920_v52 = vshll.u32 %v10525_v31, 16  ;;  %v7076_v46 = vunpack.c.l.b16 %v7002_v10  ;;  %v8073_v35 = vunpack.c.l.b16 %v7905_v29  ;;  %v8074_v2 = vunpack.c.l.b16 %v7915_v50  ;;  %v10279_v29 = vld [vmem:[%s12185_s23 + $0x90] sm:$0xe]  ;;  %v11087_v50 = vld [vmem:[%s12185_s23 + $0x94] sm:$0xf] }
 0x43e   : > { %8644 = vmatmul.bf16.gmra.mxu1 %v8520_v6  ;;  %v8681_v20 = vadd.f32 %v8602_v27, %v8255_v25  ;;  %v8748_v6 = vmax.f32 %v8716_v44, 0.0  ;;  %v7919_v26 = vrot.slane %v7917_v38, 4  ;;  %v13858_v47 = vrot.slane %v7926_v0, 5  ;;  %v10527_v44 = vld [vmem:[%s12185_s23 + $0xa4] sm:$0x1] }
 0x43f   : > { %v7181_v3 = vpop.f32.mrf.mxu2  ;;  %v7922_v25 = vrot.slane %v7920_v52, 5  ;;  %v8095_v10 = vpack.c.b16 %v8074_v2, %v8073_v35  ;;  %v13875_v2 = vld [vmem:[%s12185_s23 + $0xac] sm:$0xf] }
 0x440   : > { %v7497_v54 = vpop.f32.mrf.mxu3  ;;  %v8717_v27 = vadd.f32 %v13825_v4, %v8681_v20  ;;  %v7258_v22 = vadd.f32 %v7181_v3, %v13245_v58  ;;  %v7075_v58 = vunpack.c.l.b16 %v6999_v32  ;;  %v10881_v32 = vld [vmem:[%s12185_s23 + $0x90] sm:$0xff]  ;;  %v7933_v14 = vor.u32 %v7932_v45, %v13858_v47 }
 0x441   : > { %v8181_v9 = vpop.f32.mrf.mxu0  ;;  %v7923_v15 = vor.u32 %v7922_v25, %v7919_v26 }
 0x442   : > { %v8749_v59 = vmax.f32 %v8717_v27, 0.0  ;;  %v7574_v28 = vadd.f32 %v7497_v54, %v7258_v22  ;;  %v7097_v54 = vpack.c.b16 %v7076_v46, %v7075_v58  ;;  %v7005_v27 = vrot.slane %v11087_v50, 5  ;;  %v11088_v46 = vld [vmem:[%s12185_s23 + $0x98] sm:$0x1] }
 0x443   : > { %v8607_v43 = vpop.f32.mrf.mxu1  ;;  %v8521_v22 = vpack.c.b16 %v8500_v33, %v8499_v48  ;;  %v7008_v35 = vrot.slane %v11088_v46, 5  ;;  %v7934_v48 = vrot.slane %v7933_v14, 4 }
 0x444   : > { %v10914_v37 = vpack.c.bf16 %v8749_v59, %v8748_v6  ;;  %v8256_v18 = vadd.f32 %v8179_v51, %v7574_v28  ;;  %v7936_v51 = vshll.u32 %v10527_v44, 16  ;;  %v8429_v6 = vrot.slane %v13833_v63, 5 }
 0x445   : > { %v10295_v59 = vrot.slane %v10279_v29, 9  ;;  %v7007_v58 = vrot.slane %v7005_v27, 4 }
 0x446   : > { %10915 = vst [vmem:[%s13856_s29] sm:$0xff] %v10914_v37   ;;  %v8682_v38 = vadd.f32 %v13827_v23, %v8256_v18  ;;  %v10528_v37 = vld [vmem:[%s12185_s23 + $0xa8] sm:$0xf]  ;;  %v7924_v23 = vrot.slane %v7923_v15, 4  ;;  %v7938_v33 = vrot.slane %v7936_v51, 5  ;;  %v8431_v63 = vrot.slane %v8429_v6, 4 }
 0x447   : > { %v7183_v20 = vpop.f32.mrf.mxu2  ;;  %v8432_v18 = vrot.slane %v10527_v44, 5  ;;  %v7006_v50 = vsel %vm11554_vm5, %v10295_v59, %v7005_v27 }
 0x448   : > { %v7499_v31 = vpop.f32.mrf.mxu3  ;;  %v7259_v3 = vadd.f32 %v7183_v20, %v13265_v36  ;;  %v10599_v36 = vld [vmem:[%s12185_s23 + $0x9c] sm:$0xe]  ;;  %v8718_v25 = vadd.f32 %v13825_v4, %v8682_v38  ;;  %v7929_v44 = vsel %vm11230_vm2, %v7924_v23, %v13858_v47  ;;  %v7077_v46 = vunpack.c.l.b16 %v7006_v50 }
 0x449   : > { %v8184_v0 = vpop.f32.mrf.mxu0  ;;  %v10615_v26 = vrot.slane %v10599_v36, 9 }
 0x44a   : > { %v7575_v52 = vadd.f32 %v7499_v31, %v7259_v3  ;;  %v7941_v31 = vshrl.u32 %v10528_v37, 16  ;;  %v7944_v3 = vshll.u32 %v10528_v37, 16  ;;  %v8750_v14 = vmax.f32 %v8718_v25, 0.0  ;;  %v11089_v25 = vld [vmem:[%s12185_s23 + $0xa0] sm:$0xf] }
 0x44b   : > { %v13868_v13 = vpop.f32.mrf.mxu1  ;;  %v8430_v15 = vsel %vm11554_vm5, %v10615_v26, %v8429_v6  ;;  %v10530_v6 = vld [vmem:[%s12185_s23 + $0xb0] sm:$0x1]  ;;  %v8075_v37 = vunpack.c.l.b16 %v7929_v44  ;;  %v10600_v44 = vld [vmem:[%s12185_s23 + $0xa8] sm:$0xe] }
 0x44c   : > { %v8257_v28 = vadd.f32 %v8181_v9, %v7575_v52  ;;  %7225 = vmatmul.bf16.gmra.mxu2 %v7097_v54  ;;  %8223 = vmatmul.bf16.gmra.mxu0 %v8095_v10  ;;  %v7950_v54 = vshll.u32 %v13875_v2, 16  ;;  %v8433_v52 = vsel %vm11554_vm5, %v8431_v63, %v8432_v18  ;;  %v7943_v36 = vrot.slane %v7941_v31, 4 }
 0x44d   : > { %7541 = vmatmul.bf16.gmra.mxu3 %v10881_v32  ;;  %v7954_v32 = vshrl.u32 %v13875_v2, 16  ;;  %v7946_v59 = vrot.slane %v7944_v3, 5  ;;  %v7960_v3 = vshll.u32 %v10530_v6, 16 }
 0x44e   : > { %8649 = vmatmul.bf16.gmra.mxu1 %v8521_v22  ;;  %v8683_v45 = vadd.f32 %v8607_v43, %v8257_v28  ;;  %v7009_v43 = vsel %vm11554_vm5, %v7007_v58, %v7008_v35  ;;  %v7939_v22 = vsel %vm11230_vm2, %v7934_v48, %v7938_v33  ;;  %v13895_v47 = vrot.slane %v7950_v54, 5 }
 0x44f   : > { %v7186_v9 = vpop.f32.mrf.mxu2  ;;  %v7956_v28 = vrot.slane %v7954_v32, 4  ;;  %v7078_v35 = vunpack.c.l.b16 %v7009_v43  ;;  %v8076_v23 = vunpack.c.l.b16 %v7939_v22  ;;  %v8501_v48 = vunpack.c.l.b16 %v8430_v15 }
 0x450   : > { %v7502_v20 = vpop.f32.mrf.mxu3  ;;  %v8719_v10 = vadd.f32 %v13825_v4, %v8683_v45  ;;  %v7260_v29 = vadd.f32 %v7186_v9, %v13288_v19  ;;  %v8502_v33 = vunpack.c.l.b16 %v8433_v52  ;;  %v7012_v45 = vrot.slane %v11089_v25, 5  ;;  %v10280_v9 = vld [vmem:[%s12185_s23 + $0x9c] sm:$0xe]  ;;  %v11090_v52 = vld [vmem:[%s12185_s23 + $0xa4] sm:$0x1] }
 0x451   : > { %v8186_v38 = vpop.f32.mrf.mxu0  ;;  %v7957_v31 = vor.u32 %v7956_v28, %v13895_v47  ;;  %v7098_v32 = vpack.c.b16 %v7078_v35, %v7077_v46  ;;  %v8096_v50 = vpack.c.b16 %v8076_v23, %v8075_v37  ;;  %v7962_v28 = vrot.slane %v7960_v3, 5  ;;  %v10531_v23 = vld [vmem:[%s12185_s23 + $0xb4] sm:$0xf] }
 0x452   : > { %v8751_v51 = vmax.f32 %v8719_v10, 0.0  ;;  %v7576_v19 = vadd.f32 %v7502_v20, %v7260_v29  ;;  %v7947_v20 = vor.u32 %v7946_v59, %v7943_v36  ;;  %v10882_v10 = vld [vmem:[%s12185_s23 + $0x9c] sm:$0xff]  ;;  %v8436_v29 = vrot.slane %v13875_v2, 5 }
 0x453   : > { %v8612_v27 = vpop.f32.mrf.mxu1  ;;  %v8522_v43 = vpack.c.b16 %v8502_v33, %v8501_v48  ;;  %v7015_v36 = vrot.slane %v11090_v52, 5  ;;  %v7958_v59 = vrot.slane %v7957_v31, 4  ;;  %v10616_v2 = vrot.slane %v10600_v44, 9  ;;  %v13913_v48 = vld [vmem:[%s12185_s23 + $0xb8] sm:$0xf] }
 0x454   : > { %v10919_v58 = vpack.c.bf16 %v8751_v51, %v8750_v14  ;;  %v8258_v26 = vadd.f32 %v8184_v0, %v7576_v19  ;;  %v10296_v51 = vrot.slane %v10280_v9, 9  ;;  %v7014_v19 = vrot.slane %v7012_v45, 4 }
 0x455   : > { %v8438_v46 = vrot.slane %v8436_v29, 4  ;;  %v8439_v35 = vrot.slane %v10530_v6, 5  ;;  %v8437_v9 = vsel %vm11554_vm5, %v10616_v2, %v8436_v29  ;;  %v7968_v31 = vshll.u32 %v10531_v23, 16 }
 0x456   : > { %10991 = vst [vmem:[%s13856_s29 + $0x8] sm:$0xff] %v10919_v58   ;;  %v8684_v0 = vadd.f32 %v13868_v13, %v8258_v26  ;;  %v7013_v25 = vsel %vm11554_vm5, %v10296_v51, %v7012_v45  ;;  %v7974_v3 = vshll.u32 %v13913_v48, 16  ;;  %v8503_v51 = vunpack.c.l.b16 %v8437_v9 }
 0x457   : > { %v7188_v63 = vpop.f32.mrf.mxu2  ;;  %v8440_v45 = vsel %vm11554_vm5, %v8438_v46, %v8439_v35  ;;  %v14139_v35 = vld [vmem:[#allocation2_spill] sm:$0xff] }
 0x458   : > { %v7504_v18 = vpop.f32.mrf.mxu3  ;;  %v7261_v54 = vadd.f32 %v7188_v63, %v13307_v7  ;;  %v7948_v7 = vrot.slane %v7947_v20, 4  ;;  %v8720_v13 = vadd.f32 %v13825_v4, %v8684_v0  ;;  %v7963_v63 = vsel %vm11230_vm2, %v7958_v59, %v7962_v28 }
 0x459   : > { %v8189_v15 = vpop.f32.mrf.mxu0  ;;  %v7965_v20 = vshrl.u32 %v10531_v23, 16  ;;  %v10883_v23 = vld [vmem:[%s12185_s23 + $0xa8] sm:$0xff] }
 0x45a   : > { %v7577_v22 = vadd.f32 %v7504_v18, %v7261_v54  ;;  %v7953_v6 = vsel %vm11230_vm2, %v7948_v7, %v13895_v47  ;;  %v7978_v54 = vshrl.u32 %v13913_v48, 16  ;;  %v8752_v47 = vmax.f32 %v8720_v13, 0.0 }
 0x45b   : > { %v13907_v14 = vpop.f32.mrf.mxu1  ;;  %v8077_v0 = vunpack.c.l.b16 %v7953_v6  ;;  %v7967_v52 = vrot.slane %v7965_v20, 4  ;;  %v13932_v7 = vrot.slane %v7974_v3, 5  ;;  %v8443_v3 = vrot.slane %v13913_v48, 5 }
 0x45c   : > { %v8259_v58 = vadd.f32 %v8186_v38, %v7577_v22  ;;  %7230 = vmatmul.bf16.gmra.mxu2 %v7098_v32  ;;  %8228 = vmatmul.bf16.gmra.mxu0 %v8096_v50  ;;  %v7016_v38 = vsel %vm11554_vm5, %v7014_v19, %v7015_v36  ;;  %v8078_v22 = vunpack.c.l.b16 %v7963_v63  ;;  %v8504_v19 = vunpack.c.l.b16 %v8440_v45 }
 0x45d   : > { %7546 = vmatmul.bf16.gmra.mxu3 %v10882_v10  ;;  %v7080_v44 = vunpack.c.l.b16 %v7016_v38  ;;  %v7970_v36 = vrot.slane %v7968_v31, 5  ;;  %v7980_v59 = vrot.slane %v7978_v54, 4  ;;  %v10601_v31 = vld [vmem:[%s12185_s23 + $0xb4] sm:$0xe]  ;;  %v8445_v48 = vrot.slane %v8443_v3, 4 }
 0x45e   : > { %8654 = vmatmul.bf16.gmra.mxu1 %v8522_v43  ;;  %v8685_v37 = vadd.f32 %v8612_v27, %v8259_v58  ;;  %v10533_v58 = vld [vmem:[%s12185_s23 + $0xbc] sm:$0x1]  ;;  %v8523_v6 = vpack.c.b16 %v8504_v19, %v8503_v51  ;;  %v10617_v51 = vrot.slane %v10601_v31, 9 }
 0x45f   : > { %v7191_v33 = vpop.f32.mrf.mxu2  ;;  %v7971_v63 = vor.u32 %v7970_v36, %v7967_v52  ;;  %v8446_v36 = vrot.slane %v10533_v58, 5 }
 0x460   : > { %v7507_v26 = vpop.f32.mrf.mxu3  ;;  %v8721_v27 = vadd.f32 %v13825_v4, %v8685_v37  ;;  %v7262_v18 = vadd.f32 %v7191_v33, %v13335_v39  ;;  %v7079_v39 = vunpack.c.l.b16 %v7013_v25  ;;  %v8097_v33 = vpack.c.b16 %v8078_v22, %v8077_v0  ;;  %v11091_v25 = vld [vmem:[%s12185_s23 + $0xac] sm:$0xf]  ;;  %v13949_v0 = vld [vmem:[%s12185_s23 + $0xc4] sm:$0xf] }
 0x461   : > { %v8191_v50 = vpop.f32.mrf.mxu0  ;;  %v7019_v38 = vrot.slane %v11091_v25, 5  ;;  %v8444_v25 = vsel %vm11554_vm5, %v10617_v51, %v8443_v3  ;;  %v10536_v3 = vld [vmem:[%s12185_s23 + $0xc8] sm:$0x1]  ;;  %v11093_v51 = vld [vmem:[%s12185_s23 + $0xb8] sm:$0xf] }
 0x462   : > { %v8753_v32 = vmax.f32 %v8721_v27, 0.0  ;;  %v7578_v10 = vadd.f32 %v7507_v26, %v7262_v18  ;;  %v7099_v37 = vpack.c.b16 %v7080_v44, %v7079_v39  ;;  %v10281_v26 = vld [vmem:[%s12185_s23 + $0xa8] sm:$0xe]  ;;  %v7981_v27 = vor.u32 %v7980_v59, %v13932_v7  ;;  %v10534_v44 = vld [vmem:[%s12185_s23 + $0xc0] sm:$0xf] }
 0x463   : > { %v8617_v43 = vpop.f32.mrf.mxu1  ;;  %v10297_v54 = vrot.slane %v10281_v26, 9 }
 0x464   : > { %v10924_v29 = vpack.c.bf16 %v8753_v32, %v8752_v47  ;;  %v8260_v28 = vadd.f32 %v8189_v15, %v7578_v10  ;;  %v7984_v15 = vshll.u32 %v10533_v58, 16  ;;  %v7021_v32 = vrot.slane %v7019_v38, 4  ;;  %v11092_v10 = vld [vmem:[%s12185_s23 + $0xb0] sm:$0x1] }
 0x465   : > { %v7022_v39 = vrot.slane %v11092_v10, 5 }
 0x466   : > { %10992 = vst [vmem:[%s13856_s29 + $0x10] sm:$0xff] %v10924_v29   ;;  %v8686_v18 = vadd.f32 %v13907_v14, %v8260_v28  ;;  %v7972_v14 = vrot.slane %v7971_v63, 4  ;;  %v7982_v29 = vrot.slane %v7981_v27, 4  ;;  %v7986_v22 = vrot.slane %v7984_v15, 5 }
 0x467   : > { %v7193_v2 = vpop.f32.mrf.mxu2  ;;  %v7989_v28 = vshrl.u32 %v10534_v44, 16 }
 0x468   : > { %v7509_v46 = vpop.f32.mrf.mxu3  ;;  %v7263_v13 = vadd.f32 %v7193_v2, %v14139_v35  ;;  %v8722_v19 = vadd.f32 %v13825_v4, %v8686_v18  ;;  %v7992_v2 = vshll.u32 %v10534_v44, 16  ;;  %v8002_v35 = vshrl.u32 %v13949_v0, 16 }
 0x469   : > { %v8194_v45 = vpop.f32.mrf.mxu0  ;;  %v7977_v58 = vsel %vm11230_vm2, %v7972_v14, %v13932_v7  ;;  %v7987_v26 = vsel %vm11230_vm2, %v7982_v29, %v7986_v22  ;;  %v8447_v18 = vsel %vm11554_vm5, %v8445_v48, %v8446_v36  ;;  %v8505_v14 = vunpack.c.l.b16 %v8444_v25  ;;  %v10282_v36 = vld [vmem:[%s12185_s23 + $0xb4] sm:$0xe] }
 0x46a   : > { %v7579_v9 = vadd.f32 %v7509_v46, %v7263_v13  ;;  %v7998_v46 = vshll.u32 %v13949_v0, 16  ;;  %v7994_v31 = vrot.slane %v7992_v2, 5  ;;  %v8080_v44 = vunpack.c.l.b16 %v7987_v26 }
 0x46b   : > { %v13942_v20 = vpop.f32.mrf.mxu1  ;;  %v8506_v29 = vunpack.c.l.b16 %v8447_v18  ;;  %v10298_v25 = vrot.slane %v10282_v36, 9 }
 0x46c   : > { %v8261_v47 = vadd.f32 %v8191_v50, %v7579_v9  ;;  %7235 = vmatmul.bf16.gmra.mxu2 %v7099_v37  ;;  %8233 = vmatmul.bf16.gmra.mxu0 %v8097_v33  ;;  %v14140_v37 = vld [vmem:[#allocation3_spill] sm:$0xff]  ;;  %v7020_v33 = vsel %vm11554_vm5, %v10297_v54, %v7019_v38  ;;  %v7991_v9 = vrot.slane %v7989_v28, 4  ;;  %v13969_v7 = vrot.slane %v7998_v46, 5 }
 0x46d   : > { %7551 = vmatmul.bf16.gmra.mxu3 %v10883_v23  ;;  %v8004_v54 = vrot.slane %v8002_v35, 4  ;;  %v8008_v28 = vshll.u32 %v10536_v3, 16  ;;  %v10884_v35 = vld [vmem:[%s12185_s23 + $0xb4] sm:$0xff] }
 0x46e   : > { %8659 = vmatmul.bf16.gmra.mxu1 %v8523_v6  ;;  %v8687_v52 = vadd.f32 %v8617_v43, %v8261_v47  ;;  %v7023_v43 = vsel %vm11554_vm5, %v7021_v32, %v7022_v39  ;;  %v8754_v6 = vmax.f32 %v8722_v19, 0.0  ;;  %v7081_v32 = vunpack.c.l.b16 %v7020_v33  ;;  %v10602_v33 = vld [vmem:[%s12185_s23 + $0xc0] sm:$0xe] }
 0x46f   : > { %v7196_v50 = vpop.f32.mrf.mxu2  ;;  %v7082_v10 = vunpack.c.l.b16 %v7023_v43  ;;  %v8079_v39 = vunpack.c.l.b16 %v7977_v58  ;;  %v7026_v19 = vrot.slane %v11093_v51, 5 }
 0x470   : > { %v7512_v59 = vpop.f32.mrf.mxu3  ;;  %v8723_v13 = vadd.f32 %v13825_v4, %v8687_v52  ;;  %v7264_v23 = vadd.f32 %v7196_v50, %v14140_v37  ;;  %v7995_v50 = vor.u32 %v7994_v31, %v7991_v9  ;;  %v8010_v9 = vrot.slane %v8008_v28, 5 }
 0x471   : > { %v8196_v15 = vpop.f32.mrf.mxu0  ;;  %v7100_v46 = vpack.c.b16 %v7082_v10, %v7081_v32  ;;  %v8098_v37 = vpack.c.b16 %v8080_v44, %v8079_v39  ;;  %v10537_v10 = vld [vmem:[%s12185_s23 + $0xcc] sm:$0xf]  ;;  %v13987_v39 = vld [vmem:[%s12185_s23 + $0xd0] sm:$0xf] }
 0x472   : > { %v8755_v63 = vmax.f32 %v8723_v13, 0.0  ;;  %v7580_v27 = vadd.f32 %v7512_v59, %v7264_v23  ;;  %v8005_v59 = vor.u32 %v8004_v54, %v13969_v7  ;;  %v8450_v13 = vrot.slane %v13949_v0, 5 }
 0x473   : > { %v8622_v38 = vpop.f32.mrf.mxu1  ;;  %v8524_v23 = vpack.c.b16 %v8506_v29, %v8505_v14  ;;  %v10618_v0 = vrot.slane %v10602_v33, 9  ;;  %v7027_v29 = vsel %vm11554_vm5, %v10298_v25, %v7026_v19  ;;  %v8016_v36 = vshll.u32 %v10537_v10, 16 }
 0x474   : > { %v10929_v47 = vpack.c.bf16 %v8755_v63, %v8754_v6  ;;  %v8262_v22 = vadd.f32 %v8194_v45, %v7580_v27  ;;  %v7028_v6 = vrot.slane %v7026_v19, 4  ;;  %v11094_v63 = vld [vmem:[%s12185_s23 + $0xbc] sm:$0x1]  ;;  %v8006_v18 = vrot.slane %v8005_v59, 4 }
 0x475   : > { %v7029_v27 = vrot.slane %v11094_v63, 5  ;;  %v8452_v54 = vrot.slane %v8450_v13, 4  ;;  %v8026_v59 = vshrl.u32 %v13987_v39, 16 }
 0x476   : > { %10993 = vst [vmem:[%s13856_s29 + $0x18] sm:$0xff] %v10929_v47   ;;  %v8688_v45 = vadd.f32 %v13942_v20, %v8262_v22  ;;  %v8453_v47 = vrot.slane %v10536_v3, 5  ;;  %v8011_v22 = vsel %vm11230_vm2, %v8006_v18, %v8010_v9  ;;  %v10539_v18 = vld [vmem:[%s12185_s23 + $0xd4] sm:$0x1] }
 0x477   : > { %v7198_v52 = vpop.f32.mrf.mxu2  ;;  %v8082_v33 = vunpack.c.l.b16 %v8011_v22 }
 0x478   : > { %v7514_v48 = vpop.f32.mrf.mxu3  ;;  %v7265_v2 = vadd.f32 %v7198_v52, %v13419_v21  ;;  %v7996_v21 = vrot.slane %v7995_v50, 4  ;;  %v8724_v20 = vadd.f32 %v13825_v4, %v8688_v45  ;;  %v8451_v52 = vsel %vm11554_vm5, %v10618_v0, %v8450_v13 }
 0x479   : > { %v8199_v58 = vpop.f32.mrf.mxu0  ;;  %v8454_v19 = vsel %vm11554_vm5, %v8452_v54, %v8453_v47  ;;  %v8022_v50 = vshll.u32 %v13987_v39, 16  ;;  %v8507_v45 = vunpack.c.l.b16 %v8451_v52  ;;  %v10885_v47 = vld [vmem:[%s12185_s23 + $0xc0] sm:$0xff]  ;;  %v10603_v52 = vld [vmem:[%s12185_s23 + $0xcc] sm:$0xe] }
 0x47a   : > { %v7581_v43 = vadd.f32 %v7514_v48, %v7265_v2  ;;  %v8001_v3 = vsel %vm11230_vm2, %v7996_v21, %v13969_v7  ;;  %v8013_v48 = vshrl.u32 %v10537_v10, 16  ;;  %v8756_v7 = vmax.f32 %v8724_v20, 0.0 }
 0x47b   : > { %v13981_v26 = vpop.f32.mrf.mxu1  ;;  %v8024_v63 = vrot.slane %v8022_v50, 5  ;;  %v11096_v50 = vld [vmem:[%s12185_s23 + $0xc8] sm:$0x1] }
 0x47c   : > { %v8263_v31 = vadd.f32 %v8196_v15, %v7581_v43  ;;  %7240 = vmatmul.bf16.gmra.mxu2 %v7100_v46  ;;  %8238 = vmatmul.bf16.gmra.mxu0 %v8098_v37  ;;  %v7030_v15 = vsel %vm11554_vm5, %v7028_v6, %v7029_v27  ;;  %v8508_v43 = vunpack.c.l.b16 %v8454_v19  ;;  %v8015_v25 = vrot.slane %v8013_v48, 4 }
 0x47d   : > { %7556 = vmatmul.bf16.gmra.mxu3 %v10884_v35  ;;  %v7084_v37 = vunpack.c.l.b16 %v7030_v15  ;;  %v8018_v6 = vrot.slane %v8016_v36, 5  ;;  %v8028_v27 = vrot.slane %v8026_v59, 4  ;;  %v8457_v19 = vrot.slane %v13987_v39, 5 }
 0x47e   : > { %8664 = vmatmul.bf16.gmra.mxu1 %v8524_v23  ;;  %v8689_v32 = vadd.f32 %v8622_v38, %v8263_v31  ;;  %v8081_v23 = vunpack.c.l.b16 %v8001_v3  ;;  %v8032_v3 = vshll.u32 %v10539_v18, 16  ;;  %v7036_v59 = vrot.slane %v11096_v50, 5 }
 0x47f   : > { %v7201_v44 = vpop.f32.mrf.mxu2  ;;  %v8029_v15 = vor.u32 %v8028_v27, %v8024_v63 }
 0x480   : > { %v7517_v14 = vpop.f32.mrf.mxu3  ;;  %v8725_v38 = vadd.f32 %v13825_v4, %v8689_v32  ;;  %v7266_v51 = vadd.f32 %v7201_v44, %v13434_v8  ;;  %v7083_v8 = vunpack.c.l.b16 %v7027_v29  ;;  %v8099_v20 = vpack.c.b16 %v8082_v33, %v8081_v23  ;;  %v11095_v32 = vld [vmem:[%s12185_s23 + $0xc4] sm:$0xf] }
 0x481   : > { %v8201_v46 = vpop.f32.mrf.mxu0  ;;  %v7033_v10 = vrot.slane %v11095_v32, 5  ;;  %v8525_v44 = vpack.c.b16 %v8508_v43, %v8507_v45  ;;  %v8019_v29 = vor.u32 %v8018_v6, %v8015_v25  ;;  %v8459_v23 = vrot.slane %v8457_v19, 4 }
 0x482   : > { %v8757_v28 = vmax.f32 %v8725_v38, 0.0  ;;  %v7582_v2 = vadd.f32 %v7517_v14, %v7266_v51  ;;  %v7101_v54 = vpack.c.b16 %v7084_v37, %v7083_v8  ;;  %v10283_v14 = vld [vmem:[%s12185_s23 + $0xc0] sm:$0xe]  ;;  %v10619_v8 = vrot.slane %v10603_v52, 9 }
 0x483   : > { %v8627_v35 = vpop.f32.mrf.mxu1  ;;  %v10299_v48 = vrot.slane %v10283_v14, 9  ;;  %v7035_v36 = vrot.slane %v7033_v10, 4 }
 0x484   : > { %v10934_v13 = vpack.c.bf16 %v8757_v28, %v8756_v7  ;;  %v8264_v21 = vadd.f32 %v8199_v58, %v7582_v2  ;;  %v8020_v7 = vrot.slane %v8019_v29, 4  ;;  %v8030_v28 = vrot.slane %v8029_v15, 4 }
 0x485   : > { %v8034_v2 = vrot.slane %v8032_v3, 5  ;;  %v7034_v43 = vsel %vm11554_vm5, %v10299_v48, %v7033_v10  ;;  %v7037_v25 = vsel %vm11554_vm5, %v7035_v36, %v7036_v59  ;;  %v8458_v27 = vsel %vm11554_vm5, %v10619_v8, %v8457_v19 }
 0x486   : > { %10994 = vst [vmem:[%s13856_s29 + $0x20] sm:$0xff] %v10934_v13   ;;  %v8690_v22 = vadd.f32 %v13981_v26, %v8264_v21  ;;  %v8460_v13 = vrot.slane %v10539_v18, 5  ;;  %v8025_v6 = vsel %vm11230_vm2, %v8020_v7, %v8024_v63  ;;  %v8509_v42 = vunpack.c.l.b16 %v8458_v27 }
 0x487   : > { %v7203_v9 = vpop.f32.mrf.mxu2  ;;  %v8083_v63 = vunpack.c.l.b16 %v8025_v6 }
 0x488   : > { %v7519_v31 = vpop.f32.mrf.mxu3  ;;  %v7267_v0 = vadd.f32 %v7203_v9, %v13449_v61  ;;  %v8726_v26 = vadd.f32 %v13825_v4, %v8690_v22  ;;  %v10886_v22 = vld [vmem:[%s12185_s23 + $0xcc] sm:$0xff] }
 0x489   : > { %v8204_v38 = vpop.f32.mrf.mxu0 }
 0x48a   : > { %v7583_v58 = vadd.f32 %v7519_v31, %v7267_v0  ;;  %v8758_v21 = vmax.f32 %v8726_v26, 0.0  ;;  %v8461_v0 = vsel %vm11554_vm5, %v8459_v23, %v8460_v13 }
 0x48b   : > { %v8630_v51 = vpop.f32.mrf.mxu1  ;;  %v8510_v10 = vunpack.c.l.b16 %v8461_v0 }
 0x48c   : > { %v8265_v61 = vadd.f32 %v8201_v46, %v7583_v58  ;;  %7245 = vmatmul.bf16.gmra.mxu2 %v7101_v54  ;;  %8243 = vmatmul.bf16.gmra.mxu0 %v8099_v20  ;;  %v7086_v20 = vunpack.c.l.b16 %v7037_v25 }
 0x48d   : > { %7561 = vmatmul.bf16.gmra.mxu3 %v10885_v47  ;;  %v7085_v47 = vunpack.c.l.b16 %v7034_v43  ;;  %v8526_v52 = vpack.c.b16 %v8510_v10, %v8509_v42 }
 0x48e   : > { %8669 = vmatmul.bf16.gmra.mxu1 %v8525_v44  ;;  %v8691_v37 = vadd.f32 %v8627_v35, %v8265_v61  ;;  %v8035_v35 = vsel %vm11230_vm2, %v8030_v28, %v8034_v2 }
 0x48f   : > { %v7206_v33 = vpop.f32.mrf.mxu2  ;;  %v8084_v32 = vunpack.c.l.b16 %v8035_v35  ;;  %v7102_v3 = vpack.c.b16 %v7086_v20, %v7085_v47 }
 0x490   : > { %v7522_v39 = vpop.f32.mrf.mxu3  ;;  %v8727_v46 = vadd.f32 %v13825_v4, %v8691_v37  ;;  %v7268_v45 = vadd.f32 %v7206_v33, %v13466_v12 }
 0x491   : > { %v8206_v12 = vpop.f32.mrf.mxu0  ;;  %v8100_v58 = vpack.c.b16 %v8084_v32, %v8083_v63 }
 0x492   : > { %v8759_v18 = vmax.f32 %v8727_v46, 0.0  ;;  %v7584_v9 = vadd.f32 %v7522_v39, %v7268_v45  ;;  %v14141_v46 = vld [vmem:[#allocation4_spill] sm:$0xff] }
 0x493   : > { %v8632_v31 = vpop.f32.mrf.mxu1 }
 0x494   : > { %v10939_v54 = vpack.c.bf16 %v8759_v18, %v8758_v21  ;;  %v8266_v44 = vadd.f32 %v8204_v38, %v7584_v9 }
 0x496   : > { %10995 = vst [vmem:[%s13856_s29 + $0x28] sm:$0xff] %v10939_v54   ;;  %v8692_v19 = vadd.f32 %v8630_v51, %v8266_v44 }
 0x497   : > { %v7208_v14 = vpop.f32.mrf.mxu2 }
 0x498   : > { %v7524_v29 = vpop.f32.mrf.mxu3  ;;  %v7269_v15 = vadd.f32 %v7208_v14, %v13483_v11  ;;  %v8728_v38 = vadd.f32 %v13825_v4, %v8692_v19 }
 0x499   : > { %v8209_v61 = vpop.f32.mrf.mxu0 }
 0x49a   : > { %v7585_v1 = vadd.f32 %v7524_v29, %v7269_v15  ;;  %v8760_v2 = vmax.f32 %v8728_v38, 0.0 }
 0x49b   : > { %v8635_v48 = vpop.f32.mrf.mxu1 }
 0x49c   : > { %v8267_v36 = vadd.f32 %v8206_v12, %v7585_v1  ;;  %7250 = vmatmul.bf16.gmra.mxu2 %v7102_v3  ;;  %8248 = vmatmul.bf16.gmra.mxu0 %v8100_v58 }
 0x49d   : > { %7566 = vmatmul.bf16.gmra.mxu3 %v10886_v22 }
 0x49e   : > { %8674 = vmatmul.bf16.gmra.mxu1 %v8526_v52  ;;  %v8693_v50 = vadd.f32 %v8632_v31, %v8267_v36  ;;  %v14142_v31 = vld [vmem:[#allocation5_spill] sm:$0xff] }
 0x49f   : > { %v7211_v59 = vpop.f32.mrf.mxu2 }
 0x4a0   : > { %v7527_v7 = vpop.f32.mrf.mxu3  ;;  %v8729_v11 = vadd.f32 %v13825_v4, %v8693_v50  ;;  %v7270_v28 = vadd.f32 %v7211_v59, %v13497_v53 }
 0x4a1   : > { %v8211_v26 = vpop.f32.mrf.mxu0 }
 0x4a2   : > { %v8761_v51 = vmax.f32 %v8729_v11, 0.0  ;;  %v7586_v8 = vadd.f32 %v7527_v7, %v7270_v28 }
 0x4a3   : > { %v8637_v37 = vpop.f32.mrf.mxu1 }
 0x4a4   : > { %v10944_v23 = vpack.c.bf16 %v8761_v51, %v8760_v2  ;;  %v8268_v13 = vadd.f32 %v8209_v61, %v7586_v8 }
 0x4a6   : > { %10996 = vst [vmem:[%s13856_s29 + $0x30] sm:$0xff] %v10944_v23   ;;  %v8694_v43 = vadd.f32 %v8635_v48, %v8268_v13 }
 0x4a7   : > { %v7213_v33 = vpop.f32.mrf.mxu2 }
 0x4a8   : > { %v7529_v39 = vpop.f32.mrf.mxu3  ;;  %v7271_v45 = vadd.f32 %v7213_v33, %v14141_v46  ;;  %v8730_v53 = vadd.f32 %v13825_v4, %v8694_v43 }
 0x4a9   : > { %v8214_v6 = vpop.f32.mrf.mxu0 }
 0x4aa   : > { %v7587_v25 = vadd.f32 %v7529_v39, %v7271_v45  ;;  %v8762_v54 = vmax.f32 %v8730_v53, 0.0 }
 0x4ab   : > { %v8640_v35 = vpop.f32.mrf.mxu1 }
 0x4ac   : > { %v8269_v27 = vadd.f32 %v8211_v26, %v7587_v25 }
 0x4ae   : > { %v8695_v21 = vadd.f32 %v8637_v37, %v8269_v27 }
 0x4af   : > { %v7216_v18 = vpop.f32.mrf.mxu2 }
 0x4b0   : > { %v7532_v9 = vpop.f32.mrf.mxu3  ;;  %v8731_v12 = vadd.f32 %v13825_v4, %v8695_v21  ;;  %v7272_v0 = vadd.f32 %v7216_v18, %v14142_v31 }
 0x4b1   : > { %v8216_v63 = vpop.f32.mrf.mxu0 }
 0x4b2   : > { %v8763_v47 = vmax.f32 %v8731_v12, 0.0  ;;  %v7588_v20 = vadd.f32 %v7532_v9, %v7272_v0 }
 0x4b3   : > { %v8642_v32 = vpop.f32.mrf.mxu1 }
 0x4b4   : > { %v10949_v42 = vpack.c.bf16 %v8763_v47, %v8762_v54  ;;  %v8270_v10 = vadd.f32 %v8214_v6, %v7588_v20 }
 0x4b6   : > { %10997 = vst [vmem:[%s13856_s29 + $0x38] sm:$0xff] %v10949_v42   ;;  %v8696_v15 = vadd.f32 %v8640_v35, %v8270_v10 }
 0x4b7   : > { %v7218_v44 = vpop.f32.mrf.mxu2 }
 0x4b8   : > { %v7534_v14 = vpop.f32.mrf.mxu3  ;;  %v7273_v29 = vadd.f32 %v7218_v44, %v13553_v55  ;;  %v8732_v19 = vadd.f32 %v13825_v4, %v8696_v15 }
 0x4b9   : > { %v8219_v22 = vpop.f32.mrf.mxu0 }
 0x4ba   : > { %v7589_v3 = vadd.f32 %v7534_v14, %v7273_v29  ;;  %v8764_v50 = vmax.f32 %v8732_v19, 0.0 }
 0x4bb   : > { %v8645_v58 = vpop.f32.mrf.mxu1 }
 0x4bc   : > { %v8271_v52 = vadd.f32 %v8216_v63, %v7589_v3 }
 0x4be   : > { %v8697_v1 = vadd.f32 %v8642_v32, %v8271_v52 }
 0x4bf   : > { %v7221_v61 = vpop.f32.mrf.mxu2 }
 0x4c0   : > { %v7537_v48 = vpop.f32.mrf.mxu3  ;;  %v8733_v36 = vadd.f32 %v13825_v4, %v8697_v1  ;;  %v7274_v38 = vadd.f32 %v7221_v61, %v13567_v57 }
 0x4c1   : > { %v8221_v11 = vpop.f32.mrf.mxu0 }
 0x4c2   : > { %v8765_v59 = vmax.f32 %v8733_v36, 0.0  ;;  %v7590_v7 = vadd.f32 %v7537_v48, %v7274_v38 }
 0x4c3   : > { %v8647_v55 = vpop.f32.mrf.mxu1 }
 0x4c4   : > { %v10954_v28 = vpack.c.bf16 %v8765_v59, %v8764_v50  ;;  %v8272_v2 = vadd.f32 %v8219_v22, %v7590_v7 }
 0x4c6   : > { %10998 = vst [vmem:[%s13856_s29 + $0x40] sm:$0xff] %v10954_v28   ;;  %v8698_v37 = vadd.f32 %v8645_v58, %v8272_v2 }
 0x4c7   : > { %v7223_v51 = vpop.f32.mrf.mxu2 }
 0x4c8   : > { %v7539_v8 = vpop.f32.mrf.mxu3  ;;  %v7275_v26 = vadd.f32 %v7223_v51, %v13583_v40  ;;  %v8734_v57 = vadd.f32 %v13825_v4, %v8698_v37 }
 0x4c9   : > { %v8224_v13 = vpop.f32.mrf.mxu0 }
 0x4ca   : > { %v7591_v23 = vadd.f32 %v7539_v8, %v7275_v26  ;;  %v8766_v35 = vmax.f32 %v8734_v57, 0.0 }
 0x4cb   : > { %v8650_v33 = vpop.f32.mrf.mxu1 }
 0x4cc   : > { %v8273_v39 = vadd.f32 %v8221_v11, %v7591_v23 }
 0x4ce   : > { %v8699_v46 = vadd.f32 %v8647_v55, %v8273_v39 }
 0x4cf   : > { %v7226_v45 = vpop.f32.mrf.mxu2 }
 0x4d0   : > { %v7542_v43 = vpop.f32.mrf.mxu3  ;;  %v8735_v25 = vadd.f32 %v13825_v4, %v8699_v46  ;;  %v7276_v6 = vadd.f32 %v7226_v45, %v13605_v17 }
 0x4d1   : > { %v8226_v21 = vpop.f32.mrf.mxu0 }
 0x4d2   : > { %v8767_v27 = vmax.f32 %v8735_v25, 0.0  ;;  %v7592_v53 = vadd.f32 %v7542_v43, %v7276_v6 }
 0x4d3   : > { %v8652_v40 = vpop.f32.mrf.mxu1 }
 0x4d4   : > { %v10959_v18 = vpack.c.bf16 %v8767_v27, %v8766_v35  ;;  %v8274_v9 = vadd.f32 %v8224_v13, %v7592_v53 }
 0x4d6   : > { %10999 = vst [vmem:[%s13856_s29 + $0x48] sm:$0xff] %v10959_v18   ;;  %v8700_v54 = vadd.f32 %v8650_v33, %v8274_v9 }
 0x4d7   : > { %v7228_v12 = vpop.f32.mrf.mxu2 }
 0x4d8   : > { %v7544_v31 = vpop.f32.mrf.mxu3  ;;  %v7277_v0 = vadd.f32 %v7228_v12, %v13623_v49  ;;  %v8736_v17 = vadd.f32 %v13825_v4, %v8700_v54 }
 0x4d9   : > { %v8229_v20 = vpop.f32.mrf.mxu0 }
 0x4da   : > { %v7593_v47 = vadd.f32 %v7544_v31, %v7277_v0  ;;  %v8768_v15 = vmax.f32 %v8736_v17, 0.0 }
 0x4db   : > { %v8655_v63 = vpop.f32.mrf.mxu1 }
 0x4dc   : > { %v8275_v32 = vadd.f32 %v8226_v21, %v7593_v47 }
 0x4de   : > { %v8701_v42 = vadd.f32 %v8652_v40, %v8275_v32 }
 0x4df   : > { %v7231_v10 = vpop.f32.mrf.mxu2 }
 0x4e0   : > { %v7547_v44 = vpop.f32.mrf.mxu3  ;;  %v8737_v14 = vadd.f32 %v13825_v4, %v8701_v42  ;;  %v7278_v29 = vadd.f32 %v7231_v10, %v13637_v56  ;;  %v14062_v56 = vld [vmem:[%s14100_s4] ss:$0 sm:$0xff] }
 0x4e1   : > { %v8231_v58 = vpop.f32.mrf.mxu0 }
 0x4e2   : > { %v8769_v3 = vmax.f32 %v8737_v14, 0.0  ;;  %v7594_v22 = vadd.f32 %v7547_v44, %v7278_v29 }
 0x4e3   : > { %v8657_v49 = vpop.f32.mrf.mxu1 }
 0x4e4   : > { %v10964_v52 = vpack.c.bf16 %v8769_v3, %v8768_v15  ;;  %v8276_v19 = vadd.f32 %v8229_v20, %v7594_v22 }
 0x4e6   : > { %11000 = vst [vmem:[%s13856_s29 + $0x50] sm:$0xff] %v10964_v52   ;;  %v8702_v36 = vadd.f32 %v8655_v63, %v8276_v19 }
 0x4e7   : > { %v7233_v1 = vpop.f32.mrf.mxu2 }
 0x4e8   : > { %v7549_v61 = vpop.f32.mrf.mxu3  ;;  %v7279_v48 = vadd.f32 %v7233_v1, %v13653_v34  ;;  %v8738_v7 = vadd.f32 %v14062_v56, %v8702_v36 }
 0x4e9   : > { %v8234_v50 = vpop.f32.mrf.mxu0 }
 0x4ea   : > { %v7595_v38 = vadd.f32 %v7549_v61, %v7279_v48  ;;  %v8770_v51 = vmax.f32 %v8738_v7, 0.0 }
 0x4eb   : > { %v8660_v59 = vpop.f32.mrf.mxu1 }
 0x4ec   : > { %v8277_v4 = vadd.f32 %v8231_v58, %v7595_v38  ;;  %v14143_v58 = vld [vmem:[#allocation6_spill] sm:$0xff] }
 0x4ee   : > { %v8703_v11 = vadd.f32 %v8657_v49, %v8277_v4 }
 0x4ef   : > { %v7236_v55 = vpop.f32.mrf.mxu2 }
 0x4f0   : > { %v7552_v28 = vpop.f32.mrf.mxu3  ;;  %v8739_v2 = vadd.f32 %v14062_v56, %v8703_v11  ;;  %v7280_v34 = vadd.f32 %v7236_v55, %v13675_v30 }
 0x4f1   : > { %v8236_v37 = vpop.f32.mrf.mxu0 }
 0x4f2   : > { %v8771_v8 = vmax.f32 %v8739_v2, 0.0  ;;  %v7596_v26 = vadd.f32 %v7552_v28, %v7280_v34 }
 0x4f3   : > { %v8662_v23 = vpop.f32.mrf.mxu1 }
 0x4f4   : > { %v10969_v13 = vpack.c.bf16 %v8771_v8, %v8770_v51  ;;  %v8278_v33 = vadd.f32 %v8234_v50, %v7596_v26 }
 0x4f6   : > { %11001 = vst [vmem:[%s13856_s29 + $0x58] sm:$0xff] %v10969_v13   ;;  %v8704_v45 = vadd.f32 %v8660_v59, %v8278_v33 }
 0x4f7   : > { %v7238_v39 = vpop.f32.mrf.mxu2 }
 0x4f8   : > { %v7554_v57 = vpop.f32.mrf.mxu3  ;;  %v7281_v46 = vadd.f32 %v7238_v39, %v13693_v24  ;;  %v8740_v30 = vadd.f32 %v14062_v56, %v8704_v45 }
 0x4f9   : > { %v8239_v25 = vpop.f32.mrf.mxu0 }
 0x4fa   : > { %v7597_v43 = vadd.f32 %v7554_v57, %v7281_v46  ;;  %v8772_v9 = vmax.f32 %v8740_v30, 0.0 }
 0x4fb   : > { %v8665_v6 = vpop.f32.mrf.mxu1 }
 0x4fc   : > { %v8279_v35 = vadd.f32 %v8236_v37, %v7597_v43 }
 0x4fe   : > { %v8705_v27 = vadd.f32 %v8662_v23, %v8279_v35 }
 0x4ff   : > { %v7241_v53 = vpop.f32.mrf.mxu2 }
 0x500   : > { %v7557_v21 = vpop.f32.mrf.mxu3  ;;  %v8741_v40 = vadd.f32 %v14062_v56, %v8705_v27  ;;  %v7282_v18 = vadd.f32 %v7241_v53, %v13707_v41 }
 0x501   : > { %v8241_v0 = vpop.f32.mrf.mxu0 }
 0x502   : > { %v8773_v12 = vmax.f32 %v8741_v40, 0.0  ;;  %v7598_v31 = vadd.f32 %v7557_v21, %v7282_v18 }
 0x503   : > { %v8667_v54 = vpop.f32.mrf.mxu1 }
 0x504   : > { %v10974_v24 = vpack.c.bf16 %v8773_v12, %v8772_v9  ;;  %v8280_v47 = vadd.f32 %v8239_v25, %v7598_v31 }
 0x506   : > { %11002 = vst [vmem:[%s13856_s29 + $0x60] sm:$0xff] %v10974_v24   ;;  %v8706_v17 = vadd.f32 %v8665_v6, %v8280_v47 }
 0x507   : > { %v7243_v20 = vpop.f32.mrf.mxu2 }
 0x508   : > { %v7559_v63 = vpop.f32.mrf.mxu3  ;;  %v7283_v32 = vadd.f32 %v7243_v20, %v13723_v60  ;;  %v8742_v14 = vadd.f32 %v14062_v56, %v8706_v17 }
 0x509   : > { %v8244_v44 = vpop.f32.mrf.mxu0 }
 0x50a   : > { %v7599_v42 = vadd.f32 %v7559_v63, %v7283_v32  ;;  %v8774_v52 = vmax.f32 %v8742_v14, 0.0 }
 0x50b   : > { %v8670_v29 = vpop.f32.mrf.mxu1 }
 0x50c   : > { %v8281_v10 = vadd.f32 %v8241_v0, %v7599_v42 }
 0x50e   : > { %v8707_v41 = vadd.f32 %v8667_v54, %v8281_v10 }
 0x50f   : > { %v7246_v15 = vpop.f32.mrf.mxu2 }
 0x510   : > { %v7562_v3 = vpop.f32.mrf.mxu3  ;;  %v8743_v22 = vadd.f32 %v14062_v56, %v8707_v41  ;;  %v7284_v49 = vadd.f32 %v7246_v15, %v14143_v58 }
 0x511   : > { %v8246_v48 = vpop.f32.mrf.mxu0 }
 0x512   : > { %v8775_v19 = vmax.f32 %v8743_v22, 0.0  ;;  %v7600_v1 = vadd.f32 %v7562_v3, %v7284_v49 }
 0x513   : > { %v8672_v59 = vpop.f32.mrf.mxu1 }
 0x514   : > { %v10979_v61 = vpack.c.bf16 %v8775_v19, %v8774_v52  ;;  %v8282_v60 = vadd.f32 %v8244_v44, %v7600_v1 }
 0x516   : > { %11003 = vst [vmem:[%s13856_s29 + $0x68] sm:$0xff] %v10979_v61   ;;  %v8708_v4 = vadd.f32 %v8670_v29, %v8282_v60 }
 0x517   : > { %v7248_v36 = vpop.f32.mrf.mxu2 }
 0x518   : > { %v7564_v38 = vpop.f32.mrf.mxu3  ;;  %v7285_v50 = vadd.f32 %v7248_v36, %v13763_v5  ;;  %v8744_v55 = vadd.f32 %v14062_v56, %v8708_v4 }
 0x519   : > { %v8249_v26 = vpop.f32.mrf.mxu0 }
 0x51a   : > { %v7601_v7 = vadd.f32 %v7564_v38, %v7285_v50  ;;  %v8776_v37 = vmax.f32 %v8744_v55, 0.0 }
 0x51b   : > { %v8675_v33 = vpop.f32.mrf.mxu1 }
 0x51c   : > { %v8283_v11 = vadd.f32 %v8246_v48, %v7601_v7 }
 0x51e   : > { %v8709_v28 = vadd.f32 %v8672_v59, %v8283_v11 }
 0x51f   : > { %v7251_v2 = vpop.f32.mrf.mxu2 }
 0x520   : > { %v7567_v34 = vpop.f32.mrf.mxu3  ;;  %v8745_v51 = vadd.f32 %v14062_v56, %v8709_v28  ;;  %v7286_v8 = vadd.f32 %v7251_v2, %v13777_v62 }
 0x521   : > { %v8251_v6 = vpop.f32.mrf.mxu0 }
 0x522   : > { %v8777_v23 = vmax.f32 %v8745_v51, 0.0  ;;  %v7602_v13 = vadd.f32 %v7567_v34, %v7286_v8 }
 0x523   : > { %v8677_v30 = vpop.f32.mrf.mxu1 }
 0x524   : > { %v10984_v5 = vpack.c.bf16 %v8777_v23, %v8776_v37  ;;  %v8284_v39 = vadd.f32 %v8249_v26, %v7602_v13 }
 0x526   : > { %11004 = vst [vmem:[%s13856_s29 + $0x70] sm:$0xff] %v10984_v5   ;;  %v8710_v43 = vadd.f32 %v8675_v33, %v8284_v39 }
 0x527   : > { %v7253_v57 = vpop.f32.mrf.mxu2 }
 0x528   : > { %v7287_v46 = vadd.f32 %v7253_v57, %v13795_v16  ;;  %v7569_v45 = vpop.f32.mrf.mxu3  ;;  %v8746_v62 = vadd.f32 %v14062_v56, %v8710_v43 }
 0x52a   : > { %v7603_v25 = vadd.f32 %v7569_v45, %v7287_v46  ;;  %v8778_v21 = vmax.f32 %v8746_v62, 0.0 }
 0x52c   : > { %v8285_v35 = vadd.f32 %v8251_v6, %v7603_v25 }
 0x52e   : > { %v8711_v27 = vadd.f32 %v8677_v30, %v8285_v35 }
 0x530   : > { %v8747_v53 = vadd.f32 %v14062_v56, %v8711_v27 }
 0x532   : > { %v8779_v40 = vmax.f32 %v8747_v53, 0.0 }
 0x534   : > { %v10989_v18 = vpack.c.bf16 %v8779_v40, %v8778_v21 }
 0x536   : > { %11005 = vst [vmem:[%s13856_s29 + $0x78] sm:$0xff] %v10989_v18  }
 0x537 PF: > { %s15_s20 = sadd.s32 1, %s11120_s20   ;;  %s14144_s18 = smov %s11116_s19 }
 0x538   : > { %p12_p5 = scmp.ge.s32.totalorder %s15_s20, 4   ;;  %s14145_s19 = smov %s14147_s21 }
 0x53a   :  { %14 = sbr.rel (!%p12_p5) target bundleno = 2 (0x2), region = 95 }

</bundles_post_ra>
